<compile_context>
chip_gen: v7x
topology: tpu7x:2x2x1
jax: 0.10.0
libtpu: 0.0.40
codegen_flags: <defaults>
</compile_context>

<pallas_src>
import jax
import jax.numpy as jnp
from jax.experimental import pallas as pl
from jax.experimental.pallas import tpu as pltpu


_PARAM_ORDER = (
    "wo1", "bo1", "wo2", "bo2",            # AEouter.encode : x -> h1 -> z1
    "wi1", "bi1", "whd", "bhd",            # AEinner.encode : z1 -> h2 -> (mu | logvar), fused head
    "wi3", "bi3", "wi4", "bi4",            # AEinner.decode : z2 -> h2 -> z1_hat
    "wo3", "bo3", "wo4", "bo4",            # AEouter.decode : z1_hat -> h1 -> x_hat
)


def _round_up(n, m):
    return ((n + m - 1) // m) * m


def _linear(h, w, b, *, relu):
    """torch.nn.Linear (+ optional ReLU): bf16 operands, f32 MXU accumulation."""
    y = jnp.dot(h.astype(w.dtype), w, preferred_element_type=jnp.float32) + b
    if relu:
        y = jnp.maximum(y, 0.0)
    return y


def _make_kernel(z2_dim, zp):
    n_p = len(_PARAM_ORDER)

    def kernel(x_ref, eps_ref, *refs):
        p = dict(zip(_PARAM_ORDER, refs[:n_p]))
        xhat_ref, z2_ref, qm_ref, qlv_ref, eps_scr = refs[n_p:]

        # Widen eps (tb, z2_dim) -> (tb, zp) with zero padding via VMEM scratch.
        # Zero every step (cheap) so padded lanes are exact zeros on every core.
        eps_scr[...] = jnp.zeros_like(eps_scr)
        eps_scr[:, :z2_dim] = eps_ref[...]
        eps = eps_scr[...]                              # f32, zero beyond z2_dim

        x = x_ref[...].astype(jnp.bfloat16)             # in-kernel cast, no wrapper pass

        # ---- AEouter.encode ----
        h = _linear(x, p["wo1"][...], p["bo1"][...], relu=True)
        z1 = _linear(h, p["wo2"][...], p["bo2"][...], relu=False)

        # ---- AEinner.encode: fused (mean | logvar) head, lane-aligned split ----
        h = _linear(z1, p["wi1"][...], p["bi1"][...], relu=True)
        head = _linear(h, p["whd"][...], p["bhd"][...], relu=False)   # (tb, 2*zp)
        q_m = head[:, :zp]
        q_logv = head[:, zp:]

        # ---- reparameterized sample: z2 = q_m + exp(0.5*q_logv) * eps ----
        # padded lanes: 0 + exp(0)*0 == 0, so the zero rows of wi3 stay inert.
        z2 = q_m + jnp.exp(0.5 * q_logv) * eps

        # ---- AEinner.decode ----
        h = _linear(z2, p["wi3"][...], p["bi3"][...], relu=True)
        z1_hat = _linear(h, p["wi4"][...], p["bi4"][...], relu=False)

        # ---- AEouter.decode ----
        h = _linear(z1_hat, p["wo3"][...], p["bo3"][...], relu=True)
        x_hat = _linear(h, p["wo4"][...], p["bo4"][...], relu=False)

        xhat_ref[...] = x_hat.astype(xhat_ref.dtype)
        # Narrow (full-last-dim) outputs: only the useful z2_dim lanes hit HBM.
        z2_ref[...] = z2[:, :z2_dim]
        qm_ref[...] = q_m[:, :z2_dim]
        qlv_ref[...] = q_logv[:, :z2_dim]

    return kernel


def _prep_params(params, lane_pad=128):
    """Fuse the inner-encoder head into one lane-padded (mean|logvar) weight,
    lane-pad the z2 path, cast weights to bf16 (biases stay f32)."""
    # NOTE: on v6e/v7x, sizing model dims / lane_pad as multiples of 256 fills
    # the 2x256 MXU better; 128 is matched to v5e.
    z2_dim = params["wi3"].shape[0]
    zp = _round_up(max(z2_dim, lane_pad), lane_pad)
    pad = zp - z2_dim

    # z2.view(-1, 2, z2_dim): columns [0:z2_dim] = mean, [z2_dim:] = logvar.
    wmu, wlv = params["wi2"][:, :z2_dim], params["wi2"][:, z2_dim:]
    bmu, blv = params["bi2"][:, :z2_dim], params["bi2"][:, z2_dim:]
    whd = jnp.concatenate([jnp.pad(wmu, ((0, 0), (0, pad))),
                           jnp.pad(wlv, ((0, 0), (0, pad)))], axis=1)   # (h2, 2*zp)
    bhd = jnp.concatenate([jnp.pad(bmu, ((0, 0), (0, pad))),
                           jnp.pad(blv, ((0, 0), (0, pad)))], axis=1)   # (1, 2*zp)
    wi3 = jnp.pad(params["wi3"], ((0, pad), (0, 0)))   # zero rows for padded z2 lanes

    def w(a):
        return a.astype(jnp.bfloat16)

    def b(a):
        return a.astype(jnp.float32)

    prepped = dict(
        wo1=w(params["wo1"]), bo1=b(params["bo1"]),
        wo2=w(params["wo2"]), bo2=b(params["bo2"]),
        wi1=w(params["wi1"]), bi1=b(params["bi1"]),
        whd=w(whd), bhd=b(bhd),
        wi3=w(wi3), bi3=b(params["bi3"]),
        wi4=w(params["wi4"]), bi4=b(params["bi4"]),
        wo3=w(params["wo3"]), bo3=b(params["bo3"]),
        wo4=w(params["wo4"]), bo4=b(params["bo4"]),
    )
    return prepped, z2_dim, zp


def stacked_ae_forward(x, eps, params, *, block_batch=2048, lane_pad=128,
                       xhat_dtype=jnp.float32):
    """Pallas implementation of StackedAE.forward.

    Args:
      x:    (batch, x_dim) f32 input.
      eps:  (batch, z2_dim) standard-normal noise for the reparameterized sample.
      params: dict of torch-style (in_dim, out_dim) weights / (1, out_dim) biases.
      xhat_dtype: set to jnp.bfloat16 to halve x_hat HBM writeback if downstream
        consumers tolerate it.

    Returns (x_hat, z2_given_x, q_m, q_logv), like the PyTorch module.
    """
    batch, x_dim = x.shape
    prepped, z2_dim, zp = _prep_params(params, lane_pad)
    assert eps.shape == (batch, z2_dim)

    # ---- generation-aware VMEM budget (~20% headroom for compiler internals) ----
    try:
        vmem_phys = int(pltpu.get_tpu_info().vmem_capacity_bytes)
    except Exception:
        vmem_phys = 64 * 1024 * 1024            # conservative (v7x per-TC VMEM)
    vmem_cap = int(vmem_phys * 0.8)             # ~51 MiB on v7x, ~102 MiB on v5e/v6e

    weight_bytes = sum(int(a.size) * a.dtype.itemsize for a in prepped.values())
    max_w = max(x_dim, 2 * zp,
                params["wo1"].shape[1], params["wo2"].shape[1],
                params["wi1"].shape[1], params["wi4"].shape[1],
                params["wo3"].shape[1])

    def vmem_need(tb):
        io = 2 * tb * 4 * (x_dim + z2_dim)        # double-buffered f32 input tiles
        out = 2 * tb * 4 * (x_dim + 3 * z2_dim)   # double-buffered output tiles
        scr = tb * zp * 4                         # eps widening scratch
        interm = 6 * tb * max_w * 4               # live f32 chained intermediates
        return 2 * weight_bytes + io + out + scr + interm + (2 << 20)

    # ---- batch tile: big (grid is serial on 1-TC chips) but always >= 2 steps
    # when batch allows, so v7x's two TensorCores both get work; shrink if the
    # VMEM estimate would blow the per-core budget. ----
    tb = min(block_batch, max(8, _round_up(pl.cdiv(batch, 2), 8)))
    while tb > 8 and vmem_need(tb) > vmem_cap:
        tb = max(8, ((tb // 2) // 8) * 8)
    grid = (pl.cdiv(batch, tb),)

    vmem_limit = int(min(vmem_cap, max(vmem_need(tb), 32 << 20)))

    def tiled(width):
        return pl.BlockSpec((tb, width), lambda i: (i, 0))

    def resident(arr, single_buffer):
        if single_buffer:
            # constant index_map -> never re-fetched; one buffer is enough.
            return pl.BlockSpec(arr.shape, lambda i: (0, 0),
                                pipeline_mode=pl.Buffered(1))
        return pl.BlockSpec(arr.shape, lambda i: (0, 0))

    out_specs = (tiled(x_dim), tiled(z2_dim), tiled(z2_dim), tiled(z2_dim))
    out_shape = (
        jax.ShapeDtypeStruct((batch, x_dim), xhat_dtype),
        jax.ShapeDtypeStruct((batch, z2_dim), jnp.float32),
        jax.ShapeDtypeStruct((batch, z2_dim), jnp.float32),
        jax.ShapeDtypeStruct((batch, z2_dim), jnp.float32),
    )
    kernel = _make_kernel(z2_dim, zp)
    args = (x, eps) + tuple(prepped[k] for k in _PARAM_ORDER)

    def build(single_buffer_weights):
        in_specs = [tiled(x_dim), tiled(z2_dim)] + [
            resident(prepped[k], single_buffer_weights) for k in _PARAM_ORDER]
        return pl.pallas_call(
            kernel,
            grid=grid,
            in_specs=in_specs,
            out_specs=out_specs,
            out_shape=out_shape,
            scratch_shapes=[pltpu.VMEM((tb, zp), jnp.float32)],
            compiler_params=pltpu.CompilerParams(
                dimension_semantics=("parallel",),
                vmem_limit_bytes=vmem_limit,
            ),
        )

    try:
        return build(True)(*args)
    except Exception:
        # Fall back to default double-buffered weights if Buffered(1) is not
        # supported by this JAX/Mosaic version.
        return build(False)(*args)


def init_params(key, x_dim, h1, z1_dim, h2, z2_dim):
    """Deterministic torch.nn.Linear-style parameters for both AEs."""
    ks = jax.random.split(key, 16)

    def lin(kw, kb, fan_in, fan_out):
        s = 1.0 / jnp.sqrt(fan_in)
        w = jax.random.uniform(kw, (fan_in, fan_out), jnp.float32, -s, s)
        b = jax.random.uniform(kb, (1, fan_out), jnp.float32, -s, s)
        return w, b

    wo1, bo1 = lin(ks[0], ks[1], x_dim, h1)          # AEouter.encode layer 1
    wo2, bo2 = lin(ks[2], ks[3], h1, z1_dim)         # AEouter.encode layer 2
    wi1, bi1 = lin(ks[4], ks[5], z1_dim, h2)         # AEinner.encode layer 1
    wi2, bi2 = lin(ks[6], ks[7], h2, 2 * z2_dim)     # AEinner.encode head (mean | logvar)
    wi3, bi3 = lin(ks[8], ks[9], z2_dim, h2)         # AEinner.decode layer 1
    wi4, bi4 = lin(ks[10], ks[11], h2, z1_dim)       # AEinner.decode layer 2
    wo3, bo3 = lin(ks[12], ks[13], z1_dim, h1)       # AEouter.decode layer 1
    wo4, bo4 = lin(ks[14], ks[15], h1, x_dim)        # AEouter.decode layer 2
    return dict(wo1=wo1, bo1=bo1, wo2=wo2, bo2=bo2,
                wi1=wi1, bi1=bi1, wi2=wi2, bi2=bi2,
                wi3=wi3, bi3=bi3, wi4=wi4, bi4=bi4,
                wo3=wo3, bo3=bo3, wo4=wo4, bo4=bo4)


def stacked_ae_forward_ref(x, eps, params):
    """Plain-JAX (XLA) reference with the same bf16-weight / f32-accumulate math."""
    bf16 = jnp.bfloat16

    def lin(h, w, b, relu=False):
        y = jnp.dot(h.astype(bf16), w.astype(bf16),
                    preferred_element_type=jnp.float32) + b
        return jnp.maximum(y, 0.0) if relu else y

    z2_dim = params["wi3"].shape[0]
    h = lin(x, params["wo1"], params["bo1"], relu=True)
    z1 = lin(h, params["wo2"], params["bo2"])
    h = lin(z1, params["wi1"], params["bi1"], relu=True)
    z2_enc = lin(h, params["wi2"], params["bi2"])                # (B, 2*z2_dim)
    q_m, q_logv = z2_enc[:, :z2_dim], z2_enc[:, z2_dim:]         # view(-1,2,z_dim) split
    z2 = q_m + jnp.exp(0.5 * q_logv) * eps
    h = lin(z2, params["wi3"], params["bi3"], relu=True)
    z1_hat = lin(h, params["wi4"], params["bi4"])
    h = lin(z1_hat, params["wo3"], params["bo3"], relu=True)
    x_hat = lin(h, params["wo4"], params["bo4"])
    return x_hat, z2, q_m, q_logv


if __name__ == "__main__":
    key = jax.random.PRNGKey(0)
    k_x, k_eps, k_p = jax.random.split(key, 3)

    # TPU-friendly demo shapes: feature dims multiples of 128; batch=512 splits
    # into two 256-row grid steps (both v7x TensorCores get work).
    batch, x_dim, h1, z1_dim, h2, z2_dim = 512, 128, 128, 128, 128, 8

    x = jax.random.normal(k_x, (batch, x_dim), jnp.float32)
    eps = jax.random.normal(k_eps, (batch, z2_dim), jnp.float32)
    params = init_params(k_p, x_dim, h1, z1_dim, h2, z2_dim)

    outs = stacked_ae_forward(x, eps, params)
    jax.block_until_ready(outs)
    x_hat, z2, q_m, q_logv = outs

    assert x_hat.shape == (batch, x_dim)
    assert z2.shape == (batch, z2_dim)
    assert q_m.shape == (batch, z2_dim) and q_logv.shape == (batch, z2_dim)

    r_xhat, r_z2, r_qm, r_qlv = stacked_ae_forward_ref(x, eps, params)
    for got, ref in ((x_hat, r_xhat), (z2, r_z2), (q_m, r_qm), (q_logv, r_qlv)):
        assert jnp.allclose(got, ref, atol=5e-3, rtol=5e-3), \
            float(jnp.max(jnp.abs(got - ref)))

    print("KERNEL_OK")
</pallas_src>

<mosaic_0001>
module attributes {stable_mosaic.version = 11 : i64} {
  func.func @kernel(%arg0: i32, %arg1: memref<256x128xf32, #tpu.memory_space<vmem>>, %arg2: memref<256x8xf32, #tpu.memory_space<vmem>>, %arg3: memref<128x128xbf16, #tpu.memory_space<vmem>>, %arg4: memref<1x128xf32, #tpu.memory_space<vmem>>, %arg5: memref<128x128xbf16, #tpu.memory_space<vmem>>, %arg6: memref<1x128xf32, #tpu.memory_space<vmem>>, %arg7: memref<128x128xbf16, #tpu.memory_space<vmem>>, %arg8: memref<1x128xf32, #tpu.memory_space<vmem>>, %arg9: memref<128x256xbf16, #tpu.memory_space<vmem>>, %arg10: memref<1x256xf32, #tpu.memory_space<vmem>>, %arg11: memref<128x128xbf16, #tpu.memory_space<vmem>>, %arg12: memref<1x128xf32, #tpu.memory_space<vmem>>, %arg13: memref<128x128xbf16, #tpu.memory_space<vmem>>, %arg14: memref<1x128xf32, #tpu.memory_space<vmem>>, %arg15: memref<128x128xbf16, #tpu.memory_space<vmem>>, %arg16: memref<1x128xf32, #tpu.memory_space<vmem>>, %arg17: memref<128x128xbf16, #tpu.memory_space<vmem>>, %arg18: memref<1x128xf32, #tpu.memory_space<vmem>>, %arg19: memref<256x128xf32, #tpu.memory_space<vmem>>, %arg20: memref<256x8xf32, #tpu.memory_space<vmem>>, %arg21: memref<256x8xf32, #tpu.memory_space<vmem>>, %arg22: memref<256x8xf32, #tpu.memory_space<vmem>>, %arg23: memref<256x128xf32, #tpu.memory_space<vmem>>) attributes {dimension_semantics = [#tpu.dimension_semantics<parallel>], iteration_bounds = array<i64: 2>, scalar_prefetch = 0 : i64, scratch_operands = 1 : i64, tpu.core_type = #tpu.core_type<tc>, window_params = [{transform_indices = @transform_0, window_bounds = array<i64: 256, 128>}, {transform_indices = @transform_1, window_bounds = array<i64: 256, 8>}, {pipeline_mode = #tpu.pipeline_mode<synchronous>, transform_indices = @transform_2, window_bounds = array<i64: 128, 128>}, {pipeline_mode = #tpu.pipeline_mode<synchronous>, transform_indices = @transform_3, window_bounds = array<i64: 1, 128>}, {pipeline_mode = #tpu.pipeline_mode<synchronous>, transform_indices = @transform_4, window_bounds = array<i64: 128, 128>}, {pipeline_mode = #tpu.pipeline_mode<synchronous>, transform_indices = @transform_5, window_bounds = array<i64: 1, 128>}, {pipeline_mode = #tpu.pipeline_mode<synchronous>, transform_indices = @transform_6, window_bounds = array<i64: 128, 128>}, {pipeline_mode = #tpu.pipeline_mode<synchronous>, transform_indices = @transform_7, window_bounds = array<i64: 1, 128>}, {pipeline_mode = #tpu.pipeline_mode<synchronous>, transform_indices = @transform_8, window_bounds = array<i64: 128, 256>}, {pipeline_mode = #tpu.pipeline_mode<synchronous>, transform_indices = @transform_9, window_bounds = array<i64: 1, 256>}, {pipeline_mode = #tpu.pipeline_mode<synchronous>, transform_indices = @transform_10, window_bounds = array<i64: 128, 128>}, {pipeline_mode = #tpu.pipeline_mode<synchronous>, transform_indices = @transform_11, window_bounds = array<i64: 1, 128>}, {pipeline_mode = #tpu.pipeline_mode<synchronous>, transform_indices = @transform_12, window_bounds = array<i64: 128, 128>}, {pipeline_mode = #tpu.pipeline_mode<synchronous>, transform_indices = @transform_13, window_bounds = array<i64: 1, 128>}, {pipeline_mode = #tpu.pipeline_mode<synchronous>, transform_indices = @transform_14, window_bounds = array<i64: 128, 128>}, {pipeline_mode = #tpu.pipeline_mode<synchronous>, transform_indices = @transform_15, window_bounds = array<i64: 1, 128>}, {pipeline_mode = #tpu.pipeline_mode<synchronous>, transform_indices = @transform_16, window_bounds = array<i64: 128, 128>}, {pipeline_mode = #tpu.pipeline_mode<synchronous>, transform_indices = @transform_17, window_bounds = array<i64: 1, 128>}, {transform_indices = @transform_18, window_bounds = array<i64: 256, 128>}, {transform_indices = @transform_19, window_bounds = array<i64: 256, 8>}, {transform_indices = @transform_20, window_bounds = array<i64: 256, 8>}, {transform_indices = @transform_21, window_bounds = array<i64: 256, 8>}]} {
    %cst = arith.constant 0.000000e+00 : f32
    %0 = vector.broadcast %cst : f32 to vector<256x128xf32>
    %c0 = arith.constant 0 : index
    %c0_0 = arith.constant 0 : index
    %1 = vector.load %arg23[%c0, %c0_0] : memref<256x128xf32, #tpu.memory_space<vmem>>, vector<256x128xf32>
    tpu.vector_store %arg23[%c0, %c0_0], %0 {strides = array<i32>} : memref<256x128xf32, #tpu.memory_space<vmem>>, vector<256x128xf32>,
    %c0_1 = arith.constant 0 : index
    %c0_2 = arith.constant 0 : index
    %2 = vector.load %arg2[%c0_1, %c0_2] : memref<256x8xf32, #tpu.memory_space<vmem>>, vector<256x8xf32>
    %c0_3 = arith.constant 0 : index
    %c0_4 = arith.constant 0 : index
    %3 = vector.load %arg23[%c0_3, %c0_4] : memref<256x128xf32, #tpu.memory_space<vmem>>, vector<256x8xf32>
    tpu.vector_store %arg23[%c0_3, %c0_4], %2 {strides = array<i32>} : memref<256x128xf32, #tpu.memory_space<vmem>>, vector<256x8xf32>,
    %c0_5 = arith.constant 0 : index
    %c0_6 = arith.constant 0 : index
    %4 = vector.load %arg23[%c0_5, %c0_6] : memref<256x128xf32, #tpu.memory_space<vmem>>, vector<256x128xf32>
    %c0_7 = arith.constant 0 : index
    %c0_8 = arith.constant 0 : index
    %5 = vector.load %arg1[%c0_7, %c0_8] : memref<256x128xf32, #tpu.memory_space<vmem>>, vector<256x128xf32>
    %6 = arith.truncf %5 : vector<256x128xf32> to vector<256x128xbf16>
    %c0_9 = arith.constant 0 : index
    %c0_10 = arith.constant 0 : index
    %7 = vector.load %arg3[%c0_9, %c0_10] : memref<128x128xbf16, #tpu.memory_space<vmem>>, vector<128x128xbf16>
    %c0_11 = arith.constant 0 : index
    %c0_12 = arith.constant 0 : index
    %8 = vector.load %arg4[%c0_11, %c0_12] : memref<1x128xf32, #tpu.memory_space<vmem>>, vector<1x128xf32>
    %cst_13 = arith.constant dense<0.000000e+00> : vector<256x128xf32>
    %9 = tpu.matmul %6, %7, %cst_13 {dimension_numbers = #tpu.dot_dimension_numbers<[1], [0], [0], [1], [0, 0, 1, 1], [], []>} : vector<256x128xbf16>, vector<128x128xbf16>, vector<256x128xf32> -> vector<256x128xf32>
    %10 = vector.broadcast %8 : vector<1x128xf32> to vector<256x128xf32>
    %11 = arith.addf %9, %10 : vector<256x128xf32>
    %cst_14 = arith.constant 0.000000e+00 : f32
    %12 = vector.broadcast %cst_14 : f32 to vector<256x128xf32>
    %13 = arith.maximumf %11, %12 : vector<256x128xf32>
    %c0_15 = arith.constant 0 : index
    %c0_16 = arith.constant 0 : index
    %14 = vector.load %arg5[%c0_15, %c0_16] : memref<128x128xbf16, #tpu.memory_space<vmem>>, vector<128x128xbf16>
    %c0_17 = arith.constant 0 : index
    %c0_18 = arith.constant 0 : index
    %15 = vector.load %arg6[%c0_17, %c0_18] : memref<1x128xf32, #tpu.memory_space<vmem>>, vector<1x128xf32>
    %16 = arith.truncf %13 : vector<256x128xf32> to vector<256x128xbf16>
    %cst_19 = arith.constant dense<0.000000e+00> : vector<256x128xf32>
    %17 = tpu.matmul %16, %14, %cst_19 {dimension_numbers = #tpu.dot_dimension_numbers<[1], [0], [0], [1], [0, 0, 1, 1], [], []>} : vector<256x128xbf16>, vector<128x128xbf16>, vector<256x128xf32> -> vector<256x128xf32>
    %18 = vector.broadcast %15 : vector<1x128xf32> to vector<256x128xf32>
    %19 = arith.addf %17, %18 : vector<256x128xf32>
    %c0_20 = arith.constant 0 : index
    %c0_21 = arith.constant 0 : index
    %20 = vector.load %arg7[%c0_20, %c0_21] : memref<128x128xbf16, #tpu.memory_space<vmem>>, vector<128x128xbf16>
    %c0_22 = arith.constant 0 : index
    %c0_23 = arith.constant 0 : index
    %21 = vector.load %arg8[%c0_22, %c0_23] : memref<1x128xf32, #tpu.memory_space<vmem>>, vector<1x128xf32>
    %22 = arith.truncf %19 : vector<256x128xf32> to vector<256x128xbf16>
    %cst_24 = arith.constant dense<0.000000e+00> : vector<256x128xf32>
    %23 = tpu.matmul %22, %20, %cst_24 {dimension_numbers = #tpu.dot_dimension_numbers<[1], [0], [0], [1], [0, 0, 1, 1], [], []>} : vector<256x128xbf16>, vector<128x128xbf16>, vector<256x128xf32> -> vector<256x128xf32>
    %24 = vector.broadcast %21 : vector<1x128xf32> to vector<256x128xf32>
    %25 = arith.addf %23, %24 : vector<256x128xf32>
    %cst_25 = arith.constant 0.000000e+00 : f32
    %26 = vector.broadcast %cst_25 : f32 to vector<256x128xf32>
    %27 = arith.maximumf %25, %26 : vector<256x128xf32>
    %c0_26 = arith.constant 0 : index
    %c0_27 = arith.constant 0 : index
    %28 = vector.load %arg9[%c0_26, %c0_27] : memref<128x256xbf16, #tpu.memory_space<vmem>>, vector<128x256xbf16>
    %c0_28 = arith.constant 0 : index
    %c0_29 = arith.constant 0 : index
    %29 = vector.load %arg10[%c0_28, %c0_29] : memref<1x256xf32, #tpu.memory_space<vmem>>, vector<1x256xf32>
    %30 = arith.truncf %27 : vector<256x128xf32> to vector<256x128xbf16>
    %cst_30 = arith.constant dense<0.000000e+00> : vector<256x256xf32>
    %31 = tpu.matmul %30, %28, %cst_30 {dimension_numbers = #tpu.dot_dimension_numbers<[1], [0], [0], [1], [0, 0, 1, 1], [], []>} : vector<256x128xbf16>, vector<128x256xbf16>, vector<256x256xf32> -> vector<256x256xf32>
    %32 = vector.broadcast %29 : vector<1x256xf32> to vector<256x256xf32>
    %33 = arith.addf %31, %32 : vector<256x256xf32>
    %34 = vector.extract_strided_slice %33 {offsets = [0, 0], sizes = [256, 128], strides = [1, 1]} : vector<256x256xf32> to vector<256x128xf32>
    %35 = vector.extract_strided_slice %33 {offsets = [0, 128], sizes = [256, 128], strides = [1, 1]} : vector<256x256xf32> to vector<256x128xf32>
    %cst_31 = arith.constant 5.000000e-01 : f32
    %36 = vector.broadcast %cst_31 : f32 to vector<256x128xf32>
    %37 = arith.mulf %36, %35 : vector<256x128xf32>
    %38 = math.exp %37 : vector<256x128xf32>
    %39 = arith.mulf %38, %4 : vector<256x128xf32>
    %40 = arith.addf %34, %39 : vector<256x128xf32>
    %c0_32 = arith.constant 0 : index
    %c0_33 = arith.constant 0 : index
    %41 = vector.load %arg11[%c0_32, %c0_33] : memref<128x128xbf16, #tpu.memory_space<vmem>>, vector<128x128xbf16>
    %c0_34 = arith.constant 0 : index
    %c0_35 = arith.constant 0 : index
    %42 = vector.load %arg12[%c0_34, %c0_35] : memref<1x128xf32, #tpu.memory_space<vmem>>, vector<1x128xf32>
    %43 = arith.truncf %40 : vector<256x128xf32> to vector<256x128xbf16>
    %cst_36 = arith.constant dense<0.000000e+00> : vector<256x128xf32>
    %44 = tpu.matmul %43, %41, %cst_36 {dimension_numbers = #tpu.dot_dimension_numbers<[1], [0], [0], [1], [0, 0, 1, 1], [], []>} : vector<256x128xbf16>, vector<128x128xbf16>, vector<256x128xf32> -> vector<256x128xf32>
    %45 = vector.broadcast %42 : vector<1x128xf32> to vector<256x128xf32>
    %46 = arith.addf %44, %45 : vector<256x128xf32>
    %cst_37 = arith.constant 0.000000e+00 : f32
    %47 = vector.broadcast %cst_37 : f32 to vector<256x128xf32>
    %48 = arith.maximumf %46, %47 : vector<256x128xf32>
    %c0_38 = arith.constant 0 : index
    %c0_39 = arith.constant 0 : index
    %49 = vector.load %arg13[%c0_38, %c0_39] : memref<128x128xbf16, #tpu.memory_space<vmem>>, vector<128x128xbf16>
    %c0_40 = arith.constant 0 : index
    %c0_41 = arith.constant 0 : index
    %50 = vector.load %arg14[%c0_40, %c0_41] : memref<1x128xf32, #tpu.memory_space<vmem>>, vector<1x128xf32>
    %51 = arith.truncf %48 : vector<256x128xf32> to vector<256x128xbf16>
    %cst_42 = arith.constant dense<0.000000e+00> : vector<256x128xf32>
    %52 = tpu.matmul %51, %49, %cst_42 {dimension_numbers = #tpu.dot_dimension_numbers<[1], [0], [0], [1], [0, 0, 1, 1], [], []>} : vector<256x128xbf16>, vector<128x128xbf16>, vector<256x128xf32> -> vector<256x128xf32>
    %53 = vector.broadcast %50 : vector<1x128xf32> to vector<256x128xf32>
    %54 = arith.addf %52, %53 : vector<256x128xf32>
    %c0_43 = arith.constant 0 : index
    %c0_44 = arith.constant 0 : index
    %55 = vector.load %arg15[%c0_43, %c0_44] : memref<128x128xbf16, #tpu.memory_space<vmem>>, vector<128x128xbf16>
    %c0_45 = arith.constant 0 : index
    %c0_46 = arith.constant 0 : index
    %56 = vector.load %arg16[%c0_45, %c0_46] : memref<1x128xf32, #tpu.memory_space<vmem>>, vector<1x128xf32>
    %57 = arith.truncf %54 : vector<256x128xf32> to vector<256x128xbf16>
    %cst_47 = arith.constant dense<0.000000e+00> : vector<256x128xf32>
    %58 = tpu.matmul %57, %55, %cst_47 {dimension_numbers = #tpu.dot_dimension_numbers<[1], [0], [0], [1], [0, 0, 1, 1], [], []>} : vector<256x128xbf16>, vector<128x128xbf16>, vector<256x128xf32> -> vector<256x128xf32>
    %59 = vector.broadcast %56 : vector<1x128xf32> to vector<256x128xf32>
    %60 = arith.addf %58, %59 : vector<256x128xf32>
    %cst_48 = arith.constant 0.000000e+00 : f32
    %61 = vector.broadcast %cst_48 : f32 to vector<256x128xf32>
    %62 = arith.maximumf %60, %61 : vector<256x128xf32>
    %c0_49 = arith.constant 0 : index
    %c0_50 = arith.constant 0 : index
    %63 = vector.load %arg17[%c0_49, %c0_50] : memref<128x128xbf16, #tpu.memory_space<vmem>>, vector<128x128xbf16>
    %c0_51 = arith.constant 0 : index
    %c0_52 = arith.constant 0 : index
    %64 = vector.load %arg18[%c0_51, %c0_52] : memref<1x128xf32, #tpu.memory_space<vmem>>, vector<1x128xf32>
    %65 = arith.truncf %62 : vector<256x128xf32> to vector<256x128xbf16>
    %cst_53 = arith.constant dense<0.000000e+00> : vector<256x128xf32>
    %66 = tpu.matmul %65, %63, %cst_53 {dimension_numbers = #tpu.dot_dimension_numbers<[1], [0], [0], [1], [0, 0, 1, 1], [], []>} : vector<256x128xbf16>, vector<128x128xbf16>, vector<256x128xf32> -> vector<256x128xf32>
    %67 = vector.broadcast %64 : vector<1x128xf32> to vector<256x128xf32>
    %68 = arith.addf %66, %67 : vector<256x128xf32>
    %c0_54 = arith.constant 0 : index
    %c0_55 = arith.constant 0 : index
    %69 = vector.load %arg19[%c0_54, %c0_55] : memref<256x128xf32, #tpu.memory_space<vmem>>, vector<256x128xf32>
    tpu.vector_store %arg19[%c0_54, %c0_55], %68 {strides = array<i32>} : memref<256x128xf32, #tpu.memory_space<vmem>>, vector<256x128xf32>,
    %70 = vector.extract_strided_slice %40 {offsets = [0, 0], sizes = [256, 8], strides = [1, 1]} : vector<256x128xf32> to vector<256x8xf32>
    %c0_56 = arith.constant 0 : index
    %c0_57 = arith.constant 0 : index
    %71 = vector.load %arg20[%c0_56, %c0_57] : memref<256x8xf32, #tpu.memory_space<vmem>>, vector<256x8xf32>
    tpu.vector_store %arg20[%c0_56, %c0_57], %70 {strides = array<i32>} : memref<256x8xf32, #tpu.memory_space<vmem>>, vector<256x8xf32>,
    %72 = vector.extract_strided_slice %34 {offsets = [0, 0], sizes = [256, 8], strides = [1, 1]} : vector<256x128xf32> to vector<256x8xf32>
    %c0_58 = arith.constant 0 : index
    %c0_59 = arith.constant 0 : index
    %73 = vector.load %arg21[%c0_58, %c0_59] : memref<256x8xf32, #tpu.memory_space<vmem>>, vector<256x8xf32>
    tpu.vector_store %arg21[%c0_58, %c0_59], %72 {strides = array<i32>} : memref<256x8xf32, #tpu.memory_space<vmem>>, vector<256x8xf32>,
    %74 = vector.extract_strided_slice %35 {offsets = [0, 0], sizes = [256, 8], strides = [1, 1]} : vector<256x128xf32> to vector<256x8xf32>
    %c0_60 = arith.constant 0 : index
    %c0_61 = arith.constant 0 : index
    %75 = vector.load %arg22[%c0_60, %c0_61] : memref<256x8xf32, #tpu.memory_space<vmem>>, vector<256x8xf32>
    tpu.vector_store %arg22[%c0_60, %c0_61], %74 {strides = array<i32>} : memref<256x8xf32, #tpu.memory_space<vmem>>, vector<256x8xf32>,
    return
  }
  func.func @transform_0(%arg0: i32) -> (i32, i32) {
    %c0_i32 = arith.constant 0 : i32
    %c0_i32_0 = arith.constant 0 : i32
    return %arg0, %c0_i32 : i32, i32
  }
  func.func @transform_1(%arg0: i32) -> (i32, i32) {
    %c0_i32 = arith.constant 0 : i32
    %c0_i32_0 = arith.constant 0 : i32
    return %arg0, %c0_i32 : i32, i32
  }
  func.func @transform_2(%arg0: i32) -> (i32, i32) {
    %c0_i32 = arith.constant 0 : i32
    %c0_i32_0 = arith.constant 0 : i32
    %c0_i32_1 = arith.constant 0 : i32
    return %c0_i32, %c0_i32_0 : i32, i32
  }
  func.func @transform_3(%arg0: i32) -> (i32, i32) {
    %c0_i32 = arith.constant 0 : i32
    %c0_i32_0 = arith.constant 0 : i32
    %c0_i32_1 = arith.constant 0 : i32
    return %c0_i32, %c0_i32_0 : i32, i32
  }
  func.func @transform_4(%arg0: i32) -> (i32, i32) {
    %c0_i32 = arith.constant 0 : i32
    %c0_i32_0 = arith.constant 0 : i32
    %c0_i32_1 = arith.constant 0 : i32
    return %c0_i32, %c0_i32_0 : i32, i32
  }
  func.func @transform_5(%arg0: i32) -> (i32, i32) {
    %c0_i32 = arith.constant 0 : i32
    %c0_i32_0 = arith.constant 0 : i32
    %c0_i32_1 = arith.constant 0 : i32
    return %c0_i32, %c0_i32_0 : i32, i32
  }
  func.func @transform_6(%arg0: i32) -> (i32, i32) {
    %c0_i32 = arith.constant 0 : i32
    %c0_i32_0 = arith.constant 0 : i32
    %c0_i32_1 = arith.constant 0 : i32
    return %c0_i32, %c0_i32_0 : i32, i32
  }
  func.func @transform_7(%arg0: i32) -> (i32, i32) {
    %c0_i32 = arith.constant 0 : i32
    %c0_i32_0 = arith.constant 0 : i32
    %c0_i32_1 = arith.constant 0 : i32
    return %c0_i32, %c0_i32_0 : i32, i32
  }
  func.func @transform_8(%arg0: i32) -> (i32, i32) {
    %c0_i32 = arith.constant 0 : i32
    %c0_i32_0 = arith.constant 0 : i32
    %c0_i32_1 = arith.constant 0 : i32
    return %c0_i32, %c0_i32_0 : i32, i32
  }
  func.func @transform_9(%arg0: i32) -> (i32, i32) {
    %c0_i32 = arith.constant 0 : i32
    %c0_i32_0 = arith.constant 0 : i32
    %c0_i32_1 = arith.constant 0 : i32
    return %c0_i32, %c0_i32_0 : i32, i32
  }
  func.func @transform_10(%arg0: i32) -> (i32, i32) {
    %c0_i32 = arith.constant 0 : i32
    %c0_i32_0 = arith.constant 0 : i32
    %c0_i32_1 = arith.constant 0 : i32
    return %c0_i32, %c0_i32_0 : i32, i32
  }
  func.func @transform_11(%arg0: i32) -> (i32, i32) {
    %c0_i32 = arith.constant 0 : i32
    %c0_i32_0 = arith.constant 0 : i32
    %c0_i32_1 = arith.constant 0 : i32
    return %c0_i32, %c0_i32_0 : i32, i32
  }
  func.func @transform_12(%arg0: i32) -> (i32, i32) {
    %c0_i32 = arith.constant 0 : i32
    %c0_i32_0 = arith.constant 0 : i32
    %c0_i32_1 = arith.constant 0 : i32
    return %c0_i32, %c0_i32_0 : i32, i32
  }
  func.func @transform_13(%arg0: i32) -> (i32, i32) {
    %c0_i32 = arith.constant 0 : i32
    %c0_i32_0 = arith.constant 0 : i32
    %c0_i32_1 = arith.constant 0 : i32
    return %c0_i32, %c0_i32_0 : i32, i32
  }
  func.func @transform_14(%arg0: i32) -> (i32, i32) {
    %c0_i32 = arith.constant 0 : i32
    %c0_i32_0 = arith.constant 0 : i32
    %c0_i32_1 = arith.constant 0 : i32
    return %c0_i32, %c0_i32_0 : i32, i32
  }
  func.func @transform_15(%arg0: i32) -> (i32, i32) {
    %c0_i32 = arith.constant 0 : i32
    %c0_i32_0 = arith.constant 0 : i32
    %c0_i32_1 = arith.constant 0 : i32
    return %c0_i32, %c0_i32_0 : i32, i32
  }
  func.func @transform_16(%arg0: i32) -> (i32, i32) {
    %c0_i32 = arith.constant 0 : i32
    %c0_i32_0 = arith.constant 0 : i32
    %c0_i32_1 = arith.constant 0 : i32
    return %c0_i32, %c0_i32_0 : i32, i32
  }
  func.func @transform_17(%arg0: i32) -> (i32, i32) {
    %c0_i32 = arith.constant 0 : i32
    %c0_i32_0 = arith.constant 0 : i32
    %c0_i32_1 = arith.constant 0 : i32
    return %c0_i32, %c0_i32_0 : i32, i32
  }
  func.func @transform_18(%arg0: i32) -> (i32, i32) {
    %c0_i32 = arith.constant 0 : i32
    %c0_i32_0 = arith.constant 0 : i32
    return %arg0, %c0_i32 : i32, i32
  }
  func.func @transform_19(%arg0: i32) -> (i32, i32) {
    %c0_i32 = arith.constant 0 : i32
    %c0_i32_0 = arith.constant 0 : i32
    return %arg0, %c0_i32 : i32, i32
  }
  func.func @transform_20(%arg0: i32) -> (i32, i32) {
    %c0_i32 = arith.constant 0 : i32
    %c0_i32_0 = arith.constant 0 : i32
    return %arg0, %c0_i32 : i32, i32
  }
  func.func @transform_21(%arg0: i32) -> (i32, i32) {
    %c0_i32 = arith.constant 0 : i32
    %c0_i32_0 = arith.constant 0 : i32
    return %arg0, %c0_i32 : i32, i32
  }
}

module attributes {stable_mosaic.version = 11 : i64} {
  func.func @kernel(%arg0: i32, %arg1: memref<256x128xf32, #tpu.memory_space<vmem>>, %arg2: memref<256x8xf32, #tpu.memory_space<vmem>>, %arg3: memref<128x128xbf16, #tpu.memory_space<vmem>>, %arg4: memref<1x128xf32, #tpu.memory_space<vmem>>, %arg5: memref<128x128xbf16, #tpu.memory_space<vmem>>, %arg6: memref<1x128xf32, #tpu.memory_space<vmem>>, %arg7: memref<128x128xbf16, #tpu.memory_space<vmem>>, %arg8: memref<1x128xf32, #tpu.memory_space<vmem>>, %arg9: memref<128x256xbf16, #tpu.memory_space<vmem>>, %arg10: memref<1x256xf32, #tpu.memory_space<vmem>>, %arg11: memref<128x128xbf16, #tpu.memory_space<vmem>>, %arg12: memref<1x128xf32, #tpu.memory_space<vmem>>, %arg13: memref<128x128xbf16, #tpu.memory_space<vmem>>, %arg14: memref<1x128xf32, #tpu.memory_space<vmem>>, %arg15: memref<128x128xbf16, #tpu.memory_space<vmem>>, %arg16: memref<1x128xf32, #tpu.memory_space<vmem>>, %arg17: memref<128x128xbf16, #tpu.memory_space<vmem>>, %arg18: memref<1x128xf32, #tpu.memory_space<vmem>>, %arg19: memref<256x128xf32, #tpu.memory_space<vmem>>, %arg20: memref<256x8xf32, #tpu.memory_space<vmem>>, %arg21: memref<256x8xf32, #tpu.memory_space<vmem>>, %arg22: memref<256x8xf32, #tpu.memory_space<vmem>>, %arg23: memref<256x128xf32, #tpu.memory_space<vmem>>) attributes {dimension_semantics = [#tpu.dimension_semantics<parallel>], iteration_bounds = array<i64: 2>, scalar_prefetch = 0 : i64, scratch_operands = 1 : i64, tpu.core_type = #tpu.core_type<tc>, window_params = [{transform_indices = @transform_0, window_bounds = array<i64: 256, 128>}, {transform_indices = @transform_1, window_bounds = array<i64: 256, 8>}, {pipeline_mode = #tpu.pipeline_mode<synchronous>, transform_indices = @transform_2, window_bounds = array<i64: 128, 128>}, {pipeline_mode = #tpu.pipeline_mode<synchronous>, transform_indices = @transform_3, window_bounds = array<i64: 1, 128>}, {pipeline_mode = #tpu.pipeline_mode<synchronous>, transform_indices = @transform_4, window_bounds = array<i64: 128, 128>}, {pipeline_mode = #tpu.pipeline_mode<synchronous>, transform_indices = @transform_5, window_bounds = array<i64: 1, 128>}, {pipeline_mode = #tpu.pipeline_mode<synchronous>, transform_indices = @transform_6, window_bounds = array<i64: 128, 128>}, {pipeline_mode = #tpu.pipeline_mode<synchronous>, transform_indices = @transform_7, window_bounds = array<i64: 1, 128>}, {pipeline_mode = #tpu.pipeline_mode<synchronous>, transform_indices = @transform_8, window_bounds = array<i64: 128, 256>}, {pipeline_mode = #tpu.pipeline_mode<synchronous>, transform_indices = @transform_9, window_bounds = array<i64: 1, 256>}, {pipeline_mode = #tpu.pipeline_mode<synchronous>, transform_indices = @transform_10, window_bounds = array<i64: 128, 128>}, {pipeline_mode = #tpu.pipeline_mode<synchronous>, transform_indices = @transform_11, window_bounds = array<i64: 1, 128>}, {pipeline_mode = #tpu.pipeline_mode<synchronous>, transform_indices = @transform_12, window_bounds = array<i64: 128, 128>}, {pipeline_mode = #tpu.pipeline_mode<synchronous>, transform_indices = @transform_13, window_bounds = array<i64: 1, 128>}, {pipeline_mode = #tpu.pipeline_mode<synchronous>, transform_indices = @transform_14, window_bounds = array<i64: 128, 128>}, {pipeline_mode = #tpu.pipeline_mode<synchronous>, transform_indices = @transform_15, window_bounds = array<i64: 1, 128>}, {pipeline_mode = #tpu.pipeline_mode<synchronous>, transform_indices = @transform_16, window_bounds = array<i64: 128, 128>}, {pipeline_mode = #tpu.pipeline_mode<synchronous>, transform_indices = @transform_17, window_bounds = array<i64: 1, 128>}, {transform_indices = @transform_18, window_bounds = array<i64: 256, 128>}, {transform_indices = @transform_19, window_bounds = array<i64: 256, 8>}, {transform_indices = @transform_20, window_bounds = array<i64: 256, 8>}, {transform_indices = @transform_21, window_bounds = array<i64: 256, 8>}]} {
    %cst = arith.constant 0.000000e+00 : f32
    %0 = vector.broadcast %cst : f32 to vector<256x128xf32>
    %c0 = arith.constant 0 : index
    %c0_0 = arith.constant 0 : index
    %1 = vector.load %arg23[%c0, %c0_0] : memref<256x128xf32, #tpu.memory_space<vmem>>, vector<256x128xf32>
    tpu.vector_store %arg23[%c0, %c0_0], %0 {strides = array<i32>} : memref<256x128xf32, #tpu.memory_space<vmem>>, vector<256x128xf32>,
    %c0_1 = arith.constant 0 : index
    %c0_2 = arith.constant 0 : index
    %2 = vector.load %arg2[%c0_1, %c0_2] : memref<256x8xf32, #tpu.memory_space<vmem>>, vector<256x8xf32>
    %c0_3 = arith.constant 0 : index
    %c0_4 = arith.constant 0 : index
    %3 = vector.load %arg23[%c0_3, %c0_4] : memref<256x128xf32, #tpu.memory_space<vmem>>, vector<256x8xf32>
    tpu.vector_store %arg23[%c0_3, %c0_4], %2 {strides = array<i32>} : memref<256x128xf32, #tpu.memory_space<vmem>>, vector<256x8xf32>,
    %c0_5 = arith.constant 0 : index
    %c0_6 = arith.constant 0 : index
    %4 = vector.load %arg23[%c0_5, %c0_6] : memref<256x128xf32, #tpu.memory_space<vmem>>, vector<256x128xf32>
    %c0_7 = arith.constant 0 : index
    %c0_8 = arith.constant 0 : index
    %5 = vector.load %arg1[%c0_7, %c0_8] : memref<256x128xf32, #tpu.memory_space<vmem>>, vector<256x128xf32>
    %6 = arith.truncf %5 : vector<256x128xf32> to vector<256x128xbf16>
    %c0_9 = arith.constant 0 : index
    %c0_10 = arith.constant 0 : index
    %7 = vector.load %arg3[%c0_9, %c0_10] : memref<128x128xbf16, #tpu.memory_space<vmem>>, vector<128x128xbf16>
    %c0_11 = arith.constant 0 : index
    %c0_12 = arith.constant 0 : index
    %8 = vector.load %arg4[%c0_11, %c0_12] : memref<1x128xf32, #tpu.memory_space<vmem>>, vector<1x128xf32>
    %cst_13 = arith.constant dense<0.000000e+00> : vector<256x128xf32>
    %9 = tpu.matmul %6, %7, %cst_13 {dimension_numbers = #tpu.dot_dimension_numbers<[1], [0], [0], [1], [0, 0, 1, 1], [], []>} : vector<256x128xbf16>, vector<128x128xbf16>, vector<256x128xf32> -> vector<256x128xf32>
    %10 = vector.broadcast %8 : vector<1x128xf32> to vector<256x128xf32>
    %11 = arith.addf %9, %10 : vector<256x128xf32>
    %cst_14 = arith.constant 0.000000e+00 : f32
    %12 = vector.broadcast %cst_14 : f32 to vector<256x128xf32>
    %13 = arith.maximumf %11, %12 : vector<256x128xf32>
    %c0_15 = arith.constant 0 : index
    %c0_16 = arith.constant 0 : index
    %14 = vector.load %arg5[%c0_15, %c0_16] : memref<128x128xbf16, #tpu.memory_space<vmem>>, vector<128x128xbf16>
    %c0_17 = arith.constant 0 : index
    %c0_18 = arith.constant 0 : index
    %15 = vector.load %arg6[%c0_17, %c0_18] : memref<1x128xf32, #tpu.memory_space<vmem>>, vector<1x128xf32>
    %16 = arith.truncf %13 : vector<256x128xf32> to vector<256x128xbf16>
    %cst_19 = arith.constant dense<0.000000e+00> : vector<256x128xf32>
    %17 = tpu.matmul %16, %14, %cst_19 {dimension_numbers = #tpu.dot_dimension_numbers<[1], [0], [0], [1], [0, 0, 1, 1], [], []>} : vector<256x128xbf16>, vector<128x128xbf16>, vector<256x128xf32> -> vector<256x128xf32>
    %18 = vector.broadcast %15 : vector<1x128xf32> to vector<256x128xf32>
    %19 = arith.addf %17, %18 : vector<256x128xf32>
    %c0_20 = arith.constant 0 : index
    %c0_21 = arith.constant 0 : index
    %20 = vector.load %arg7[%c0_20, %c0_21] : memref<128x128xbf16, #tpu.memory_space<vmem>>, vector<128x128xbf16>
    %c0_22 = arith.constant 0 : index
    %c0_23 = arith.constant 0 : index
    %21 = vector.load %arg8[%c0_22, %c0_23] : memref<1x128xf32, #tpu.memory_space<vmem>>, vector<1x128xf32>
    %22 = arith.truncf %19 : vector<256x128xf32> to vector<256x128xbf16>
    %cst_24 = arith.constant dense<0.000000e+00> : vector<256x128xf32>
    %23 = tpu.matmul %22, %20, %cst_24 {dimension_numbers = #tpu.dot_dimension_numbers<[1], [0], [0], [1], [0, 0, 1, 1], [], []>} : vector<256x128xbf16>, vector<128x128xbf16>, vector<256x128xf32> -> vector<256x128xf32>
    %24 = vector.broadcast %21 : vector<1x128xf32> to vector<256x128xf32>
    %25 = arith.addf %23, %24 : vector<256x128xf32>
    %cst_25 = arith.constant 0.000000e+00 : f32
    %26 = vector.broadcast %cst_25 : f32 to vector<256x128xf32>
    %27 = arith.maximumf %25, %26 : vector<256x128xf32>
    %c0_26 = arith.constant 0 : index
    %c0_27 = arith.constant 0 : index
    %28 = vector.load %arg9[%c0_26, %c0_27] : memref<128x256xbf16, #tpu.memory_space<vmem>>, vector<128x256xbf16>
    %c0_28 = arith.constant 0 : index
    %c0_29 = arith.constant 0 : index
    %29 = vector.load %arg10[%c0_28, %c0_29] : memref<1x256xf32, #tpu.memory_space<vmem>>, vector<1x256xf32>
    %30 = arith.truncf %27 : vector<256x128xf32> to vector<256x128xbf16>
    %cst_30 = arith.constant dense<0.000000e+00> : vector<256x256xf32>
    %31 = tpu.matmul %30, %28, %cst_30 {dimension_numbers = #tpu.dot_dimension_numbers<[1], [0], [0], [1], [0, 0, 1, 1], [], []>} : vector<256x128xbf16>, vector<128x256xbf16>, vector<256x256xf32> -> vector<256x256xf32>
    %32 = vector.broadcast %29 : vector<1x256xf32> to vector<256x256xf32>
    %33 = arith.addf %31, %32 : vector<256x256xf32>
    %34 = vector.extract_strided_slice %33 {offsets = [0, 0], sizes = [256, 128], strides = [1, 1]} : vector<256x256xf32> to vector<256x128xf32>
    %35 = vector.extract_strided_slice %33 {offsets = [0, 128], sizes = [256, 128], strides = [1, 1]} : vector<256x256xf32> to vector<256x128xf32>
    %cst_31 = arith.constant 5.000000e-01 : f32
    %36 = vector.broadcast %cst_31 : f32 to vector<256x128xf32>
    %37 = arith.mulf %36, %35 : vector<256x128xf32>
    %38 = math.exp %37 : vector<256x128xf32>
    %39 = arith.mulf %38, %4 : vector<256x128xf32>
    %40 = arith.addf %34, %39 : vector<256x128xf32>
    %c0_32 = arith.constant 0 : index
    %c0_33 = arith.constant 0 : index
    %41 = vector.load %arg11[%c0_32, %c0_33] : memref<128x128xbf16, #tpu.memory_space<vmem>>, vector<128x128xbf16>
    %c0_34 = arith.constant 0 : index
    %c0_35 = arith.constant 0 : index
    %42 = vector.load %arg12[%c0_34, %c0_35] : memref<1x128xf32, #tpu.memory_space<vmem>>, vector<1x128xf32>
    %43 = arith.truncf %40 : vector<256x128xf32> to vector<256x128xbf16>
    %cst_36 = arith.constant dense<0.000000e+00> : vector<256x128xf32>
    %44 = tpu.matmul %43, %41, %cst_36 {dimension_numbers = #tpu.dot_dimension_numbers<[1], [0], [0], [1], [0, 0, 1, 1], [], []>} : vector<256x128xbf16>, vector<128x128xbf16>, vector<256x128xf32> -> vector<256x128xf32>
    %45 = vector.broadcast %42 : vector<1x128xf32> to vector<256x128xf32>
    %46 = arith.addf %44, %45 : vector<256x128xf32>
    %cst_37 = arith.constant 0.000000e+00 : f32
    %47 = vector.broadcast %cst_37 : f32 to vector<256x128xf32>
    %48 = arith.maximumf %46, %47 : vector<256x128xf32>
    %c0_38 = arith.constant 0 : index
    %c0_39 = arith.constant 0 : index
    %49 = vector.load %arg13[%c0_38, %c0_39] : memref<128x128xbf16, #tpu.memory_space<vmem>>, vector<128x128xbf16>
    %c0_40 = arith.constant 0 : index
    %c0_41 = arith.constant 0 : index
    %50 = vector.load %arg14[%c0_40, %c0_41] : memref<1x128xf32, #tpu.memory_space<vmem>>, vector<1x128xf32>
    %51 = arith.truncf %48 : vector<256x128xf32> to vector<256x128xbf16>
    %cst_42 = arith.constant dense<0.000000e+00> : vector<256x128xf32>
    %52 = tpu.matmul %51, %49, %cst_42 {dimension_numbers = #tpu.dot_dimension_numbers<[1], [0], [0], [1], [0, 0, 1, 1], [], []>} : vector<256x128xbf16>, vector<128x128xbf16>, vector<256x128xf32> -> vector<256x128xf32>
    %53 = vector.broadcast %50 : vector<1x128xf32> to vector<256x128xf32>
    %54 = arith.addf %52, %53 : vector<256x128xf32>
    %c0_43 = arith.constant 0 : index
    %c0_44 = arith.constant 0 : index
    %55 = vector.load %arg15[%c0_43, %c0_44] : memref<128x128xbf16, #tpu.memory_space<vmem>>, vector<128x128xbf16>
    %c0_45 = arith.constant 0 : index
    %c0_46 = arith.constant 0 : index
    %56 = vector.load %arg16[%c0_45, %c0_46] : memref<1x128xf32, #tpu.memory_space<vmem>>, vector<1x128xf32>
    %57 = arith.truncf %54 : vector<256x128xf32> to vector<256x128xbf16>
    %cst_47 = arith.constant dense<0.000000e+00> : vector<256x128xf32>
    %58 = tpu.matmul %57, %55, %cst_47 {dimension_numbers = #tpu.dot_dimension_numbers<[1], [0], [0], [1], [0, 0, 1, 1], [], []>} : vector<256x128xbf16>, vector<128x128xbf16>, vector<256x128xf32> -> vector<256x128xf32>
    %59 = vector.broadcast %56 : vector<1x128xf32> to vector<256x128xf32>
    %60 = arith.addf %58, %59 : vector<256x128xf32>
    %cst_48 = arith.constant 0.000000e+00 : f32
    %61 = vector.broadcast %cst_48 : f32 to vector<256x128xf32>
    %62 = arith.maximumf %60, %61 : vector<256x128xf32>
    %c0_49 = arith.constant 0 : index
    %c0_50 = arith.constant 0 : index
    %63 = vector.load %arg17[%c0_49, %c0_50] : memref<128x128xbf16, #tpu.memory_space<vmem>>, vector<128x128xbf16>
    %c0_51 = arith.constant 0 : index
    %c0_52 = arith.constant 0 : index
    %64 = vector.load %arg18[%c0_51, %c0_52] : memref<1x128xf32, #tpu.memory_space<vmem>>, vector<1x128xf32>
    %65 = arith.truncf %62 : vector<256x128xf32> to vector<256x128xbf16>
    %cst_53 = arith.constant dense<0.000000e+00> : vector<256x128xf32>
    %66 = tpu.matmul %65, %63, %cst_53 {dimension_numbers = #tpu.dot_dimension_numbers<[1], [0], [0], [1], [0, 0, 1, 1], [], []>} : vector<256x128xbf16>, vector<128x128xbf16>, vector<256x128xf32> -> vector<256x128xf32>
    %67 = vector.broadcast %64 : vector<1x128xf32> to vector<256x128xf32>
    %68 = arith.addf %66, %67 : vector<256x128xf32>
    %c0_54 = arith.constant 0 : index
    %c0_55 = arith.constant 0 : index
    %69 = vector.load %arg19[%c0_54, %c0_55] : memref<256x128xf32, #tpu.memory_space<vmem>>, vector<256x128xf32>
    tpu.vector_store %arg19[%c0_54, %c0_55], %68 {strides = array<i32>} : memref<256x128xf32, #tpu.memory_space<vmem>>, vector<256x128xf32>,
    %70 = vector.extract_strided_slice %40 {offsets = [0, 0], sizes = [256, 8], strides = [1, 1]} : vector<256x128xf32> to vector<256x8xf32>
    %c0_56 = arith.constant 0 : index
    %c0_57 = arith.constant 0 : index
    %71 = vector.load %arg20[%c0_56, %c0_57] : memref<256x8xf32, #tpu.memory_space<vmem>>, vector<256x8xf32>
    tpu.vector_store %arg20[%c0_56, %c0_57], %70 {strides = array<i32>} : memref<256x8xf32, #tpu.memory_space<vmem>>, vector<256x8xf32>,
    %72 = vector.extract_strided_slice %34 {offsets = [0, 0], sizes = [256, 8], strides = [1, 1]} : vector<256x128xf32> to vector<256x8xf32>
    %c0_58 = arith.constant 0 : index
    %c0_59 = arith.constant 0 : index
    %73 = vector.load %arg21[%c0_58, %c0_59] : memref<256x8xf32, #tpu.memory_space<vmem>>, vector<256x8xf32>
    tpu.vector_store %arg21[%c0_58, %c0_59], %72 {strides = array<i32>} : memref<256x8xf32, #tpu.memory_space<vmem>>, vector<256x8xf32>,
    %74 = vector.extract_strided_slice %35 {offsets = [0, 0], sizes = [256, 8], strides = [1, 1]} : vector<256x128xf32> to vector<256x8xf32>
    %c0_60 = arith.constant 0 : index
    %c0_61 = arith.constant 0 : index
    %75 = vector.load %arg22[%c0_60, %c0_61] : memref<256x8xf32, #tpu.memory_space<vmem>>, vector<256x8xf32>
    tpu.vector_store %arg22[%c0_60, %c0_61], %74 {strides = array<i32>} : memref<256x8xf32, #tpu.memory_space<vmem>>, vector<256x8xf32>,
    return
  }
  func.func @transform_0(%arg0: i32) -> (i32, i32) {
    %c0_i32 = arith.constant 0 : i32
    %c0_i32_0 = arith.constant 0 : i32
    return %arg0, %c0_i32 : i32, i32
  }
  func.func @transform_1(%arg0: i32) -> (i32, i32) {
    %c0_i32 = arith.constant 0 : i32
    %c0_i32_0 = arith.constant 0 : i32
    return %arg0, %c0_i32 : i32, i32
  }
  func.func @transform_2(%arg0: i32) -> (i32, i32) {
    %c0_i32 = arith.constant 0 : i32
    %c0_i32_0 = arith.constant 0 : i32
    %c0_i32_1 = arith.constant 0 : i32
    return %c0_i32, %c0_i32_0 : i32, i32
  }
  func.func @transform_3(%arg0: i32) -> (i32, i32) {
    %c0_i32 = arith.constant 0 : i32
    %c0_i32_0 = arith.constant 0 : i32
    %c0_i32_1 = arith.constant 0 : i32
    return %c0_i32, %c0_i32_0 : i32, i32
  }
  func.func @transform_4(%arg0: i32) -> (i32, i32) {
    %c0_i32 = arith.constant 0 : i32
    %c0_i32_0 = arith.constant 0 : i32
    %c0_i32_1 = arith.constant 0 : i32
    return %c0_i32, %c0_i32_0 : i32, i32
  }
  func.func @transform_5(%arg0: i32) -> (i32, i32) {
    %c0_i32 = arith.constant 0 : i32
    %c0_i32_0 = arith.constant 0 : i32
    %c0_i32_1 = arith.constant 0 : i32
    return %c0_i32, %c0_i32_0 : i32, i32
  }
  func.func @transform_6(%arg0: i32) -> (i32, i32) {
    %c0_i32 = arith.constant 0 : i32
    %c0_i32_0 = arith.constant 0 : i32
    %c0_i32_1 = arith.constant 0 : i32
    return %c0_i32, %c0_i32_0 : i32, i32
  }
  func.func @transform_7(%arg0: i32) -> (i32, i32) {
    %c0_i32 = arith.constant 0 : i32
    %c0_i32_0 = arith.constant 0 : i32
    %c0_i32_1 = arith.constant 0 : i32
    return %c0_i32, %c0_i32_0 : i32, i32
  }
  func.func @transform_8(%arg0: i32) -> (i32, i32) {
    %c0_i32 = arith.constant 0 : i32
    %c0_i32_0 = arith.constant 0 : i32
    %c0_i32_1 = arith.constant 0 : i32
    return %c0_i32, %c0_i32_0 : i32, i32
  }
  func.func @transform_9(%arg0: i32) -> (i32, i32) {
    %c0_i32 = arith.constant 0 : i32
    %c0_i32_0 = arith.constant 0 : i32
    %c0_i32_1 = arith.constant 0 : i32
    return %c0_i32, %c0_i32_0 : i32, i32
  }
  func.func @transform_10(%arg0: i32) -> (i32, i32) {
    %c0_i32 = arith.constant 0 : i32
    %c0_i32_0 = arith.constant 0 : i32
    %c0_i32_1 = arith.constant 0 : i32
    return %c0_i32, %c0_i32_0 : i32, i32
  }
  func.func @transform_11(%arg0: i32) -> (i32, i32) {
    %c0_i32 = arith.constant 0 : i32
    %c0_i32_0 = arith.constant 0 : i32
    %c0_i32_1 = arith.constant 0 : i32
    return %c0_i32, %c0_i32_0 : i32, i32
  }
  func.func @transform_12(%arg0: i32) -> (i32, i32) {
    %c0_i32 = arith.constant 0 : i32
    %c0_i32_0 = arith.constant 0 : i32
    %c0_i32_1 = arith.constant 0 : i32
    return %c0_i32, %c0_i32_0 : i32, i32
  }
  func.func @transform_13(%arg0: i32) -> (i32, i32) {
    %c0_i32 = arith.constant 0 : i32
    %c0_i32_0 = arith.constant 0 : i32
    %c0_i32_1 = arith.constant 0 : i32
    return %c0_i32, %c0_i32_0 : i32, i32
  }
  func.func @transform_14(%arg0: i32) -> (i32, i32) {
    %c0_i32 = arith.constant 0 : i32
    %c0_i32_0 = arith.constant 0 : i32
    %c0_i32_1 = arith.constant 0 : i32
    return %c0_i32, %c0_i32_0 : i32, i32
  }
  func.func @transform_15(%arg0: i32) -> (i32, i32) {
    %c0_i32 = arith.constant 0 : i32
    %c0_i32_0 = arith.constant 0 : i32
    %c0_i32_1 = arith.constant 0 : i32
    return %c0_i32, %c0_i32_0 : i32, i32
  }
  func.func @transform_16(%arg0: i32) -> (i32, i32) {
    %c0_i32 = arith.constant 0 : i32
    %c0_i32_0 = arith.constant 0 : i32
    %c0_i32_1 = arith.constant 0 : i32
    return %c0_i32, %c0_i32_0 : i32, i32
  }
  func.func @transform_17(%arg0: i32) -> (i32, i32) {
    %c0_i32 = arith.constant 0 : i32
    %c0_i32_0 = arith.constant 0 : i32
    %c0_i32_1 = arith.constant 0 : i32
    return %c0_i32, %c0_i32_0 : i32, i32
  }
  func.func @transform_18(%arg0: i32) -> (i32, i32) {
    %c0_i32 = arith.constant 0 : i32
    %c0_i32_0 = arith.constant 0 : i32
    return %arg0, %c0_i32 : i32, i32
  }
  func.func @transform_19(%arg0: i32) -> (i32, i32) {
    %c0_i32 = arith.constant 0 : i32
    %c0_i32_0 = arith.constant 0 : i32
    return %arg0, %c0_i32 : i32, i32
  }
  func.func @transform_20(%arg0: i32) -> (i32, i32) {
    %c0_i32 = arith.constant 0 : i32
    %c0_i32_0 = arith.constant 0 : i32
    return %arg0, %c0_i32 : i32, i32
  }
  func.func @transform_21(%arg0: i32) -> (i32, i32) {
    %c0_i32 = arith.constant 0 : i32
    %c0_i32_0 = arith.constant 0 : i32
    return %arg0, %c0_i32 : i32, i32
  }
}

</mosaic_0001>

<bundles_post_ra>
// kernel: tpu_custom_call.1
= control target key start
LH: loop header
LB: loop body
LE: loop exit
PB: predicated region body
PF: predicated region fallthrough
CT: control target
= control target key end

     0   :  { %s6275_s0 = inlined_call_operand.vmem [shape: f32[512,128], index: 0, kind: input, shape index: {}]   ;;  %s6276_s1 = inlined_call_operand.vmem [shape: f32[512,8], index: 1, kind: input, shape index: {}]   ;;  %s6277_s2 = inlined_call_operand.hbm [shape: bf16[128,128], index: 2, kind: input, shape index: {}]   ;;  %s6278_s3 = inlined_call_operand.vmem [shape: f32[1,128], index: 3, kind: input, shape index: {}]   ;;  %s6279_s4 = inlined_call_operand.hbm [shape: bf16[128,128], index: 4, kind: input, shape index: {}]   ;;  %s6280_s5 = inlined_call_operand.vmem [shape: f32[1,128], index: 5, kind: input, shape index: {}]   ;;  %s6281_s6 = inlined_call_operand.hbm [shape: bf16[128,128], index: 6, kind: input, shape index: {}]   ;;  %s6282_s7 = inlined_call_operand.vmem [shape: f32[1,128], index: 7, kind: input, shape index: {}]   ;;  %s6283_s8 = inlined_call_operand.hbm [shape: bf16[128,256], index: 8, kind: input, shape index: {}]   ;;  %s6284_s9 = inlined_call_operand.vmem [shape: f32[1,256], index: 9, kind: input, shape index: {}]   ;;  %s6285_s10 = inlined_call_operand.vmem [shape: bf16[128,128], index: 10, kind: input, shape index: {}]   ;;  %s6286_s11 = inlined_call_operand.hbm [shape: f32[1,128], index: 11, kind: input, shape index: {}]   ;;  %s6287_s12 = inlined_call_operand.hbm [shape: bf16[128,128], index: 12, kind: input, shape index: {}]   ;;  %s6288_s13 = inlined_call_operand.vmem [shape: f32[1,128], index: 13, kind: input, shape index: {}]   ;;  %s6289_s14 = inlined_call_operand.hbm [shape: bf16[128,128], index: 14, kind: input, shape index: {}]   ;;  %s6290_s15 = inlined_call_operand.vmem [shape: f32[1,128], index: 15, kind: input, shape index: {}]   ;;  %s6291_s16 = inlined_call_operand.hbm [shape: bf16[128,128], index: 16, kind: input, shape index: {}]   ;;  %s6292_s17 = inlined_call_operand.vmem [shape: f32[1,128], index: 17, kind: input, shape index: {}]   ;;  %s6293_s18 = inlined_call_operand.hbm [shape: f32[512,128], index: 18, kind: output, shape index: {0}]   ;;  %s6294_s19 = inlined_call_operand.vmem [shape: f32[512,8], index: 19, kind: output, shape index: {1}]   ;;  %s6295_s20 = inlined_call_operand.vmem [shape: f32[512,8], index: 20, kind: output, shape index: {2}]   ;;  %s6296_s21 = inlined_call_operand.vmem [shape: f32[512,8], index: 21, kind: output, shape index: {3}]  }
   0x1   :  { %6318 = sst [smem:[#allocation32_spill]] %s6275_s0 }
   0x2   :  { %6319 = sst [smem:[#allocation33_spill]] %s6276_s1 }
   0x3   :  { %6320 = sst [smem:[#allocation34_spill]] %s6277_s2 }
   0x4   :  { %6321 = sst [smem:[#allocation35_spill]] %s6278_s3 }
   0x5   :  { %6322 = sst [smem:[#allocation36_spill]] %s6279_s4 }
   0x6   :  { %6323 = sst [smem:[#allocation37_spill]] %s6280_s5 }
   0x7   :  { %6324 = sst [smem:[#allocation38_spill]] %s6283_s8 }
   0x8   :  { %6325 = sst [smem:[#allocation39_spill]] %s6290_s15 }
   0x9   :  { %6326 = sst [smem:[#allocation40_spill]] %s6292_s17 }
   0xa   :  { %6327 = sst [smem:[#allocation41_spill]] %s6293_s18 }
   0xb   :  { %27 = vsyncpa [#allocation4], 0 }
   0xc   :  { %28 = vsyncpa [#allocation7], 0 }
   0xd   :  { %29 = vsyncpa [#allocation10], 0 }
   0xe   :  { %30 = vsyncpa [#allocation13], 0 }
   0xf   :  { %31 = vsyncpa [#allocation16], 0 }
  0x10   :  { %32 = vsyncpa [#allocation5], 0 }
  0x11   :  { %34 = vsyncpa [#allocation5 + $0x1], 0  ;;  %s5078_s2 = smov 0   ;;  %s5080_s25 = smov 0  }
  0x12   :  { %s5082_s26 = smov 0   ;;  %s5084_s27 = smov 0  }
  0x13 LB: > { %6328 = sst [smem:[#allocation24_spill]] %s4937_s2  ;;  %s5099_s3 = sadd.s32 4294967295, %s4949_s27   ;;  %s4949_s27 = sphi %s5084_s27, %s6371_s27   ;;  %s4945_s26 = sphi %s5082_s26, %s6374_s26   ;;  %s4941_s25 = sphi %s5080_s25, %s6373_s25   ;;  %s4937_s2 = sphi %s5078_s2, %s6372_s2  }
  0x14   : > { %6329 = sst [smem:[#allocation25_spill]] %s4941_s25  ;;  %s3735_s28 = sadd.s32 4294967294, %s4949_s27  }
  0x15   : > { %6330 = sst [smem:[#allocation26_spill]] %s4945_s26  ;;  %s5103_s29 = sadd.s32 1, %s4949_s27  }
  0x16   : > { %6331 = sst [smem:[#allocation27_spill]] %s4949_s27  ;;  %s435_s0 = sadd.s32 1, %s4945_s26 }
  0x17   : > { %6332 = sst [smem:[#allocation28_spill]] %s5103_s29  ;;  %s432_s4 = ssub.s32 %s4949_s27, %s5103_s29 }
  0x18   : > { %p445_p0 = scmp.ne.s32.totalorder %s4945_s26, %s4941_s25  ;;  %p433_p1 = scmp.eq.s32.totalorder %s432_s4, 0 }
  0x19   : > { %p446_p2 = scmp.eq.s32.totalorder %s5099_s3, 1  ;;  %p451_p3 = scmp.ne.s32.totalorder %s4941_s25, %s4937_s2 }
  0x1a   : > { %p452_p4 = scmp.eq.s32.totalorder %s3735_s28, 1  ;;  %p3736_p7 = scmp.ge.s32.totalorder %s4949_s27, 1 }
  0x1b   : > { %s5114_s30 = scalar_select %p433_p1, %s4945_s26, %s435_s0  }
  0x1c   : > { %p5116_p5 = por %p446_p2, %p445_p0  ;;  %p5120_p6 = por %p452_p4, %p451_p3 }
  0x1d   : > { %6333 = sst [smem:[#allocation29_spill]] %s5114_s30  ;;  %p537_p8 = scmp.lt.s32.totalorder %s4949_s27, 3 }
  0x1e   : > { %s6334_s5 = scalar_select %p5116_p5, 1, 0 }
  0x1f   : > { %s6336_s22 = scalar_select %p5120_p6, 1, 0 }
  0x20   : > { %6335 = sst [smem:[#allocation30_spill]] %s6334_s5  ;;  %p6306_p9 = scmp.eq.s32.totalorder %s5099_s3, 0 }
  0x21   : > { %6337 = sst [smem:[#allocation31_spill]] %s6336_s22  ;;  %p5127_p10 = pnand %p3736_p7, %p537_p8 }
  0x22   : > { %s4951_s1 = smov [#allocation6]   ;;  %s4952_s0 = smov [#allocation9]  }
  0x23   : > { %s6338_s23 = scalar_select %p5127_p10, 1, 0 }
  0x24   : > { %p4405_p11 = pneg %p5127_p10  ;;  %s565_s24 = sshll.u32 %s4951_s1, 4  ;;  %s566_s24 = int_to_ptr.vmem [resolvable:$true] %s565_s24 }
  0x25   : > { %s597_s4 = sshll.u32 %s4952_s0, 4  ;;  %s6340_s29 = sld [smem:[#allocation36_spill]]  ;;  %s5139_s4 = int_to_ptr.vmem [resolvable:$true] %s597_s4 }
  0x26   : > { %p5135_p12 = pnand %p6306_p9, %p4405_p11 }
  0x28   : > { %p5149_p0 = pneg %p5135_p12 }
  0x2b   : > { %s4643_s22 = scalar_lea.hbm %s6340_s29, 1024 }
  0x2c   : > { %p4644_p13 = scmp.ne.s32.totalorder %s6340_s29, %s4643_s22  ;;  %p4650_p3 = scmp.lt.u32.totalorder %s4643_s22, %s6340_s29 }
  0x2e   : > { %p4646_p1 = pnand %p5149_p0, %p4644_p13 }
  0x30   : > { %p4647_p2 = pneg %p4646_p1 }
  0x32   : > { %p4652_p4 = pnand %p4650_p3, %p4647_p2 }
  0x34   : > { %4655 = shalt.err (!%p4652_p4)
}
  0x35   : > { %s4656_s26 = scalar_lea.vmem %s566_s24, 1024  ;;  %p4664_p9 = scmp.lt.s32.totalorder %s566_s24, %s566_s24 }
  0x36   : > { %p4657_p7 = scmp.ne.s32.totalorder %s566_s24, %s4656_s26  ;;  %p4665_p6 = scmp.lt.s32.totalorder %s4656_s26, %s4656_s26 }
  0x38   : > { %p4659_p8 = pnand %p4657_p7, %p5149_p0  ;;  %p4666_p5 = por %p4665_p6, %p4664_p9 }
  0x3a   : > { %p4660_p11 = pneg %p4659_p8 }
  0x3c   : > { %p4667_p10 = pnand %p4666_p5, %p4660_p11 }
  0x3e   : > { %4670 = shalt.err (!%p4667_p10)
}
  0x3f   : > { %s6313_s2 = smov 64   ;;  %s6315_s27 = smov 4  }
  0x40   : > { %4411 = dma.hbm_to_vmem [thread:$0]  (!%p5135_p12), %s6340_s29, 1024, %s566_s24, [#allocation7], %s6313_s2, %s6313_s2, %s6315_s27  }
  0x41   : > { %s6342_s8 = sld [smem:[#allocation38_spill]] }
  0x47   : > { %s4671_s5 = scalar_lea.hbm %s6342_s8, 2048 }
  0x48   : > { %p4672_p5 = scmp.ne.s32.totalorder %s6342_s8, %s4671_s5  ;;  %p4678_p10 = scmp.lt.u32.totalorder %s4671_s5, %s6342_s8 }
  0x4a   : > { %p4674_p6 = pnand %p4672_p5, %p5149_p0 }
  0x4c   : > { %p4675_p9 = pneg %p4674_p6 }
  0x4e   : > { %p4680_p13 = pnand %p4678_p10, %p4675_p9 }
  0x50   : > { %4683 = shalt.err (!%p4680_p13)
}
  0x51   : > { %s4684_s24 = scalar_lea.vmem %s5139_s4, 2048  ;;  %p4692_p4 = scmp.lt.s32.totalorder %s5139_s4, %s5139_s4 }
  0x52   : > { %p4685_p1 = scmp.ne.s32.totalorder %s5139_s4, %s4684_s24  ;;  %p4693_p7 = scmp.lt.s32.totalorder %s4684_s24, %s4684_s24 }
  0x54   : > { %p4687_p2 = pnand %p4685_p1, %p5149_p0  ;;  %p4694_p8 = por %p4693_p7, %p4692_p4 }
  0x56   : > { %p4688_p3 = pneg %p4687_p2 }
  0x58   : > { %p4695_p11 = pnand %p4694_p8, %p4688_p3 }
  0x5a   : > { %4698 = shalt.err (!%p4695_p11)
}
  0x5b   : > { %s4955_s17 = smov 128   ;;  %s4956_s15 = smov 8  }
  0x5c   : > { %4417 = dma.hbm_to_vmem [thread:$0]  (!%p5135_p12), %s6342_s8, 2048, %s5139_s4, [#allocation10], %s4955_s17, %s4955_s17, %s4956_s15  }
  0x5d   : > { %s4957_s18 = smov [#allocation12]   ;;  %s4958_s22 = smov [#allocation3]  }
  0x5e   : > { %s627_s30 = sshll.u32 %s4957_s18, 4  ;;  %s549_s0 = sshll.u32 %s4958_s22, 4  ;;  %s628_s30 = int_to_ptr.vmem [resolvable:$true] %s627_s30  ;;  %s5191_s0 = int_to_ptr.vmem [resolvable:$true] %s549_s0 }
  0x5f   : > { %s4699_s2 = scalar_lea.hbm %s6287_s12, 1024 }
  0x60   : > { %p4700_p5 = scmp.ne.s32.totalorder %s6287_s12, %s4699_s2  ;;  %p4706_p10 = scmp.lt.u32.totalorder %s4699_s2, %s6287_s12 }
  0x62   : > { %p4702_p6 = pnand %p4700_p5, %p5149_p0 }
  0x64   : > { %p4703_p9 = pneg %p4702_p6 }
  0x66   : > { %p4708_p13 = pnand %p4706_p10, %p4703_p9 }
  0x68   : > { %4711 = shalt.err (!%p4708_p13)
}
  0x69   : > { %s4712_s17 = scalar_lea.vmem %s628_s30, 1024  ;;  %p4720_p4 = scmp.lt.s32.totalorder %s628_s30, %s628_s30 }
  0x6a   : > { %p4713_p1 = scmp.ne.s32.totalorder %s628_s30, %s4712_s17  ;;  %p4721_p7 = scmp.lt.s32.totalorder %s4712_s17, %s4712_s17 }
  0x6c   : > { %p4715_p2 = pnand %p4713_p1, %p5149_p0  ;;  %p4722_p8 = por %p4721_p7, %p4720_p4 }
  0x6e   : > { %p4716_p3 = pneg %p4715_p2 }
  0x70   : > { %p4723_p11 = pnand %p4722_p8, %p4716_p3 }
  0x72   : > { %4726 = shalt.err (!%p4723_p11)
}
  0x73   : > { %s6343_s29 = smov 4   ;;  %s6344_s27 = smov 64  }
  0x74   : > { %4423 = dma.hbm_to_vmem [thread:$0]  (!%p5135_p12), %s6287_s12, 1024, %s628_s30, [#allocation13], %s6344_s27, %s6344_s27, %s6343_s29  }
  0x75   : > { %s6345_s22 = sld [smem:[#allocation34_spill]] }
  0x7b   : > { %s4727_s26 = scalar_lea.hbm %s6345_s22, 1024 }
  0x7c   : > { %p4728_p5 = scmp.ne.s32.totalorder %s6345_s22, %s4727_s26  ;;  %p4734_p10 = scmp.lt.u32.totalorder %s4727_s26, %s6345_s22 }
  0x7e   : > { %p4730_p6 = pnand %p4728_p5, %p5149_p0 }
  0x80   : > { %p4731_p9 = pneg %p4730_p6 }
  0x82   : > { %p4736_p13 = pnand %p4734_p10, %p4731_p9 }
  0x84   : > { %4739 = shalt.err (!%p4736_p13)
}
  0x85   : > { %s4740_s30 = scalar_lea.vmem %s5191_s0, 1024  ;;  %p4748_p4 = scmp.lt.s32.totalorder %s5191_s0, %s5191_s0 }
  0x86   : > { %p4741_p1 = scmp.ne.s32.totalorder %s5191_s0, %s4740_s30  ;;  %p4749_p7 = scmp.lt.s32.totalorder %s4740_s30, %s4740_s30 }
  0x88   : > { %p4743_p2 = pnand %p4741_p1, %p5149_p0  ;;  %p4750_p8 = por %p4749_p7, %p4748_p4 }
  0x8a   : > { %p4744_p3 = pneg %p4743_p2 }
  0x8c   : > { %p4751_p11 = pnand %p4750_p8, %p4744_p3 }
  0x8e   : > { %4754 = shalt.err (!%p4751_p11)
}
  0x8f   : > { %4408 = dma.hbm_to_vmem [thread:$0]  (!%p5135_p12), %s6345_s22, 1024, %s5191_s0, [#allocation4], %s6344_s27, %s6344_s27, %s6343_s29  }
  0x90   : > { %s4959_s5 = smov [#allocation8]   ;;  %s4960_s26 = smov [#allocation11]  }
  0x91   : > { %s581_s18 = sshll.u32 %s4959_s5, 4  ;;  %s617_s24 = sshll.u32 %s4960_s26, 4  ;;  %s582_s18 = int_to_ptr.vmem [resolvable:$true] %s581_s18  ;;  %s5240_s24 = int_to_ptr.vmem [resolvable:$true] %s617_s24 }
  0x92   : > { %s4755_s17 = scalar_lea.hbm %s6281_s6, 1024 }
  0x93   : > { %p4756_p5 = scmp.ne.s32.totalorder %s6281_s6, %s4755_s17  ;;  %p4762_p10 = scmp.lt.u32.totalorder %s4755_s17, %s6281_s6 }
  0x95   : > { %p4758_p6 = pnand %p4756_p5, %p5149_p0 }
  0x97   : > { %p4759_p9 = pneg %p4758_p6 }
  0x99   : > { %p4764_p13 = pnand %p4762_p10, %p4759_p9 }
  0x9b   : > { %4767 = shalt.err (!%p4764_p13)
}
  0x9c   : > { %s4768_s2 = scalar_lea.vmem %s582_s18, 1024  ;;  %p4776_p4 = scmp.lt.s32.totalorder %s582_s18, %s582_s18 }
  0x9d   : > { %p4769_p1 = scmp.ne.s32.totalorder %s582_s18, %s4768_s2  ;;  %p4777_p7 = scmp.lt.s32.totalorder %s4768_s2, %s4768_s2 }
  0x9f   : > { %p4771_p2 = pnand %p4769_p1, %p5149_p0  ;;  %p4778_p8 = por %p4777_p7, %p4776_p4 }
  0xa1   : > { %p4772_p3 = pneg %p4771_p2 }
  0xa3   : > { %p4779_p11 = pnand %p4778_p8, %p4772_p3 }
  0xa5   : > { %4782 = shalt.err (!%p4779_p11)
}
  0xa6   : > { %4414 = dma.hbm_to_vmem [thread:$0]  (!%p5135_p12), %s6281_s6, 1024, %s582_s18, [#allocation7], %s6344_s27, %s6344_s27, %s6343_s29  }
  0xa7   : > { %s4783_s4 = scalar_lea.hbm %s6286_s11, 16 }
  0xa8   : > { %p4784_p5 = scmp.ne.s32.totalorder %s6286_s11, %s4783_s4  ;;  %p4790_p10 = scmp.lt.u32.totalorder %s4783_s4, %s6286_s11 }
  0xaa   : > { %p4786_p6 = pnand %p4784_p5, %p5149_p0 }
  0xac   : > { %p4787_p9 = pneg %p4786_p6 }
  0xae   : > { %p4792_p13 = pnand %p4790_p10, %p4787_p9 }
  0xb0   : > { %4795 = shalt.err (!%p4792_p13)
}
  0xb1   : > { %s4796_s18 = scalar_lea.vmem %s5240_s24, 16  ;;  %s4803_s2 = scalar_lea.vmem %s5240_s24, 32 }
  0xb2   : > { %p4797_p1 = scmp.ne.s32.totalorder %s5240_s24, %s4796_s18  ;;  %p4804_p4 = scmp.lt.s32.totalorder %s5240_s24, %s5240_s24 }
  0xb3   : > { %p4805_p7 = scmp.lt.s32.totalorder %s4803_s2, %s4796_s18 }
  0xb4   : > { %p4799_p2 = pnand %p4797_p1, %p5149_p0 }
  0xb5   : > { %p4806_p8 = por %p4805_p7, %p4804_p4 }
  0xb6   : > { %p4800_p3 = pneg %p4799_p2 }
  0xb8   : > { %p4807_p11 = pnand %p4806_p8, %p4800_p3 }
  0xba   : > { %4810 = shalt.err (!%p4807_p11)
}
  0xbb   : > { %4420 = dma.hbm_to_vmem [thread:$0]  (!%p5135_p12), %s6286_s11, 16, %s5240_s24, [#allocation10]  }
  0xbc   : > { %s4961_s26 = smov [#allocation14]   ;;  %s4962_s4 = smov [#allocation15]  }
  0xbd   : > { %s643_s25 = sshll.u32 %s4961_s26, 4  ;;  %s659_s17 = sshll.u32 %s4962_s4, 4  ;;  %s644_s25 = int_to_ptr.vmem [resolvable:$true] %s643_s25  ;;  %s5287_s17 = int_to_ptr.vmem [resolvable:$true] %s659_s17 }
  0xbe   : > { %s4811_s0 = scalar_lea.hbm %s6289_s14, 1024 }
  0xbf   : > { %p4812_p5 = scmp.ne.s32.totalorder %s6289_s14, %s4811_s0  ;;  %p4818_p10 = scmp.lt.u32.totalorder %s4811_s0, %s6289_s14 }
  0xc1   : > { %p4814_p6 = pnand %p4812_p5, %p5149_p0 }
  0xc3   : > { %p4815_p9 = pneg %p4814_p6 }
  0xc5   : > { %p4820_p13 = pnand %p4818_p10, %p4815_p9 }
  0xc7   : > { %4823 = shalt.err (!%p4820_p13)
}
  0xc8   : > { %s4824_s5 = scalar_lea.vmem %s644_s25, 1024  ;;  %p4832_p4 = scmp.lt.s32.totalorder %s644_s25, %s644_s25 }
  0xc9   : > { %p4825_p1 = scmp.ne.s32.totalorder %s644_s25, %s4824_s5  ;;  %p4833_p7 = scmp.lt.s32.totalorder %s4824_s5, %s4824_s5 }
  0xcb   : > { %p4827_p2 = pnand %p4825_p1, %p5149_p0  ;;  %p4834_p8 = por %p4833_p7, %p4832_p4 }
  0xcd   : > { %p4828_p3 = pneg %p4827_p2 }
  0xcf   : > { %p4835_p11 = pnand %p4834_p8, %p4828_p3 }
  0xd1   : > { %4838 = shalt.err (!%p4835_p11)
}
  0xd2   : > { %4426 = dma.hbm_to_vmem [thread:$0]  (!%p5135_p12), %s6289_s14, 1024, %s644_s25, [#allocation13], %s6344_s27, %s6344_s27, %s6343_s29  }
  0xd3   : > { %s4839_s0 = scalar_lea.hbm %s6291_s16, 1024 }
  0xd4   : > { %p4840_p5 = scmp.ne.s32.totalorder %s6291_s16, %s4839_s0  ;;  %p4846_p10 = scmp.lt.u32.totalorder %s4839_s0, %s6291_s16 }
  0xd6   : > { %p4842_p6 = pnand %p4840_p5, %p5149_p0 }
  0xd8   : > { %p4843_p9 = pneg %p4842_p6 }
  0xda   : > { %p4848_p13 = pnand %p4846_p10, %p4843_p9 }
  0xdc   : > { %4851 = shalt.err (!%p4848_p13)
}
  0xdd   : > { %s4852_s25 = scalar_lea.vmem %s5287_s17, 1024  ;;  %p4860_p4 = scmp.lt.s32.totalorder %s5287_s17, %s5287_s17 }
  0xde   : > { %p4853_p1 = scmp.ne.s32.totalorder %s5287_s17, %s4852_s25  ;;  %p4861_p7 = scmp.lt.s32.totalorder %s4852_s25, %s4852_s25 }
  0xe0   : > { %p4855_p2 = pnand %p4853_p1, %p5149_p0  ;;  %p4862_p8 = por %p4861_p7, %p4860_p4 }
  0xe2   : > { %p4856_p3 = pneg %p4855_p2 }
  0xe4   : > { %p4863_p11 = pnand %p4862_p8, %p4856_p3 }
  0xe6   : > { %4866 = shalt.err (!%p4863_p11)
}
  0xe7   : > { %4429 = dma.hbm_to_vmem [thread:$0]  (!%p5135_p12), %s6291_s16, 1024, %s5287_s17, [#allocation16], %s6344_s27, %s6344_s27, %s6343_s29  }
  0xe8   : > { %p6346_p5 = scmp.ne.s32.totalorder %s6338_s23, 0 }
  0xe9   : > { %p6347_p0 = scmp.eq.s32.totalorder (!%p6346_p5), %s5099_s3, 0 }
  0xea   : > { %696 = sbr.rel (%p6346_p5) target bundleno = 2204 (0x89c), region = 92 }
  0xf1   : > { %4912 = dma.done.wait (%p6347_p0), [#allocation4], 1024   ;;  %p6348_p6 = pmov %p6347_p0 }
  0xf2   : > { %p6349_p9 = pmov %p6347_p0 }
  0xf3   : > { %4914 = vsyncadd (%p6348_p6), [#allocation4], 4294966272 }
  0xf4   : > { %4916 = dma.done.wait (%p6349_p9), [#allocation7], 2048   ;;  %p6350_p10 = pmov %p6347_p0 }
  0xf5   : > { %p6351_p13 = pmov %p6347_p0 }
  0xf6   : > { %4918 = vsyncadd (%p6350_p10), [#allocation7], 4294965248 }
  0xf7   : > { %4920 = dma.done.wait (%p6351_p13), [#allocation10], 2064   ;;  %p6352_p12 = pmov %p6347_p0 }
  0xf8   : > { %p6353_p1 = pmov %p6347_p0 }
  0xf9   : > { %4922 = vsyncadd (%p6352_p12), [#allocation10], 4294965232 }
  0xfa   : > { %4924 = dma.done.wait (%p6353_p1), [#allocation13], 2048   ;;  %p6354_p2 = pmov %p6347_p0 }
  0xfb   : > { %p6355_p3 = pmov %p6347_p0 }
  0xfc   : > { %4926 = vsyncadd (%p6354_p2), [#allocation13], 4294965248 }
  0xfd   : > { %4928 = dma.done.wait (%p6355_p3), [#allocation16], 1024   ;;  %p6356_p4 = pmov %p6347_p0 }
  0xfe   : > { %s3756_s23 = sshll.u32 %s5099_s3, 5  ;;  %v4499_v0 = vld [vmem:[#allocation3] sm:$0xff]   ;;  %v4500_v1 = vld [vmem:[#allocation3 + $0x8] sm:$0xff]   ;;  %v4501_v2 = vld [vmem:[#allocation3 + $0x10] sm:$0xff]   ;;  %s6357_s27 = sld [smem:[#allocation32_spill]]  ;;  %vm900_vm0 = vcmask 64512  }
  0xff   : > { %4930 = vsyncadd (%p6356_p4), [#allocation16], 4294966272  ;;  %p805_p7 = scmp.lt.s32.totalorder %s3756_s23, 63  ;;  %4019 = vmatprep.subr.bf16.mxu0 %v4499_v0  ;;  %4355 = vmatprep.subr.bf16.mxu1 %v4499_v0  ;;  %v4502_v3 = vld [vmem:[#allocation3 + $0x18] sm:$0xff]   ;;  %v4503_v7 = vld [vmem:[#allocation3 + $0x20] sm:$0xff]   ;;  %s6358_s15 = sld [smem:[#allocation35_spill]] }
 0x100   : > { %4020 = vmatpush3.bf16.msra.mxu0 %v4499_v0  ;;  %4363 = vmatpush3.bf16.msra.mxu1 %v4499_v0  ;;  %v4504_v11 = vld [vmem:[#allocation3 + $0x28] sm:$0xff]   ;;  %v4505_v12 = vld [vmem:[#allocation3 + $0x30] sm:$0xff]   ;;  %v4506_v13 = vld [vmem:[#allocation3 + $0x38] sm:$0xff]   ;;  %s6359_s2 = sld [smem:[#allocation37_spill]]  ;;  %s6361_s26 = sld [smem:[#allocation39_spill]] }
 0x101   : > { %s6376_s23 = smov (!%p805_p7, %s3756_s23), 63  ;;  %4021 = vmatprep.subr.bf16.mxu0 %v4500_v1  ;;  %4356 = vmatprep.subr.bf16.mxu1 %v4500_v1  ;;  %v4507_v22 = vld [vmem:[#allocation6] sm:$0xff]   ;;  %v4508_v26 = vld [vmem:[#allocation6 + $0x8] sm:$0xff]   ;;  %v4509_v36 = vld [vmem:[#allocation6 + $0x10] sm:$0xff]   ;;  %s3850_s0 = sshll.u32 %s5099_s3, 12 }
 0x102   : > { %s5359_s28 = sshll.u32 %s6376_s23, 3  ;;  %v4510_v40 = vld [vmem:[#allocation6 + $0x18] sm:$0xff]   ;;  %v4511_v50 = vld [vmem:[#allocation6 + $0x20] sm:$0xff]   ;;  %v4512_v54 = vld [vmem:[#allocation6 + $0x28] sm:$0xff]   ;;  %s6362_s23 = sld [smem:[#allocation25_spill]] }
 0x103   : > { %v4513_v62 = vld [vmem:[#allocation6 + $0x30] sm:$0xff]   ;;  %v4514_v63 = vld [vmem:[#allocation6 + $0x38] sm:$0xff]   ;;  %v4515_v0 = vld [vmem:[#allocation8] sm:$0xff]   ;;  %s5651_s30 = scalar_lea.vmem %s6295_s20, %s5359_s28  ;;  %s5658_s18 = scalar_lea.vmem %s6296_s21, %s5359_s28 }
 0x104   : > { %s5365_s17 = scalar_lea.vmem %s6357_s27, %s5359_s28  ;;  %4022 = vmatpush3.bf16.msra.mxu0 %v4500_v1  ;;  %4364 = vmatpush3.bf16.msra.mxu1 %v4500_v1  ;;  %v4516_v1 = vld [vmem:[#allocation8 + $0x8] sm:$0xff]   ;;  %s6360_s27 = sld [smem:[#allocation33_spill]] }
 0x105   : > { %4023 = vmatprep.subr.bf16.mxu0 %v4501_v2  ;;  %v965_v4 = vld [vmem:[%s5365_s17] sm:$0xff]  ;;  %v966_v5 = vld [vmem:[%s5365_s17 + $0x8] sm:$0xff]  ;;  %4357 = vmatprep.subr.bf16.mxu1 %v4501_v2  ;;  %v967_v14 = vld [vmem:[%s5365_s17 + $0x10] sm:$0xff]  ;;  %s5712_s8 = scalar_lea.vmem %s6294_s19, %s5359_s28  ;;  %s4965_s5 = smov [#allocation17]  }
 0x106   : > { %v997_v6 = vpack.c.bf16 %v966_v5, %v965_v4  ;;  %v981_v8 = vld [vmem:[%s5365_s17 + $0x80] sm:$0xff]  ;;  %v982_v9 = vld [vmem:[%s5365_s17 + $0x88] sm:$0xff]  ;;  %v968_v15 = vld [vmem:[%s5365_s17 + $0x18] sm:$0xff] }
 0x107   : > { %v1005_v10 = vpack.c.bf16 %v982_v9, %v981_v8  ;;  %v969_v16 = vld [vmem:[%s5365_s17 + $0x20] sm:$0xff]  ;;  %v970_v17 = vld [vmem:[%s5365_s17 + $0x28] sm:$0xff]  ;;  %v983_v18 = vld [vmem:[%s5365_s17 + $0x90] sm:$0xff]  ;;  %v998_v23 = vpack.c.bf16 %v968_v15, %v967_v14 }
 0x108   : > { %4024 = vmatpush3.bf16.msra.mxu0 %v4501_v2  ;;  %4035 = vmatprep.mubr.bf16.mxu0 %v997_v6  ;;  %v984_v19 = vld [vmem:[%s5365_s17 + $0x98] sm:$0xff]  ;;  %v985_v20 = vld [vmem:[%s5365_s17 + $0xa0] sm:$0xff]  ;;  %v986_v21 = vld [vmem:[%s5365_s17 + $0xa8] sm:$0xff]  ;;  %v999_v24 = vpack.c.bf16 %v970_v17, %v969_v16  ;;  %s780_s1 = sand.u32 1, %s6362_s23  }
 0x109   : > { %4025 = vmatprep.subr.bf16.mxu0 %v4502_v3  ;;  %4365 = vmatpush3.bf16.msra.mxu1 %v4501_v2  ;;  %v1006_v25 = vpack.c.bf16 %v984_v19, %v983_v18  ;;  %v1007_v27 = vpack.c.bf16 %v986_v21, %v985_v20  ;;  %v971_v28 = vld [vmem:[%s5365_s17 + $0x30] sm:$0xff]  ;;  %v972_v29 = vld [vmem:[%s5365_s17 + $0x38] sm:$0xff]  ;;  %v973_v30 = vld [vmem:[%s5365_s17 + $0x40] sm:$0xff]  ;;  %s3755_s29 = sshll.u32 %s780_s1, 8  ;;  %s6234_s3 = scalar_lea.sflag [#allocation5], %s780_s1 }
 0x10a   : > { %4358 = vmatprep.subr.bf16.mxu1 %v4502_v3  ;;  %4051 = vmatprep.mubr.bf16.mxu1 %v1005_v10  ;;  %v974_v31 = vld [vmem:[%s5365_s17 + $0x48] sm:$0xff]  ;;  %v987_v32 = vld [vmem:[%s5365_s17 + $0xb0] sm:$0xff]  ;;  %v988_v33 = vld [vmem:[%s5365_s17 + $0xb8] sm:$0xff]  ;;  %v1000_v37 = vpack.c.bf16 %v972_v29, %v971_v28 }
 0x10b   : > { %v989_v34 = vld [vmem:[%s5365_s17 + $0xc0] sm:$0xff]  ;;  %v990_v35 = vld [vmem:[%s5365_s17 + $0xc8] sm:$0xff]  ;;  %v1001_v38 = vpack.c.bf16 %v974_v31, %v973_v30  ;;  %v1008_v39 = vpack.c.bf16 %v988_v33, %v987_v32  ;;  %v975_v42 = vld [vmem:[%s5365_s17 + $0x50] sm:$0xff] }
 0x10c   : > { %4026 = vmatpush3.bf16.msra.mxu0 %v4502_v3  ;;  %v1009_v41 = vpack.c.bf16 %v990_v35, %v989_v34  ;;  %v976_v43 = vld [vmem:[%s5365_s17 + $0x58] sm:$0xff]  ;;  %v977_v44 = vld [vmem:[%s5365_s17 + $0x60] sm:$0xff]  ;;  %v978_v45 = vld [vmem:[%s5365_s17 + $0x68] sm:$0xff] }
 0x10d   : > { %4027 = vmatprep.subr.bf16.mxu0 %v4503_v7  ;;  %4366 = vmatpush3.bf16.msra.mxu1 %v4502_v3  ;;  %v991_v46 = vld [vmem:[%s5365_s17 + $0xd0] sm:$0xff]  ;;  %v992_v47 = vld [vmem:[%s5365_s17 + $0xd8] sm:$0xff]  ;;  %v993_v48 = vld [vmem:[%s5365_s17 + $0xe0] sm:$0xff]  ;;  %v1002_v51 = vpack.c.bf16 %v976_v43, %v975_v42  ;;  %v1003_v52 = vpack.c.bf16 %v978_v45, %v977_v44 }
 0x10e   : > { %4359 = vmatprep.subr.bf16.mxu1 %v4503_v7  ;;  %v994_v49 = vld [vmem:[%s5365_s17 + $0xe8] sm:$0xff]  ;;  %v1010_v53 = vpack.c.bf16 %v992_v47, %v991_v46  ;;  %v979_v56 = vld [vmem:[%s5365_s17 + $0x70] sm:$0xff]  ;;  %v980_v57 = vld [vmem:[%s5365_s17 + $0x78] sm:$0xff] }
 0x10f   : > { %v1011_v55 = vpack.c.bf16 %v994_v49, %v993_v48  ;;  %v995_v58 = vld [vmem:[%s5365_s17 + $0xf0] sm:$0xff]  ;;  %v996_v59 = vld [vmem:[%s5365_s17 + $0xf8] sm:$0xff]  ;;  %v1004_v60 = vpack.c.bf16 %v980_v57, %v979_v56  ;;  %v4519_v4 = vld [vmem:[#allocation8 + $0x20] sm:$0xff]   ;;  %s5553_s17 = scalar_lea.vmem %s6360_s27, %s5359_s28  ;;  %s6365_s28 = sld [smem:[#allocation41_spill]] }
 0x110   : > { %4028 = vmatpush3.bf16.msra.mxu0 %v4503_v7  ;;  %v1012_v61 = vpack.c.bf16 %v996_v59, %v995_v58  ;;  %v4517_v2 = vld [vmem:[#allocation8 + $0x10] sm:$0xff]   ;;  %v4518_v3 = vld [vmem:[#allocation8 + $0x18] sm:$0xff]   ;;  %v4520_v5 = vld [vmem:[#allocation8 + $0x28] sm:$0xff]  }
 0x111   : > { %4029 = vmatprep.subr.bf16.mxu0 %v4504_v11  ;;  %4367 = vmatpush3.bf16.msra.mxu1 %v4503_v7  ;;  %v5402_v6 = vld [vmem:[%s6358_s15] ss:$0 sm:$0xff]  ;;  %s6159_s15 = scalar_lea.vmem [#allocation17], %s3755_s29 }
 0x112   : > { %4360 = vmatprep.subr.bf16.mxu1 %v4504_v11 }
 0x114   : > { %4030 = vmatpush3.bf16.msra.mxu0 %v4504_v11 }
 0x115   : > { %4031 = vmatprep.subr.bf16.mxu0 %v4505_v12  ;;  %4368 = vmatpush3.bf16.msra.mxu1 %v4504_v11  ;;  %s6224_s24 = scalar_lea.hbm %s6365_s28, %s3850_s0 }
 0x116   : > { %4361 = vmatprep.subr.bf16.mxu1 %v4505_v12 }
 0x118   : > { %4032 = vmatpush3.bf16.msra.mxu0 %v4505_v12 }
 0x119   : > { %4033 = vmatprep.subr.bf16.mxu0 %v4506_v13  ;;  %4369 = vmatpush3.bf16.msra.mxu1 %v4505_v12 }
 0x11a   : > { %4362 = vmatprep.subr.bf16.mxu1 %v4506_v13 }
 0x11c   : > { %4034 = vmatpush3.bf16.msra.mxu0 %v4506_v13 }
 0x11d   : > { %4370 = vmatpush3.bf16.msra.mxu1 %v4506_v13  ;;  %4115 = vmatprep.subr.bf16.mxu0 %v4515_v0 }
 0x11e   : > { %4067 = vmatprep.subr.bf16.mxu1 %v4507_v22 }
 0x11f   : > { %4036 = vmatmul.mubr.bf16.vlgmr.msra.gmra.mrb[0].mxu0 %v998_v23 }
 0x120   : > { %4039 = vmatprep.mubr.bf16.mxu0 %v999_v24  ;;  %4052 = vmatmul.mubr.bf16.vlgmr.msra.gmra.mrb[0].mxu1 %v1006_v25 }
 0x121   : > { %4055 = vmatprep.mubr.bf16.mxu1 %v1007_v27  ;;  %4068 = vmatpush3.bf16.msra.mxu1 %v4507_v22 }
 0x122   : > { %4069 = vmatprep.subr.bf16.mxu1 %v4508_v26  ;;  %4116 = vmatpush3.bf16.msra.mxu0 %v4515_v0 }
 0x123   : > { %4117 = vmatprep.subr.bf16.mxu0 %v4516_v1 }
 0x125   : > { %4070 = vmatpush3.bf16.msra.mxu1 %v4508_v26 }
 0x126   : > { %4071 = vmatprep.subr.bf16.mxu1 %v4509_v36  ;;  %4118 = vmatpush3.bf16.msra.mxu0 %v4516_v1 }
 0x127   : > { %4040 = vmatmul.mubr.bf16.gmra.mrb[4].mxu0 %v1000_v37  ;;  %4119 = vmatprep.subr.bf16.mxu0 %v4517_v2 }
 0x128   : > { %4043 = vmatprep.mubr.bf16.mxu0 %v1001_v38  ;;  %4056 = vmatmul.mubr.bf16.gmra.mrb[4].mxu1 %v1008_v39 }
 0x129   : > { %4059 = vmatprep.mubr.bf16.mxu1 %v1009_v41  ;;  %4072 = vmatpush3.bf16.msra.mxu1 %v4509_v36 }
 0x12a   : > { %4073 = vmatprep.subr.bf16.mxu1 %v4510_v40  ;;  %4120 = vmatpush3.bf16.msra.mxu0 %v4517_v2 }
 0x12b   : > { %4121 = vmatprep.subr.bf16.mxu0 %v4518_v3 }
 0x12d   : > { %4074 = vmatpush3.bf16.msra.mxu1 %v4510_v40 }
 0x12e   : > { %4075 = vmatprep.subr.bf16.mxu1 %v4511_v50  ;;  %4122 = vmatpush3.bf16.msra.mxu0 %v4518_v3 }
 0x12f   : > { %4044 = vmatmul.mubr.bf16.gmra.mrb[8].mxu0 %v1002_v51  ;;  %4123 = vmatprep.subr.bf16.mxu0 %v4519_v4 }
 0x130   : > { %4047 = vmatprep.mubr.bf16.mxu0 %v1003_v52  ;;  %4060 = vmatmul.mubr.bf16.gmra.mrb[8].mxu1 %v1010_v53 }
 0x131   : > { %4063 = vmatprep.mubr.bf16.mxu1 %v1011_v55  ;;  %4076 = vmatpush3.bf16.msra.mxu1 %v4511_v50 }
 0x132   : > { %4077 = vmatprep.subr.bf16.mxu1 %v4512_v54  ;;  %4124 = vmatpush3.bf16.msra.mxu0 %v4519_v4 }
 0x133   : > { %4125 = vmatprep.subr.bf16.mxu0 %v4520_v5 }
 0x135   : > { %4078 = vmatpush3.bf16.msra.mxu1 %v4512_v54 }
 0x136   : > { %4079 = vmatprep.subr.bf16.mxu1 %v4513_v62  ;;  %4126 = vmatpush3.bf16.msra.mxu0 %v4520_v5 }
 0x137   : > { %4048 = vmatmul.mubr.bf16.gmra.mrb[12].mxu0 %v1004_v60 }
 0x138   : > { %4064 = vmatmul.mubr.bf16.gmra.mrb[12].mxu1 %v1012_v61 }
 0x139   : > { %4080 = vmatpush3.bf16.msra.mxu1 %v4513_v62 }
 0x13a   : > { %4081 = vmatprep.subr.bf16.mxu1 %v4514_v63 }
 0x13d   : > { %4082 = vmatpush3.bf16.msra.mxu1 %v4514_v63 }
 0x1f2   : > { %v4037_v7 = vpop.f32.mrb[0].mxu0 }
 0x1f3   : > { %v1127_v8 = vadd.f32 %v4037_v7, %v5402_v6  ;;  %v1118_v9 = vpop.f32.mrb[1].mxu0  ;;  %v4053_v10 = vpop.f32.mrb[0].mxu1 }
 0x1f4   : > { %v1119_v11 = vadd.f32 %v5402_v6, %v1118_v9  ;;  %v4038_v12 = vpop.f32.mrb[2].mxu0  ;;  %v1191_v13 = vadd.f32 %v4053_v10, %v5402_v6  ;;  %v1182_v14 = vpop.f32.mrb[1].mxu1 }
 0x1f5   : > { %v1130_v15 = vadd.f32 %v4038_v12, %v5402_v6  ;;  %v1121_v16 = vpop.f32.mrb[3].mxu0  ;;  %v1183_v17 = vadd.f32 %v5402_v6, %v1182_v14  ;;  %v4054_v18 = vpop.f32.mrb[2].mxu1  ;;  %v1247_v23 = vmax.f32 %v1127_v8, 0.0 }
 0x1f6   : > { %v1122_v19 = vadd.f32 %v5402_v6, %v1121_v16  ;;  %v1263_v20 = vmax.f32 %v1191_v13, 0.0  ;;  %v1194_v21 = vadd.f32 %v4054_v18, %v5402_v6  ;;  %v1185_v22 = vpop.f32.mrb[3].mxu1  ;;  %v1245_v27 = vmax.f32 %v1119_v11, 0.0 }
 0x1f7   : > { %v1248_v24 = vmax.f32 %v1130_v15, 0.0  ;;  %v1261_v25 = vmax.f32 %v1183_v17, 0.0  ;;  %v1186_v26 = vadd.f32 %v5402_v6, %v1185_v22 }
 0x1f8   : > { %v1246_v28 = vmax.f32 %v1122_v19, 0.0  ;;  %v1264_v29 = vmax.f32 %v1194_v21, 0.0 }
 0x1f9   : > { %v1295_v30 = vpack.c.bf16 %v1248_v24, %v1247_v23  ;;  %v1262_v31 = vmax.f32 %v1186_v26, 0.0 }
 0x1fa   : > { %v1294_v32 = vpack.c.bf16 %v1246_v28, %v1245_v27  ;;  %v4041_v33 = vpop.f32.mrb[4].mxu0  ;;  %v5412_v34 = vpack.c.bf16 %v1264_v29, %v1263_v20 }
 0x1fb   : > { %v1143_v35 = vadd.f32 %v4041_v33, %v5402_v6  ;;  %v1134_v36 = vpop.f32.mrb[5].mxu0  ;;  %v5415_v37 = vpack.c.bf16 %v1262_v31, %v1261_v25  ;;  %v4057_v38 = vpop.f32.mrb[4].mxu1 }
 0x1fc   : > { %v1135_v39 = vadd.f32 %v5402_v6, %v1134_v36  ;;  %v4042_v40 = vpop.f32.mrb[6].mxu0  ;;  %4083 = vmatprep.mubr.bf16.mxu1 %v1294_v32  ;;  %v1207_v41 = vadd.f32 %v4057_v38, %v5402_v6  ;;  %v1198_v42 = vpop.f32.mrb[5].mxu1 }
 0x1fd   : > { %v1251_v43 = vmax.f32 %v1143_v35, 0.0  ;;  %v1146_v44 = vadd.f32 %v4042_v40, %v5402_v6  ;;  %v1137_v45 = vpop.f32.mrb[7].mxu0  ;;  %4084 = vmatmul.mubr.bf16.vlgmr.msra.gmra.mrb[16].mxu1 %v1295_v30  ;;  %v1199_v46 = vadd.f32 %v5402_v6, %v1198_v42  ;;  %v4058_v47 = vpop.f32.mrb[6].mxu1 }
 0x1fe   : > { %v1249_v48 = vmax.f32 %v1135_v39, 0.0  ;;  %v1138_v49 = vadd.f32 %v5402_v6, %v1137_v45  ;;  %v1267_v50 = vmax.f32 %v1207_v41, 0.0  ;;  %v1210_v51 = vadd.f32 %v4058_v47, %v5402_v6  ;;  %v1201_v52 = vpop.f32.mrb[7].mxu1 }
 0x1ff   : > { %v1252_v53 = vmax.f32 %v1146_v44, 0.0  ;;  %v1265_v54 = vmax.f32 %v1199_v46, 0.0  ;;  %v1202_v55 = vadd.f32 %v5402_v6, %v1201_v52 }
 0x200   : > { %v1250_v56 = vmax.f32 %v1138_v49, 0.0  ;;  %v1268_v57 = vmax.f32 %v1210_v51, 0.0 }
 0x201   : > { %v1297_v58 = vpack.c.bf16 %v1252_v53, %v1251_v43  ;;  %v1266_v59 = vmax.f32 %v1202_v55, 0.0 }
 0x202   : > { %v1296_v60 = vpack.c.bf16 %v1250_v56, %v1249_v48  ;;  %v4045_v61 = vpop.f32.mrb[8].mxu0  ;;  %v5424_v62 = vpack.c.bf16 %v1268_v57, %v1267_v50 }
 0x203   : > { %v1159_v63 = vadd.f32 %v4045_v61, %v5402_v6  ;;  %v1150_v0 = vpop.f32.mrb[9].mxu0  ;;  %v1304_v1 = vpack.c.bf16 %v1266_v59, %v1265_v54  ;;  %v4061_v2 = vpop.f32.mrb[8].mxu1  ;;  %v4523_v59 = vld [vmem:[#allocation9] ss:$8 sps:$4 sm:$0xff]   ;;  %v4528_v61 = vld [vmem:[#allocation9 + $0x14] ss:$8 sps:$4 sm:$0xff]  }
 0x204   : > { %4087 = vmatprep.mubr.bf16.mxu1 %v1296_v60  ;;  %v1151_v3 = vadd.f32 %v5402_v6, %v1150_v0  ;;  %v4046_v4 = vpop.f32.mrb[10].mxu0  ;;  %v1223_v5 = vadd.f32 %v4061_v2, %v5402_v6  ;;  %v1214_v7 = vpop.f32.mrb[9].mxu1  ;;  %v4525_v60 = vld [vmem:[#allocation9 + $0x4] ss:$8 sps:$4 sm:$0xff]   ;;  %v4532_v0 = vld [vmem:[#allocation9 + $0x30] ss:$8 sps:$4 sm:$0xff]  }
 0x205   : > { %4088 = vmatmul.mubr.bf16.gmra.mrb[20].mxu1 %v1297_v58  ;;  %v1255_v8 = vmax.f32 %v1159_v63, 0.0  ;;  %v1162_v9 = vadd.f32 %v4046_v4, %v5402_v6  ;;  %v1153_v10 = vpop.f32.mrb[11].mxu0  ;;  %v1215_v11 = vadd.f32 %v5402_v6, %v1214_v7  ;;  %v4062_v12 = vpop.f32.mrb[10].mxu1  ;;  %v4522_v58 = vld [vmem:[#allocation8 + $0x38] sm:$0xff]   ;;  %1929 = vmatprep.subr.bf16.mxu1 %v4525_v60  ;;  %v4535_v2 = vld [vmem:[#allocation9 + $0x40] ss:$8 sps:$4 sm:$0xff]  }
 0x206   : > { %v1253_v13 = vmax.f32 %v1151_v3, 0.0  ;;  %v1154_v14 = vadd.f32 %v5402_v6, %v1153_v10  ;;  %v1271_v15 = vmax.f32 %v1223_v5, 0.0  ;;  %v1226_v16 = vadd.f32 %v4062_v12, %v5402_v6  ;;  %v1217_v17 = vpop.f32.mrb[11].mxu1  ;;  %1930 = vmatpush1.bf16.msra.mxu1 %v4523_v59  ;;  %v4534_v63 = vld [vmem:[#allocation9 + $0x34] ss:$8 sps:$4 sm:$0xff]  }
 0x207   : > { %v1256_v18 = vmax.f32 %v1162_v9, 0.0  ;;  %v1269_v19 = vmax.f32 %v1215_v11, 0.0  ;;  %v1218_v20 = vadd.f32 %v5402_v6, %v1217_v17  ;;  %1931 = vmatprep.subr.bf16.mxu1 %v4528_v61  ;;  %v4540_v3 = vld [vmem:[#allocation9 + $0x54] ss:$8 sps:$4 sm:$0xff]   ;;  %v4538_v4 = vld [vmem:[#allocation9 + $0x50] ss:$8 sps:$4 sm:$0xff]  }
 0x208   : > { %v1254_v21 = vmax.f32 %v1154_v14, 0.0  ;;  %v1272_v22 = vmax.f32 %v1226_v16, 0.0  ;;  %v4543_v5 = vld [vmem:[#allocation9 + $0x64] ss:$8 sps:$4 sm:$0xff]   ;;  %v4541_v7 = vld [vmem:[#allocation9 + $0x60] ss:$8 sps:$4 sm:$0xff]  }
 0x209   : > { %v1299_v23 = vpack.c.bf16 %v1256_v18, %v1255_v8  ;;  %v1270_v24 = vmax.f32 %v1218_v20, 0.0  ;;  %v5448_v9 = vld [vmem:[%s6359_s2] ss:$0 sm:$0xff] }
 0x20a   : > { %v1298_v25 = vpack.c.bf16 %v1254_v21, %v1253_v13  ;;  %v4049_v26 = vpop.f32.mrb[12].mxu0  ;;  %v1307_v27 = vpack.c.bf16 %v1272_v22, %v1271_v15 }
 0x20b   : > { %v1175_v28 = vadd.f32 %v4049_v26, %v5402_v6  ;;  %v1166_v29 = vpop.f32.mrb[13].mxu0  ;;  %v1306_v30 = vpack.c.bf16 %v1270_v24, %v1269_v19  ;;  %v4065_v31 = vpop.f32.mrb[12].mxu1 }
 0x20c   : > { %4091 = vmatprep.mubr.bf16.mxu1 %v1298_v25  ;;  %v1167_v32 = vadd.f32 %v5402_v6, %v1166_v29  ;;  %v4050_v33 = vpop.f32.mrb[14].mxu0  ;;  %v1239_v35 = vadd.f32 %v4065_v31, %v5402_v6  ;;  %v1230_v36 = vpop.f32.mrb[13].mxu1 }
 0x20d   : > { %4092 = vmatmul.mubr.bf16.gmra.mrb[24].mxu1 %v1299_v23  ;;  %v1259_v38 = vmax.f32 %v1175_v28, 0.0  ;;  %v1178_v39 = vadd.f32 %v4050_v33, %v5402_v6  ;;  %v1169_v40 = vpop.f32.mrb[15].mxu0  ;;  %v1231_v41 = vadd.f32 %v5402_v6, %v1230_v36  ;;  %v4066_v42 = vpop.f32.mrb[14].mxu1 }
 0x20e   : > { %v1257_v43 = vmax.f32 %v1167_v32, 0.0  ;;  %v1170_v44 = vadd.f32 %v5402_v6, %v1169_v40  ;;  %v1275_v45 = vmax.f32 %v1239_v35, 0.0  ;;  %v1242_v46 = vadd.f32 %v4066_v42, %v5402_v6  ;;  %v1233_v47 = vpop.f32.mrb[15].mxu1 }
 0x20f   : > { %v1260_v48 = vmax.f32 %v1178_v39, 0.0  ;;  %v1273_v49 = vmax.f32 %v1231_v41, 0.0  ;;  %v1234_v50 = vadd.f32 %v5402_v6, %v1233_v47  ;;  %v4521_v6 = vld [vmem:[#allocation8 + $0x30] sm:$0xff]  }
 0x210   : > { %v1258_v51 = vmax.f32 %v1170_v44, 0.0  ;;  %v1276_v52 = vmax.f32 %v1242_v46, 0.0  ;;  %4127 = vmatprep.subr.bf16.mxu0 %v4521_v6 }
 0x211   : > { %v1301_v53 = vpack.c.bf16 %v1260_v48, %v1259_v38  ;;  %v1274_v54 = vmax.f32 %v1234_v50, 0.0  ;;  %4128 = vmatpush3.bf16.msra.mxu0 %v4521_v6 }
 0x212   : > { %v1300_v55 = vpack.c.bf16 %v1258_v51, %v1257_v43  ;;  %v1309_v56 = vpack.c.bf16 %v1276_v52, %v1275_v45  ;;  %4129 = vmatprep.subr.bf16.mxu0 %v4522_v58 }
 0x213   : > { %v1308_v57 = vpack.c.bf16 %v1274_v54, %v1273_v49 }
 0x214   : > { %4095 = vmatprep.mubr.bf16.mxu1 %v1300_v55 }
 0x215   : > { %4096 = vmatmul.mubr.bf16.gmra.mrb[28].mxu1 %v1301_v53  ;;  %4130 = vmatpush3.bf16.msra.mxu0 %v4522_v58 }
 0x216   : > { %4099 = vmatprep.mubr.bf16.mxu1 %v5415_v37  ;;  %v4526_v37 = vld [vmem:[#allocation9 + $0x10] ss:$8 sps:$4 sm:$0xff]  }
 0x217   : > { %1932 = vmatpush1.bf16.msra.mxu1 %v4526_v37 }
 0x21d   : > { %4100 = vmatmul.mubr.bf16.gmra.mrb[32].mxu1 %v5412_v34  ;;  %v4531_v34 = vld [vmem:[#allocation9 + $0x24] ss:$8 sps:$4 sm:$0xff]  }
 0x21e   : > { %4103 = vmatprep.mubr.bf16.mxu1 %v1304_v1  ;;  %1933 = vmatprep.subr.bf16.mxu1 %v4531_v34  ;;  %v4537_v1 = vld [vmem:[#allocation9 + $0x44] ss:$8 sps:$4 sm:$0xff]  }
 0x225   : > { %4104 = vmatmul.mubr.bf16.gmra.mrb[36].mxu1 %v5424_v62  ;;  %v4529_v62 = vld [vmem:[#allocation9 + $0x20] ss:$8 sps:$4 sm:$0xff]  }
 0x226   : > { %4107 = vmatprep.mubr.bf16.mxu1 %v1306_v30  ;;  %1934 = vmatpush1.bf16.msra.mxu1 %v4529_v62 }
 0x227   : > { %1935 = vmatprep.subr.bf16.mxu1 %v4534_v63 }
 0x22a   : > { %1936 = vmatpush1.bf16.msra.mxu1 %v4532_v0 }
 0x22b   : > { %1937 = vmatprep.subr.bf16.mxu1 %v4537_v1 }
 0x22d   : > { %4108 = vmatmul.mubr.bf16.gmra.mrb[40].mxu1 %v1307_v27 }
 0x22e   : > { %4111 = vmatprep.mubr.bf16.mxu1 %v1308_v57  ;;  %1938 = vmatpush1.bf16.msra.mxu1 %v4535_v2 }
 0x22f   : > { %1939 = vmatprep.subr.bf16.mxu1 %v4540_v3 }
 0x232   : > { %1940 = vmatpush1.bf16.msra.mxu1 %v4538_v4 }
 0x233   : > { %1941 = vmatprep.subr.bf16.mxu1 %v4543_v5 }
 0x235   : > { %4112 = vmatmul.mubr.bf16.gmra.mrb[44].mxu1 %v1309_v56 }
 0x236   : > { %1942 = vmatpush1.bf16.msra.mxu1 %v4541_v7 }
 0x2d0   : > { %v4085_v8 = vpop.f32.mrb[16].mxu1 }
 0x2d1   : > { %v1398_v10 = vpop.f32.mrb[17].mxu1  ;;  %v1407_v12 = vadd.f32 %v4085_v8, %v5448_v9 }
 0x2d2   : > { %v4086_v11 = vpop.f32.mrb[18].mxu1  ;;  %v1399_v15 = vadd.f32 %v5448_v9, %v1398_v10 }
 0x2d3   : > { %v1410_v13 = vadd.f32 %v4086_v11, %v5448_v9  ;;  %v1401_v14 = vpop.f32.mrb[19].mxu1 }
 0x2d4   : > { %v1402_v16 = vadd.f32 %v5448_v9, %v1401_v14 }
 0x2d5   : > { %v1543_v17 = vpack.c.bf16 %v1410_v13, %v1407_v12 }
 0x2d6   : > { %v1542_v18 = vpack.c.bf16 %v1402_v16, %v1399_v15 }
 0x2d8   : > { %v4089_v19 = vpop.f32.mrb[20].mxu1  ;;  %4131 = vmatprep.mubr.bf16.mxu0 %v1542_v18 }
 0x2d9   : > { %v1423_v20 = vadd.f32 %v4089_v19, %v5448_v9  ;;  %v1414_v21 = vpop.f32.mrb[21].mxu1  ;;  %4132 = vmatmul.mubr.bf16.vlgmr.msra.gmra.mrb[16].mxu0 %v1543_v17 }
 0x2da   : > { %v1415_v22 = vadd.f32 %v5448_v9, %v1414_v21  ;;  %v4090_v23 = vpop.f32.mrb[22].mxu1 }
 0x2db   : > { %v1426_v24 = vadd.f32 %v4090_v23, %v5448_v9  ;;  %v1417_v25 = vpop.f32.mrb[23].mxu1 }
 0x2dc   : > { %v1418_v26 = vadd.f32 %v5448_v9, %v1417_v25 }
 0x2dd   : > { %v1545_v27 = vpack.c.bf16 %v1426_v24, %v1423_v20 }
 0x2de   : > { %v1544_v28 = vpack.c.bf16 %v1418_v26, %v1415_v22  ;;  %v4544_v26 = vld [vmem:[#allocation9 + $0x70] ss:$8 sps:$4 sm:$0xff]  }
 0x2e0   : > { %4135 = vmatprep.mubr.bf16.mxu0 %v1544_v28  ;;  %v4093_v29 = vpop.f32.mrb[24].mxu1  ;;  %v4963_v28 = vmov 0  }
 0x2e1   : > { %4136 = vmatmul.mubr.bf16.gmra.mrb[20].mxu0 %v1545_v27  ;;  %v1439_v30 = vadd.f32 %v4093_v29, %v5448_v9  ;;  %v1430_v31 = vpop.f32.mrb[25].mxu1  ;;  %v4546_v27 = vld [vmem:[#allocation9 + $0x74] ss:$8 sps:$4 sm:$0xff]   ;;  %1961 = vmatprep.mubr.bf16.mxu1 %v4963_v28  ;;  %v5486_v29 = vld [vmem:[%s6282_s7] ss:$0 sm:$0xff] }
 0x2e2   : > { %v1431_v32 = vadd.f32 %v5448_v9, %v1430_v31  ;;  %v4094_v33 = vpop.f32.mrb[26].mxu1  ;;  %1943 = vmatprep.subr.bf16.mxu1 %v4546_v27 }
 0x2e3   : > { %v1442_v35 = vadd.f32 %v4094_v33, %v5448_v9  ;;  %v1433_v36 = vpop.f32.mrb[27].mxu1  ;;  %1944 = vmatpush1.bf16.msra.mxu1 %v4544_v26 }
 0x2e4   : > { %v1434_v38 = vadd.f32 %v5448_v9, %v1433_v36 }
 0x2e5   : > { %v1547_v39 = vpack.c.bf16 %v1442_v35, %v1439_v30 }
 0x2e6   : > { %v1546_v40 = vpack.c.bf16 %v1434_v38, %v1431_v32 }
 0x2e8   : > { %4139 = vmatprep.mubr.bf16.mxu0 %v1546_v40  ;;  %v4097_v41 = vpop.f32.mrb[28].mxu1 }
 0x2e9   : > { %4140 = vmatmul.mubr.bf16.gmra.mrb[24].mxu0 %v1547_v39  ;;  %v1455_v42 = vadd.f32 %v4097_v41, %v5448_v9  ;;  %v1446_v43 = vpop.f32.mrb[29].mxu1 }
 0x2ea   : > { %v1447_v44 = vadd.f32 %v5448_v9, %v1446_v43  ;;  %v4098_v45 = vpop.f32.mrb[30].mxu1 }
 0x2eb   : > { %v1458_v46 = vadd.f32 %v4098_v45, %v5448_v9  ;;  %v1449_v47 = vpop.f32.mrb[31].mxu1 }
 0x2ec   : > { %v1450_v48 = vadd.f32 %v5448_v9, %v1449_v47 }
 0x2ed   : > { %v1549_v49 = vpack.c.bf16 %v1458_v46, %v1455_v42 }
 0x2ee   : > { %v1548_v50 = vpack.c.bf16 %v1450_v48, %v1447_v44 }
 0x2f0   : > { %4143 = vmatprep.mubr.bf16.mxu0 %v1548_v50  ;;  %v4101_v51 = vpop.f32.mrb[32].mxu1 }
 0x2f1   : > { %4144 = vmatmul.mubr.bf16.gmra.mrb[28].mxu0 %v1549_v49  ;;  %v1471_v52 = vadd.f32 %v4101_v51, %v5448_v9  ;;  %v1462_v53 = vpop.f32.mrb[33].mxu1 }
 0x2f2   : > { %v1463_v54 = vadd.f32 %v5448_v9, %v1462_v53  ;;  %v4102_v55 = vpop.f32.mrb[34].mxu1 }
 0x2f3   : > { %v1474_v56 = vadd.f32 %v4102_v55, %v5448_v9  ;;  %v1465_v57 = vpop.f32.mrb[35].mxu1 }
 0x2f4   : > { %v1466_v6 = vadd.f32 %v5448_v9, %v1465_v57 }
 0x2f5   : > { %v1551_v58 = vpack.c.bf16 %v1474_v56, %v1471_v52 }
 0x2f6   : > { %v1550_v59 = vpack.c.bf16 %v1466_v6, %v1463_v54 }
 0x2f8   : > { %4147 = vmatprep.mubr.bf16.mxu0 %v1550_v59  ;;  %v4105_v60 = vpop.f32.mrb[36].mxu1 }
 0x2f9   : > { %4148 = vmatmul.mubr.bf16.gmra.mrb[32].mxu0 %v1551_v58  ;;  %v1487_v61 = vadd.f32 %v4105_v60, %v5448_v9  ;;  %v1478_v37 = vpop.f32.mrb[37].mxu1 }
 0x2fa   : > { %v1479_v34 = vadd.f32 %v5448_v9, %v1478_v37  ;;  %v4106_v62 = vpop.f32.mrb[38].mxu1 }
 0x2fb   : > { %v1490_v63 = vadd.f32 %v4106_v62, %v5448_v9  ;;  %v1481_v0 = vpop.f32.mrb[39].mxu1 }
 0x2fc   : > { %v1482_v1 = vadd.f32 %v5448_v9, %v1481_v0 }
 0x2fd   : > { %v1553_v2 = vpack.c.bf16 %v1490_v63, %v1487_v61 }
 0x2fe   : > { %v1552_v3 = vpack.c.bf16 %v1482_v1, %v1479_v34 }
 0x300   : > { %4151 = vmatprep.mubr.bf16.mxu0 %v1552_v3  ;;  %v4109_v4 = vpop.f32.mrb[40].mxu1 }
 0x301   : > { %4152 = vmatmul.mubr.bf16.gmra.mrb[36].mxu0 %v1553_v2  ;;  %v1503_v5 = vadd.f32 %v4109_v4, %v5448_v9  ;;  %v1494_v7 = vpop.f32.mrb[41].mxu1 }
 0x302   : > { %v1495_v8 = vadd.f32 %v5448_v9, %v1494_v7  ;;  %v4110_v10 = vpop.f32.mrb[42].mxu1 }
 0x303   : > { %v1506_v11 = vadd.f32 %v4110_v10, %v5448_v9  ;;  %v1497_v12 = vpop.f32.mrb[43].mxu1 }
 0x304   : > { %v1498_v13 = vadd.f32 %v5448_v9, %v1497_v12 }
 0x305   : > { %v1555_v14 = vpack.c.bf16 %v1506_v11, %v1503_v5 }
 0x306   : > { %v1554_v15 = vpack.c.bf16 %v1498_v13, %v1495_v8 }
 0x308   : > { %4155 = vmatprep.mubr.bf16.mxu0 %v1554_v15  ;;  %v4113_v16 = vpop.f32.mrb[44].mxu1 }
 0x309   : > { %4156 = vmatmul.mubr.bf16.gmra.mrb[40].mxu0 %v1555_v14  ;;  %v1519_v17 = vadd.f32 %v4113_v16, %v5448_v9  ;;  %v1510_v18 = vpop.f32.mrb[45].mxu1 }
 0x30a   : > { %v1511_v19 = vadd.f32 %v5448_v9, %v1510_v18  ;;  %v4114_v20 = vpop.f32.mrb[46].mxu1 }
 0x30b   : > { %v1522_v21 = vadd.f32 %v4114_v20, %v5448_v9  ;;  %v1513_v22 = vpop.f32.mrb[47].mxu1 }
 0x30c   : > { %v1514_v23 = vadd.f32 %v5448_v9, %v1513_v22 }
 0x30d   : > { %v1557_v24 = vpack.c.bf16 %v1522_v21, %v1519_v17 }
 0x30e   : > { %v1556_v25 = vpack.c.bf16 %v1514_v23, %v1511_v19 }
 0x310   : > { %4159 = vmatprep.mubr.bf16.mxu0 %v1556_v25 }
 0x311   : > { %4160 = vmatmul.mubr.bf16.gmra.mrb[44].mxu0 %v1557_v24 }
 0x3ac   : > { %v4133_v30 = vpop.f32.mrb[16].mxu0 }
 0x3ad   : > { %v1655_v31 = vadd.f32 %v4133_v30, %v5486_v29  ;;  %v1646_v9 = vpop.f32.mrb[17].mxu0 }
 0x3ae   : > { %v1647_v32 = vadd.f32 %v5486_v29, %v1646_v9  ;;  %v4134_v33 = vpop.f32.mrb[18].mxu0 }
 0x3af   : > { %v1658_v35 = vadd.f32 %v4134_v33, %v5486_v29  ;;  %v1649_v36 = vpop.f32.mrb[19].mxu0  ;;  %v1775_v39 = vmax.f32 %v1655_v31, 0.0 }
 0x3b0   : > { %v1650_v38 = vadd.f32 %v5486_v29, %v1649_v36  ;;  %v1773_v41 = vmax.f32 %v1647_v32, 0.0 }
 0x3b1   : > { %v1776_v40 = vmax.f32 %v1658_v35, 0.0 }
 0x3b2   : > { %v1774_v42 = vmax.f32 %v1650_v38, 0.0 }
 0x3b3   : > { %v1823_v43 = vpack.c.bf16 %v1776_v40, %v1775_v39 }
 0x3b4   : > { %v1822_v44 = vpack.c.bf16 %v1774_v42, %v1773_v41  ;;  %v4137_v45 = vpop.f32.mrb[20].mxu0 }
 0x3b5   : > { %v1671_v46 = vadd.f32 %v4137_v45, %v5486_v29  ;;  %v1662_v47 = vpop.f32.mrb[21].mxu0 }
 0x3b6   : > { %v1663_v48 = vadd.f32 %v5486_v29, %v1662_v47  ;;  %v4138_v49 = vpop.f32.mrb[22].mxu0  ;;  %1962 = vmatmul.mubr.bf16.vlgmr.msra.gmra.mrb[48].mxu1 %v1822_v44 }
 0x3b7   : > { %v1674_v50 = vadd.f32 %v4138_v49, %v5486_v29  ;;  %v1665_v51 = vpop.f32.mrb[23].mxu0  ;;  %1971 = vmatprep.mubr.bf16.mxu1 %v4963_v28  ;;  %v1779_v53 = vmax.f32 %v1671_v46, 0.0 }
 0x3b8   : > { %v1666_v52 = vadd.f32 %v5486_v29, %v1665_v51  ;;  %v1777_v55 = vmax.f32 %v1663_v48, 0.0 }
 0x3b9   : > { %v1780_v54 = vmax.f32 %v1674_v50, 0.0 }
 0x3ba   : > { %v1778_v56 = vmax.f32 %v1666_v52, 0.0 }
 0x3bb   : > { %v1825_v57 = vpack.c.bf16 %v1780_v54, %v1779_v53 }
 0x3bc   : > { %v1824_v6 = vpack.c.bf16 %v1778_v56, %v1777_v55  ;;  %v4141_v58 = vpop.f32.mrb[24].mxu0 }
 0x3bd   : > { %v1687_v59 = vadd.f32 %v4141_v58, %v5486_v29  ;;  %v1678_v60 = vpop.f32.mrb[25].mxu0 }
 0x3be   : > { %1972 = vmatmul.mubr.bf16.gmra.mrb[52].mxu1 %v1823_v43  ;;  %v1679_v61 = vadd.f32 %v5486_v29, %v1678_v60  ;;  %v4142_v37 = vpop.f32.mrb[26].mxu0 }
 0x3bf   : > { %v1783_v34 = vmax.f32 %v1687_v59, 0.0  ;;  %v1690_v62 = vadd.f32 %v4142_v37, %v5486_v29  ;;  %v1681_v63 = vpop.f32.mrb[27].mxu0  ;;  %1981 = vmatprep.mubr.bf16.mxu1 %v4963_v28 }
 0x3c0   : > { %v1781_v0 = vmax.f32 %v1679_v61, 0.0  ;;  %v1682_v1 = vadd.f32 %v5486_v29, %v1681_v63 }
 0x3c1   : > { %v1784_v2 = vmax.f32 %v1690_v62, 0.0 }
 0x3c2   : > { %v1782_v3 = vmax.f32 %v1682_v1, 0.0 }
 0x3c3   : > { %v1827_v4 = vpack.c.bf16 %v1784_v2, %v1783_v34 }
 0x3c4   : > { %v1826_v5 = vpack.c.bf16 %v1782_v3, %v1781_v0  ;;  %v4145_v7 = vpop.f32.mrb[28].mxu0 }
 0x3c5   : > { %v1703_v8 = vadd.f32 %v4145_v7, %v5486_v29  ;;  %v1694_v10 = vpop.f32.mrb[29].mxu0 }
 0x3c6   : > { %1982 = vmatmul.mubr.bf16.gmra.mrb[56].mxu1 %v1824_v6  ;;  %v1695_v11 = vadd.f32 %v5486_v29, %v1694_v10  ;;  %v4146_v12 = vpop.f32.mrb[30].mxu0 }
 0x3c7   : > { %1991 = vmatprep.mubr.bf16.mxu1 %v4963_v28  ;;  %v1787_v13 = vmax.f32 %v1703_v8, 0.0  ;;  %v1706_v14 = vadd.f32 %v4146_v12, %v5486_v29  ;;  %v1697_v15 = vpop.f32.mrb[31].mxu0 }
 0x3c8   : > { %v1785_v16 = vmax.f32 %v1695_v11, 0.0  ;;  %v1698_v17 = vadd.f32 %v5486_v29, %v1697_v15 }
 0x3c9   : > { %v1788_v18 = vmax.f32 %v1706_v14, 0.0 }
 0x3ca   : > { %v1786_v19 = vmax.f32 %v1698_v17, 0.0  ;;  %v4549_v17 = vld [vmem:[%s6285_s10 + $0x10] sm:$0xff]  }
 0x3cb   : > { %v5507_v20 = vpack.c.bf16 %v1788_v18, %v1787_v13  ;;  %v4964_v18 = vmov 0.0  }
 0x3cc   : > { %v1828_v21 = vpack.c.bf16 %v1786_v19, %v1785_v16  ;;  %v4149_v22 = vpop.f32.mrb[32].mxu0  ;;  %v4548_v16 = vld [vmem:[%s6285_s10 + $0x8] sm:$0xff]   ;;  %838 = vst [vmem:[#allocation2 + $0x10] sm:$0xff] %v4964_v18  ;;  %836 = vst [vmem:[#allocation2] sm:$0xff] %v4964_v18  ;;  %v868_v19 = vld [vmem:[%s5553_s17] sm:$0xff] }
 0x3cd   : > { %v1719_v23 = vadd.f32 %v4149_v22, %v5486_v29  ;;  %v1710_v24 = vpop.f32.mrb[33].mxu0  ;;  %837 = vst [vmem:[#allocation2 + $0x8] sm:$0xff] %v4964_v18  ;;  %839 = vst [vmem:[#allocation2 + $0x18] sm:$0xff] %v4964_v18  ;;  %v4550_v22 = vld [vmem:[%s6285_s10 + $0x18] sm:$0xff]  }
 0x3ce   : > { %1992 = vmatmul.mubr.bf16.gmra.mrb[60].mxu1 %v1825_v57  ;;  %v1711_v25 = vadd.f32 %v5486_v29, %v1710_v24  ;;  %v4150_v26 = vpop.f32.mrb[34].mxu0  ;;  %840 = vst [vmem:[#allocation2 + $0x20] sm:$0xff] %v4964_v18  ;;  %841 = vst [vmem:[#allocation2 + $0x28] sm:$0xff] %v4964_v18  ;;  %v871_v24 = vld [vmem:[%s5553_s17 + $0x18] sm:$0xff] }
 0x3cf   : > { %2001 = vmatprep.mubr.bf16.mxu1 %v4963_v28  ;;  %v1791_v27 = vmax.f32 %v1719_v23, 0.0  ;;  %v1722_v30 = vadd.f32 %v4150_v26, %v5486_v29  ;;  %v1713_v31 = vpop.f32.mrb[35].mxu0  ;;  %842 = vst [vmem:[#allocation2 + $0x30] sm:$0xff] %v4964_v18  ;;  %843 = vst [vmem:[#allocation2 + $0x38] sm:$0xff] %v4964_v18  ;;  %v4551_v23 = vld [vmem:[%s6285_s10 + $0x20] sm:$0xff]   ;;  %v4553_v26 = vld [vmem:[%s6285_s10 + $0x30] sm:$0xff]  }
 0x3d0   : > { %v1789_v9 = vmax.f32 %v1711_v25, 0.0  ;;  %v1714_v32 = vadd.f32 %v5486_v29, %v1713_v31  ;;  %844 = vst [vmem:[#allocation2 + $0x40] sm:$0xff] %v4964_v18  ;;  %845 = vst [vmem:[#allocation2 + $0x48] sm:$0xff] %v4964_v18  ;;  %v4552_v25 = vld [vmem:[%s6285_s10 + $0x28] sm:$0xff]   ;;  %v4554_v31 = vld [vmem:[%s6285_s10 + $0x38] sm:$0xff]  }
 0x3d1   : > { %v1792_v33 = vmax.f32 %v1722_v30, 0.0  ;;  %846 = vst [vmem:[#allocation2 + $0x50] sm:$0xff] %v4964_v18  ;;  %847 = vst [vmem:[#allocation2 + $0x58] sm:$0xff] %v4964_v18  ;;  %v873_v30 = vld [vmem:[%s5553_s17 + $0x28] sm:$0xff] }
 0x3d2   : > { %v1790_v35 = vmax.f32 %v1714_v32, 0.0  ;;  %848 = vst [vmem:[#allocation2 + $0x60] sm:$0xff] %v4964_v18  ;;  %849 = vst [vmem:[#allocation2 + $0x68] sm:$0xff] %v4964_v18  ;;  %v875_v32 = vld [vmem:[%s5553_s17 + $0x38] sm:$0xff] }
 0x3d3   : > { %v1831_v36 = vpack.c.bf16 %v1792_v33, %v1791_v27  ;;  %850 = vst [vmem:[#allocation2 + $0x70] sm:$0xff] %v4964_v18  ;;  %851 = vst [vmem:[#allocation2 + $0x78] sm:$0xff] %v4964_v18  ;;  %v872_v27 = vld [vmem:[%s5553_s17 + $0x20] sm:$0xff] }
 0x3d4   : > { %v1830_v38 = vpack.c.bf16 %v1790_v35, %v1789_v9  ;;  %v4153_v39 = vpop.f32.mrb[36].mxu0  ;;  %852 = vst [vmem:[#allocation2 + $0x80] sm:$0xff] %v4964_v18  ;;  %853 = vst [vmem:[#allocation2 + $0x88] sm:$0xff] %v4964_v18  ;;  %v874_v9 = vld [vmem:[%s5553_s17 + $0x30] sm:$0xff]  ;;  %v876_v33 = vld [vmem:[%s5553_s17 + $0x40] sm:$0xff] }
 0x3d5   : > { %v1735_v40 = vadd.f32 %v4153_v39, %v5486_v29  ;;  %v1726_v41 = vpop.f32.mrb[37].mxu0  ;;  %854 = vst [vmem:[#allocation2 + $0x90] sm:$0xff] %v4964_v18  ;;  %855 = vst [vmem:[#allocation2 + $0x98] sm:$0xff] %v4964_v18  ;;  %v877_v35 = vld [vmem:[%s5553_s17 + $0x48] sm:$0xff] }
 0x3d6   : > { %2002 = vmatmul.mubr.bf16.gmra.mrb[64].mxu1 %v1826_v5  ;;  %v1727_v42 = vadd.f32 %v5486_v29, %v1726_v41  ;;  %v4154_v43 = vpop.f32.mrb[38].mxu0  ;;  %856 = vst [vmem:[#allocation2 + $0xa0] sm:$0xff] %v4964_v18  ;;  %857 = vst [vmem:[#allocation2 + $0xa8] sm:$0xff] %v4964_v18  ;;  %v881_v39 = vld [vmem:[%s5553_s17 + $0x68] sm:$0xff]  ;;  %v883_v41 = vld [vmem:[%s5553_s17 + $0x78] sm:$0xff] }
 0x3d7   : > { %2011 = vmatprep.mubr.bf16.mxu1 %v4963_v28  ;;  %v1795_v44 = vmax.f32 %v1735_v40, 0.0  ;;  %v1738_v45 = vadd.f32 %v4154_v43, %v5486_v29  ;;  %v1729_v46 = vpop.f32.mrb[39].mxu0  ;;  %858 = vst [vmem:[#allocation2 + $0xb0] sm:$0xff] %v4964_v18  ;;  %859 = vst [vmem:[#allocation2 + $0xb8] sm:$0xff] %v4964_v18  ;;  %v882_v40 = vld [vmem:[%s5553_s17 + $0x70] sm:$0xff]  ;;  %v885_v43 = vld [vmem:[%s5553_s17 + $0x88] sm:$0xff] }
 0x3d8   : > { %v1793_v47 = vmax.f32 %v1727_v42, 0.0  ;;  %v1730_v48 = vadd.f32 %v5486_v29, %v1729_v46  ;;  %860 = vst [vmem:[#allocation2 + $0xc0] sm:$0xff] %v4964_v18  ;;  %861 = vst [vmem:[#allocation2 + $0xc8] sm:$0xff] %v4964_v18  ;;  %v884_v42 = vld [vmem:[%s5553_s17 + $0x80] sm:$0xff] }
 0x3d9   : > { %v1796_v49 = vmax.f32 %v1738_v45, 0.0  ;;  %862 = vst [vmem:[#allocation2 + $0xd0] sm:$0xff] %v4964_v18  ;;  %863 = vst [vmem:[#allocation2 + $0xd8] sm:$0xff] %v4964_v18  ;;  %v887_v45 = vld [vmem:[%s5553_s17 + $0x98] sm:$0xff]  ;;  %v888_v46 = vld [vmem:[%s5553_s17 + $0xa0] sm:$0xff] }
 0x3da   : > { %v1794_v50 = vmax.f32 %v1730_v48, 0.0  ;;  %864 = vst [vmem:[#allocation2 + $0xe0] sm:$0xff] %v4964_v18  ;;  %865 = vst [vmem:[#allocation2 + $0xe8] sm:$0xff] %v4964_v18  ;;  %v890_v48 = vld [vmem:[%s5553_s17 + $0xb0] sm:$0xff] }
 0x3db   : > { %v1833_v51 = vpack.c.bf16 %v1796_v49, %v1795_v44  ;;  %866 = vst [vmem:[#allocation2 + $0xf0] sm:$0xff] %v4964_v18  ;;  %867 = vst [vmem:[#allocation2 + $0xf8] sm:$0xff] %v4964_v18  ;;  %v886_v44 = vld [vmem:[%s5553_s17 + $0x90] sm:$0xff]  ;;  %v891_v49 = vld [vmem:[%s5553_s17 + $0xb8] sm:$0xff] }
 0x3dc   : > { %v1832_v52 = vpack.c.bf16 %v1794_v50, %v1793_v47  ;;  %v4157_v53 = vpop.f32.mrb[40].mxu0  ;;  %901 = vst.msk [vmem:[#allocation2] sm:$0xff] %vm900_vm0, %v868_v19  ;;  %904 = vst.msk [vmem:[#allocation2 + $0x18] sm:$0xff] %vm900_vm0, %v871_v24  ;;  %v889_v47 = vld [vmem:[%s5553_s17 + $0xa8] sm:$0xff]  ;;  %v892_v50 = vld [vmem:[%s5553_s17 + $0xc0] sm:$0xff] }
 0x3dd   : > { %v1751_v54 = vadd.f32 %v4157_v53, %v5486_v29  ;;  %v1742_v55 = vpop.f32.mrb[41].mxu0  ;;  %905 = vst.msk [vmem:[#allocation2 + $0x20] sm:$0xff] %vm900_vm0, %v872_v27  ;;  %906 = vst.msk [vmem:[#allocation2 + $0x28] sm:$0xff] %vm900_vm0, %v873_v30  ;;  %v894_v53 = vld [vmem:[%s5553_s17 + $0xd0] sm:$0xff] }
 0x3de   : > { %2012 = vmatmul.mubr.bf16.gmra.mrb[68].mxu1 %v1827_v4  ;;  %v1743_v56 = vadd.f32 %v5486_v29, %v1742_v55  ;;  %v4158_v57 = vpop.f32.mrb[42].mxu0  ;;  %907 = vst.msk [vmem:[#allocation2 + $0x30] sm:$0xff] %vm900_vm0, %v874_v9  ;;  %908 = vst.msk [vmem:[#allocation2 + $0x38] sm:$0xff] %vm900_vm0, %v875_v32 }
 0x3df   : > { %2021 = vmatprep.mubr.bf16.mxu1 %v4963_v28  ;;  %v1799_v6 = vmax.f32 %v1751_v54, 0.0  ;;  %v1754_v58 = vadd.f32 %v4158_v57, %v5486_v29  ;;  %v1745_v59 = vpop.f32.mrb[43].mxu0  ;;  %909 = vst.msk [vmem:[#allocation2 + $0x40] sm:$0xff] %vm900_vm0, %v876_v33  ;;  %910 = vst.msk [vmem:[#allocation2 + $0x48] sm:$0xff] %vm900_vm0, %v877_v35  ;;  %v895_v54 = vld [vmem:[%s5553_s17 + $0xd8] sm:$0xff] }
 0x3e0   : > { %v1797_v60 = vmax.f32 %v1743_v56, 0.0  ;;  %v1746_v61 = vadd.f32 %v5486_v29, %v1745_v59  ;;  %914 = vst.msk [vmem:[#allocation2 + $0x68] sm:$0xff] %vm900_vm0, %v881_v39  ;;  %915 = vst.msk [vmem:[#allocation2 + $0x70] sm:$0xff] %vm900_vm0, %v882_v40  ;;  %v1821_v57 = vld [vmem:[%s6284_s9] sm:$0x3]  ;;  %v897_v59 = vld [vmem:[%s5553_s17 + $0xe8] sm:$0xff] }
 0x3e1   : > { %v1800_v37 = vmax.f32 %v1754_v58, 0.0  ;;  %916 = vst.msk [vmem:[#allocation2 + $0x78] sm:$0xff] %vm900_vm0, %v883_v41  ;;  %917 = vst.msk [vmem:[#allocation2 + $0x80] sm:$0xff] %vm900_vm0, %v884_v42  ;;  %v896_v58 = vld [vmem:[%s5553_s17 + $0xe0] sm:$0xff] }
 0x3e2   : > { %v1798_v34 = vmax.f32 %v1746_v61, 0.0  ;;  %918 = vst.msk [vmem:[#allocation2 + $0x88] sm:$0xff] %vm900_vm0, %v885_v43  ;;  %919 = vst.msk [vmem:[#allocation2 + $0x90] sm:$0xff] %vm900_vm0, %v886_v44 }
 0x3e3   : > { %v5524_v62 = vpack.c.bf16 %v1800_v37, %v1799_v6  ;;  %920 = vst.msk [vmem:[#allocation2 + $0x98] sm:$0xff] %vm900_vm0, %v887_v45  ;;  %921 = vst.msk [vmem:[#allocation2 + $0xa0] sm:$0xff] %vm900_vm0, %v888_v46  ;;  %v933_v24 = vld [vmem:[#allocation2] sm:$0xff] }
 0x3e4   : > { %v5526_v63 = vpack.c.bf16 %v1798_v34, %v1797_v60  ;;  %v4161_v0 = vpop.f32.mrb[44].mxu0  ;;  %922 = vst.msk [vmem:[#allocation2 + $0xa8] sm:$0xff] %vm900_vm0, %v889_v47  ;;  %923 = vst.msk [vmem:[#allocation2 + $0xb0] sm:$0xff] %vm900_vm0, %v890_v48 }
 0x3e5   : > { %v1767_v1 = vadd.f32 %v4161_v0, %v5486_v29  ;;  %v1758_v2 = vpop.f32.mrb[45].mxu0  ;;  %924 = vst.msk [vmem:[#allocation2 + $0xb8] sm:$0xff] %vm900_vm0, %v891_v49  ;;  %925 = vst.msk [vmem:[#allocation2 + $0xc0] sm:$0xff] %vm900_vm0, %v892_v50 }
 0x3e6   : > { %2022 = vmatmul.mubr.bf16.gmra.mrb[72].mxu1 %v1828_v21  ;;  %v1759_v3 = vadd.f32 %v5486_v29, %v1758_v2  ;;  %v4162_v4 = vpop.f32.mrb[46].mxu0  ;;  %v869_v21 = vld [vmem:[%s5553_s17 + $0x8] sm:$0xff]  ;;  %927 = vst.msk [vmem:[#allocation2 + $0xd0] sm:$0xff] %vm900_vm0, %v894_v53  ;;  %928 = vst.msk [vmem:[#allocation2 + $0xd8] sm:$0xff] %vm900_vm0, %v895_v54 }
 0x3e7   : > { %2031 = vmatprep.mubr.bf16.mxu1 %v4963_v28  ;;  %v1803_v5 = vmax.f32 %v1767_v1, 0.0  ;;  %v1770_v7 = vadd.f32 %v4162_v4, %v5486_v29  ;;  %v1761_v8 = vpop.f32.mrb[47].mxu0  ;;  %902 = vst.msk [vmem:[#allocation2 + $0x8] sm:$0xff] %vm900_vm0, %v869_v21  ;;  %929 = vst.msk [vmem:[#allocation2 + $0xe0] sm:$0xff] %vm900_vm0, %v896_v58  ;;  %v898_v1 = vld [vmem:[%s5553_s17 + $0xf0] sm:$0xff] }
 0x3e8   : > { %v1801_v10 = vmax.f32 %v1759_v3, 0.0  ;;  %v1762_v11 = vadd.f32 %v5486_v29, %v1761_v8  ;;  %v4547_v29 = vld [vmem:[%s6285_s10] sm:$0xff]   ;;  %930 = vst.msk [vmem:[#allocation2 + $0xe8] sm:$0xff] %vm900_vm0, %v897_v59  ;;  %931 = vst.msk [vmem:[#allocation2 + $0xf0] sm:$0xff] %vm900_vm0, %v898_v1 }
 0x3e9   : > { %v1804_v12 = vmax.f32 %v1770_v7, 0.0  ;;  %4163 = vmatprep.subr.bf16.mxu0 %v4547_v29  ;;  %v899_v7 = vld [vmem:[%s5553_s17 + $0xf8] sm:$0xff] }
 0x3ea   : > { %v1802_v13 = vmax.f32 %v1762_v11, 0.0  ;;  %4164 = vmatpush3.bf16.msra.mxu0 %v4547_v29  ;;  %932 = vst.msk [vmem:[#allocation2 + $0xf8] sm:$0xff] %vm900_vm0, %v899_v7 }
 0x3eb   : > { %v5533_v14 = vpack.c.bf16 %v1804_v12, %v1803_v5  ;;  %4165 = vmatprep.subr.bf16.mxu0 %v4548_v16 }
 0x3ec   : > { %v5535_v15 = vpack.c.bf16 %v1802_v13, %v1801_v10 }
 0x3ee   : > { %2032 = vmatmul.mubr.bf16.gmra.mrb[76].mxu1 %v5507_v20  ;;  %4166 = vmatpush3.bf16.msra.mxu0 %v4548_v16  ;;  %v870_v20 = vld [vmem:[%s5553_s17 + $0x10] sm:$0xff]  ;;  %v934_v9 = vld [vmem:[#allocation2 + $0x8] sm:$0xff] }
 0x3ef   : > { %2041 = vmatprep.mubr.bf16.mxu1 %v4963_v28  ;;  %4167 = vmatprep.subr.bf16.mxu0 %v4549_v17  ;;  %903 = vst.msk [vmem:[#allocation2 + $0x10] sm:$0xff] %vm900_vm0, %v870_v20 }
 0x3f2   : > { %4168 = vmatpush3.bf16.msra.mxu0 %v4549_v17 }
 0x3f3   : > { %4169 = vmatprep.subr.bf16.mxu0 %v4550_v22 }
 0x3f6   : > { %2042 = vmatmul.mubr.bf16.gmra.mrb[80].mxu1 %v1830_v38  ;;  %4170 = vmatpush3.bf16.msra.mxu0 %v4550_v22  ;;  %v880_v38 = vld [vmem:[%s5553_s17 + $0x60] sm:$0xff]  ;;  %v935_v45 = vld [vmem:[#allocation2 + $0x10] sm:$0xff] }
 0x3f7   : > { %2051 = vmatprep.mubr.bf16.mxu1 %v4963_v28  ;;  %4171 = vmatprep.subr.bf16.mxu0 %v4551_v23  ;;  %913 = vst.msk [vmem:[#allocation2 + $0x60] sm:$0xff] %vm900_vm0, %v880_v38 }
 0x3fa   : > { %4172 = vmatpush3.bf16.msra.mxu0 %v4551_v23 }
 0x3fb   : > { %4173 = vmatprep.subr.bf16.mxu0 %v4552_v25 }
 0x3fe   : > { %2052 = vmatmul.mubr.bf16.gmra.mrb[84].mxu1 %v1831_v36  ;;  %4174 = vmatpush3.bf16.msra.mxu0 %v4552_v25  ;;  %v879_v36 = vld [vmem:[%s5553_s17 + $0x58] sm:$0xff] }
 0x3ff   : > { %2061 = vmatprep.mubr.bf16.mxu1 %v4963_v28  ;;  %4175 = vmatprep.subr.bf16.mxu0 %v4553_v26  ;;  %912 = vst.msk [vmem:[#allocation2 + $0x58] sm:$0xff] %vm900_vm0, %v879_v36 }
 0x402   : > { %4176 = vmatpush3.bf16.msra.mxu0 %v4553_v26 }
 0x403   : > { %4177 = vmatprep.subr.bf16.mxu0 %v4554_v31 }
 0x406   : > { %2062 = vmatmul.mubr.bf16.gmra.mrb[88].mxu1 %v1832_v52  ;;  %4178 = vmatpush3.bf16.msra.mxu0 %v4554_v31  ;;  %v1839_v52 = vlaneseq }
 0x407   : > { %2071 = vmatprep.mubr.bf16.mxu1 %v4963_v28 }
 0x408   : > { %v1840_v55 = vshrl.u32 %v1839_v52, 7  ;;  %v936_v52 = vld [vmem:[#allocation2 + $0x18] sm:$0xff] }
 0x40a   : > { %v1841_v56 = vsub.s32 0, %v1840_v55  ;;  %v1845_v6 = vsub.s32 1, %v1840_v55 }
 0x40c   : > { %v5642_v60 = vrot.slane %v1821_v57, %v1841_v56  ;;  %v5645_v61 = vrot.slane %v1821_v57, %v1845_v6 }
 0x40e   : > { %2072 = vmatmul.mubr.bf16.gmra.mrb[92].mxu1 %v1833_v51  ;;  %v893_v51 = vld [vmem:[%s5553_s17 + $0xc8] sm:$0xff] }
 0x40f   : > { %2081 = vmatprep.mubr.bf16.mxu1 %v4963_v28  ;;  %926 = vst.msk [vmem:[#allocation2 + $0xc8] sm:$0xff] %vm900_vm0, %v893_v51 }
 0x416   : > { %2082 = vmatmul.mubr.bf16.gmra.mrb[96].mxu1 %v5526_v63 }
 0x417   : > { %2091 = vmatprep.mubr.bf16.mxu1 %v4963_v28 }
 0x41e   : > { %2092 = vmatmul.mubr.bf16.gmra.mrb[100].mxu1 %v5524_v62 }
 0x41f   : > { %2101 = vmatprep.mubr.bf16.mxu1 %v4963_v28 }
 0x426   : > { %2102 = vmatmul.mubr.bf16.gmra.mrb[104].mxu1 %v5535_v15 }
 0x427   : > { %2111 = vmatprep.mubr.bf16.mxu1 %v4963_v28  ;;  %v878_v28 = vld [vmem:[%s5553_s17 + $0x50] sm:$0xff]  ;;  %s6364_s17 = sld [smem:[#allocation30_spill]] }
 0x428   : > { %911 = vst.msk [vmem:[#allocation2 + $0x50] sm:$0xff] %vm900_vm0, %v878_v28  ;;  %v5703_v28 = vld [vmem:[#allocation12] sm:$0xff]  }
 0x429   : > { %4211 = vmatprep.subr.bf16.mxu0 %v5703_v28 }
 0x42d   : > { %p6366_p11 = scmp.ne.s32.totalorder %s6364_s17, 0 }
 0x42e   : > { %2112 = vmatmul.mubr.bf16.gmra.mrb[108].mxu1 %v5533_v14 }
 0x489   : > { %v1963_v37 = vpop.f32.mrb[48].mxu1 }
 0x48a   : > { %v1964_v34 = vadd.f32 %v1963_v37, %v5642_v60  ;;  %v1965_v62 = vpop.f32.mrb[49].mxu1 }
 0x48b   : > { %v1966_v63 = vadd.f32 %v1965_v62, %v5645_v61  ;;  %v1967_v0 = vpop.f32.mrb[50].mxu1 }
 0x48c   : > { %3402 = vst.msk [vmem:[%s5651_s30] sm:$0xff] %vm900_vm0, %v1964_v34  ;;  %v1968_v2 = vadd.f32 %v1967_v0, %v5642_v60  ;;  %v1969_v3 = vpop.f32.mrb[51].mxu1 }
 0x48d   : > { %v2122_v4 = vmul.f32 0.5, %v1966_v63  ;;  %3434 = vst.msk [vmem:[%s5658_s18] sm:$0xff] %vm900_vm0, %v1966_v63  ;;  %v1970_v5 = vadd.f32 %v1969_v3, %v5645_v61  ;;  %v937_v3 = vld [vmem:[#allocation2 + $0x20] sm:$0xff] }
 0x48e   : > { %3403 = vst.msk [vmem:[%s5651_s30 + $0x8] sm:$0xff] %vm900_vm0, %v1968_v2 }
 0x48f   : > { %v2154_v8 = vmul.f32 1.442695, %v2122_v4  ;;  %v2123_v10 = vmul.f32 0.5, %v1970_v5  ;;  %3435 = vst.msk [vmem:[%s5658_s18 + $0x8] sm:$0xff] %vm900_vm0, %v1970_v5 }
 0x491   : > { %4579 = vpow2.f32 %v2154_v8  ;;  %v2156_v11 = vmul.f32 1.442695, %v2123_v10  ;;  %v1973_v12 = vpop.f32.mrb[52].mxu1  ;;  %v4556_v8 = vld [vmem:[#allocation12 + $0x8] sm:$0xff]  }
 0x492   : > { %v5676_v13 = vadd.f32 %v1973_v12, %v5642_v60  ;;  %v1975_v14 = vpop.f32.mrb[53].mxu1 }
 0x493   : > { %4581 = vpow2.f32 %v2156_v11  ;;  %v1976_v15 = vadd.f32 %v1975_v14, %v5645_v61  ;;  %v1977_v29 = vpop.f32.mrb[54].mxu1 }
 0x494   : > { %3404 = vst.msk [vmem:[%s5651_s30 + $0x10] sm:$0xff] %vm900_vm0, %v5676_v13  ;;  %v5683_v16 = vadd.f32 %v1977_v29, %v5642_v60  ;;  %v1979_v17 = vpop.f32.mrb[55].mxu1 }
 0x495   : > { %v2124_v18 = vmul.f32 0.5, %v1976_v15  ;;  %3436 = vst.msk [vmem:[%s5658_s18 + $0x10] sm:$0xff] %vm900_vm0, %v1976_v15  ;;  %v1980_v19 = vadd.f32 %v1979_v17, %v5645_v61 }
 0x496   : > { %3405 = vst.msk [vmem:[%s5651_s30 + $0x18] sm:$0xff] %vm900_vm0, %v5683_v16 }
 0x497   : > { %v2158_v20 = vmul.f32 1.442695, %v2124_v18  ;;  %v2125_v21 = vmul.f32 0.5, %v1980_v19  ;;  %3437 = vst.msk [vmem:[%s5658_s18 + $0x18] sm:$0xff] %vm900_vm0, %v1980_v19 }
 0x499   : > { %4583 = vpow2.f32 %v2158_v20  ;;  %v2160_v22 = vmul.f32 1.442695, %v2125_v21  ;;  %v1983_v23 = vpop.f32.mrb[56].mxu1  ;;  %v4557_v21 = vld [vmem:[#allocation12 + $0x10] sm:$0xff]  }
 0x49a   : > { %v5694_v25 = vadd.f32 %v1983_v23, %v5642_v60  ;;  %v1985_v26 = vpop.f32.mrb[57].mxu1 }
 0x49b   : > { %v4580_v27 = vpop.eup %4579  ;;  %4585 = vpow2.f32 %v2160_v22  ;;  %v1986_v30 = vadd.f32 %v1985_v26, %v5645_v61  ;;  %v1987_v31 = vpop.f32.mrb[58].mxu1 }
 0x49c   : > { %3406 = vst.msk [vmem:[%s5651_s30 + $0x20] sm:$0xff] %vm900_vm0, %v5694_v25  ;;  %v5701_v32 = vadd.f32 %v1987_v31, %v5642_v60  ;;  %v1989_v33 = vpop.f32.mrb[59].mxu1  ;;  %v2218_v35 = vmul.f32 %v4580_v27, %v933_v24 }
 0x49d   : > { %v4582_v36 = vpop.eup %4581  ;;  %v2126_v38 = vmul.f32 0.5, %v1986_v30  ;;  %3438 = vst.msk [vmem:[%s5658_s18 + $0x20] sm:$0xff] %vm900_vm0, %v1986_v30  ;;  %v1990_v39 = vadd.f32 %v1989_v33, %v5645_v61  ;;  %v939_v30 = vld [vmem:[#allocation2 + $0x30] sm:$0xff]  ;;  %v4558_v33 = vld [vmem:[#allocation12 + $0x18] sm:$0xff]  }
 0x49e   : > { %3407 = vst.msk [vmem:[%s5651_s30 + $0x28] sm:$0xff] %vm900_vm0, %v5701_v32  ;;  %v2219_v40 = vmul.f32 %v4582_v36, %v934_v9  ;;  %v2250_v41 = vadd.f32 %v2218_v35, %v1964_v34  ;;  %v940_v36 = vld [vmem:[#allocation2 + $0x38] sm:$0xff] }
 0x49f   : > { %v2162_v42 = vmul.f32 1.442695, %v2126_v38  ;;  %v2127_v43 = vmul.f32 0.5, %v1990_v39  ;;  %3439 = vst.msk [vmem:[%s5658_s18 + $0x28] sm:$0xff] %vm900_vm0, %v1990_v39 }
 0x4a0   : > { %v2251_v44 = vadd.f32 %v2219_v40, %v1968_v2  ;;  %3370 = vst.msk [vmem:[%s5712_s8] sm:$0xff] %vm900_vm0, %v2250_v41 }
 0x4a1   : > { %4587 = vpow2.f32 %v2162_v42  ;;  %v2164_v46 = vmul.f32 1.442695, %v2127_v43  ;;  %v1993_v47 = vpop.f32.mrb[60].mxu1 }
 0x4a2   : > { %v5723_v48 = vadd.f32 %v1993_v47, %v5642_v60  ;;  %v1995_v49 = vpop.f32.mrb[61].mxu1  ;;  %v2299_v50 = vpack.c.bf16 %v2251_v44, %v2250_v41  ;;  %3371 = vst.msk [vmem:[%s5712_s8 + $0x8] sm:$0xff] %vm900_vm0, %v2251_v44 }
 0x4a3   : > { %v4584_v51 = vpop.eup %4583  ;;  %4589 = vpow2.f32 %v2164_v46  ;;  %v1996_v53 = vadd.f32 %v1995_v49, %v5645_v61  ;;  %v1997_v54 = vpop.f32.mrb[62].mxu1  ;;  %v4559_v46 = vld [vmem:[#allocation12 + $0x20] sm:$0xff]  }
 0x4a4   : > { %v2220_v55 = vmul.f32 %v4584_v51, %v935_v45  ;;  %3408 = vst.msk [vmem:[%s5651_s30 + $0x30] sm:$0xff] %vm900_vm0, %v5723_v48  ;;  %v5732_v56 = vadd.f32 %v1997_v54, %v5642_v60  ;;  %v1999_v57 = vpop.f32.mrb[63].mxu1  ;;  %4179 = vmatprep.mubr.bf16.mxu0 %v2299_v50 }
 0x4a5   : > { %v4586_v6 = vpop.eup %4585  ;;  %v2128_v58 = vmul.f32 0.5, %v1996_v53  ;;  %3440 = vst.msk [vmem:[%s5658_s18 + $0x30] sm:$0xff] %vm900_vm0, %v1996_v53  ;;  %v2000_v59 = vadd.f32 %v1999_v57, %v5645_v61  ;;  %v941_v53 = vld [vmem:[#allocation2 + $0x40] sm:$0xff]  ;;  %v4560_v57 = vld [vmem:[#allocation12 + $0x28] sm:$0xff]  }
 0x4a6   : > { %v2221_v37 = vmul.f32 %v4586_v6, %v936_v52  ;;  %3409 = vst.msk [vmem:[%s5651_s30 + $0x38] sm:$0xff] %vm900_vm0, %v5732_v56  ;;  %v2252_v34 = vadd.f32 %v2220_v55, %v5676_v13  ;;  %v938_v13 = vld [vmem:[#allocation2 + $0x28] sm:$0xff] }
 0x4a7   : > { %v2166_v62 = vmul.f32 1.442695, %v2128_v58  ;;  %v2129_v63 = vmul.f32 0.5, %v2000_v59  ;;  %3441 = vst.msk [vmem:[%s5658_s18 + $0x38] sm:$0xff] %vm900_vm0, %v2000_v59  ;;  %v942_v59 = vld [vmem:[#allocation2 + $0x48] sm:$0xff] }
 0x4a8   : > { %v2253_v0 = vadd.f32 %v2221_v37, %v5683_v16  ;;  %3372 = vst.msk [vmem:[%s5712_s8 + $0x10] sm:$0xff] %vm900_vm0, %v2252_v34 }
 0x4a9   : > { %4591 = vpow2.f32 %v2166_v62  ;;  %v2168_v1 = vmul.f32 1.442695, %v2129_v63  ;;  %v2003_v2 = vpop.f32.mrb[64].mxu1 }
 0x4aa   : > { %v5747_v4 = vadd.f32 %v2003_v2, %v5642_v60  ;;  %v2005_v5 = vpop.f32.mrb[65].mxu1  ;;  %v2300_v7 = vpack.c.bf16 %v2253_v0, %v2252_v34  ;;  %3373 = vst.msk [vmem:[%s5712_s8 + $0x18] sm:$0xff] %vm900_vm0, %v2253_v0 }
 0x4ab   : > { %v4588_v10 = vpop.eup %4587  ;;  %4593 = vpow2.f32 %v2168_v1  ;;  %v2006_v11 = vadd.f32 %v2005_v5, %v5645_v61  ;;  %v2007_v12 = vpop.f32.mrb[66].mxu1 }
 0x4ac   : > { %3410 = vst.msk [vmem:[%s5651_s30 + $0x40] sm:$0xff] %vm900_vm0, %v5747_v4  ;;  %v5756_v14 = vadd.f32 %v2007_v12, %v5642_v60  ;;  %v2009_v15 = vpop.f32.mrb[67].mxu1  ;;  %4180 = vmatmul.mubr.bf16.vlgmr.msra.gmra.mrb[48].mxu0 %v2300_v7  ;;  %v2222_v29 = vmul.f32 %v4588_v10, %v937_v3  ;;  %v943_v12 = vld [vmem:[#allocation2 + $0x50] sm:$0xff] }
 0x4ad   : > { %v4590_v16 = vpop.eup %4589  ;;  %v2130_v17 = vmul.f32 0.5, %v2006_v11  ;;  %3442 = vst.msk [vmem:[%s5658_s18 + $0x40] sm:$0xff] %vm900_vm0, %v2006_v11  ;;  %v2010_v18 = vadd.f32 %v2009_v15, %v5645_v61  ;;  %4212 = vmatpush3.bf16.msra.mxu0 %v5703_v28 }
 0x4ae   : > { %3411 = vst.msk [vmem:[%s5651_s30 + $0x48] sm:$0xff] %vm900_vm0, %v5756_v14  ;;  %v2223_v19 = vmul.f32 %v4590_v16, %v938_v13  ;;  %v2254_v20 = vadd.f32 %v2222_v29, %v5694_v25  ;;  %4213 = vmatprep.subr.bf16.mxu0 %v4556_v8 }
 0x4af   : > { %v2170_v22 = vmul.f32 1.442695, %v2130_v17  ;;  %v2131_v23 = vmul.f32 0.5, %v2010_v18  ;;  %3443 = vst.msk [vmem:[%s5658_s18 + $0x48] sm:$0xff] %vm900_vm0, %v2010_v18  ;;  %v944_v17 = vld [vmem:[#allocation2 + $0x58] sm:$0xff] }
 0x4b0   : > { %v2255_v24 = vadd.f32 %v2223_v19, %v5701_v32  ;;  %3374 = vst.msk [vmem:[%s5712_s8 + $0x20] sm:$0xff] %vm900_vm0, %v2254_v20 }
 0x4b1   : > { %4595 = vpow2.f32 %v2170_v22  ;;  %v2172_v26 = vmul.f32 1.442695, %v2131_v23  ;;  %v2013_v27 = vpop.f32.mrb[68].mxu1  ;;  %4214 = vmatpush3.bf16.msra.mxu0 %v4556_v8 }
 0x4b2   : > { %v5772_v31 = vadd.f32 %v2013_v27, %v5642_v60  ;;  %v2015_v25 = vpop.f32.mrb[69].mxu1  ;;  %v2301_v9 = vpack.c.bf16 %v2255_v24, %v2254_v20  ;;  %3375 = vst.msk [vmem:[%s5712_s8 + $0x28] sm:$0xff] %vm900_vm0, %v2255_v24  ;;  %4215 = vmatprep.subr.bf16.mxu0 %v4557_v21 }
 0x4b3   : > { %v4592_v32 = vpop.eup %4591  ;;  %4597 = vpow2.f32 %v2172_v26  ;;  %v2016_v35 = vadd.f32 %v2015_v25, %v5645_v61  ;;  %v2017_v28 = vpop.f32.mrb[70].mxu1 }
 0x4b4   : > { %3412 = vst.msk [vmem:[%s5651_s30 + $0x50] sm:$0xff] %vm900_vm0, %v5772_v31  ;;  %v5781_v38 = vadd.f32 %v2017_v28, %v5642_v60  ;;  %v2019_v39 = vpop.f32.mrb[71].mxu1  ;;  %4183 = vmatprep.mubr.bf16.mxu0 %v2301_v9  ;;  %v2224_v40 = vmul.f32 %v4592_v32, %v939_v30  ;;  %v945_v32 = vld [vmem:[#allocation2 + $0x60] sm:$0xff] }
 0x4b5   : > { %v4594_v41 = vpop.eup %4593  ;;  %v2132_v42 = vmul.f32 0.5, %v2016_v35  ;;  %3444 = vst.msk [vmem:[%s5658_s18 + $0x50] sm:$0xff] %vm900_vm0, %v2016_v35  ;;  %v2020_v43 = vadd.f32 %v2019_v39, %v5645_v61  ;;  %4216 = vmatpush3.bf16.msra.mxu0 %v4557_v21 }
 0x4b6   : > { %3413 = vst.msk [vmem:[%s5651_s30 + $0x58] sm:$0xff] %vm900_vm0, %v5781_v38  ;;  %v2225_v44 = vmul.f32 %v4594_v41, %v940_v36  ;;  %v2256_v45 = vadd.f32 %v2224_v40, %v5723_v48  ;;  %4217 = vmatprep.subr.bf16.mxu0 %v4558_v33  ;;  %v946_v40 = vld [vmem:[#allocation2 + $0x68] sm:$0xff] }
 0x4b7   : > { %v2174_v47 = vmul.f32 1.442695, %v2132_v42  ;;  %v2133_v49 = vmul.f32 0.5, %v2020_v43  ;;  %3445 = vst.msk [vmem:[%s5658_s18 + $0x58] sm:$0xff] %vm900_vm0, %v2020_v43 }
 0x4b8   : > { %v2257_v50 = vadd.f32 %v2225_v44, %v5732_v56  ;;  %3376 = vst.msk [vmem:[%s5712_s8 + $0x30] sm:$0xff] %vm900_vm0, %v2256_v45 }
 0x4b9   : > { %4599 = vpow2.f32 %v2174_v47  ;;  %v2176_v51 = vmul.f32 1.442695, %v2133_v49  ;;  %v2023_v52 = vpop.f32.mrb[72].mxu1  ;;  %4218 = vmatpush3.bf16.msra.mxu0 %v4558_v33 }
 0x4ba   : > { %v5796_v54 = vadd.f32 %v2023_v52, %v5642_v60  ;;  %v2025_v48 = vpop.f32.mrb[73].mxu1  ;;  %v2302_v55 = vpack.c.bf16 %v2257_v50, %v2256_v45  ;;  %3377 = vst.msk [vmem:[%s5712_s8 + $0x38] sm:$0xff] %vm900_vm0, %v2257_v50  ;;  %4219 = vmatprep.subr.bf16.mxu0 %v4559_v46 }
 0x4bb   : > { %v4596_v56 = vpop.eup %4595  ;;  %4601 = vpow2.f32 %v2176_v51  ;;  %v2026_v6 = vadd.f32 %v2025_v48, %v5645_v61  ;;  %v2027_v58 = vpop.f32.mrb[74].mxu1 }
 0x4bc   : > { %3414 = vst.msk [vmem:[%s5651_s30 + $0x60] sm:$0xff] %vm900_vm0, %v5796_v54  ;;  %v5805_v37 = vadd.f32 %v2027_v58, %v5642_v60  ;;  %v2029_v34 = vpop.f32.mrb[75].mxu1  ;;  %4184 = vmatmul.mubr.bf16.gmra.mrb[52].mxu0 %v2302_v55  ;;  %v2226_v62 = vmul.f32 %v4596_v56, %v941_v53  ;;  %v947_v55 = vld [vmem:[#allocation2 + $0x70] sm:$0xff] }
 0x4bd   : > { %v4598_v63 = vpop.eup %4597  ;;  %v2134_v0 = vmul.f32 0.5, %v2026_v6  ;;  %3446 = vst.msk [vmem:[%s5658_s18 + $0x60] sm:$0xff] %vm900_vm0, %v2026_v6  ;;  %v2030_v1 = vadd.f32 %v2029_v34, %v5645_v61  ;;  %4220 = vmatpush3.bf16.msra.mxu0 %v4559_v46 }
 0x4be   : > { %3415 = vst.msk [vmem:[%s5651_s30 + $0x68] sm:$0xff] %vm900_vm0, %v5805_v37  ;;  %v2227_v2 = vmul.f32 %v4598_v63, %v942_v59  ;;  %v2258_v3 = vadd.f32 %v2226_v62, %v5747_v4  ;;  %4221 = vmatprep.subr.bf16.mxu0 %v4560_v57 }
 0x4bf   : > { %v2178_v5 = vmul.f32 1.442695, %v2134_v0  ;;  %v2135_v7 = vmul.f32 0.5, %v2030_v1  ;;  %3447 = vst.msk [vmem:[%s5658_s18 + $0x68] sm:$0xff] %vm900_vm0, %v2030_v1 }
 0x4c0   : > { %v2259_v8 = vadd.f32 %v2227_v2, %v5756_v14  ;;  %3378 = vst.msk [vmem:[%s5712_s8 + $0x40] sm:$0xff] %vm900_vm0, %v2258_v3 }
 0x4c1   : > { %4603 = vpow2.f32 %v2178_v5  ;;  %v2180_v10 = vmul.f32 1.442695, %v2135_v7  ;;  %v2033_v11 = vpop.f32.mrb[76].mxu1  ;;  %4222 = vmatpush3.bf16.msra.mxu0 %v4560_v57 }
 0x4c2   : > { %v5820_v13 = vadd.f32 %v2033_v11, %v5642_v60  ;;  %v2035_v4 = vpop.f32.mrb[77].mxu1  ;;  %v2303_v15 = vpack.c.bf16 %v2259_v8, %v2258_v3  ;;  %3379 = vst.msk [vmem:[%s5712_s8 + $0x48] sm:$0xff] %vm900_vm0, %v2259_v8 }
 0x4c3   : > { %v4600_v29 = vpop.eup %4599  ;;  %4605 = vpow2.f32 %v2180_v10  ;;  %v2036_v14 = vadd.f32 %v2035_v4, %v5645_v61  ;;  %v2037_v16 = vpop.f32.mrb[78].mxu1  ;;  %v949_v4 = vld [vmem:[#allocation2 + $0x80] sm:$0xff] }
 0x4c4   : > { %3416 = vst.msk [vmem:[%s5651_s30 + $0x70] sm:$0xff] %vm900_vm0, %v5820_v13  ;;  %v5829_v18 = vadd.f32 %v2037_v16, %v5642_v60  ;;  %v2039_v19 = vpop.f32.mrb[79].mxu1  ;;  %4187 = vmatprep.mubr.bf16.mxu0 %v2303_v15  ;;  %v2228_v20 = vmul.f32 %v4600_v29, %v943_v12 }
 0x4c5   : > { %v4602_v21 = vpop.eup %4601  ;;  %v2136_v22 = vmul.f32 0.5, %v2036_v14  ;;  %3448 = vst.msk [vmem:[%s5658_s18 + $0x70] sm:$0xff] %vm900_vm0, %v2036_v14  ;;  %v2040_v23 = vadd.f32 %v2039_v19, %v5645_v61 }
 0x4c6   : > { %3417 = vst.msk [vmem:[%s5651_s30 + $0x78] sm:$0xff] %vm900_vm0, %v5829_v18  ;;  %v2229_v24 = vmul.f32 %v4602_v21, %v944_v17  ;;  %v2260_v26 = vadd.f32 %v2228_v20, %v5772_v31 }
 0x4c7   : > { %v2182_v27 = vmul.f32 1.442695, %v2136_v22  ;;  %v2137_v30 = vmul.f32 0.5, %v2040_v23  ;;  %3449 = vst.msk [vmem:[%s5658_s18 + $0x78] sm:$0xff] %vm900_vm0, %v2040_v23 }
 0x4c8   : > { %v2261_v25 = vadd.f32 %v2229_v24, %v5781_v38  ;;  %3380 = vst.msk [vmem:[%s5712_s8 + $0x50] sm:$0xff] %vm900_vm0, %v2260_v26 }
 0x4c9   : > { %4607 = vpow2.f32 %v2182_v27  ;;  %v2184_v9 = vmul.f32 1.442695, %v2137_v30  ;;  %v2043_v33 = vpop.f32.mrb[80].mxu1 }
 0x4ca   : > { %v5844_v35 = vadd.f32 %v2043_v33, %v5642_v60  ;;  %v2045_v28 = vpop.f32.mrb[81].mxu1  ;;  %v2304_v36 = vpack.c.bf16 %v2261_v25, %v2260_v26  ;;  %3381 = vst.msk [vmem:[%s5712_s8 + $0x58] sm:$0xff] %vm900_vm0, %v2261_v25 }
 0x4cb   : > { %v4604_v31 = vpop.eup %4603  ;;  %4609 = vpow2.f32 %v2184_v9  ;;  %v2046_v39 = vadd.f32 %v2045_v28, %v5645_v61  ;;  %v2047_v38 = vpop.f32.mrb[82].mxu1  ;;  %v951_v28 = vld [vmem:[#allocation2 + $0x90] sm:$0xff] }
 0x4cc   : > { %3418 = vst.msk [vmem:[%s5651_s30 + $0x80] sm:$0xff] %vm900_vm0, %v5844_v35  ;;  %v5853_v41 = vadd.f32 %v2047_v38, %v5642_v60  ;;  %v2049_v42 = vpop.f32.mrb[83].mxu1  ;;  %4188 = vmatmul.mubr.bf16.gmra.mrb[56].mxu0 %v2304_v36  ;;  %v2230_v43 = vmul.f32 %v4604_v31, %v945_v32 }
 0x4cd   : > { %v4606_v44 = vpop.eup %4605  ;;  %v2138_v45 = vmul.f32 0.5, %v2046_v39  ;;  %3450 = vst.msk [vmem:[%s5658_s18 + $0x80] sm:$0xff] %vm900_vm0, %v2046_v39  ;;  %v2050_v46 = vadd.f32 %v2049_v42, %v5645_v61 }
 0x4ce   : > { %3419 = vst.msk [vmem:[%s5651_s30 + $0x88] sm:$0xff] %vm900_vm0, %v5853_v41  ;;  %v2231_v47 = vmul.f32 %v4606_v44, %v946_v40  ;;  %v2262_v49 = vadd.f32 %v2230_v43, %v5796_v54 }
 0x4cf   : > { %v2186_v50 = vmul.f32 1.442695, %v2138_v45  ;;  %v2139_v51 = vmul.f32 0.5, %v2050_v46  ;;  %3451 = vst.msk [vmem:[%s5658_s18 + $0x88] sm:$0xff] %vm900_vm0, %v2050_v46 }
 0x4d0   : > { %v2263_v52 = vadd.f32 %v2231_v47, %v5805_v37  ;;  %3382 = vst.msk [vmem:[%s5712_s8 + $0x60] sm:$0xff] %vm900_vm0, %v2262_v49  ;;  %v948_v37 = vld [vmem:[#allocation2 + $0x78] sm:$0xff] }
 0x4d1   : > { %4611 = vpow2.f32 %v2186_v50  ;;  %v2188_v53 = vmul.f32 1.442695, %v2139_v51  ;;  %v2053_v48 = vpop.f32.mrb[84].mxu1 }
 0x4d2   : > { %v5868_v57 = vadd.f32 %v2053_v48, %v5642_v60  ;;  %v2055_v56 = vpop.f32.mrb[85].mxu1  ;;  %v2305_v6 = vpack.c.bf16 %v2263_v52, %v2262_v49  ;;  %3383 = vst.msk [vmem:[%s5712_s8 + $0x68] sm:$0xff] %vm900_vm0, %v2263_v52 }
 0x4d3   : > { %v4608_v54 = vpop.eup %4607  ;;  %4613 = vpow2.f32 %v2188_v53  ;;  %v2056_v58 = vadd.f32 %v2055_v56, %v5645_v61  ;;  %v2057_v59 = vpop.f32.mrb[86].mxu1  ;;  %v953_v56 = vld [vmem:[#allocation2 + $0xa0] sm:$0xff] }
 0x4d4   : > { %3420 = vst.msk [vmem:[%s5651_s30 + $0x90] sm:$0xff] %vm900_vm0, %v5868_v57  ;;  %v5877_v34 = vadd.f32 %v2057_v59, %v5642_v60  ;;  %v2059_v62 = vpop.f32.mrb[87].mxu1  ;;  %4191 = vmatprep.mubr.bf16.mxu0 %v2305_v6  ;;  %v2232_v63 = vmul.f32 %v4608_v54, %v947_v55 }
 0x4d5   : > { %v4610_v0 = vpop.eup %4609  ;;  %v2140_v1 = vmul.f32 0.5, %v2056_v58  ;;  %3452 = vst.msk [vmem:[%s5658_s18 + $0x90] sm:$0xff] %vm900_vm0, %v2056_v58  ;;  %v2060_v2 = vadd.f32 %v2059_v62, %v5645_v61 }
 0x4d6   : > { %3421 = vst.msk [vmem:[%s5651_s30 + $0x98] sm:$0xff] %vm900_vm0, %v5877_v34  ;;  %v2233_v3 = vmul.f32 %v4610_v0, %v948_v37  ;;  %v2264_v5 = vadd.f32 %v2232_v63, %v5820_v13 }
 0x4d7   : > { %v2190_v7 = vmul.f32 1.442695, %v2140_v1  ;;  %v2141_v8 = vmul.f32 0.5, %v2060_v2  ;;  %3453 = vst.msk [vmem:[%s5658_s18 + $0x98] sm:$0xff] %vm900_vm0, %v2060_v2 }
 0x4d8   : > { %v2265_v10 = vadd.f32 %v2233_v3, %v5829_v18  ;;  %3384 = vst.msk [vmem:[%s5712_s8 + $0x70] sm:$0xff] %vm900_vm0, %v2264_v5  ;;  %v950_v18 = vld [vmem:[#allocation2 + $0x88] sm:$0xff] }
 0x4d9   : > { %4615 = vpow2.f32 %v2190_v7  ;;  %v2192_v11 = vmul.f32 1.442695, %v2141_v8  ;;  %v2063_v12 = vpop.f32.mrb[88].mxu1 }
 0x4da   : > { %v5892_v15 = vadd.f32 %v2063_v12, %v5642_v60  ;;  %v2065_v29 = vpop.f32.mrb[89].mxu1  ;;  %v2306_v14 = vpack.c.bf16 %v2265_v10, %v2264_v5  ;;  %3385 = vst.msk [vmem:[%s5712_s8 + $0x78] sm:$0xff] %vm900_vm0, %v2265_v10 }
 0x4db   : > { %v4612_v13 = vpop.eup %4611  ;;  %4617 = vpow2.f32 %v2192_v11  ;;  %v2066_v16 = vadd.f32 %v2065_v29, %v5645_v61  ;;  %v2067_v17 = vpop.f32.mrb[90].mxu1  ;;  %v955_v29 = vld [vmem:[#allocation2 + $0xb0] sm:$0xff] }
 0x4dc   : > { %3422 = vst.msk [vmem:[%s5651_s30 + $0xa0] sm:$0xff] %vm900_vm0, %v5892_v15  ;;  %v5901_v19 = vadd.f32 %v2067_v17, %v5642_v60  ;;  %v2069_v20 = vpop.f32.mrb[91].mxu1  ;;  %4192 = vmatmul.mubr.bf16.gmra.mrb[60].mxu0 %v2306_v14  ;;  %v2234_v21 = vmul.f32 %v4612_v13, %v949_v4 }
 0x4dd   : > { %v4614_v22 = vpop.eup %4613  ;;  %v2142_v23 = vmul.f32 0.5, %v2066_v16  ;;  %3454 = vst.msk [vmem:[%s5658_s18 + $0xa0] sm:$0xff] %vm900_vm0, %v2066_v16  ;;  %v2070_v24 = vadd.f32 %v2069_v20, %v5645_v61 }
 0x4de   : > { %3423 = vst.msk [vmem:[%s5651_s30 + $0xa8] sm:$0xff] %vm900_vm0, %v5901_v19  ;;  %v2235_v26 = vmul.f32 %v4614_v22, %v950_v18  ;;  %v2266_v27 = vadd.f32 %v2234_v21, %v5844_v35 }
 0x4df   : > { %v2194_v30 = vmul.f32 1.442695, %v2142_v23  ;;  %v2143_v25 = vmul.f32 0.5, %v2070_v24  ;;  %3455 = vst.msk [vmem:[%s5658_s18 + $0xa8] sm:$0xff] %vm900_vm0, %v2070_v24 }
 0x4e0   : > { %v2267_v9 = vadd.f32 %v2235_v26, %v5853_v41  ;;  %3386 = vst.msk [vmem:[%s5712_s8 + $0x80] sm:$0xff] %vm900_vm0, %v2266_v27  ;;  %v952_v41 = vld [vmem:[#allocation2 + $0x98] sm:$0xff] }
 0x4e1   : > { %4619 = vpow2.f32 %v2194_v30  ;;  %v2196_v33 = vmul.f32 1.442695, %v2143_v25  ;;  %v2073_v32 = vpop.f32.mrb[92].mxu1 }
 0x4e2   : > { %v5916_v36 = vadd.f32 %v2073_v32, %v5642_v60  ;;  %v2075_v31 = vpop.f32.mrb[93].mxu1  ;;  %v2307_v39 = vpack.c.bf16 %v2267_v9, %v2266_v27  ;;  %3387 = vst.msk [vmem:[%s5712_s8 + $0x88] sm:$0xff] %vm900_vm0, %v2267_v9 }
 0x4e3   : > { %v4616_v35 = vpop.eup %4615  ;;  %4621 = vpow2.f32 %v2196_v33  ;;  %v2076_v38 = vadd.f32 %v2075_v31, %v5645_v61  ;;  %v2077_v40 = vpop.f32.mrb[94].mxu1  ;;  %v957_v31 = vld [vmem:[#allocation2 + $0xc0] sm:$0xff] }
 0x4e4   : > { %3424 = vst.msk [vmem:[%s5651_s30 + $0xb0] sm:$0xff] %vm900_vm0, %v5916_v36  ;;  %v5925_v42 = vadd.f32 %v2077_v40, %v5642_v60  ;;  %v2079_v43 = vpop.f32.mrb[95].mxu1  ;;  %4195 = vmatprep.mubr.bf16.mxu0 %v2307_v39  ;;  %v2236_v44 = vmul.f32 %v4616_v35, %v951_v28 }
 0x4e5   : > { %v4618_v45 = vpop.eup %4617  ;;  %v2144_v46 = vmul.f32 0.5, %v2076_v38  ;;  %3456 = vst.msk [vmem:[%s5658_s18 + $0xb0] sm:$0xff] %vm900_vm0, %v2076_v38  ;;  %v2080_v47 = vadd.f32 %v2079_v43, %v5645_v61 }
 0x4e6   : > { %3425 = vst.msk [vmem:[%s5651_s30 + $0xb8] sm:$0xff] %vm900_vm0, %v5925_v42  ;;  %v2237_v49 = vmul.f32 %v4618_v45, %v952_v41  ;;  %v2268_v50 = vadd.f32 %v2236_v44, %v5868_v57 }
 0x4e7   : > { %v2198_v51 = vmul.f32 1.442695, %v2144_v46  ;;  %v2145_v52 = vmul.f32 0.5, %v2080_v47  ;;  %3457 = vst.msk [vmem:[%s5658_s18 + $0xb8] sm:$0xff] %vm900_vm0, %v2080_v47 }
 0x4e8   : > { %v2269_v53 = vadd.f32 %v2237_v49, %v5877_v34  ;;  %3388 = vst.msk [vmem:[%s5712_s8 + $0x90] sm:$0xff] %vm900_vm0, %v2268_v50  ;;  %v954_v34 = vld [vmem:[#allocation2 + $0xa8] sm:$0xff] }
 0x4e9   : > { %4623 = vpow2.f32 %v2198_v51  ;;  %v2200_v48 = vmul.f32 1.442695, %v2145_v52  ;;  %v2083_v55 = vpop.f32.mrb[96].mxu1 }
 0x4ea   : > { %v5940_v6 = vadd.f32 %v2083_v55, %v5642_v60  ;;  %v2085_v54 = vpop.f32.mrb[97].mxu1  ;;  %v2308_v58 = vpack.c.bf16 %v2269_v53, %v2268_v50  ;;  %3389 = vst.msk [vmem:[%s5712_s8 + $0x98] sm:$0xff] %vm900_vm0, %v2269_v53  ;;  %v4561_v55 = vld [vmem:[#allocation12 + $0x30] sm:$0xff]  }
 0x4eb   : > { %v4620_v57 = vpop.eup %4619  ;;  %4625 = vpow2.f32 %v2200_v48  ;;  %v2086_v59 = vadd.f32 %v2085_v54, %v5645_v61  ;;  %v2087_v37 = vpop.f32.mrb[98].mxu1  ;;  %4223 = vmatprep.subr.bf16.mxu0 %v4561_v55 }
 0x4ec   : > { %3426 = vst.msk [vmem:[%s5651_s30 + $0xc0] sm:$0xff] %vm900_vm0, %v5940_v6  ;;  %v5949_v62 = vadd.f32 %v2087_v37, %v5642_v60  ;;  %v2089_v63 = vpop.f32.mrb[99].mxu1  ;;  %4196 = vmatmul.mubr.bf16.gmra.mrb[64].mxu0 %v2308_v58  ;;  %v2238_v0 = vmul.f32 %v4620_v57, %v953_v56  ;;  %v959_v58 = vld [vmem:[#allocation2 + $0xd0] sm:$0xff] }
 0x4ed   : > { %v4622_v1 = vpop.eup %4621  ;;  %v2146_v2 = vmul.f32 0.5, %v2086_v59  ;;  %3458 = vst.msk [vmem:[%s5658_s18 + $0xc0] sm:$0xff] %vm900_vm0, %v2086_v59  ;;  %v2090_v3 = vadd.f32 %v2089_v63, %v5645_v61  ;;  %v960_v63 = vld [vmem:[#allocation2 + $0xd8] sm:$0xff]  ;;  %4224 = vmatpush3.bf16.msra.mxu0 %v4561_v55 }
 0x4ee   : > { %3427 = vst.msk [vmem:[%s5651_s30 + $0xc8] sm:$0xff] %vm900_vm0, %v5949_v62  ;;  %v2239_v5 = vmul.f32 %v4622_v1, %v954_v34  ;;  %v2270_v7 = vadd.f32 %v2238_v0, %v5892_v15 }
 0x4ef   : > { %v2202_v8 = vmul.f32 1.442695, %v2146_v2  ;;  %v2147_v10 = vmul.f32 0.5, %v2090_v3  ;;  %3459 = vst.msk [vmem:[%s5658_s18 + $0xc8] sm:$0xff] %vm900_vm0, %v2090_v3  ;;  %v4562_v3 = vld [vmem:[#allocation12 + $0x38] sm:$0xff]  }
 0x4f0   : > { %v2271_v11 = vadd.f32 %v2239_v5, %v5901_v19  ;;  %3390 = vst.msk [vmem:[%s5712_s8 + $0xa0] sm:$0xff] %vm900_vm0, %v2270_v7  ;;  %v956_v19 = vld [vmem:[#allocation2 + $0xb8] sm:$0xff]  ;;  %4225 = vmatprep.subr.bf16.mxu0 %v4562_v3 }
 0x4f1   : > { %4627 = vpow2.f32 %v2202_v8  ;;  %v2204_v12 = vmul.f32 1.442695, %v2147_v10  ;;  %v2093_v4 = vpop.f32.mrb[100].mxu1  ;;  %4226 = vmatpush3.bf16.msra.mxu0 %v4562_v3 }
 0x4f2   : > { %v5964_v14 = vadd.f32 %v2093_v4, %v5642_v60  ;;  %v2095_v13 = vpop.f32.mrb[101].mxu1  ;;  %v2309_v16 = vpack.c.bf16 %v2271_v11, %v2270_v7  ;;  %3391 = vst.msk [vmem:[%s5712_s8 + $0xa8] sm:$0xff] %vm900_vm0, %v2271_v11 }
 0x4f3   : > { %v4624_v15 = vpop.eup %4623  ;;  %4629 = vpow2.f32 %v2204_v12  ;;  %v2096_v17 = vadd.f32 %v2095_v13, %v5645_v61  ;;  %v2097_v18 = vpop.f32.mrb[102].mxu1 }
 0x4f4   : > { %3428 = vst.msk [vmem:[%s5651_s30 + $0xd0] sm:$0xff] %vm900_vm0, %v5964_v14  ;;  %v5973_v20 = vadd.f32 %v2097_v18, %v5642_v60  ;;  %v2099_v21 = vpop.f32.mrb[103].mxu1  ;;  %4199 = vmatprep.mubr.bf16.mxu0 %v2309_v16  ;;  %v2240_v22 = vmul.f32 %v4624_v15, %v955_v29 }
 0x4f5   : > { %v4626_v23 = vpop.eup %4625  ;;  %v2148_v24 = vmul.f32 0.5, %v2096_v17  ;;  %3460 = vst.msk [vmem:[%s5658_s18 + $0xd0] sm:$0xff] %vm900_vm0, %v2096_v17  ;;  %v2100_v26 = vadd.f32 %v2099_v21, %v5645_v61  ;;  %v963_v21 = vld [vmem:[#allocation2 + $0xf0] sm:$0xff] }
 0x4f6   : > { %3429 = vst.msk [vmem:[%s5651_s30 + $0xd8] sm:$0xff] %vm900_vm0, %v5973_v20  ;;  %v2241_v27 = vmul.f32 %v4626_v23, %v956_v19  ;;  %v2272_v30 = vadd.f32 %v2240_v22, %v5916_v36 }
 0x4f7   : > { %v2206_v25 = vmul.f32 1.442695, %v2148_v24  ;;  %v2149_v9 = vmul.f32 0.5, %v2100_v26  ;;  %3461 = vst.msk [vmem:[%s5658_s18 + $0xd8] sm:$0xff] %vm900_vm0, %v2100_v26  ;;  %v964_v24 = vld [vmem:[#allocation2 + $0xf8] sm:$0xff] }
 0x4f8   : > { %v2273_v33 = vadd.f32 %v2241_v27, %v5925_v42  ;;  %3392 = vst.msk [vmem:[%s5712_s8 + $0xb0] sm:$0xff] %vm900_vm0, %v2272_v30  ;;  %v958_v42 = vld [vmem:[#allocation2 + $0xc8] sm:$0xff] }
 0x4f9   : > { %4631 = vpow2.f32 %v2206_v25  ;;  %v2208_v32 = vmul.f32 1.442695, %v2149_v9  ;;  %v2103_v28 = vpop.f32.mrb[104].mxu1 }
 0x4fa   : > { %v5988_v39 = vadd.f32 %v2103_v28, %v5642_v60  ;;  %v2105_v35 = vpop.f32.mrb[105].mxu1  ;;  %v2310_v38 = vpack.c.bf16 %v2273_v33, %v2272_v30  ;;  %3393 = vst.msk [vmem:[%s5712_s8 + $0xb8] sm:$0xff] %vm900_vm0, %v2273_v33  ;;  %v4564_v28 = vld [vmem:[#allocation14 + $0x8] sm:$0xff]  }
 0x4fb   : > { %v4628_v36 = vpop.eup %4627  ;;  %4633 = vpow2.f32 %v2208_v32  ;;  %v2106_v40 = vadd.f32 %v2105_v35, %v5645_v61  ;;  %v2107_v41 = vpop.f32.mrb[106].mxu1  ;;  %v4563_v32 = vld [vmem:[#allocation14] sm:$0xff]  }
 0x4fc   : > { %3430 = vst.msk [vmem:[%s5651_s30 + $0xe0] sm:$0xff] %vm900_vm0, %v5988_v39  ;;  %v5997_v43 = vadd.f32 %v2107_v41, %v5642_v60  ;;  %v2109_v44 = vpop.f32.mrb[107].mxu1  ;;  %4200 = vmatmul.mubr.bf16.gmra.mrb[68].mxu0 %v2310_v38  ;;  %v2242_v45 = vmul.f32 %v4628_v36, %v957_v31  ;;  %4259 = vmatprep.subr.bf16.mxu1 %v4563_v32  ;;  %v6041_v31 = vld [vmem:[#allocation11] ss:$0 sm:$0xff] }
 0x4fd   : > { %v4630_v46 = vpop.eup %4629  ;;  %v2150_v47 = vmul.f32 0.5, %v2106_v40  ;;  %3462 = vst.msk [vmem:[%s5658_s18 + $0xe0] sm:$0xff] %vm900_vm0, %v2106_v40  ;;  %v2110_v49 = vadd.f32 %v2109_v44, %v5645_v61  ;;  %4260 = vmatpush3.bf16.msra.mxu1 %v4563_v32  ;;  %v4566_v44 = vld [vmem:[#allocation14 + $0x18] sm:$0xff]  }
 0x4fe   : > { %3431 = vst.msk [vmem:[%s5651_s30 + $0xe8] sm:$0xff] %vm900_vm0, %v5997_v43  ;;  %v2243_v50 = vmul.f32 %v4630_v46, %v958_v42  ;;  %v2274_v51 = vadd.f32 %v2242_v45, %v5940_v6  ;;  %4261 = vmatprep.subr.bf16.mxu1 %v4564_v28 }
 0x4ff   : > { %v2210_v52 = vmul.f32 1.442695, %v2150_v47  ;;  %v2151_v53 = vmul.f32 0.5, %v2110_v49  ;;  %3463 = vst.msk [vmem:[%s5658_s18 + $0xe8] sm:$0xff] %vm900_vm0, %v2110_v49 }
 0x500   : > { %v2275_v48 = vadd.f32 %v2243_v50, %v5949_v62  ;;  %3394 = vst.msk [vmem:[%s5712_s8 + $0xc0] sm:$0xff] %vm900_vm0, %v2274_v51 }
 0x501   : > { %4635 = vpow2.f32 %v2210_v52  ;;  %v2212_v56 = vmul.f32 1.442695, %v2151_v53  ;;  %v2113_v54 = vpop.f32.mrb[108].mxu1  ;;  %4262 = vmatpush3.bf16.msra.mxu1 %v4564_v28  ;;  %v4567_v52 = vld [vmem:[#allocation14 + $0x20] sm:$0xff]  }
 0x502   : > { %v2114_v57 = vadd.f32 %v2113_v54, %v5642_v60  ;;  %v2115_v59 = vpop.f32.mrb[109].mxu1  ;;  %v2311_v37 = vpack.c.bf16 %v2275_v48, %v2274_v51  ;;  %3395 = vst.msk [vmem:[%s5712_s8 + $0xc8] sm:$0xff] %vm900_vm0, %v2275_v48  ;;  %v4568_v48 = vld [vmem:[#allocation14 + $0x28] sm:$0xff]  }
 0x503   : > { %v4632_v6 = vpop.eup %4631  ;;  %4637 = vpow2.f32 %v2212_v56  ;;  %v2116_v34 = vadd.f32 %v2115_v59, %v5645_v61  ;;  %v2117_v62 = vpop.f32.mrb[110].mxu1 }
 0x504   : > { %3432 = vst.msk [vmem:[%s5651_s30 + $0xf0] sm:$0xff] %vm900_vm0, %v2114_v57  ;;  %v2118_v0 = vadd.f32 %v2117_v62, %v5642_v60  ;;  %v2119_v1 = vpop.f32.mrb[111].mxu1  ;;  %4203 = vmatprep.mubr.bf16.mxu0 %v2311_v37  ;;  %v2244_v2 = vmul.f32 %v4632_v6, %v959_v58 }
 0x505   : > { %v4634_v5 = vpop.eup %4633  ;;  %v2152_v7 = vmul.f32 0.5, %v2116_v34  ;;  %3464 = vst.msk [vmem:[%s5658_s18 + $0xf0] sm:$0xff] %vm900_vm0, %v2116_v34  ;;  %v2120_v8 = vadd.f32 %v2119_v1, %v5645_v61  ;;  %v961_v61 = vld [vmem:[#allocation2 + $0xe0] sm:$0xff] }
 0x506   : > { %3433 = vst.msk [vmem:[%s5651_s30 + $0xf8] sm:$0xff] %vm900_vm0, %v2118_v0  ;;  %v2245_v10 = vmul.f32 %v4634_v5, %v960_v63  ;;  %v2276_v11 = vadd.f32 %v2244_v2, %v5964_v14  ;;  %v962_v14 = vld [vmem:[#allocation2 + $0xe8] sm:$0xff]  ;;  %s6363_s30 = sld [smem:[#allocation40_spill]] }
 0x507   : > { %v2214_v12 = vmul.f32 1.442695, %v2152_v7  ;;  %v2153_v60 = vmul.f32 0.5, %v2120_v8  ;;  %3465 = vst.msk [vmem:[%s5658_s18 + $0xf8] sm:$0xff] %vm900_vm0, %v2120_v8  ;;  %s3495_s18 = sshll.u32 %s6159_s15, 4  ;;  %s6226_s18 = int_to_ptr.vmem [resolvable:$true] %s3495_s18 }
 0x508   : > { %v2277_v4 = vadd.f32 %v2245_v10, %v5973_v20  ;;  %3396 = vst.msk [vmem:[%s5712_s8 + $0xd0] sm:$0xff] %vm900_vm0, %v2276_v11  ;;  %s4867_s25 = scalar_lea.vmem %s6226_s18, 4096 }
 0x509   : > { %4639 = vpow2.f32 %v2214_v12  ;;  %v2216_v29 = vmul.f32 1.442695, %v2153_v60  ;;  %p4868_p8 = scmp.ne.s32.totalorder %s6226_s18, %s4867_s25 }
 0x50a   : > { %v2312_v13 = vpack.c.bf16 %v2277_v4, %v2276_v11  ;;  %3397 = vst.msk [vmem:[%s5712_s8 + $0xd8] sm:$0xff] %vm900_vm0, %v2277_v4 }
 0x50b   : > { %v4636_v16 = vpop.eup %4635  ;;  %4641 = vpow2.f32 %v2216_v29  ;;  %p4869_p5 = pnand %p4868_p8, %p6366_p11 }
 0x50c   : > { %4204 = vmatmul.mubr.bf16.gmra.mrb[72].mxu0 %v2312_v13  ;;  %v2246_v15 = vmul.f32 %v4636_v16, %v961_v61 }
 0x50d   : > { %v4638_v17 = vpop.eup %4637  ;;  %p4870_p0 = pneg %p4869_p5 }
 0x50e   : > { %v2247_v18 = vmul.f32 %v4638_v17, %v962_v14  ;;  %v2278_v19 = vadd.f32 %v2246_v15, %v5988_v39  ;;  %v4565_v39 = vld [vmem:[#allocation14 + $0x10] sm:$0xff]  }
 0x50f   : > { %4263 = vmatprep.subr.bf16.mxu1 %v4565_v39 }
 0x510   : > { %v2279_v20 = vadd.f32 %v2247_v18, %v5997_v43  ;;  %3398 = vst.msk [vmem:[%s5712_s8 + $0xe0] sm:$0xff] %vm900_vm0, %v2278_v19  ;;  %4264 = vmatpush3.bf16.msra.mxu1 %v4565_v39 }
 0x511   : > { %4265 = vmatprep.subr.bf16.mxu1 %v4566_v44 }
 0x512   : > { %v2313_v22 = vpack.c.bf16 %v2279_v20, %v2278_v19  ;;  %3399 = vst.msk [vmem:[%s5712_s8 + $0xe8] sm:$0xff] %vm900_vm0, %v2279_v20 }
 0x513   : > { %v4640_v23 = vpop.eup %4639 }
 0x514   : > { %4207 = vmatprep.mubr.bf16.mxu0 %v2313_v22  ;;  %v2248_v26 = vmul.f32 %v4640_v23, %v963_v21  ;;  %4266 = vmatpush3.bf16.msra.mxu1 %v4566_v44 }
 0x515   : > { %v4642_v27 = vpop.eup %4641  ;;  %4267 = vmatprep.subr.bf16.mxu1 %v4567_v52 }
 0x516   : > { %v2249_v30 = vmul.f32 %v4642_v27, %v964_v24  ;;  %v2280_v25 = vadd.f32 %v2248_v26, %v2114_v57 }
 0x518   : > { %v2281_v9 = vadd.f32 %v2249_v30, %v2118_v0  ;;  %3400 = vst.msk [vmem:[%s5712_s8 + $0xf0] sm:$0xff] %vm900_vm0, %v2280_v25  ;;  %4268 = vmatpush3.bf16.msra.mxu1 %v4567_v52 }
 0x519   : > { %4269 = vmatprep.subr.bf16.mxu1 %v4568_v48 }
 0x51a   : > { %v2314_v33 = vpack.c.bf16 %v2281_v9, %v2280_v25  ;;  %3401 = vst.msk [vmem:[%s5712_s8 + $0xf8] sm:$0xff] %vm900_vm0, %v2281_v9 }
 0x51c   : > { %4208 = vmatmul.mubr.bf16.gmra.mrb[76].mxu0 %v2314_v33  ;;  %4270 = vmatpush3.bf16.msra.mxu1 %v4568_v48 }
 0x57f   : > { %v4181_v35 = vpop.f32.mrb[48].mxu0 }
 0x580   : > { %v2412_v38 = vadd.f32 %v4181_v35, %v6041_v31  ;;  %v2403_v36 = vpop.f32.mrb[49].mxu0 }
 0x581   : > { %v2404_v40 = vadd.f32 %v6041_v31, %v2403_v36  ;;  %v4182_v41 = vpop.f32.mrb[50].mxu0 }
 0x582   : > { %v2415_v42 = vadd.f32 %v4182_v41, %v6041_v31  ;;  %v2406_v43 = vpop.f32.mrb[51].mxu0  ;;  %v2532_v46 = vmax.f32 %v2412_v38, 0.0 }
 0x583   : > { %v2407_v45 = vadd.f32 %v6041_v31, %v2406_v43  ;;  %v2530_v49 = vmax.f32 %v2404_v40, 0.0 }
 0x584   : > { %v2533_v47 = vmax.f32 %v2415_v42, 0.0 }
 0x585   : > { %v2531_v50 = vmax.f32 %v2407_v45, 0.0 }
 0x586   : > { %v2580_v51 = vpack.c.bf16 %v2533_v47, %v2532_v46 }
 0x587   : > { %v2579_v53 = vpack.c.bf16 %v2531_v50, %v2530_v49 }
 0x589   : > { %4227 = vmatprep.mubr.bf16.mxu0 %v2579_v53 }
 0x58a   : > { %4228 = vmatmul.mubr.bf16.vlgmr.msra.gmra.mrb[80].mxu0 %v2580_v51 }
 0x58f   : > { %v4185_v55 = vpop.f32.mrb[52].mxu0 }
 0x590   : > { %v2428_v56 = vadd.f32 %v4185_v55, %v6041_v31  ;;  %v2419_v54 = vpop.f32.mrb[53].mxu0 }
 0x591   : > { %v2420_v58 = vadd.f32 %v6041_v31, %v2419_v54  ;;  %v4186_v57 = vpop.f32.mrb[54].mxu0 }
 0x592   : > { %v2431_v59 = vadd.f32 %v4186_v57, %v6041_v31  ;;  %v2422_v37 = vpop.f32.mrb[55].mxu0  ;;  %v2536_v34 = vmax.f32 %v2428_v56, 0.0 }
 0x593   : > { %v2423_v6 = vadd.f32 %v6041_v31, %v2422_v37  ;;  %v2534_v63 = vmax.f32 %v2420_v58, 0.0 }
 0x594   : > { %v2537_v62 = vmax.f32 %v2431_v59, 0.0 }
 0x595   : > { %v2535_v0 = vmax.f32 %v2423_v6, 0.0  ;;  %v4569_v6 = vld [vmem:[#allocation14 + $0x30] sm:$0xff]  }
 0x596   : > { %v2582_v1 = vpack.c.bf16 %v2537_v62, %v2536_v34  ;;  %4271 = vmatprep.subr.bf16.mxu1 %v4569_v6 }
 0x597   : > { %v2581_v2 = vpack.c.bf16 %v2535_v0, %v2534_v63  ;;  %4272 = vmatpush3.bf16.msra.mxu1 %v4569_v6  ;;  %v4570_v0 = vld [vmem:[#allocation14 + $0x38] sm:$0xff]  }
 0x598   : > { %4273 = vmatprep.subr.bf16.mxu1 %v4570_v0 }
 0x599   : > { %4231 = vmatprep.mubr.bf16.mxu0 %v2581_v2 }
 0x59a   : > { %4232 = vmatmul.mubr.bf16.gmra.mrb[84].mxu0 %v2582_v1 }
 0x59b   : > { %4274 = vmatpush3.bf16.msra.mxu1 %v4570_v0 }
 0x59f   : > { %v4189_v3 = vpop.f32.mrb[56].mxu0 }
 0x5a0   : > { %v2444_v5 = vadd.f32 %v4189_v3, %v6041_v31  ;;  %v2435_v7 = vpop.f32.mrb[57].mxu0 }
 0x5a1   : > { %v2436_v8 = vadd.f32 %v6041_v31, %v2435_v7  ;;  %v4190_v10 = vpop.f32.mrb[58].mxu0 }
 0x5a2   : > { %v2447_v11 = vadd.f32 %v4190_v10, %v6041_v31  ;;  %v2438_v12 = vpop.f32.mrb[59].mxu0  ;;  %v2540_v4 = vmax.f32 %v2444_v5, 0.0 }
 0x5a3   : > { %v2439_v60 = vadd.f32 %v6041_v31, %v2438_v12  ;;  %v2538_v61 = vmax.f32 %v2436_v8, 0.0 }
 0x5a4   : > { %v2541_v29 = vmax.f32 %v2447_v11, 0.0 }
 0x5a5   : > { %v2539_v13 = vmax.f32 %v2439_v60, 0.0 }
 0x5a6   : > { %v2584_v16 = vpack.c.bf16 %v2541_v29, %v2540_v4 }
 0x5a7   : > { %v2583_v14 = vpack.c.bf16 %v2539_v13, %v2538_v61 }
 0x5a9   : > { %4235 = vmatprep.mubr.bf16.mxu0 %v2583_v14 }
 0x5aa   : > { %4236 = vmatmul.mubr.bf16.gmra.mrb[88].mxu0 %v2584_v16 }
 0x5af   : > { %v4193_v15 = vpop.f32.mrb[60].mxu0 }
 0x5b0   : > { %v2460_v17 = vadd.f32 %v4193_v15, %v6041_v31  ;;  %v2451_v18 = vpop.f32.mrb[61].mxu0 }
 0x5b1   : > { %v2452_v19 = vadd.f32 %v6041_v31, %v2451_v18  ;;  %v4194_v20 = vpop.f32.mrb[62].mxu0 }
 0x5b2   : > { %v2463_v21 = vadd.f32 %v4194_v20, %v6041_v31  ;;  %v2454_v22 = vpop.f32.mrb[63].mxu0  ;;  %v2544_v24 = vmax.f32 %v2460_v17, 0.0 }
 0x5b3   : > { %v2455_v23 = vadd.f32 %v6041_v31, %v2454_v22  ;;  %v2542_v27 = vmax.f32 %v2452_v19, 0.0 }
 0x5b4   : > { %v2545_v26 = vmax.f32 %v2463_v21, 0.0 }
 0x5b5   : > { %v2543_v30 = vmax.f32 %v2455_v23, 0.0 }
 0x5b6   : > { %v2586_v25 = vpack.c.bf16 %v2545_v26, %v2544_v24  ;;  %v4571_v26 = vld [vmem:[#allocation15] sm:$0xff]  }
 0x5b7   : > { %v2585_v9 = vpack.c.bf16 %v2543_v30, %v2542_v27  ;;  %v4572_v27 = vld [vmem:[#allocation15 + $0x8] sm:$0xff]   ;;  %4307 = vmatprep.subr.bf16.mxu0 %v4571_v26  ;;  %v4573_v30 = vld [vmem:[#allocation15 + $0x10] sm:$0xff]  }
 0x5b8   : > { %4308 = vmatpush3.bf16.msra.mxu0 %v4571_v26 }
 0x5b9   : > { %4239 = vmatprep.mubr.bf16.mxu0 %v2585_v9  ;;  %4309 = vmatprep.subr.bf16.mxu0 %v4572_v27  ;;  %v6078_v9 = vld [vmem:[%s6288_s13] ss:$0 sm:$0xff] }
 0x5ba   : > { %4240 = vmatmul.mubr.bf16.gmra.mrb[92].mxu0 %v2586_v25 }
 0x5bc   : > { %4310 = vmatpush3.bf16.msra.mxu0 %v4572_v27 }
 0x5bd   : > { %4311 = vmatprep.subr.bf16.mxu0 %v4573_v30 }
 0x5bf   : > { %v4197_v33 = vpop.f32.mrb[64].mxu0 }
 0x5c0   : > { %v2476_v32 = vadd.f32 %v4197_v33, %v6041_v31  ;;  %v2467_v28 = vpop.f32.mrb[65].mxu0  ;;  %v4574_v33 = vld [vmem:[#allocation15 + $0x18] sm:$0xff]   ;;  %4312 = vmatpush3.bf16.msra.mxu0 %v4573_v30 }
 0x5c1   : > { %v2468_v39 = vadd.f32 %v6041_v31, %v2467_v28  ;;  %v4198_v35 = vpop.f32.mrb[66].mxu0  ;;  %4313 = vmatprep.subr.bf16.mxu0 %v4574_v33 }
 0x5c2   : > { %v2479_v38 = vadd.f32 %v4198_v35, %v6041_v31  ;;  %v2470_v36 = vpop.f32.mrb[67].mxu0  ;;  %v2548_v41 = vmax.f32 %v2476_v32, 0.0 }
 0x5c3   : > { %v2471_v40 = vadd.f32 %v6041_v31, %v2470_v36  ;;  %v2546_v43 = vmax.f32 %v2468_v39, 0.0 }
 0x5c4   : > { %v2549_v42 = vmax.f32 %v2479_v38, 0.0  ;;  %4314 = vmatpush3.bf16.msra.mxu0 %v4574_v33 }
 0x5c5   : > { %v2547_v44 = vmax.f32 %v2471_v40, 0.0 }
 0x5c6   : > { %v2588_v45 = vpack.c.bf16 %v2549_v42, %v2548_v41  ;;  %v4575_v41 = vld [vmem:[#allocation15 + $0x20] sm:$0xff]  }
 0x5c7   : > { %v2587_v46 = vpack.c.bf16 %v2547_v44, %v2546_v43  ;;  %4315 = vmatprep.subr.bf16.mxu0 %v4575_v41  ;;  %v4576_v43 = vld [vmem:[#allocation15 + $0x28] sm:$0xff]  }
 0x5c8   : > { %4316 = vmatpush3.bf16.msra.mxu0 %v4575_v41 }
 0x5c9   : > { %4243 = vmatprep.mubr.bf16.mxu0 %v2587_v46  ;;  %4317 = vmatprep.subr.bf16.mxu0 %v4576_v43 }
 0x5ca   : > { %4244 = vmatmul.mubr.bf16.gmra.mrb[96].mxu0 %v2588_v45 }
 0x5cc   : > { %4318 = vmatpush3.bf16.msra.mxu0 %v4576_v43 }
 0x5cf   : > { %v4201_v47 = vpop.f32.mrb[68].mxu0 }
 0x5d0   : > { %v2492_v49 = vadd.f32 %v4201_v47, %v6041_v31  ;;  %v2483_v50 = vpop.f32.mrb[69].mxu0 }
 0x5d1   : > { %v2484_v51 = vadd.f32 %v6041_v31, %v2483_v50  ;;  %v4202_v52 = vpop.f32.mrb[70].mxu0 }
 0x5d2   : > { %v2495_v53 = vadd.f32 %v4202_v52, %v6041_v31  ;;  %v2486_v48 = vpop.f32.mrb[71].mxu0  ;;  %v2552_v56 = vmax.f32 %v2492_v49, 0.0 }
 0x5d3   : > { %v2487_v55 = vadd.f32 %v6041_v31, %v2486_v48  ;;  %v2550_v58 = vmax.f32 %v2484_v51, 0.0 }
 0x5d4   : > { %v2553_v54 = vmax.f32 %v2495_v53, 0.0 }
 0x5d5   : > { %v2551_v57 = vmax.f32 %v2487_v55, 0.0 }
 0x5d6   : > { %v2590_v59 = vpack.c.bf16 %v2553_v54, %v2552_v56 }
 0x5d7   : > { %v2589_v37 = vpack.c.bf16 %v2551_v57, %v2550_v58 }
 0x5d9   : > { %4247 = vmatprep.mubr.bf16.mxu0 %v2589_v37 }
 0x5da   : > { %4248 = vmatmul.mubr.bf16.gmra.mrb[100].mxu0 %v2590_v59 }
 0x5df   : > { %v4205_v34 = vpop.f32.mrb[72].mxu0 }
 0x5e0   : > { %v2508_v62 = vadd.f32 %v4205_v34, %v6041_v31  ;;  %v2499_v63 = vpop.f32.mrb[73].mxu0 }
 0x5e1   : > { %v2500_v1 = vadd.f32 %v6041_v31, %v2499_v63  ;;  %v4206_v2 = vpop.f32.mrb[74].mxu0 }
 0x5e2   : > { %v2511_v3 = vadd.f32 %v4206_v2, %v6041_v31  ;;  %v2502_v5 = vpop.f32.mrb[75].mxu0  ;;  %v2556_v8 = vmax.f32 %v2508_v62, 0.0 }
 0x5e3   : > { %v2503_v7 = vadd.f32 %v6041_v31, %v2502_v5  ;;  %v2554_v11 = vmax.f32 %v2500_v1, 0.0 }
 0x5e4   : > { %v2557_v10 = vmax.f32 %v2511_v3, 0.0 }
 0x5e5   : > { %v2555_v12 = vmax.f32 %v2503_v7, 0.0 }
 0x5e6   : > { %v2592_v60 = vpack.c.bf16 %v2557_v10, %v2556_v8 }
 0x5e7   : > { %v2591_v4 = vpack.c.bf16 %v2555_v12, %v2554_v11 }
 0x5e9   : > { %4251 = vmatprep.mubr.bf16.mxu0 %v2591_v4 }
 0x5ea   : > { %4252 = vmatmul.mubr.bf16.gmra.mrb[104].mxu0 %v2592_v60 }
 0x5ef   : > { %v4209_v29 = vpop.f32.mrb[76].mxu0 }
 0x5f0   : > { %v2524_v61 = vadd.f32 %v4209_v29, %v6041_v31  ;;  %v2515_v13 = vpop.f32.mrb[77].mxu0 }
 0x5f1   : > { %v2516_v16 = vadd.f32 %v6041_v31, %v2515_v13  ;;  %v4210_v14 = vpop.f32.mrb[78].mxu0 }
 0x5f2   : > { %v2527_v15 = vadd.f32 %v4210_v14, %v6041_v31  ;;  %v2518_v17 = vpop.f32.mrb[79].mxu0  ;;  %v2560_v19 = vmax.f32 %v2524_v61, 0.0 }
 0x5f3   : > { %v2519_v18 = vadd.f32 %v6041_v31, %v2518_v17  ;;  %v2558_v21 = vmax.f32 %v2516_v16, 0.0 }
 0x5f4   : > { %v2561_v20 = vmax.f32 %v2527_v15, 0.0 }
 0x5f5   : > { %v2559_v22 = vmax.f32 %v2519_v18, 0.0 }
 0x5f6   : > { %v2594_v23 = vpack.c.bf16 %v2561_v20, %v2560_v19 }
 0x5f7   : > { %v2593_v24 = vpack.c.bf16 %v2559_v22, %v2558_v21 }
 0x5f9   : > { %4255 = vmatprep.mubr.bf16.mxu0 %v2593_v24 }
 0x5fa   : > { %4256 = vmatmul.mubr.bf16.gmra.mrb[108].mxu0 %v2594_v23 }
 0x65d   : > { %v4229_v25 = vpop.f32.mrb[80].mxu0 }
 0x65e   : > { %v2683_v31 = vpop.f32.mrb[81].mxu0  ;;  %v2692_v28 = vadd.f32 %v4229_v25, %v6078_v9  ;;  %v4577_v25 = vld [vmem:[#allocation15 + $0x30] sm:$0xff]  }
 0x65f   : > { %v4230_v32 = vpop.f32.mrb[82].mxu0  ;;  %v2684_v38 = vadd.f32 %v6078_v9, %v2683_v31  ;;  %4319 = vmatprep.subr.bf16.mxu0 %v4577_v25 }
 0x660   : > { %v2695_v39 = vadd.f32 %v4230_v32, %v6078_v9  ;;  %v2686_v35 = vpop.f32.mrb[83].mxu0  ;;  %4320 = vmatpush3.bf16.msra.mxu0 %v4577_v25  ;;  %v4578_v32 = vld [vmem:[#allocation15 + $0x38] sm:$0xff]  }
 0x661   : > { %v2687_v36 = vadd.f32 %v6078_v9, %v2686_v35  ;;  %4321 = vmatprep.subr.bf16.mxu0 %v4578_v32 }
 0x662   : > { %v2828_v40 = vpack.c.bf16 %v2695_v39, %v2692_v28 }
 0x663   : > { %v2827_v42 = vpack.c.bf16 %v2687_v36, %v2684_v38 }
 0x664   : > { %4322 = vmatpush3.bf16.msra.mxu0 %v4578_v32 }
 0x665   : > { %4275 = vmatprep.mubr.bf16.mxu1 %v2827_v42 }
 0x666   : > { %4276 = vmatmul.mubr.bf16.vlgmr.msra.gmra.mrb[112].mxu1 %v2828_v40 }
 0x66d   : > { %v4233_v44 = vpop.f32.mrb[84].mxu0 }
 0x66e   : > { %v2699_v45 = vpop.f32.mrb[85].mxu0  ;;  %v2708_v47 = vadd.f32 %v4233_v44, %v6078_v9 }
 0x66f   : > { %v4234_v46 = vpop.f32.mrb[86].mxu0  ;;  %v2700_v51 = vadd.f32 %v6078_v9, %v2699_v45 }
 0x670   : > { %v2711_v49 = vadd.f32 %v4234_v46, %v6078_v9  ;;  %v2702_v50 = vpop.f32.mrb[87].mxu0 }
 0x671   : > { %v2703_v52 = vadd.f32 %v6078_v9, %v2702_v50 }
 0x672   : > { %v2830_v53 = vpack.c.bf16 %v2711_v49, %v2708_v47 }
 0x673   : > { %v2829_v48 = vpack.c.bf16 %v2703_v52, %v2700_v51 }
 0x675   : > { %4279 = vmatprep.mubr.bf16.mxu1 %v2829_v48  ;;  %v6115_v48 = vld [vmem:[%s6361_s26] ss:$0 sm:$0xff]  ;;  %s4871_s26 = sshll.u32 %s4965_s5, 4  ;;  %s4872_s26 = int_to_ptr.vmem [resolvable:$false] %s4871_s26 }
 0x676   : > { %4280 = vmatmul.mubr.bf16.gmra.mrb[116].mxu1 %v2830_v53  ;;  %s4873_s29 = scalar_lea.vmem %s4872_s26, 8192  ;;  %p4874_p6 = scmp.lt.s32.totalorder %s6226_s18, %s4872_s26 }
 0x677   : > { %p4875_p9 = scmp.lt.s32.totalorder %s4873_s29, %s4867_s25 }
 0x679   : > { %p4876_p10 = por %p4875_p9, %p4874_p6 }
 0x67b   : > { %p4877_p13 = pnand %p4876_p10, %p4870_p0 }
 0x67d   : > { %v4237_v55 = vpop.f32.mrb[88].mxu0 }
 0x67e   : > { %v2715_v56 = vpop.f32.mrb[89].mxu0  ;;  %v2724_v58 = vadd.f32 %v4237_v55, %v6078_v9 }
 0x67f   : > { %v4238_v54 = vpop.f32.mrb[90].mxu0  ;;  %v2716_v37 = vadd.f32 %v6078_v9, %v2715_v56 }
 0x680   : > { %v2727_v57 = vadd.f32 %v4238_v54, %v6078_v9  ;;  %v2718_v59 = vpop.f32.mrb[91].mxu0 }
 0x681   : > { %v2719_v6 = vadd.f32 %v6078_v9, %v2718_v59 }
 0x682   : > { %v2832_v34 = vpack.c.bf16 %v2727_v57, %v2724_v58 }
 0x683   : > { %v2831_v62 = vpack.c.bf16 %v2719_v6, %v2716_v37 }
 0x685   : > { %4283 = vmatprep.mubr.bf16.mxu1 %v2831_v62 }
 0x686   : > { %4284 = vmatmul.mubr.bf16.gmra.mrb[120].mxu1 %v2832_v34 }
 0x68d   : > { %v4241_v63 = vpop.f32.mrb[92].mxu0 }
 0x68e   : > { %v2731_v0 = vpop.f32.mrb[93].mxu0  ;;  %v2740_v2 = vadd.f32 %v4241_v63, %v6078_v9 }
 0x68f   : > { %v4242_v1 = vpop.f32.mrb[94].mxu0  ;;  %v2732_v7 = vadd.f32 %v6078_v9, %v2731_v0 }
 0x690   : > { %v2743_v3 = vadd.f32 %v4242_v1, %v6078_v9  ;;  %v2734_v5 = vpop.f32.mrb[95].mxu0 }
 0x691   : > { %v2735_v8 = vadd.f32 %v6078_v9, %v2734_v5 }
 0x692   : > { %v2834_v10 = vpack.c.bf16 %v2743_v3, %v2740_v2 }
 0x693   : > { %v2833_v11 = vpack.c.bf16 %v2735_v8, %v2732_v7 }
 0x695   : > { %4287 = vmatprep.mubr.bf16.mxu1 %v2833_v11 }
 0x696   : > { %4288 = vmatmul.mubr.bf16.gmra.mrb[124].mxu1 %v2834_v10 }
 0x69d   : > { %v4245_v12 = vpop.f32.mrb[96].mxu0 }
 0x69e   : > { %v2747_v60 = vpop.f32.mrb[97].mxu0  ;;  %v2756_v29 = vadd.f32 %v4245_v12, %v6078_v9 }
 0x69f   : > { %v4246_v4 = vpop.f32.mrb[98].mxu0  ;;  %v2748_v16 = vadd.f32 %v6078_v9, %v2747_v60 }
 0x6a0   : > { %v2759_v61 = vadd.f32 %v4246_v4, %v6078_v9  ;;  %v2750_v13 = vpop.f32.mrb[99].mxu0 }
 0x6a1   : > { %v2751_v14 = vadd.f32 %v6078_v9, %v2750_v13 }
 0x6a2   : > { %v2836_v15 = vpack.c.bf16 %v2759_v61, %v2756_v29 }
 0x6a3   : > { %v2835_v17 = vpack.c.bf16 %v2751_v14, %v2748_v16 }
 0x6a5   : > { %4291 = vmatprep.mubr.bf16.mxu1 %v2835_v17 }
 0x6a6   : > { %4292 = vmatmul.mubr.bf16.gmra.mrb[128].mxu1 %v2836_v15 }
 0x6ad   : > { %v4249_v18 = vpop.f32.mrb[100].mxu0 }
 0x6ae   : > { %v2763_v19 = vpop.f32.mrb[101].mxu0  ;;  %v2772_v21 = vadd.f32 %v4249_v18, %v6078_v9 }
 0x6af   : > { %v4250_v20 = vpop.f32.mrb[102].mxu0  ;;  %v2764_v24 = vadd.f32 %v6078_v9, %v2763_v19 }
 0x6b0   : > { %v2775_v22 = vadd.f32 %v4250_v20, %v6078_v9  ;;  %v2766_v23 = vpop.f32.mrb[103].mxu0 }
 0x6b1   : > { %v2767_v26 = vadd.f32 %v6078_v9, %v2766_v23 }
 0x6b2   : > { %v2838_v27 = vpack.c.bf16 %v2775_v22, %v2772_v21 }
 0x6b3   : > { %v2837_v30 = vpack.c.bf16 %v2767_v26, %v2764_v24 }
 0x6b5   : > { %4295 = vmatprep.mubr.bf16.mxu1 %v2837_v30 }
 0x6b6   : > { %4296 = vmatmul.mubr.bf16.gmra.mrb[132].mxu1 %v2838_v27 }
 0x6bd   : > { %v4253_v31 = vpop.f32.mrb[104].mxu0 }
 0x6be   : > { %v2779_v33 = vpop.f32.mrb[105].mxu0  ;;  %v2788_v39 = vadd.f32 %v4253_v31, %v6078_v9 }
 0x6bf   : > { %v4254_v28 = vpop.f32.mrb[106].mxu0  ;;  %v2780_v36 = vadd.f32 %v6078_v9, %v2779_v33 }
 0x6c0   : > { %v2791_v35 = vadd.f32 %v4254_v28, %v6078_v9  ;;  %v2782_v38 = vpop.f32.mrb[107].mxu0 }
 0x6c1   : > { %v2783_v40 = vadd.f32 %v6078_v9, %v2782_v38 }
 0x6c2   : > { %v2840_v41 = vpack.c.bf16 %v2791_v35, %v2788_v39 }
 0x6c3   : > { %v2839_v42 = vpack.c.bf16 %v2783_v40, %v2780_v36 }
 0x6c5   : > { %4299 = vmatprep.mubr.bf16.mxu1 %v2839_v42 }
 0x6c6   : > { %4300 = vmatmul.mubr.bf16.gmra.mrb[136].mxu1 %v2840_v41 }
 0x6cd   : > { %v4257_v43 = vpop.f32.mrb[108].mxu0 }
 0x6ce   : > { %v2795_v44 = vpop.f32.mrb[109].mxu0  ;;  %v2804_v46 = vadd.f32 %v4257_v43, %v6078_v9 }
 0x6cf   : > { %v4258_v45 = vpop.f32.mrb[110].mxu0  ;;  %v2796_v50 = vadd.f32 %v6078_v9, %v2795_v44 }
 0x6d0   : > { %v2807_v47 = vadd.f32 %v4258_v45, %v6078_v9  ;;  %v2798_v49 = vpop.f32.mrb[111].mxu0 }
 0x6d1   : > { %v2799_v51 = vadd.f32 %v6078_v9, %v2798_v49 }
 0x6d2   : > { %v2842_v52 = vpack.c.bf16 %v2807_v47, %v2804_v46 }
 0x6d3   : > { %v2841_v53 = vpack.c.bf16 %v2799_v51, %v2796_v50 }
 0x6d5   : > { %4303 = vmatprep.mubr.bf16.mxu1 %v2841_v53 }
 0x6d6   : > { %4304 = vmatmul.mubr.bf16.gmra.mrb[140].mxu1 %v2842_v52 }
 0x739   : > { %v4277_v55 = vpop.f32.mrb[112].mxu1 }
 0x73a   : > { %v2940_v56 = vadd.f32 %v4277_v55, %v6115_v48  ;;  %v2931_v54 = vpop.f32.mrb[113].mxu1 }
 0x73b   : > { %v2932_v58 = vadd.f32 %v6115_v48, %v2931_v54  ;;  %v4278_v57 = vpop.f32.mrb[114].mxu1 }
 0x73c   : > { %v2943_v59 = vadd.f32 %v4278_v57, %v6115_v48  ;;  %v2934_v37 = vpop.f32.mrb[115].mxu1  ;;  %v3060_v6 = vmax.f32 %v2940_v56, 0.0 }
 0x73d   : > { %v2935_v9 = vadd.f32 %v6115_v48, %v2934_v37  ;;  %v3058_v62 = vmax.f32 %v2932_v58, 0.0 }
 0x73e   : > { %v3061_v34 = vmax.f32 %v2943_v59, 0.0 }
 0x73f   : > { %v3059_v63 = vmax.f32 %v2935_v9, 0.0 }
 0x740   : > { %v3108_v0 = vpack.c.bf16 %v3061_v34, %v3060_v6 }
 0x741   : > { %v3107_v1 = vpack.c.bf16 %v3059_v63, %v3058_v62 }
 0x743   : > { %4323 = vmatprep.mubr.bf16.mxu0 %v3107_v1 }
 0x744   : > { %4324 = vmatmul.mubr.bf16.vlgmr.msra.gmra.mrb[112].mxu0 %v3108_v0 }
 0x749   : > { %v4281_v2 = vpop.f32.mrb[116].mxu1 }
 0x74a   : > { %v2956_v3 = vadd.f32 %v4281_v2, %v6115_v48  ;;  %v2947_v5 = vpop.f32.mrb[117].mxu1 }
 0x74b   : > { %v2948_v7 = vadd.f32 %v6115_v48, %v2947_v5  ;;  %v4282_v8 = vpop.f32.mrb[118].mxu1 }
 0x74c   : > { %v2959_v10 = vadd.f32 %v4282_v8, %v6115_v48  ;;  %v2950_v11 = vpop.f32.mrb[119].mxu1  ;;  %v3064_v60 = vmax.f32 %v2956_v3, 0.0 }
 0x74d   : > { %v2951_v12 = vadd.f32 %v6115_v48, %v2950_v11  ;;  %v3062_v29 = vmax.f32 %v2948_v7, 0.0 }
 0x74e   : > { %v3065_v4 = vmax.f32 %v2959_v10, 0.0 }
 0x74f   : > { %v3063_v61 = vmax.f32 %v2951_v12, 0.0 }
 0x750   : > { %v3110_v13 = vpack.c.bf16 %v3065_v4, %v3064_v60 }
 0x751   : > { %v3109_v16 = vpack.c.bf16 %v3063_v61, %v3062_v29 }
 0x753   : > { %4327 = vmatprep.mubr.bf16.mxu0 %v3109_v16 }
 0x754   : > { %4328 = vmatmul.mubr.bf16.gmra.mrb[116].mxu0 %v3110_v13 }
 0x759   : > { %v4285_v14 = vpop.f32.mrb[120].mxu1 }
 0x75a   : > { %v2972_v15 = vadd.f32 %v4285_v14, %v6115_v48  ;;  %v2963_v17 = vpop.f32.mrb[121].mxu1 }
 0x75b   : > { %v2964_v18 = vadd.f32 %v6115_v48, %v2963_v17  ;;  %v4286_v19 = vpop.f32.mrb[122].mxu1 }
 0x75c   : > { %v2975_v20 = vadd.f32 %v4286_v19, %v6115_v48  ;;  %v2966_v21 = vpop.f32.mrb[123].mxu1  ;;  %v3068_v23 = vmax.f32 %v2972_v15, 0.0 }
 0x75d   : > { %v2967_v22 = vadd.f32 %v6115_v48, %v2966_v21  ;;  %v3066_v26 = vmax.f32 %v2964_v18, 0.0 }
 0x75e   : > { %v3069_v24 = vmax.f32 %v2975_v20, 0.0 }
 0x75f   : > { %v3067_v27 = vmax.f32 %v2967_v22, 0.0 }
 0x760   : > { %v3112_v30 = vpack.c.bf16 %v3069_v24, %v3068_v23 }
 0x761   : > { %v3111_v25 = vpack.c.bf16 %v3067_v27, %v3066_v26 }
 0x763   : > { %4331 = vmatprep.mubr.bf16.mxu0 %v3111_v25 }
 0x764   : > { %4332 = vmatmul.mubr.bf16.gmra.mrb[120].mxu0 %v3112_v30 }
 0x769   : > { %v4289_v31 = vpop.f32.mrb[124].mxu1 }
 0x76a   : > { %v2988_v33 = vadd.f32 %v4289_v31, %v6115_v48  ;;  %v2979_v32 = vpop.f32.mrb[125].mxu1 }
 0x76b   : > { %v2980_v28 = vadd.f32 %v6115_v48, %v2979_v32  ;;  %v4290_v39 = vpop.f32.mrb[126].mxu1 }
 0x76c   : > { %v2991_v35 = vadd.f32 %v4290_v39, %v6115_v48  ;;  %v2982_v38 = vpop.f32.mrb[127].mxu1  ;;  %v3072_v40 = vmax.f32 %v2988_v33, 0.0 }
 0x76d   : > { %v2983_v36 = vadd.f32 %v6115_v48, %v2982_v38  ;;  %v3070_v42 = vmax.f32 %v2980_v28, 0.0 }
 0x76e   : > { %v3073_v41 = vmax.f32 %v2991_v35, 0.0 }
 0x76f   : > { %v3071_v43 = vmax.f32 %v2983_v36, 0.0  ;;  %v6155_v36 = vld [vmem:[%s6363_s30] ss:$0 sm:$0xff] }
 0x770   : > { %v3114_v44 = vpack.c.bf16 %v3073_v41, %v3072_v40 }
 0x771   : > { %v3113_v45 = vpack.c.bf16 %v3071_v43, %v3070_v42 }
 0x773   : > { %4335 = vmatprep.mubr.bf16.mxu0 %v3113_v45 }
 0x774   : > { %4336 = vmatmul.mubr.bf16.gmra.mrb[124].mxu0 %v3114_v44 }
 0x779   : > { %v4293_v46 = vpop.f32.mrb[128].mxu1 }
 0x77a   : > { %v3004_v47 = vadd.f32 %v4293_v46, %v6115_v48  ;;  %v2995_v49 = vpop.f32.mrb[129].mxu1 }
 0x77b   : > { %v2996_v50 = vadd.f32 %v6115_v48, %v2995_v49  ;;  %v4294_v51 = vpop.f32.mrb[130].mxu1 }
 0x77c   : > { %v3007_v52 = vadd.f32 %v4294_v51, %v6115_v48  ;;  %v2998_v53 = vpop.f32.mrb[131].mxu1  ;;  %v3076_v56 = vmax.f32 %v3004_v47, 0.0 }
 0x77d   : > { %v2999_v55 = vadd.f32 %v6115_v48, %v2998_v53  ;;  %v3074_v58 = vmax.f32 %v2996_v50, 0.0 }
 0x77e   : > { %v3077_v54 = vmax.f32 %v3007_v52, 0.0 }
 0x77f   : > { %v3075_v57 = vmax.f32 %v2999_v55, 0.0 }
 0x780   : > { %v3116_v59 = vpack.c.bf16 %v3077_v54, %v3076_v56 }
 0x781   : > { %v3115_v37 = vpack.c.bf16 %v3075_v57, %v3074_v58 }
 0x783   : > { %4339 = vmatprep.mubr.bf16.mxu0 %v3115_v37 }
 0x784   : > { %4340 = vmatmul.mubr.bf16.gmra.mrb[128].mxu0 %v3116_v59 }
 0x789   : > { %v4297_v9 = vpop.f32.mrb[132].mxu1 }
 0x78a   : > { %v3020_v6 = vadd.f32 %v4297_v9, %v6115_v48  ;;  %v3011_v34 = vpop.f32.mrb[133].mxu1 }
 0x78b   : > { %v3012_v62 = vadd.f32 %v6115_v48, %v3011_v34  ;;  %v4298_v63 = vpop.f32.mrb[134].mxu1 }
 0x78c   : > { %v3023_v0 = vadd.f32 %v4298_v63, %v6115_v48  ;;  %v3014_v1 = vpop.f32.mrb[135].mxu1  ;;  %v3080_v3 = vmax.f32 %v3020_v6, 0.0 }
 0x78d   : > { %v3015_v2 = vadd.f32 %v6115_v48, %v3014_v1  ;;  %v3078_v7 = vmax.f32 %v3012_v62, 0.0 }
 0x78e   : > { %v3081_v5 = vmax.f32 %v3023_v0, 0.0 }
 0x78f   : > { %v3079_v8 = vmax.f32 %v3015_v2, 0.0 }
 0x790   : > { %v3118_v10 = vpack.c.bf16 %v3081_v5, %v3080_v3 }
 0x791   : > { %v3117_v11 = vpack.c.bf16 %v3079_v8, %v3078_v7 }
 0x793   : > { %4343 = vmatprep.mubr.bf16.mxu0 %v3117_v11 }
 0x794   : > { %4344 = vmatmul.mubr.bf16.gmra.mrb[132].mxu0 %v3118_v10 }
 0x799   : > { %v4301_v12 = vpop.f32.mrb[136].mxu1 }
 0x79a   : > { %v3036_v60 = vadd.f32 %v4301_v12, %v6115_v48  ;;  %v3027_v4 = vpop.f32.mrb[137].mxu1 }
 0x79b   : > { %v3028_v29 = vadd.f32 %v6115_v48, %v3027_v4  ;;  %v4302_v61 = vpop.f32.mrb[138].mxu1 }
 0x79c   : > { %v3039_v13 = vadd.f32 %v4302_v61, %v6115_v48  ;;  %v3030_v16 = vpop.f32.mrb[139].mxu1  ;;  %v3084_v15 = vmax.f32 %v3036_v60, 0.0 }
 0x79d   : > { %v3031_v14 = vadd.f32 %v6115_v48, %v3030_v16  ;;  %v3082_v18 = vmax.f32 %v3028_v29, 0.0 }
 0x79e   : > { %v3085_v17 = vmax.f32 %v3039_v13, 0.0 }
 0x79f   : > { %v3083_v19 = vmax.f32 %v3031_v14, 0.0 }
 0x7a0   : > { %v3120_v20 = vpack.c.bf16 %v3085_v17, %v3084_v15 }
 0x7a1   : > { %v3119_v21 = vpack.c.bf16 %v3083_v19, %v3082_v18 }
 0x7a3   : > { %4347 = vmatprep.mubr.bf16.mxu0 %v3119_v21 }
 0x7a4   : > { %4348 = vmatmul.mubr.bf16.gmra.mrb[136].mxu0 %v3120_v20 }
 0x7a9   : > { %v4305_v22 = vpop.f32.mrb[140].mxu1 }
 0x7aa   : > { %v3052_v23 = vadd.f32 %v4305_v22, %v6115_v48  ;;  %v3043_v24 = vpop.f32.mrb[141].mxu1 }
 0x7ab   : > { %v3044_v26 = vadd.f32 %v6115_v48, %v3043_v24  ;;  %v4306_v27 = vpop.f32.mrb[142].mxu1 }
 0x7ac   : > { %v3055_v30 = vadd.f32 %v4306_v27, %v6115_v48  ;;  %v3046_v25 = vpop.f32.mrb[143].mxu1  ;;  %v3088_v33 = vmax.f32 %v3052_v23, 0.0 }
 0x7ad   : > { %v3047_v31 = vadd.f32 %v6115_v48, %v3046_v25  ;;  %v3086_v28 = vmax.f32 %v3044_v26, 0.0 }
 0x7ae   : > { %v3089_v32 = vmax.f32 %v3055_v30, 0.0 }
 0x7af   : > { %v3087_v39 = vmax.f32 %v3047_v31, 0.0 }
 0x7b0   : > { %v3122_v35 = vpack.c.bf16 %v3089_v32, %v3088_v33 }
 0x7b1   : > { %v3121_v38 = vpack.c.bf16 %v3087_v39, %v3086_v28 }
 0x7b3   : > { %4351 = vmatprep.mubr.bf16.mxu0 %v3121_v38 }
 0x7b4   : > { %4352 = vmatmul.mubr.bf16.gmra.mrb[140].mxu0 %v3122_v35 }
 0x817   : > { %v4325_v40 = vpop.f32.mrb[112].mxu0 }
 0x818   : > { %v3220_v41 = vadd.f32 %v4325_v40, %v6155_v36  ;;  %v3211_v48 = vpop.f32.mrb[113].mxu0 }
 0x819   : > { %v3212_v42 = vadd.f32 %v6155_v36, %v3211_v48  ;;  %v4326_v43 = vpop.f32.mrb[114].mxu0 }
 0x81a   : > { %3340 = vst [vmem:[%s6159_s15 + $0x10] sm:$0xff] %v3220_v41  ;;  %v3223_v44 = vadd.f32 %v4326_v43, %v6155_v36  ;;  %v3214_v45 = vpop.f32.mrb[115].mxu0 }
 0x81b   : > { %3338 = vst [vmem:[%s6159_s15] sm:$0xff] %v3212_v42  ;;  %v3215_v46 = vadd.f32 %v6155_v36, %v3214_v45 }
 0x81c   : > { %3341 = vst [vmem:[%s6159_s15 + $0x18] sm:$0xff] %v3223_v44 }
 0x81d   : > { %3339 = vst [vmem:[%s6159_s15 + $0x8] sm:$0xff] %v3215_v46 }
 0x827   : > { %v4329_v47 = vpop.f32.mrb[116].mxu0 }
 0x828   : > { %v3236_v49 = vadd.f32 %v4329_v47, %v6155_v36  ;;  %v3227_v50 = vpop.f32.mrb[117].mxu0 }
 0x829   : > { %v3228_v51 = vadd.f32 %v6155_v36, %v3227_v50  ;;  %v4330_v52 = vpop.f32.mrb[118].mxu0 }
 0x82a   : > { %3344 = vst [vmem:[%s6159_s15 + $0x30] sm:$0xff] %v3236_v49  ;;  %v3239_v53 = vadd.f32 %v4330_v52, %v6155_v36  ;;  %v3230_v55 = vpop.f32.mrb[119].mxu0 }
 0x82b   : > { %3342 = vst [vmem:[%s6159_s15 + $0x20] sm:$0xff] %v3228_v51  ;;  %v3231_v56 = vadd.f32 %v6155_v36, %v3230_v55 }
 0x82c   : > { %3345 = vst [vmem:[%s6159_s15 + $0x38] sm:$0xff] %v3239_v53 }
 0x82d   : > { %3343 = vst [vmem:[%s6159_s15 + $0x28] sm:$0xff] %v3231_v56 }
 0x837   : > { %v4333_v54 = vpop.f32.mrb[120].mxu0 }
 0x838   : > { %v3252_v58 = vadd.f32 %v4333_v54, %v6155_v36  ;;  %v3243_v57 = vpop.f32.mrb[121].mxu0 }
 0x839   : > { %v3244_v59 = vadd.f32 %v6155_v36, %v3243_v57  ;;  %v4334_v37 = vpop.f32.mrb[122].mxu0 }
 0x83a   : > { %3348 = vst [vmem:[%s6159_s15 + $0x50] sm:$0xff] %v3252_v58  ;;  %v3255_v9 = vadd.f32 %v4334_v37, %v6155_v36  ;;  %v3246_v6 = vpop.f32.mrb[123].mxu0 }
 0x83b   : > { %3346 = vst [vmem:[%s6159_s15 + $0x40] sm:$0xff] %v3244_v59  ;;  %v3247_v34 = vadd.f32 %v6155_v36, %v3246_v6 }
 0x83c   : > { %3349 = vst [vmem:[%s6159_s15 + $0x58] sm:$0xff] %v3255_v9 }
 0x83d   : > { %3347 = vst [vmem:[%s6159_s15 + $0x48] sm:$0xff] %v3247_v34 }
 0x847   : > { %v4337_v62 = vpop.f32.mrb[124].mxu0 }
 0x848   : > { %v3268_v63 = vadd.f32 %v4337_v62, %v6155_v36  ;;  %v3259_v0 = vpop.f32.mrb[125].mxu0 }
 0x849   : > { %v3260_v1 = vadd.f32 %v6155_v36, %v3259_v0  ;;  %v4338_v2 = vpop.f32.mrb[126].mxu0 }
 0x84a   : > { %3352 = vst [vmem:[%s6159_s15 + $0x70] sm:$0xff] %v3268_v63  ;;  %v3271_v3 = vadd.f32 %v4338_v2, %v6155_v36  ;;  %v3262_v5 = vpop.f32.mrb[127].mxu0 }
 0x84b   : > { %3350 = vst [vmem:[%s6159_s15 + $0x60] sm:$0xff] %v3260_v1  ;;  %v3263_v7 = vadd.f32 %v6155_v36, %v3262_v5 }
 0x84c   : > { %3353 = vst [vmem:[%s6159_s15 + $0x78] sm:$0xff] %v3271_v3 }
 0x84d   : > { %3351 = vst [vmem:[%s6159_s15 + $0x68] sm:$0xff] %v3263_v7 }
 0x857   : > { %v4341_v8 = vpop.f32.mrb[128].mxu0 }
 0x858   : > { %v3284_v10 = vadd.f32 %v4341_v8, %v6155_v36  ;;  %v3275_v11 = vpop.f32.mrb[129].mxu0 }
 0x859   : > { %v3276_v12 = vadd.f32 %v6155_v36, %v3275_v11  ;;  %v4342_v60 = vpop.f32.mrb[130].mxu0 }
 0x85a   : > { %3356 = vst [vmem:[%s6159_s15 + $0x90] sm:$0xff] %v3284_v10  ;;  %v3287_v4 = vadd.f32 %v4342_v60, %v6155_v36  ;;  %v3278_v29 = vpop.f32.mrb[131].mxu0 }
 0x85b   : > { %3354 = vst [vmem:[%s6159_s15 + $0x80] sm:$0xff] %v3276_v12  ;;  %v3279_v61 = vadd.f32 %v6155_v36, %v3278_v29 }
 0x85c   : > { %3357 = vst [vmem:[%s6159_s15 + $0x98] sm:$0xff] %v3287_v4 }
 0x85d   : > { %3355 = vst [vmem:[%s6159_s15 + $0x88] sm:$0xff] %v3279_v61 }
 0x867   : > { %v4345_v13 = vpop.f32.mrb[132].mxu0 }
 0x868   : > { %v3300_v16 = vadd.f32 %v4345_v13, %v6155_v36  ;;  %v3291_v14 = vpop.f32.mrb[133].mxu0 }
 0x869   : > { %v3292_v15 = vadd.f32 %v6155_v36, %v3291_v14  ;;  %v4346_v17 = vpop.f32.mrb[134].mxu0 }
 0x86a   : > { %3360 = vst [vmem:[%s6159_s15 + $0xb0] sm:$0xff] %v3300_v16  ;;  %v3303_v18 = vadd.f32 %v4346_v17, %v6155_v36  ;;  %v3294_v19 = vpop.f32.mrb[135].mxu0 }
 0x86b   : > { %3358 = vst [vmem:[%s6159_s15 + $0xa0] sm:$0xff] %v3292_v15  ;;  %v3295_v20 = vadd.f32 %v6155_v36, %v3294_v19 }
 0x86c   : > { %3361 = vst [vmem:[%s6159_s15 + $0xb8] sm:$0xff] %v3303_v18 }
 0x86d   : > { %3359 = vst [vmem:[%s6159_s15 + $0xa8] sm:$0xff] %v3295_v20 }
 0x877   : > { %v4349_v21 = vpop.f32.mrb[136].mxu0 }
 0x878   : > { %v3316_v22 = vadd.f32 %v4349_v21, %v6155_v36  ;;  %v3307_v23 = vpop.f32.mrb[137].mxu0 }
 0x879   : > { %v3308_v24 = vadd.f32 %v6155_v36, %v3307_v23  ;;  %v4350_v26 = vpop.f32.mrb[138].mxu0 }
 0x87a   : > { %3364 = vst [vmem:[%s6159_s15 + $0xd0] sm:$0xff] %v3316_v22  ;;  %v3319_v27 = vadd.f32 %v4350_v26, %v6155_v36  ;;  %v3310_v30 = vpop.f32.mrb[139].mxu0 }
 0x87b   : > { %3362 = vst [vmem:[%s6159_s15 + $0xc0] sm:$0xff] %v3308_v24  ;;  %v3311_v25 = vadd.f32 %v6155_v36, %v3310_v30 }
 0x87c   : > { %3365 = vst [vmem:[%s6159_s15 + $0xd8] sm:$0xff] %v3319_v27 }
 0x87d   : > { %3363 = vst [vmem:[%s6159_s15 + $0xc8] sm:$0xff] %v3311_v25 }
 0x887   : > { %v4353_v31 = vpop.f32.mrb[140].mxu0 }
 0x888   : > { %v3332_v33 = vadd.f32 %v4353_v31, %v6155_v36  ;;  %v3323_v32 = vpop.f32.mrb[141].mxu0 }
 0x889   : > { %v3324_v28 = vadd.f32 %v6155_v36, %v3323_v32  ;;  %v4354_v39 = vpop.f32.mrb[142].mxu0 }
 0x88a   : > { %3368 = vst [vmem:[%s6159_s15 + $0xf0] sm:$0xff] %v3332_v33  ;;  %v3335_v35 = vadd.f32 %v4354_v39, %v6155_v36  ;;  %v3326_v38 = vpop.f32.mrb[143].mxu0 }
 0x88b   : > { %3366 = vst [vmem:[%s6159_s15 + $0xe0] sm:$0xff] %v3324_v28  ;;  %v3327_v40 = vadd.f32 %v6155_v36, %v3326_v38 }
 0x88c   : > { %3369 = vst [vmem:[%s6159_s15 + $0xf8] sm:$0xff] %v3335_v35 }
 0x88d   : > { %3367 = vst [vmem:[%s6159_s15 + $0xe8] sm:$0xff] %v3327_v40 }
 0x88e   : > { %4880 = shalt.err (!%p4877_p13)
}
 0x88f   : > { %s4881_s23 = scalar_lea.hbm %s6224_s24, 4096  ;;  %s4885_s4 = scalar_lea.hbm %s6365_s28, 8192 }
 0x890   : > { %p4882_p12 = scmp.ne.s32.totalorder %s6224_s24, %s4881_s23  ;;  %p4886_p3 = scmp.lt.u32.totalorder %s6224_s24, %s6365_s28 }
 0x891   : > { %p4887_p4 = scmp.lt.u32.totalorder %s4885_s4, %s4881_s23  ;;  %p4889_p8 = scmp.lt.u32.totalorder %s4881_s23, %s6224_s24 }
 0x892   : > { %p4883_p1 = pnand %p4882_p12, %p6366_p11 }
 0x893   : > { %p4888_p7 = por %p4887_p4, %p4886_p3 }
 0x894   : > { %p4884_p2 = pneg %p4883_p1 }
 0x895   : > { %p4890_p5 = por %p4889_p8, %p4888_p7 }
 0x897   : > { %p4891_p0 = pnand %p4890_p5, %p4884_p2 }
 0x899   : > { %4894 = shalt.err (!%p4891_p0)
}
 0x89a   : > { %s4966_s0 = smov 128   ;;  %s4967_s2 = smov 8  }
 0x89b   : > { %4403 = dma.vmem_to_hbm [thread:$0]  (%p6366_p11), %s6226_s18, 4096, %s6224_s24, %s6234_s3, %s4966_s0, %s4966_s0, %s4967_s2  }
 0x89c PF: > { %s6367_s8 = sld [smem:[#allocation27_spill]]  ;;  %s6368_s25 = sld [smem:[#allocation24_spill]] }
 0x89d   : > { %s6369_s5 = sld [smem:[#allocation31_spill]] }
 0x8a2   : > { %p4450_p6 = scmp.ge.s32.totalorder %s6367_s8, 2  ;;  %s3522_s26 = sand.u32 1, %s6368_s25  }
 0x8a3   : > { %p6370_p9 = scmp.ne.s32.totalorder %s6369_s5, 0  ;;  %s3523_s29 = scalar_lea.sflag [#allocation5], %s3522_s26 }
 0x8a5   : > { %p4431_p10 = pnand %p4450_p6, %p6370_p9 }
 0x8a7   : > { %4932 = dma.done.wait (!%p4431_p10), %s3523_s29, 4096  }
 0x8a8   : > { %4934 = vsyncadd (!%p4431_p10), %s3523_s29, 4294963200  ;;  %s6371_s27 = sld [smem:[#allocation28_spill]]  ;;  %s6372_s2 = sld [smem:[#allocation25_spill]] }
 0x8a9   : > { %s6373_s25 = sld [smem:[#allocation26_spill]]  ;;  %s6374_s26 = sld [smem:[#allocation29_spill]] }
 0x8ae   : > { %p37_p13 = scmp.ge.s32.totalorder %s6371_s27, 4  }
 0x8b0   :  { %39 = sbr.rel (!%p37_p13) target bundleno = 19 (0x13), region = 199 }
 0x8b7   :  { %3552 = vsyncpa [#allocation4], 1 }
 0x8b8   :  { %3554 = vsyncpa [#allocation4 + $0x1], 1 }
 0x8b9   :  { %3555 = vsyncpa [#allocation7], 1 }
 0x8ba   :  { %3556 = vsyncpa [#allocation10], 1 }
 0x8bb   :  { %3557 = vsyncpa [#allocation13], 1 }
 0x8bc   :  { %3558 = vsyncpa [#allocation16], 1 }
 0x8bd   :  { %3559 = vsyncpa [#allocation5], 1 }
 0x8be   :  { %3561 = vsyncpa [#allocation5 + $0x1], 1 }

// kernel: tpu_custom_call.1
= control target key start
LH: loop header
LB: loop body
LE: loop exit
PB: predicated region body
PF: predicated region fallthrough
CT: control target
= control target key end

     0   :  { %s6275_s0 = inlined_call_operand.vmem [shape: f32[512,128], index: 0, kind: input, shape index: {}]   ;;  %s6276_s1 = inlined_call_operand.vmem [shape: f32[512,8], index: 1, kind: input, shape index: {}]   ;;  %s6277_s2 = inlined_call_operand.hbm [shape: bf16[128,128], index: 2, kind: input, shape index: {}]   ;;  %s6278_s3 = inlined_call_operand.vmem [shape: f32[1,128], index: 3, kind: input, shape index: {}]   ;;  %s6279_s4 = inlined_call_operand.hbm [shape: bf16[128,128], index: 4, kind: input, shape index: {}]   ;;  %s6280_s5 = inlined_call_operand.vmem [shape: f32[1,128], index: 5, kind: input, shape index: {}]   ;;  %s6281_s6 = inlined_call_operand.hbm [shape: bf16[128,128], index: 6, kind: input, shape index: {}]   ;;  %s6282_s7 = inlined_call_operand.vmem [shape: f32[1,128], index: 7, kind: input, shape index: {}]   ;;  %s6283_s8 = inlined_call_operand.hbm [shape: bf16[128,256], index: 8, kind: input, shape index: {}]   ;;  %s6284_s9 = inlined_call_operand.vmem [shape: f32[1,256], index: 9, kind: input, shape index: {}]   ;;  %s6285_s10 = inlined_call_operand.vmem [shape: bf16[128,128], index: 10, kind: input, shape index: {}]   ;;  %s6286_s11 = inlined_call_operand.hbm [shape: f32[1,128], index: 11, kind: input, shape index: {}]   ;;  %s6287_s12 = inlined_call_operand.hbm [shape: bf16[128,128], index: 12, kind: input, shape index: {}]   ;;  %s6288_s13 = inlined_call_operand.vmem [shape: f32[1,128], index: 13, kind: input, shape index: {}]   ;;  %s6289_s14 = inlined_call_operand.hbm [shape: bf16[128,128], index: 14, kind: input, shape index: {}]   ;;  %s6290_s15 = inlined_call_operand.vmem [shape: f32[1,128], index: 15, kind: input, shape index: {}]   ;;  %s6291_s16 = inlined_call_operand.hbm [shape: bf16[128,128], index: 16, kind: input, shape index: {}]   ;;  %s6292_s17 = inlined_call_operand.vmem [shape: f32[1,128], index: 17, kind: input, shape index: {}]   ;;  %s6293_s18 = inlined_call_operand.hbm [shape: f32[512,128], index: 18, kind: output, shape index: {0}]   ;;  %s6294_s19 = inlined_call_operand.vmem [shape: f32[512,8], index: 19, kind: output, shape index: {1}]   ;;  %s6295_s20 = inlined_call_operand.vmem [shape: f32[512,8], index: 20, kind: output, shape index: {2}]   ;;  %s6296_s21 = inlined_call_operand.vmem [shape: f32[512,8], index: 21, kind: output, shape index: {3}]  }
   0x1   :  { %6318 = sst [smem:[#allocation32_spill]] %s6275_s0 }
   0x2   :  { %6319 = sst [smem:[#allocation33_spill]] %s6276_s1 }
   0x3   :  { %6320 = sst [smem:[#allocation34_spill]] %s6277_s2 }
   0x4   :  { %6321 = sst [smem:[#allocation35_spill]] %s6278_s3 }
   0x5   :  { %6322 = sst [smem:[#allocation36_spill]] %s6279_s4 }
   0x6   :  { %6323 = sst [smem:[#allocation37_spill]] %s6280_s5 }
   0x7   :  { %6324 = sst [smem:[#allocation38_spill]] %s6283_s8 }
   0x8   :  { %6325 = sst [smem:[#allocation39_spill]] %s6290_s15 }
   0x9   :  { %6326 = sst [smem:[#allocation40_spill]] %s6292_s17 }
   0xa   :  { %6327 = sst [smem:[#allocation41_spill]] %s6293_s18 }
   0xb   :  { %27 = vsyncpa [#allocation4], 0 }
   0xc   :  { %28 = vsyncpa [#allocation7], 0 }
   0xd   :  { %29 = vsyncpa [#allocation10], 0 }
   0xe   :  { %30 = vsyncpa [#allocation13], 0 }
   0xf   :  { %31 = vsyncpa [#allocation16], 0 }
  0x10   :  { %32 = vsyncpa [#allocation5], 0 }
  0x11   :  { %34 = vsyncpa [#allocation5 + $0x1], 0  ;;  %s5078_s2 = smov 0   ;;  %s5080_s25 = smov 0  }
  0x12   :  { %s5082_s26 = smov 0   ;;  %s5084_s27 = smov 0  }
  0x13 LB: > { %6328 = sst [smem:[#allocation24_spill]] %s4937_s2  ;;  %s5099_s3 = sadd.s32 4294967295, %s4949_s27   ;;  %s4949_s27 = sphi %s5084_s27, %s6371_s27   ;;  %s4945_s26 = sphi %s5082_s26, %s6374_s26   ;;  %s4941_s25 = sphi %s5080_s25, %s6373_s25   ;;  %s4937_s2 = sphi %s5078_s2, %s6372_s2  }
  0x14   : > { %6329 = sst [smem:[#allocation25_spill]] %s4941_s25  ;;  %s3735_s28 = sadd.s32 4294967294, %s4949_s27  }
  0x15   : > { %6330 = sst [smem:[#allocation26_spill]] %s4945_s26  ;;  %s5103_s29 = sadd.s32 1, %s4949_s27  }
  0x16   : > { %6331 = sst [smem:[#allocation27_spill]] %s4949_s27  ;;  %s435_s0 = sadd.s32 1, %s4945_s26 }
  0x17   : > { %6332 = sst [smem:[#allocation28_spill]] %s5103_s29  ;;  %s432_s4 = ssub.s32 %s4949_s27, %s5103_s29 }
  0x18   : > { %p445_p0 = scmp.ne.s32.totalorder %s4945_s26, %s4941_s25  ;;  %p433_p1 = scmp.eq.s32.totalorder %s432_s4, 0 }
  0x19   : > { %p446_p2 = scmp.eq.s32.totalorder %s5099_s3, 1  ;;  %p451_p3 = scmp.ne.s32.totalorder %s4941_s25, %s4937_s2 }
  0x1a   : > { %p452_p4 = scmp.eq.s32.totalorder %s3735_s28, 1  ;;  %p3736_p7 = scmp.ge.s32.totalorder %s4949_s27, 1 }
  0x1b   : > { %s5114_s30 = scalar_select %p433_p1, %s4945_s26, %s435_s0  }
  0x1c   : > { %p5116_p5 = por %p446_p2, %p445_p0  ;;  %p5120_p6 = por %p452_p4, %p451_p3 }
  0x1d   : > { %6333 = sst [smem:[#allocation29_spill]] %s5114_s30  ;;  %p537_p8 = scmp.lt.s32.totalorder %s4949_s27, 3 }
  0x1e   : > { %s6334_s5 = scalar_select %p5116_p5, 1, 0 }
  0x1f   : > { %s6336_s22 = scalar_select %p5120_p6, 1, 0 }
  0x20   : > { %6335 = sst [smem:[#allocation30_spill]] %s6334_s5  ;;  %p6306_p9 = scmp.eq.s32.totalorder %s5099_s3, 0 }
  0x21   : > { %6337 = sst [smem:[#allocation31_spill]] %s6336_s22  ;;  %p5127_p10 = pnand %p3736_p7, %p537_p8 }
  0x22   : > { %s4951_s1 = smov [#allocation6]   ;;  %s4952_s0 = smov [#allocation9]  }
  0x23   : > { %s6338_s23 = scalar_select %p5127_p10, 1, 0 }
  0x24   : > { %p4405_p11 = pneg %p5127_p10  ;;  %s565_s24 = sshll.u32 %s4951_s1, 4  ;;  %s566_s24 = int_to_ptr.vmem [resolvable:$true] %s565_s24 }
  0x25   : > { %s597_s4 = sshll.u32 %s4952_s0, 4  ;;  %s6340_s29 = sld [smem:[#allocation36_spill]]  ;;  %s5139_s4 = int_to_ptr.vmem [resolvable:$true] %s597_s4 }
  0x26   : > { %p5135_p12 = pnand %p6306_p9, %p4405_p11 }
  0x28   : > { %p5149_p0 = pneg %p5135_p12 }
  0x2b   : > { %s4643_s22 = scalar_lea.hbm %s6340_s29, 1024 }
  0x2c   : > { %p4644_p13 = scmp.ne.s32.totalorder %s6340_s29, %s4643_s22  ;;  %p4650_p3 = scmp.lt.u32.totalorder %s4643_s22, %s6340_s29 }
  0x2e   : > { %p4646_p1 = pnand %p5149_p0, %p4644_p13 }
  0x30   : > { %p4647_p2 = pneg %p4646_p1 }
  0x32   : > { %p4652_p4 = pnand %p4650_p3, %p4647_p2 }
  0x34   : > { %4655 = shalt.err (!%p4652_p4)
}
  0x35   : > { %s4656_s26 = scalar_lea.vmem %s566_s24, 1024  ;;  %p4664_p9 = scmp.lt.s32.totalorder %s566_s24, %s566_s24 }
  0x36   : > { %p4657_p7 = scmp.ne.s32.totalorder %s566_s24, %s4656_s26  ;;  %p4665_p6 = scmp.lt.s32.totalorder %s4656_s26, %s4656_s26 }
  0x38   : > { %p4659_p8 = pnand %p4657_p7, %p5149_p0  ;;  %p4666_p5 = por %p4665_p6, %p4664_p9 }
  0x3a   : > { %p4660_p11 = pneg %p4659_p8 }
  0x3c   : > { %p4667_p10 = pnand %p4666_p5, %p4660_p11 }
  0x3e   : > { %4670 = shalt.err (!%p4667_p10)
}
  0x3f   : > { %s6313_s2 = smov 64   ;;  %s6315_s27 = smov 4  }
  0x40   : > { %4411 = dma.hbm_to_vmem [thread:$0]  (!%p5135_p12), %s6340_s29, 1024, %s566_s24, [#allocation7], %s6313_s2, %s6313_s2, %s6315_s27  }
  0x41   : > { %s6342_s8 = sld [smem:[#allocation38_spill]] }
  0x47   : > { %s4671_s5 = scalar_lea.hbm %s6342_s8, 2048 }
  0x48   : > { %p4672_p5 = scmp.ne.s32.totalorder %s6342_s8, %s4671_s5  ;;  %p4678_p10 = scmp.lt.u32.totalorder %s4671_s5, %s6342_s8 }
  0x4a   : > { %p4674_p6 = pnand %p4672_p5, %p5149_p0 }
  0x4c   : > { %p4675_p9 = pneg %p4674_p6 }
  0x4e   : > { %p4680_p13 = pnand %p4678_p10, %p4675_p9 }
  0x50   : > { %4683 = shalt.err (!%p4680_p13)
}
  0x51   : > { %s4684_s24 = scalar_lea.vmem %s5139_s4, 2048  ;;  %p4692_p4 = scmp.lt.s32.totalorder %s5139_s4, %s5139_s4 }
  0x52   : > { %p4685_p1 = scmp.ne.s32.totalorder %s5139_s4, %s4684_s24  ;;  %p4693_p7 = scmp.lt.s32.totalorder %s4684_s24, %s4684_s24 }
  0x54   : > { %p4687_p2 = pnand %p4685_p1, %p5149_p0  ;;  %p4694_p8 = por %p4693_p7, %p4692_p4 }
  0x56   : > { %p4688_p3 = pneg %p4687_p2 }
  0x58   : > { %p4695_p11 = pnand %p4694_p8, %p4688_p3 }
  0x5a   : > { %4698 = shalt.err (!%p4695_p11)
}
  0x5b   : > { %s4955_s17 = smov 128   ;;  %s4956_s15 = smov 8  }
  0x5c   : > { %4417 = dma.hbm_to_vmem [thread:$0]  (!%p5135_p12), %s6342_s8, 2048, %s5139_s4, [#allocation10], %s4955_s17, %s4955_s17, %s4956_s15  }
  0x5d   : > { %s4957_s18 = smov [#allocation12]   ;;  %s4958_s22 = smov [#allocation3]  }
  0x5e   : > { %s627_s30 = sshll.u32 %s4957_s18, 4  ;;  %s549_s0 = sshll.u32 %s4958_s22, 4  ;;  %s628_s30 = int_to_ptr.vmem [resolvable:$true] %s627_s30  ;;  %s5191_s0 = int_to_ptr.vmem [resolvable:$true] %s549_s0 }
  0x5f   : > { %s4699_s2 = scalar_lea.hbm %s6287_s12, 1024 }
  0x60   : > { %p4700_p5 = scmp.ne.s32.totalorder %s6287_s12, %s4699_s2  ;;  %p4706_p10 = scmp.lt.u32.totalorder %s4699_s2, %s6287_s12 }
  0x62   : > { %p4702_p6 = pnand %p4700_p5, %p5149_p0 }
  0x64   : > { %p4703_p9 = pneg %p4702_p6 }
  0x66   : > { %p4708_p13 = pnand %p4706_p10, %p4703_p9 }
  0x68   : > { %4711 = shalt.err (!%p4708_p13)
}
  0x69   : > { %s4712_s17 = scalar_lea.vmem %s628_s30, 1024  ;;  %p4720_p4 = scmp.lt.s32.totalorder %s628_s30, %s628_s30 }
  0x6a   : > { %p4713_p1 = scmp.ne.s32.totalorder %s628_s30, %s4712_s17  ;;  %p4721_p7 = scmp.lt.s32.totalorder %s4712_s17, %s4712_s17 }
  0x6c   : > { %p4715_p2 = pnand %p4713_p1, %p5149_p0  ;;  %p4722_p8 = por %p4721_p7, %p4720_p4 }
  0x6e   : > { %p4716_p3 = pneg %p4715_p2 }
  0x70   : > { %p4723_p11 = pnand %p4722_p8, %p4716_p3 }
  0x72   : > { %4726 = shalt.err (!%p4723_p11)
}
  0x73   : > { %s6343_s29 = smov 4   ;;  %s6344_s27 = smov 64  }
  0x74   : > { %4423 = dma.hbm_to_vmem [thread:$0]  (!%p5135_p12), %s6287_s12, 1024, %s628_s30, [#allocation13], %s6344_s27, %s6344_s27, %s6343_s29  }
  0x75   : > { %s6345_s22 = sld [smem:[#allocation34_spill]] }
  0x7b   : > { %s4727_s26 = scalar_lea.hbm %s6345_s22, 1024 }
  0x7c   : > { %p4728_p5 = scmp.ne.s32.totalorder %s6345_s22, %s4727_s26  ;;  %p4734_p10 = scmp.lt.u32.totalorder %s4727_s26, %s6345_s22 }
  0x7e   : > { %p4730_p6 = pnand %p4728_p5, %p5149_p0 }
  0x80   : > { %p4731_p9 = pneg %p4730_p6 }
  0x82   : > { %p4736_p13 = pnand %p4734_p10, %p4731_p9 }
  0x84   : > { %4739 = shalt.err (!%p4736_p13)
}
  0x85   : > { %s4740_s30 = scalar_lea.vmem %s5191_s0, 1024  ;;  %p4748_p4 = scmp.lt.s32.totalorder %s5191_s0, %s5191_s0 }
  0x86   : > { %p4741_p1 = scmp.ne.s32.totalorder %s5191_s0, %s4740_s30  ;;  %p4749_p7 = scmp.lt.s32.totalorder %s4740_s30, %s4740_s30 }
  0x88   : > { %p4743_p2 = pnand %p4741_p1, %p5149_p0  ;;  %p4750_p8 = por %p4749_p7, %p4748_p4 }
  0x8a   : > { %p4744_p3 = pneg %p4743_p2 }
  0x8c   : > { %p4751_p11 = pnand %p4750_p8, %p4744_p3 }
  0x8e   : > { %4754 = shalt.err (!%p4751_p11)
}
  0x8f   : > { %4408 = dma.hbm_to_vmem [thread:$0]  (!%p5135_p12), %s6345_s22, 1024, %s5191_s0, [#allocation4], %s6344_s27, %s6344_s27, %s6343_s29  }
  0x90   : > { %s4959_s5 = smov [#allocation8]   ;;  %s4960_s26 = smov [#allocation11]  }
  0x91   : > { %s581_s18 = sshll.u32 %s4959_s5, 4  ;;  %s617_s24 = sshll.u32 %s4960_s26, 4  ;;  %s582_s18 = int_to_ptr.vmem [resolvable:$true] %s581_s18  ;;  %s5240_s24 = int_to_ptr.vmem [resolvable:$true] %s617_s24 }
  0x92   : > { %s4755_s17 = scalar_lea.hbm %s6281_s6, 1024 }
  0x93   : > { %p4756_p5 = scmp.ne.s32.totalorder %s6281_s6, %s4755_s17  ;;  %p4762_p10 = scmp.lt.u32.totalorder %s4755_s17, %s6281_s6 }
  0x95   : > { %p4758_p6 = pnand %p4756_p5, %p5149_p0 }
  0x97   : > { %p4759_p9 = pneg %p4758_p6 }
  0x99   : > { %p4764_p13 = pnand %p4762_p10, %p4759_p9 }
  0x9b   : > { %4767 = shalt.err (!%p4764_p13)
}
  0x9c   : > { %s4768_s2 = scalar_lea.vmem %s582_s18, 1024  ;;  %p4776_p4 = scmp.lt.s32.totalorder %s582_s18, %s582_s18 }
  0x9d   : > { %p4769_p1 = scmp.ne.s32.totalorder %s582_s18, %s4768_s2  ;;  %p4777_p7 = scmp.lt.s32.totalorder %s4768_s2, %s4768_s2 }
  0x9f   : > { %p4771_p2 = pnand %p4769_p1, %p5149_p0  ;;  %p4778_p8 = por %p4777_p7, %p4776_p4 }
  0xa1   : > { %p4772_p3 = pneg %p4771_p2 }
  0xa3   : > { %p4779_p11 = pnand %p4778_p8, %p4772_p3 }
  0xa5   : > { %4782 = shalt.err (!%p4779_p11)
}
  0xa6   : > { %4414 = dma.hbm_to_vmem [thread:$0]  (!%p5135_p12), %s6281_s6, 1024, %s582_s18, [#allocation7], %s6344_s27, %s6344_s27, %s6343_s29  }
  0xa7   : > { %s4783_s4 = scalar_lea.hbm %s6286_s11, 16 }
  0xa8   : > { %p4784_p5 = scmp.ne.s32.totalorder %s6286_s11, %s4783_s4  ;;  %p4790_p10 = scmp.lt.u32.totalorder %s4783_s4, %s6286_s11 }
  0xaa   : > { %p4786_p6 = pnand %p4784_p5, %p5149_p0 }
  0xac   : > { %p4787_p9 = pneg %p4786_p6 }
  0xae   : > { %p4792_p13 = pnand %p4790_p10, %p4787_p9 }
  0xb0   : > { %4795 = shalt.err (!%p4792_p13)
}
  0xb1   : > { %s4796_s18 = scalar_lea.vmem %s5240_s24, 16  ;;  %s4803_s2 = scalar_lea.vmem %s5240_s24, 32 }
  0xb2   : > { %p4797_p1 = scmp.ne.s32.totalorder %s5240_s24, %s4796_s18  ;;  %p4804_p4 = scmp.lt.s32.totalorder %s5240_s24, %s5240_s24 }
  0xb3   : > { %p4805_p7 = scmp.lt.s32.totalorder %s4803_s2, %s4796_s18 }
  0xb4   : > { %p4799_p2 = pnand %p4797_p1, %p5149_p0 }
  0xb5   : > { %p4806_p8 = por %p4805_p7, %p4804_p4 }
  0xb6   : > { %p4800_p3 = pneg %p4799_p2 }
  0xb8   : > { %p4807_p11 = pnand %p4806_p8, %p4800_p3 }
  0xba   : > { %4810 = shalt.err (!%p4807_p11)
}
  0xbb   : > { %4420 = dma.hbm_to_vmem [thread:$0]  (!%p5135_p12), %s6286_s11, 16, %s5240_s24, [#allocation10]  }
  0xbc   : > { %s4961_s26 = smov [#allocation14]   ;;  %s4962_s4 = smov [#allocation15]  }
  0xbd   : > { %s643_s25 = sshll.u32 %s4961_s26, 4  ;;  %s659_s17 = sshll.u32 %s4962_s4, 4  ;;  %s644_s25 = int_to_ptr.vmem [resolvable:$true] %s643_s25  ;;  %s5287_s17 = int_to_ptr.vmem [resolvable:$true] %s659_s17 }
  0xbe   : > { %s4811_s0 = scalar_lea.hbm %s6289_s14, 1024 }
  0xbf   : > { %p4812_p5 = scmp.ne.s32.totalorder %s6289_s14, %s4811_s0  ;;  %p4818_p10 = scmp.lt.u32.totalorder %s4811_s0, %s6289_s14 }
  0xc1   : > { %p4814_p6 = pnand %p4812_p5, %p5149_p0 }
  0xc3   : > { %p4815_p9 = pneg %p4814_p6 }
  0xc5   : > { %p4820_p13 = pnand %p4818_p10, %p4815_p9 }
  0xc7   : > { %4823 = shalt.err (!%p4820_p13)
}
  0xc8   : > { %s4824_s5 = scalar_lea.vmem %s644_s25, 1024  ;;  %p4832_p4 = scmp.lt.s32.totalorder %s644_s25, %s644_s25 }
  0xc9   : > { %p4825_p1 = scmp.ne.s32.totalorder %s644_s25, %s4824_s5  ;;  %p4833_p7 = scmp.lt.s32.totalorder %s4824_s5, %s4824_s5 }
  0xcb   : > { %p4827_p2 = pnand %p4825_p1, %p5149_p0  ;;  %p4834_p8 = por %p4833_p7, %p4832_p4 }
  0xcd   : > { %p4828_p3 = pneg %p4827_p2 }
  0xcf   : > { %p4835_p11 = pnand %p4834_p8, %p4828_p3 }
  0xd1   : > { %4838 = shalt.err (!%p4835_p11)
}
  0xd2   : > { %4426 = dma.hbm_to_vmem [thread:$0]  (!%p5135_p12), %s6289_s14, 1024, %s644_s25, [#allocation13], %s6344_s27, %s6344_s27, %s6343_s29  }
  0xd3   : > { %s4839_s0 = scalar_lea.hbm %s6291_s16, 1024 }
  0xd4   : > { %p4840_p5 = scmp.ne.s32.totalorder %s6291_s16, %s4839_s0  ;;  %p4846_p10 = scmp.lt.u32.totalorder %s4839_s0, %s6291_s16 }
  0xd6   : > { %p4842_p6 = pnand %p4840_p5, %p5149_p0 }
  0xd8   : > { %p4843_p9 = pneg %p4842_p6 }
  0xda   : > { %p4848_p13 = pnand %p4846_p10, %p4843_p9 }
  0xdc   : > { %4851 = shalt.err (!%p4848_p13)
}
  0xdd   : > { %s4852_s25 = scalar_lea.vmem %s5287_s17, 1024  ;;  %p4860_p4 = scmp.lt.s32.totalorder %s5287_s17, %s5287_s17 }
  0xde   : > { %p4853_p1 = scmp.ne.s32.totalorder %s5287_s17, %s4852_s25  ;;  %p4861_p7 = scmp.lt.s32.totalorder %s4852_s25, %s4852_s25 }
  0xe0   : > { %p4855_p2 = pnand %p4853_p1, %p5149_p0  ;;  %p4862_p8 = por %p4861_p7, %p4860_p4 }
  0xe2   : > { %p4856_p3 = pneg %p4855_p2 }
  0xe4   : > { %p4863_p11 = pnand %p4862_p8, %p4856_p3 }
  0xe6   : > { %4866 = shalt.err (!%p4863_p11)
}
  0xe7   : > { %4429 = dma.hbm_to_vmem [thread:$0]  (!%p5135_p12), %s6291_s16, 1024, %s5287_s17, [#allocation16], %s6344_s27, %s6344_s27, %s6343_s29  }
  0xe8   : > { %p6346_p5 = scmp.ne.s32.totalorder %s6338_s23, 0 }
  0xe9   : > { %p6347_p0 = scmp.eq.s32.totalorder (!%p6346_p5), %s5099_s3, 0 }
  0xea   : > { %696 = sbr.rel (%p6346_p5) target bundleno = 2204 (0x89c), region = 92 }
  0xf1   : > { %4912 = dma.done.wait (%p6347_p0), [#allocation4], 1024   ;;  %p6348_p6 = pmov %p6347_p0 }
  0xf2   : > { %p6349_p9 = pmov %p6347_p0 }
  0xf3   : > { %4914 = vsyncadd (%p6348_p6), [#allocation4], 4294966272 }
  0xf4   : > { %4916 = dma.done.wait (%p6349_p9), [#allocation7], 2048   ;;  %p6350_p10 = pmov %p6347_p0 }
  0xf5   : > { %p6351_p13 = pmov %p6347_p0 }
  0xf6   : > { %4918 = vsyncadd (%p6350_p10), [#allocation7], 4294965248 }
  0xf7   : > { %4920 = dma.done.wait (%p6351_p13), [#allocation10], 2064   ;;  %p6352_p12 = pmov %p6347_p0 }
  0xf8   : > { %p6353_p1 = pmov %p6347_p0 }
  0xf9   : > { %4922 = vsyncadd (%p6352_p12), [#allocation10], 4294965232 }
  0xfa   : > { %4924 = dma.done.wait (%p6353_p1), [#allocation13], 2048   ;;  %p6354_p2 = pmov %p6347_p0 }
  0xfb   : > { %p6355_p3 = pmov %p6347_p0 }
  0xfc   : > { %4926 = vsyncadd (%p6354_p2), [#allocation13], 4294965248 }
  0xfd   : > { %4928 = dma.done.wait (%p6355_p3), [#allocation16], 1024   ;;  %p6356_p4 = pmov %p6347_p0 }
  0xfe   : > { %s3756_s23 = sshll.u32 %s5099_s3, 5  ;;  %v4499_v0 = vld [vmem:[#allocation3] sm:$0xff]   ;;  %v4500_v1 = vld [vmem:[#allocation3 + $0x8] sm:$0xff]   ;;  %v4501_v2 = vld [vmem:[#allocation3 + $0x10] sm:$0xff]   ;;  %s6357_s27 = sld [smem:[#allocation32_spill]]  ;;  %vm900_vm0 = vcmask 64512  }
  0xff   : > { %4930 = vsyncadd (%p6356_p4), [#allocation16], 4294966272  ;;  %p805_p7 = scmp.lt.s32.totalorder %s3756_s23, 63  ;;  %4019 = vmatprep.subr.bf16.mxu0 %v4499_v0  ;;  %4355 = vmatprep.subr.bf16.mxu1 %v4499_v0  ;;  %v4502_v3 = vld [vmem:[#allocation3 + $0x18] sm:$0xff]   ;;  %v4503_v7 = vld [vmem:[#allocation3 + $0x20] sm:$0xff]   ;;  %s6358_s15 = sld [smem:[#allocation35_spill]] }
 0x100   : > { %4020 = vmatpush3.bf16.msra.mxu0 %v4499_v0  ;;  %4363 = vmatpush3.bf16.msra.mxu1 %v4499_v0  ;;  %v4504_v11 = vld [vmem:[#allocation3 + $0x28] sm:$0xff]   ;;  %v4505_v12 = vld [vmem:[#allocation3 + $0x30] sm:$0xff]   ;;  %v4506_v13 = vld [vmem:[#allocation3 + $0x38] sm:$0xff]   ;;  %s6359_s2 = sld [smem:[#allocation37_spill]]  ;;  %s6361_s26 = sld [smem:[#allocation39_spill]] }
 0x101   : > { %s6376_s23 = smov (!%p805_p7, %s3756_s23), 63  ;;  %4021 = vmatprep.subr.bf16.mxu0 %v4500_v1  ;;  %4356 = vmatprep.subr.bf16.mxu1 %v4500_v1  ;;  %v4507_v22 = vld [vmem:[#allocation6] sm:$0xff]   ;;  %v4508_v26 = vld [vmem:[#allocation6 + $0x8] sm:$0xff]   ;;  %v4509_v36 = vld [vmem:[#allocation6 + $0x10] sm:$0xff]   ;;  %s3850_s0 = sshll.u32 %s5099_s3, 12 }
 0x102   : > { %s5359_s28 = sshll.u32 %s6376_s23, 3  ;;  %v4510_v40 = vld [vmem:[#allocation6 + $0x18] sm:$0xff]   ;;  %v4511_v50 = vld [vmem:[#allocation6 + $0x20] sm:$0xff]   ;;  %v4512_v54 = vld [vmem:[#allocation6 + $0x28] sm:$0xff]   ;;  %s6362_s23 = sld [smem:[#allocation25_spill]] }
 0x103   : > { %v4513_v62 = vld [vmem:[#allocation6 + $0x30] sm:$0xff]   ;;  %v4514_v63 = vld [vmem:[#allocation6 + $0x38] sm:$0xff]   ;;  %v4515_v0 = vld [vmem:[#allocation8] sm:$0xff]   ;;  %s5651_s30 = scalar_lea.vmem %s6295_s20, %s5359_s28  ;;  %s5658_s18 = scalar_lea.vmem %s6296_s21, %s5359_s28 }
 0x104   : > { %s5365_s17 = scalar_lea.vmem %s6357_s27, %s5359_s28  ;;  %4022 = vmatpush3.bf16.msra.mxu0 %v4500_v1  ;;  %4364 = vmatpush3.bf16.msra.mxu1 %v4500_v1  ;;  %v4516_v1 = vld [vmem:[#allocation8 + $0x8] sm:$0xff]   ;;  %s6360_s27 = sld [smem:[#allocation33_spill]] }
 0x105   : > { %4023 = vmatprep.subr.bf16.mxu0 %v4501_v2  ;;  %v965_v4 = vld [vmem:[%s5365_s17] sm:$0xff]  ;;  %v966_v5 = vld [vmem:[%s5365_s17 + $0x8] sm:$0xff]  ;;  %4357 = vmatprep.subr.bf16.mxu1 %v4501_v2  ;;  %v967_v14 = vld [vmem:[%s5365_s17 + $0x10] sm:$0xff]  ;;  %s5712_s8 = scalar_lea.vmem %s6294_s19, %s5359_s28  ;;  %s4965_s5 = smov [#allocation17]  }
 0x106   : > { %v997_v6 = vpack.c.bf16 %v966_v5, %v965_v4  ;;  %v981_v8 = vld [vmem:[%s5365_s17 + $0x80] sm:$0xff]  ;;  %v982_v9 = vld [vmem:[%s5365_s17 + $0x88] sm:$0xff]  ;;  %v968_v15 = vld [vmem:[%s5365_s17 + $0x18] sm:$0xff] }
 0x107   : > { %v1005_v10 = vpack.c.bf16 %v982_v9, %v981_v8  ;;  %v969_v16 = vld [vmem:[%s5365_s17 + $0x20] sm:$0xff]  ;;  %v970_v17 = vld [vmem:[%s5365_s17 + $0x28] sm:$0xff]  ;;  %v983_v18 = vld [vmem:[%s5365_s17 + $0x90] sm:$0xff]  ;;  %v998_v23 = vpack.c.bf16 %v968_v15, %v967_v14 }
 0x108   : > { %4024 = vmatpush3.bf16.msra.mxu0 %v4501_v2  ;;  %4035 = vmatprep.mubr.bf16.mxu0 %v997_v6  ;;  %v984_v19 = vld [vmem:[%s5365_s17 + $0x98] sm:$0xff]  ;;  %v985_v20 = vld [vmem:[%s5365_s17 + $0xa0] sm:$0xff]  ;;  %v986_v21 = vld [vmem:[%s5365_s17 + $0xa8] sm:$0xff]  ;;  %v999_v24 = vpack.c.bf16 %v970_v17, %v969_v16  ;;  %s780_s1 = sand.u32 1, %s6362_s23  }
 0x109   : > { %4025 = vmatprep.subr.bf16.mxu0 %v4502_v3  ;;  %4365 = vmatpush3.bf16.msra.mxu1 %v4501_v2  ;;  %v1006_v25 = vpack.c.bf16 %v984_v19, %v983_v18  ;;  %v1007_v27 = vpack.c.bf16 %v986_v21, %v985_v20  ;;  %v971_v28 = vld [vmem:[%s5365_s17 + $0x30] sm:$0xff]  ;;  %v972_v29 = vld [vmem:[%s5365_s17 + $0x38] sm:$0xff]  ;;  %v973_v30 = vld [vmem:[%s5365_s17 + $0x40] sm:$0xff]  ;;  %s3755_s29 = sshll.u32 %s780_s1, 8  ;;  %s6234_s3 = scalar_lea.sflag [#allocation5], %s780_s1 }
 0x10a   : > { %4358 = vmatprep.subr.bf16.mxu1 %v4502_v3  ;;  %4051 = vmatprep.mubr.bf16.mxu1 %v1005_v10  ;;  %v974_v31 = vld [vmem:[%s5365_s17 + $0x48] sm:$0xff]  ;;  %v987_v32 = vld [vmem:[%s5365_s17 + $0xb0] sm:$0xff]  ;;  %v988_v33 = vld [vmem:[%s5365_s17 + $0xb8] sm:$0xff]  ;;  %v1000_v37 = vpack.c.bf16 %v972_v29, %v971_v28 }
 0x10b   : > { %v989_v34 = vld [vmem:[%s5365_s17 + $0xc0] sm:$0xff]  ;;  %v990_v35 = vld [vmem:[%s5365_s17 + $0xc8] sm:$0xff]  ;;  %v1001_v38 = vpack.c.bf16 %v974_v31, %v973_v30  ;;  %v1008_v39 = vpack.c.bf16 %v988_v33, %v987_v32  ;;  %v975_v42 = vld [vmem:[%s5365_s17 + $0x50] sm:$0xff] }
 0x10c   : > { %4026 = vmatpush3.bf16.msra.mxu0 %v4502_v3  ;;  %v1009_v41 = vpack.c.bf16 %v990_v35, %v989_v34  ;;  %v976_v43 = vld [vmem:[%s5365_s17 + $0x58] sm:$0xff]  ;;  %v977_v44 = vld [vmem:[%s5365_s17 + $0x60] sm:$0xff]  ;;  %v978_v45 = vld [vmem:[%s5365_s17 + $0x68] sm:$0xff] }
 0x10d   : > { %4027 = vmatprep.subr.bf16.mxu0 %v4503_v7  ;;  %4366 = vmatpush3.bf16.msra.mxu1 %v4502_v3  ;;  %v991_v46 = vld [vmem:[%s5365_s17 + $0xd0] sm:$0xff]  ;;  %v992_v47 = vld [vmem:[%s5365_s17 + $0xd8] sm:$0xff]  ;;  %v993_v48 = vld [vmem:[%s5365_s17 + $0xe0] sm:$0xff]  ;;  %v1002_v51 = vpack.c.bf16 %v976_v43, %v975_v42  ;;  %v1003_v52 = vpack.c.bf16 %v978_v45, %v977_v44 }
 0x10e   : > { %4359 = vmatprep.subr.bf16.mxu1 %v4503_v7  ;;  %v994_v49 = vld [vmem:[%s5365_s17 + $0xe8] sm:$0xff]  ;;  %v1010_v53 = vpack.c.bf16 %v992_v47, %v991_v46  ;;  %v979_v56 = vld [vmem:[%s5365_s17 + $0x70] sm:$0xff]  ;;  %v980_v57 = vld [vmem:[%s5365_s17 + $0x78] sm:$0xff] }
 0x10f   : > { %v1011_v55 = vpack.c.bf16 %v994_v49, %v993_v48  ;;  %v995_v58 = vld [vmem:[%s5365_s17 + $0xf0] sm:$0xff]  ;;  %v996_v59 = vld [vmem:[%s5365_s17 + $0xf8] sm:$0xff]  ;;  %v1004_v60 = vpack.c.bf16 %v980_v57, %v979_v56  ;;  %v4519_v4 = vld [vmem:[#allocation8 + $0x20] sm:$0xff]   ;;  %s5553_s17 = scalar_lea.vmem %s6360_s27, %s5359_s28  ;;  %s6365_s28 = sld [smem:[#allocation41_spill]] }
 0x110   : > { %4028 = vmatpush3.bf16.msra.mxu0 %v4503_v7  ;;  %v1012_v61 = vpack.c.bf16 %v996_v59, %v995_v58  ;;  %v4517_v2 = vld [vmem:[#allocation8 + $0x10] sm:$0xff]   ;;  %v4518_v3 = vld [vmem:[#allocation8 + $0x18] sm:$0xff]   ;;  %v4520_v5 = vld [vmem:[#allocation8 + $0x28] sm:$0xff]  }
 0x111   : > { %4029 = vmatprep.subr.bf16.mxu0 %v4504_v11  ;;  %4367 = vmatpush3.bf16.msra.mxu1 %v4503_v7  ;;  %v5402_v6 = vld [vmem:[%s6358_s15] ss:$0 sm:$0xff]  ;;  %s6159_s15 = scalar_lea.vmem [#allocation17], %s3755_s29 }
 0x112   : > { %4360 = vmatprep.subr.bf16.mxu1 %v4504_v11 }
 0x114   : > { %4030 = vmatpush3.bf16.msra.mxu0 %v4504_v11 }
 0x115   : > { %4031 = vmatprep.subr.bf16.mxu0 %v4505_v12  ;;  %4368 = vmatpush3.bf16.msra.mxu1 %v4504_v11  ;;  %s6224_s24 = scalar_lea.hbm %s6365_s28, %s3850_s0 }
 0x116   : > { %4361 = vmatprep.subr.bf16.mxu1 %v4505_v12 }
 0x118   : > { %4032 = vmatpush3.bf16.msra.mxu0 %v4505_v12 }
 0x119   : > { %4033 = vmatprep.subr.bf16.mxu0 %v4506_v13  ;;  %4369 = vmatpush3.bf16.msra.mxu1 %v4505_v12 }
 0x11a   : > { %4362 = vmatprep.subr.bf16.mxu1 %v4506_v13 }
 0x11c   : > { %4034 = vmatpush3.bf16.msra.mxu0 %v4506_v13 }
 0x11d   : > { %4370 = vmatpush3.bf16.msra.mxu1 %v4506_v13  ;;  %4115 = vmatprep.subr.bf16.mxu0 %v4515_v0 }
 0x11e   : > { %4067 = vmatprep.subr.bf16.mxu1 %v4507_v22 }
 0x11f   : > { %4036 = vmatmul.mubr.bf16.vlgmr.msra.gmra.mrb[0].mxu0 %v998_v23 }
 0x120   : > { %4039 = vmatprep.mubr.bf16.mxu0 %v999_v24  ;;  %4052 = vmatmul.mubr.bf16.vlgmr.msra.gmra.mrb[0].mxu1 %v1006_v25 }
 0x121   : > { %4055 = vmatprep.mubr.bf16.mxu1 %v1007_v27  ;;  %4068 = vmatpush3.bf16.msra.mxu1 %v4507_v22 }
 0x122   : > { %4069 = vmatprep.subr.bf16.mxu1 %v4508_v26  ;;  %4116 = vmatpush3.bf16.msra.mxu0 %v4515_v0 }
 0x123   : > { %4117 = vmatprep.subr.bf16.mxu0 %v4516_v1 }
 0x125   : > { %4070 = vmatpush3.bf16.msra.mxu1 %v4508_v26 }
 0x126   : > { %4071 = vmatprep.subr.bf16.mxu1 %v4509_v36  ;;  %4118 = vmatpush3.bf16.msra.mxu0 %v4516_v1 }
 0x127   : > { %4040 = vmatmul.mubr.bf16.gmra.mrb[4].mxu0 %v1000_v37  ;;  %4119 = vmatprep.subr.bf16.mxu0 %v4517_v2 }
 0x128   : > { %4043 = vmatprep.mubr.bf16.mxu0 %v1001_v38  ;;  %4056 = vmatmul.mubr.bf16.gmra.mrb[4].mxu1 %v1008_v39 }
 0x129   : > { %4059 = vmatprep.mubr.bf16.mxu1 %v1009_v41  ;;  %4072 = vmatpush3.bf16.msra.mxu1 %v4509_v36 }
 0x12a   : > { %4073 = vmatprep.subr.bf16.mxu1 %v4510_v40  ;;  %4120 = vmatpush3.bf16.msra.mxu0 %v4517_v2 }
 0x12b   : > { %4121 = vmatprep.subr.bf16.mxu0 %v4518_v3 }
 0x12d   : > { %4074 = vmatpush3.bf16.msra.mxu1 %v4510_v40 }
 0x12e   : > { %4075 = vmatprep.subr.bf16.mxu1 %v4511_v50  ;;  %4122 = vmatpush3.bf16.msra.mxu0 %v4518_v3 }
 0x12f   : > { %4044 = vmatmul.mubr.bf16.gmra.mrb[8].mxu0 %v1002_v51  ;;  %4123 = vmatprep.subr.bf16.mxu0 %v4519_v4 }
 0x130   : > { %4047 = vmatprep.mubr.bf16.mxu0 %v1003_v52  ;;  %4060 = vmatmul.mubr.bf16.gmra.mrb[8].mxu1 %v1010_v53 }
 0x131   : > { %4063 = vmatprep.mubr.bf16.mxu1 %v1011_v55  ;;  %4076 = vmatpush3.bf16.msra.mxu1 %v4511_v50 }
 0x132   : > { %4077 = vmatprep.subr.bf16.mxu1 %v4512_v54  ;;  %4124 = vmatpush3.bf16.msra.mxu0 %v4519_v4 }
 0x133   : > { %4125 = vmatprep.subr.bf16.mxu0 %v4520_v5 }
 0x135   : > { %4078 = vmatpush3.bf16.msra.mxu1 %v4512_v54 }
 0x136   : > { %4079 = vmatprep.subr.bf16.mxu1 %v4513_v62  ;;  %4126 = vmatpush3.bf16.msra.mxu0 %v4520_v5 }
 0x137   : > { %4048 = vmatmul.mubr.bf16.gmra.mrb[12].mxu0 %v1004_v60 }
 0x138   : > { %4064 = vmatmul.mubr.bf16.gmra.mrb[12].mxu1 %v1012_v61 }
 0x139   : > { %4080 = vmatpush3.bf16.msra.mxu1 %v4513_v62 }
 0x13a   : > { %4081 = vmatprep.subr.bf16.mxu1 %v4514_v63 }
 0x13d   : > { %4082 = vmatpush3.bf16.msra.mxu1 %v4514_v63 }
 0x1f2   : > { %v4037_v7 = vpop.f32.mrb[0].mxu0 }
 0x1f3   : > { %v1127_v8 = vadd.f32 %v4037_v7, %v5402_v6  ;;  %v1118_v9 = vpop.f32.mrb[1].mxu0  ;;  %v4053_v10 = vpop.f32.mrb[0].mxu1 }
 0x1f4   : > { %v1119_v11 = vadd.f32 %v5402_v6, %v1118_v9  ;;  %v4038_v12 = vpop.f32.mrb[2].mxu0  ;;  %v1191_v13 = vadd.f32 %v4053_v10, %v5402_v6  ;;  %v1182_v14 = vpop.f32.mrb[1].mxu1 }
 0x1f5   : > { %v1130_v15 = vadd.f32 %v4038_v12, %v5402_v6  ;;  %v1121_v16 = vpop.f32.mrb[3].mxu0  ;;  %v1183_v17 = vadd.f32 %v5402_v6, %v1182_v14  ;;  %v4054_v18 = vpop.f32.mrb[2].mxu1  ;;  %v1247_v23 = vmax.f32 %v1127_v8, 0.0 }
 0x1f6   : > { %v1122_v19 = vadd.f32 %v5402_v6, %v1121_v16  ;;  %v1263_v20 = vmax.f32 %v1191_v13, 0.0  ;;  %v1194_v21 = vadd.f32 %v4054_v18, %v5402_v6  ;;  %v1185_v22 = vpop.f32.mrb[3].mxu1  ;;  %v1245_v27 = vmax.f32 %v1119_v11, 0.0 }
 0x1f7   : > { %v1248_v24 = vmax.f32 %v1130_v15, 0.0  ;;  %v1261_v25 = vmax.f32 %v1183_v17, 0.0  ;;  %v1186_v26 = vadd.f32 %v5402_v6, %v1185_v22 }
 0x1f8   : > { %v1246_v28 = vmax.f32 %v1122_v19, 0.0  ;;  %v1264_v29 = vmax.f32 %v1194_v21, 0.0 }
 0x1f9   : > { %v1295_v30 = vpack.c.bf16 %v1248_v24, %v1247_v23  ;;  %v1262_v31 = vmax.f32 %v1186_v26, 0.0 }
 0x1fa   : > { %v1294_v32 = vpack.c.bf16 %v1246_v28, %v1245_v27  ;;  %v4041_v33 = vpop.f32.mrb[4].mxu0  ;;  %v5412_v34 = vpack.c.bf16 %v1264_v29, %v1263_v20 }
 0x1fb   : > { %v1143_v35 = vadd.f32 %v4041_v33, %v5402_v6  ;;  %v1134_v36 = vpop.f32.mrb[5].mxu0  ;;  %v5415_v37 = vpack.c.bf16 %v1262_v31, %v1261_v25  ;;  %v4057_v38 = vpop.f32.mrb[4].mxu1 }
 0x1fc   : > { %v1135_v39 = vadd.f32 %v5402_v6, %v1134_v36  ;;  %v4042_v40 = vpop.f32.mrb[6].mxu0  ;;  %4083 = vmatprep.mubr.bf16.mxu1 %v1294_v32  ;;  %v1207_v41 = vadd.f32 %v4057_v38, %v5402_v6  ;;  %v1198_v42 = vpop.f32.mrb[5].mxu1 }
 0x1fd   : > { %v1251_v43 = vmax.f32 %v1143_v35, 0.0  ;;  %v1146_v44 = vadd.f32 %v4042_v40, %v5402_v6  ;;  %v1137_v45 = vpop.f32.mrb[7].mxu0  ;;  %4084 = vmatmul.mubr.bf16.vlgmr.msra.gmra.mrb[16].mxu1 %v1295_v30  ;;  %v1199_v46 = vadd.f32 %v5402_v6, %v1198_v42  ;;  %v4058_v47 = vpop.f32.mrb[6].mxu1 }
 0x1fe   : > { %v1249_v48 = vmax.f32 %v1135_v39, 0.0  ;;  %v1138_v49 = vadd.f32 %v5402_v6, %v1137_v45  ;;  %v1267_v50 = vmax.f32 %v1207_v41, 0.0  ;;  %v1210_v51 = vadd.f32 %v4058_v47, %v5402_v6  ;;  %v1201_v52 = vpop.f32.mrb[7].mxu1 }
 0x1ff   : > { %v1252_v53 = vmax.f32 %v1146_v44, 0.0  ;;  %v1265_v54 = vmax.f32 %v1199_v46, 0.0  ;;  %v1202_v55 = vadd.f32 %v5402_v6, %v1201_v52 }
 0x200   : > { %v1250_v56 = vmax.f32 %v1138_v49, 0.0  ;;  %v1268_v57 = vmax.f32 %v1210_v51, 0.0 }
 0x201   : > { %v1297_v58 = vpack.c.bf16 %v1252_v53, %v1251_v43  ;;  %v1266_v59 = vmax.f32 %v1202_v55, 0.0 }
 0x202   : > { %v1296_v60 = vpack.c.bf16 %v1250_v56, %v1249_v48  ;;  %v4045_v61 = vpop.f32.mrb[8].mxu0  ;;  %v5424_v62 = vpack.c.bf16 %v1268_v57, %v1267_v50 }
 0x203   : > { %v1159_v63 = vadd.f32 %v4045_v61, %v5402_v6  ;;  %v1150_v0 = vpop.f32.mrb[9].mxu0  ;;  %v1304_v1 = vpack.c.bf16 %v1266_v59, %v1265_v54  ;;  %v4061_v2 = vpop.f32.mrb[8].mxu1  ;;  %v4523_v59 = vld [vmem:[#allocation9] ss:$8 sps:$4 sm:$0xff]   ;;  %v4528_v61 = vld [vmem:[#allocation9 + $0x14] ss:$8 sps:$4 sm:$0xff]  }
 0x204   : > { %4087 = vmatprep.mubr.bf16.mxu1 %v1296_v60  ;;  %v1151_v3 = vadd.f32 %v5402_v6, %v1150_v0  ;;  %v4046_v4 = vpop.f32.mrb[10].mxu0  ;;  %v1223_v5 = vadd.f32 %v4061_v2, %v5402_v6  ;;  %v1214_v7 = vpop.f32.mrb[9].mxu1  ;;  %v4525_v60 = vld [vmem:[#allocation9 + $0x4] ss:$8 sps:$4 sm:$0xff]   ;;  %v4532_v0 = vld [vmem:[#allocation9 + $0x30] ss:$8 sps:$4 sm:$0xff]  }
 0x205   : > { %4088 = vmatmul.mubr.bf16.gmra.mrb[20].mxu1 %v1297_v58  ;;  %v1255_v8 = vmax.f32 %v1159_v63, 0.0  ;;  %v1162_v9 = vadd.f32 %v4046_v4, %v5402_v6  ;;  %v1153_v10 = vpop.f32.mrb[11].mxu0  ;;  %v1215_v11 = vadd.f32 %v5402_v6, %v1214_v7  ;;  %v4062_v12 = vpop.f32.mrb[10].mxu1  ;;  %v4522_v58 = vld [vmem:[#allocation8 + $0x38] sm:$0xff]   ;;  %1929 = vmatprep.subr.bf16.mxu1 %v4525_v60  ;;  %v4535_v2 = vld [vmem:[#allocation9 + $0x40] ss:$8 sps:$4 sm:$0xff]  }
 0x206   : > { %v1253_v13 = vmax.f32 %v1151_v3, 0.0  ;;  %v1154_v14 = vadd.f32 %v5402_v6, %v1153_v10  ;;  %v1271_v15 = vmax.f32 %v1223_v5, 0.0  ;;  %v1226_v16 = vadd.f32 %v4062_v12, %v5402_v6  ;;  %v1217_v17 = vpop.f32.mrb[11].mxu1  ;;  %1930 = vmatpush1.bf16.msra.mxu1 %v4523_v59  ;;  %v4534_v63 = vld [vmem:[#allocation9 + $0x34] ss:$8 sps:$4 sm:$0xff]  }
 0x207   : > { %v1256_v18 = vmax.f32 %v1162_v9, 0.0  ;;  %v1269_v19 = vmax.f32 %v1215_v11, 0.0  ;;  %v1218_v20 = vadd.f32 %v5402_v6, %v1217_v17  ;;  %1931 = vmatprep.subr.bf16.mxu1 %v4528_v61  ;;  %v4540_v3 = vld [vmem:[#allocation9 + $0x54] ss:$8 sps:$4 sm:$0xff]   ;;  %v4538_v4 = vld [vmem:[#allocation9 + $0x50] ss:$8 sps:$4 sm:$0xff]  }
 0x208   : > { %v1254_v21 = vmax.f32 %v1154_v14, 0.0  ;;  %v1272_v22 = vmax.f32 %v1226_v16, 0.0  ;;  %v4543_v5 = vld [vmem:[#allocation9 + $0x64] ss:$8 sps:$4 sm:$0xff]   ;;  %v4541_v7 = vld [vmem:[#allocation9 + $0x60] ss:$8 sps:$4 sm:$0xff]  }
 0x209   : > { %v1299_v23 = vpack.c.bf16 %v1256_v18, %v1255_v8  ;;  %v1270_v24 = vmax.f32 %v1218_v20, 0.0  ;;  %v5448_v9 = vld [vmem:[%s6359_s2] ss:$0 sm:$0xff] }
 0x20a   : > { %v1298_v25 = vpack.c.bf16 %v1254_v21, %v1253_v13  ;;  %v4049_v26 = vpop.f32.mrb[12].mxu0  ;;  %v1307_v27 = vpack.c.bf16 %v1272_v22, %v1271_v15 }
 0x20b   : > { %v1175_v28 = vadd.f32 %v4049_v26, %v5402_v6  ;;  %v1166_v29 = vpop.f32.mrb[13].mxu0  ;;  %v1306_v30 = vpack.c.bf16 %v1270_v24, %v1269_v19  ;;  %v4065_v31 = vpop.f32.mrb[12].mxu1 }
 0x20c   : > { %4091 = vmatprep.mubr.bf16.mxu1 %v1298_v25  ;;  %v1167_v32 = vadd.f32 %v5402_v6, %v1166_v29  ;;  %v4050_v33 = vpop.f32.mrb[14].mxu0  ;;  %v1239_v35 = vadd.f32 %v4065_v31, %v5402_v6  ;;  %v1230_v36 = vpop.f32.mrb[13].mxu1 }
 0x20d   : > { %4092 = vmatmul.mubr.bf16.gmra.mrb[24].mxu1 %v1299_v23  ;;  %v1259_v38 = vmax.f32 %v1175_v28, 0.0  ;;  %v1178_v39 = vadd.f32 %v4050_v33, %v5402_v6  ;;  %v1169_v40 = vpop.f32.mrb[15].mxu0  ;;  %v1231_v41 = vadd.f32 %v5402_v6, %v1230_v36  ;;  %v4066_v42 = vpop.f32.mrb[14].mxu1 }
 0x20e   : > { %v1257_v43 = vmax.f32 %v1167_v32, 0.0  ;;  %v1170_v44 = vadd.f32 %v5402_v6, %v1169_v40  ;;  %v1275_v45 = vmax.f32 %v1239_v35, 0.0  ;;  %v1242_v46 = vadd.f32 %v4066_v42, %v5402_v6  ;;  %v1233_v47 = vpop.f32.mrb[15].mxu1 }
 0x20f   : > { %v1260_v48 = vmax.f32 %v1178_v39, 0.0  ;;  %v1273_v49 = vmax.f32 %v1231_v41, 0.0  ;;  %v1234_v50 = vadd.f32 %v5402_v6, %v1233_v47  ;;  %v4521_v6 = vld [vmem:[#allocation8 + $0x30] sm:$0xff]  }
 0x210   : > { %v1258_v51 = vmax.f32 %v1170_v44, 0.0  ;;  %v1276_v52 = vmax.f32 %v1242_v46, 0.0  ;;  %4127 = vmatprep.subr.bf16.mxu0 %v4521_v6 }
 0x211   : > { %v1301_v53 = vpack.c.bf16 %v1260_v48, %v1259_v38  ;;  %v1274_v54 = vmax.f32 %v1234_v50, 0.0  ;;  %4128 = vmatpush3.bf16.msra.mxu0 %v4521_v6 }
 0x212   : > { %v1300_v55 = vpack.c.bf16 %v1258_v51, %v1257_v43  ;;  %v1309_v56 = vpack.c.bf16 %v1276_v52, %v1275_v45  ;;  %4129 = vmatprep.subr.bf16.mxu0 %v4522_v58 }
 0x213   : > { %v1308_v57 = vpack.c.bf16 %v1274_v54, %v1273_v49 }
 0x214   : > { %4095 = vmatprep.mubr.bf16.mxu1 %v1300_v55 }
 0x215   : > { %4096 = vmatmul.mubr.bf16.gmra.mrb[28].mxu1 %v1301_v53  ;;  %4130 = vmatpush3.bf16.msra.mxu0 %v4522_v58 }
 0x216   : > { %4099 = vmatprep.mubr.bf16.mxu1 %v5415_v37  ;;  %v4526_v37 = vld [vmem:[#allocation9 + $0x10] ss:$8 sps:$4 sm:$0xff]  }
 0x217   : > { %1932 = vmatpush1.bf16.msra.mxu1 %v4526_v37 }
 0x21d   : > { %4100 = vmatmul.mubr.bf16.gmra.mrb[32].mxu1 %v5412_v34  ;;  %v4531_v34 = vld [vmem:[#allocation9 + $0x24] ss:$8 sps:$4 sm:$0xff]  }
 0x21e   : > { %4103 = vmatprep.mubr.bf16.mxu1 %v1304_v1  ;;  %1933 = vmatprep.subr.bf16.mxu1 %v4531_v34  ;;  %v4537_v1 = vld [vmem:[#allocation9 + $0x44] ss:$8 sps:$4 sm:$0xff]  }
 0x225   : > { %4104 = vmatmul.mubr.bf16.gmra.mrb[36].mxu1 %v5424_v62  ;;  %v4529_v62 = vld [vmem:[#allocation9 + $0x20] ss:$8 sps:$4 sm:$0xff]  }
 0x226   : > { %4107 = vmatprep.mubr.bf16.mxu1 %v1306_v30  ;;  %1934 = vmatpush1.bf16.msra.mxu1 %v4529_v62 }
 0x227   : > { %1935 = vmatprep.subr.bf16.mxu1 %v4534_v63 }
 0x22a   : > { %1936 = vmatpush1.bf16.msra.mxu1 %v4532_v0 }
 0x22b   : > { %1937 = vmatprep.subr.bf16.mxu1 %v4537_v1 }
 0x22d   : > { %4108 = vmatmul.mubr.bf16.gmra.mrb[40].mxu1 %v1307_v27 }
 0x22e   : > { %4111 = vmatprep.mubr.bf16.mxu1 %v1308_v57  ;;  %1938 = vmatpush1.bf16.msra.mxu1 %v4535_v2 }
 0x22f   : > { %1939 = vmatprep.subr.bf16.mxu1 %v4540_v3 }
 0x232   : > { %1940 = vmatpush1.bf16.msra.mxu1 %v4538_v4 }
 0x233   : > { %1941 = vmatprep.subr.bf16.mxu1 %v4543_v5 }
 0x235   : > { %4112 = vmatmul.mubr.bf16.gmra.mrb[44].mxu1 %v1309_v56 }
 0x236   : > { %1942 = vmatpush1.bf16.msra.mxu1 %v4541_v7 }
 0x2d0   : > { %v4085_v8 = vpop.f32.mrb[16].mxu1 }
 0x2d1   : > { %v1398_v10 = vpop.f32.mrb[17].mxu1  ;;  %v1407_v12 = vadd.f32 %v4085_v8, %v5448_v9 }
 0x2d2   : > { %v4086_v11 = vpop.f32.mrb[18].mxu1  ;;  %v1399_v15 = vadd.f32 %v5448_v9, %v1398_v10 }
 0x2d3   : > { %v1410_v13 = vadd.f32 %v4086_v11, %v5448_v9  ;;  %v1401_v14 = vpop.f32.mrb[19].mxu1 }
 0x2d4   : > { %v1402_v16 = vadd.f32 %v5448_v9, %v1401_v14 }
 0x2d5   : > { %v1543_v17 = vpack.c.bf16 %v1410_v13, %v1407_v12 }
 0x2d6   : > { %v1542_v18 = vpack.c.bf16 %v1402_v16, %v1399_v15 }
 0x2d8   : > { %v4089_v19 = vpop.f32.mrb[20].mxu1  ;;  %4131 = vmatprep.mubr.bf16.mxu0 %v1542_v18 }
 0x2d9   : > { %v1423_v20 = vadd.f32 %v4089_v19, %v5448_v9  ;;  %v1414_v21 = vpop.f32.mrb[21].mxu1  ;;  %4132 = vmatmul.mubr.bf16.vlgmr.msra.gmra.mrb[16].mxu0 %v1543_v17 }
 0x2da   : > { %v1415_v22 = vadd.f32 %v5448_v9, %v1414_v21  ;;  %v4090_v23 = vpop.f32.mrb[22].mxu1 }
 0x2db   : > { %v1426_v24 = vadd.f32 %v4090_v23, %v5448_v9  ;;  %v1417_v25 = vpop.f32.mrb[23].mxu1 }
 0x2dc   : > { %v1418_v26 = vadd.f32 %v5448_v9, %v1417_v25 }
 0x2dd   : > { %v1545_v27 = vpack.c.bf16 %v1426_v24, %v1423_v20 }
 0x2de   : > { %v1544_v28 = vpack.c.bf16 %v1418_v26, %v1415_v22  ;;  %v4544_v26 = vld [vmem:[#allocation9 + $0x70] ss:$8 sps:$4 sm:$0xff]  }
 0x2e0   : > { %4135 = vmatprep.mubr.bf16.mxu0 %v1544_v28  ;;  %v4093_v29 = vpop.f32.mrb[24].mxu1  ;;  %v4963_v28 = vmov 0  }
 0x2e1   : > { %4136 = vmatmul.mubr.bf16.gmra.mrb[20].mxu0 %v1545_v27  ;;  %v1439_v30 = vadd.f32 %v4093_v29, %v5448_v9  ;;  %v1430_v31 = vpop.f32.mrb[25].mxu1  ;;  %v4546_v27 = vld [vmem:[#allocation9 + $0x74] ss:$8 sps:$4 sm:$0xff]   ;;  %1961 = vmatprep.mubr.bf16.mxu1 %v4963_v28  ;;  %v5486_v29 = vld [vmem:[%s6282_s7] ss:$0 sm:$0xff] }
 0x2e2   : > { %v1431_v32 = vadd.f32 %v5448_v9, %v1430_v31  ;;  %v4094_v33 = vpop.f32.mrb[26].mxu1  ;;  %1943 = vmatprep.subr.bf16.mxu1 %v4546_v27 }
 0x2e3   : > { %v1442_v35 = vadd.f32 %v4094_v33, %v5448_v9  ;;  %v1433_v36 = vpop.f32.mrb[27].mxu1  ;;  %1944 = vmatpush1.bf16.msra.mxu1 %v4544_v26 }
 0x2e4   : > { %v1434_v38 = vadd.f32 %v5448_v9, %v1433_v36 }
 0x2e5   : > { %v1547_v39 = vpack.c.bf16 %v1442_v35, %v1439_v30 }
 0x2e6   : > { %v1546_v40 = vpack.c.bf16 %v1434_v38, %v1431_v32 }
 0x2e8   : > { %4139 = vmatprep.mubr.bf16.mxu0 %v1546_v40  ;;  %v4097_v41 = vpop.f32.mrb[28].mxu1 }
 0x2e9   : > { %4140 = vmatmul.mubr.bf16.gmra.mrb[24].mxu0 %v1547_v39  ;;  %v1455_v42 = vadd.f32 %v4097_v41, %v5448_v9  ;;  %v1446_v43 = vpop.f32.mrb[29].mxu1 }
 0x2ea   : > { %v1447_v44 = vadd.f32 %v5448_v9, %v1446_v43  ;;  %v4098_v45 = vpop.f32.mrb[30].mxu1 }
 0x2eb   : > { %v1458_v46 = vadd.f32 %v4098_v45, %v5448_v9  ;;  %v1449_v47 = vpop.f32.mrb[31].mxu1 }
 0x2ec   : > { %v1450_v48 = vadd.f32 %v5448_v9, %v1449_v47 }
 0x2ed   : > { %v1549_v49 = vpack.c.bf16 %v1458_v46, %v1455_v42 }
 0x2ee   : > { %v1548_v50 = vpack.c.bf16 %v1450_v48, %v1447_v44 }
 0x2f0   : > { %4143 = vmatprep.mubr.bf16.mxu0 %v1548_v50  ;;  %v4101_v51 = vpop.f32.mrb[32].mxu1 }
 0x2f1   : > { %4144 = vmatmul.mubr.bf16.gmra.mrb[28].mxu0 %v1549_v49  ;;  %v1471_v52 = vadd.f32 %v4101_v51, %v5448_v9  ;;  %v1462_v53 = vpop.f32.mrb[33].mxu1 }
 0x2f2   : > { %v1463_v54 = vadd.f32 %v5448_v9, %v1462_v53  ;;  %v4102_v55 = vpop.f32.mrb[34].mxu1 }
 0x2f3   : > { %v1474_v56 = vadd.f32 %v4102_v55, %v5448_v9  ;;  %v1465_v57 = vpop.f32.mrb[35].mxu1 }
 0x2f4   : > { %v1466_v6 = vadd.f32 %v5448_v9, %v1465_v57 }
 0x2f5   : > { %v1551_v58 = vpack.c.bf16 %v1474_v56, %v1471_v52 }
 0x2f6   : > { %v1550_v59 = vpack.c.bf16 %v1466_v6, %v1463_v54 }
 0x2f8   : > { %4147 = vmatprep.mubr.bf16.mxu0 %v1550_v59  ;;  %v4105_v60 = vpop.f32.mrb[36].mxu1 }
 0x2f9   : > { %4148 = vmatmul.mubr.bf16.gmra.mrb[32].mxu0 %v1551_v58  ;;  %v1487_v61 = vadd.f32 %v4105_v60, %v5448_v9  ;;  %v1478_v37 = vpop.f32.mrb[37].mxu1 }
 0x2fa   : > { %v1479_v34 = vadd.f32 %v5448_v9, %v1478_v37  ;;  %v4106_v62 = vpop.f32.mrb[38].mxu1 }
 0x2fb   : > { %v1490_v63 = vadd.f32 %v4106_v62, %v5448_v9  ;;  %v1481_v0 = vpop.f32.mrb[39].mxu1 }
 0x2fc   : > { %v1482_v1 = vadd.f32 %v5448_v9, %v1481_v0 }
 0x2fd   : > { %v1553_v2 = vpack.c.bf16 %v1490_v63, %v1487_v61 }
 0x2fe   : > { %v1552_v3 = vpack.c.bf16 %v1482_v1, %v1479_v34 }
 0x300   : > { %4151 = vmatprep.mubr.bf16.mxu0 %v1552_v3  ;;  %v4109_v4 = vpop.f32.mrb[40].mxu1 }
 0x301   : > { %4152 = vmatmul.mubr.bf16.gmra.mrb[36].mxu0 %v1553_v2  ;;  %v1503_v5 = vadd.f32 %v4109_v4, %v5448_v9  ;;  %v1494_v7 = vpop.f32.mrb[41].mxu1 }
 0x302   : > { %v1495_v8 = vadd.f32 %v5448_v9, %v1494_v7  ;;  %v4110_v10 = vpop.f32.mrb[42].mxu1 }
 0x303   : > { %v1506_v11 = vadd.f32 %v4110_v10, %v5448_v9  ;;  %v1497_v12 = vpop.f32.mrb[43].mxu1 }
 0x304   : > { %v1498_v13 = vadd.f32 %v5448_v9, %v1497_v12 }
 0x305   : > { %v1555_v14 = vpack.c.bf16 %v1506_v11, %v1503_v5 }
 0x306   : > { %v1554_v15 = vpack.c.bf16 %v1498_v13, %v1495_v8 }
 0x308   : > { %4155 = vmatprep.mubr.bf16.mxu0 %v1554_v15  ;;  %v4113_v16 = vpop.f32.mrb[44].mxu1 }
 0x309   : > { %4156 = vmatmul.mubr.bf16.gmra.mrb[40].mxu0 %v1555_v14  ;;  %v1519_v17 = vadd.f32 %v4113_v16, %v5448_v9  ;;  %v1510_v18 = vpop.f32.mrb[45].mxu1 }
 0x30a   : > { %v1511_v19 = vadd.f32 %v5448_v9, %v1510_v18  ;;  %v4114_v20 = vpop.f32.mrb[46].mxu1 }
 0x30b   : > { %v1522_v21 = vadd.f32 %v4114_v20, %v5448_v9  ;;  %v1513_v22 = vpop.f32.mrb[47].mxu1 }
 0x30c   : > { %v1514_v23 = vadd.f32 %v5448_v9, %v1513_v22 }
 0x30d   : > { %v1557_v24 = vpack.c.bf16 %v1522_v21, %v1519_v17 }
 0x30e   : > { %v1556_v25 = vpack.c.bf16 %v1514_v23, %v1511_v19 }
 0x310   : > { %4159 = vmatprep.mubr.bf16.mxu0 %v1556_v25 }
 0x311   : > { %4160 = vmatmul.mubr.bf16.gmra.mrb[44].mxu0 %v1557_v24 }
 0x3ac   : > { %v4133_v30 = vpop.f32.mrb[16].mxu0 }
 0x3ad   : > { %v1655_v31 = vadd.f32 %v4133_v30, %v5486_v29  ;;  %v1646_v9 = vpop.f32.mrb[17].mxu0 }
 0x3ae   : > { %v1647_v32 = vadd.f32 %v5486_v29, %v1646_v9  ;;  %v4134_v33 = vpop.f32.mrb[18].mxu0 }
 0x3af   : > { %v1658_v35 = vadd.f32 %v4134_v33, %v5486_v29  ;;  %v1649_v36 = vpop.f32.mrb[19].mxu0  ;;  %v1775_v39 = vmax.f32 %v1655_v31, 0.0 }
 0x3b0   : > { %v1650_v38 = vadd.f32 %v5486_v29, %v1649_v36  ;;  %v1773_v41 = vmax.f32 %v1647_v32, 0.0 }
 0x3b1   : > { %v1776_v40 = vmax.f32 %v1658_v35, 0.0 }
 0x3b2   : > { %v1774_v42 = vmax.f32 %v1650_v38, 0.0 }
 0x3b3   : > { %v1823_v43 = vpack.c.bf16 %v1776_v40, %v1775_v39 }
 0x3b4   : > { %v1822_v44 = vpack.c.bf16 %v1774_v42, %v1773_v41  ;;  %v4137_v45 = vpop.f32.mrb[20].mxu0 }
 0x3b5   : > { %v1671_v46 = vadd.f32 %v4137_v45, %v5486_v29  ;;  %v1662_v47 = vpop.f32.mrb[21].mxu0 }
 0x3b6   : > { %v1663_v48 = vadd.f32 %v5486_v29, %v1662_v47  ;;  %v4138_v49 = vpop.f32.mrb[22].mxu0  ;;  %1962 = vmatmul.mubr.bf16.vlgmr.msra.gmra.mrb[48].mxu1 %v1822_v44 }
 0x3b7   : > { %v1674_v50 = vadd.f32 %v4138_v49, %v5486_v29  ;;  %v1665_v51 = vpop.f32.mrb[23].mxu0  ;;  %1971 = vmatprep.mubr.bf16.mxu1 %v4963_v28  ;;  %v1779_v53 = vmax.f32 %v1671_v46, 0.0 }
 0x3b8   : > { %v1666_v52 = vadd.f32 %v5486_v29, %v1665_v51  ;;  %v1777_v55 = vmax.f32 %v1663_v48, 0.0 }
 0x3b9   : > { %v1780_v54 = vmax.f32 %v1674_v50, 0.0 }
 0x3ba   : > { %v1778_v56 = vmax.f32 %v1666_v52, 0.0 }
 0x3bb   : > { %v1825_v57 = vpack.c.bf16 %v1780_v54, %v1779_v53 }
 0x3bc   : > { %v1824_v6 = vpack.c.bf16 %v1778_v56, %v1777_v55  ;;  %v4141_v58 = vpop.f32.mrb[24].mxu0 }
 0x3bd   : > { %v1687_v59 = vadd.f32 %v4141_v58, %v5486_v29  ;;  %v1678_v60 = vpop.f32.mrb[25].mxu0 }
 0x3be   : > { %1972 = vmatmul.mubr.bf16.gmra.mrb[52].mxu1 %v1823_v43  ;;  %v1679_v61 = vadd.f32 %v5486_v29, %v1678_v60  ;;  %v4142_v37 = vpop.f32.mrb[26].mxu0 }
 0x3bf   : > { %v1783_v34 = vmax.f32 %v1687_v59, 0.0  ;;  %v1690_v62 = vadd.f32 %v4142_v37, %v5486_v29  ;;  %v1681_v63 = vpop.f32.mrb[27].mxu0  ;;  %1981 = vmatprep.mubr.bf16.mxu1 %v4963_v28 }
 0x3c0   : > { %v1781_v0 = vmax.f32 %v1679_v61, 0.0  ;;  %v1682_v1 = vadd.f32 %v5486_v29, %v1681_v63 }
 0x3c1   : > { %v1784_v2 = vmax.f32 %v1690_v62, 0.0 }
 0x3c2   : > { %v1782_v3 = vmax.f32 %v1682_v1, 0.0 }
 0x3c3   : > { %v1827_v4 = vpack.c.bf16 %v1784_v2, %v1783_v34 }
 0x3c4   : > { %v1826_v5 = vpack.c.bf16 %v1782_v3, %v1781_v0  ;;  %v4145_v7 = vpop.f32.mrb[28].mxu0 }
 0x3c5   : > { %v1703_v8 = vadd.f32 %v4145_v7, %v5486_v29  ;;  %v1694_v10 = vpop.f32.mrb[29].mxu0 }
 0x3c6   : > { %1982 = vmatmul.mubr.bf16.gmra.mrb[56].mxu1 %v1824_v6  ;;  %v1695_v11 = vadd.f32 %v5486_v29, %v1694_v10  ;;  %v4146_v12 = vpop.f32.mrb[30].mxu0 }
 0x3c7   : > { %1991 = vmatprep.mubr.bf16.mxu1 %v4963_v28  ;;  %v1787_v13 = vmax.f32 %v1703_v8, 0.0  ;;  %v1706_v14 = vadd.f32 %v4146_v12, %v5486_v29  ;;  %v1697_v15 = vpop.f32.mrb[31].mxu0 }
 0x3c8   : > { %v1785_v16 = vmax.f32 %v1695_v11, 0.0  ;;  %v1698_v17 = vadd.f32 %v5486_v29, %v1697_v15 }
 0x3c9   : > { %v1788_v18 = vmax.f32 %v1706_v14, 0.0 }
 0x3ca   : > { %v1786_v19 = vmax.f32 %v1698_v17, 0.0  ;;  %v4549_v17 = vld [vmem:[%s6285_s10 + $0x10] sm:$0xff]  }
 0x3cb   : > { %v5507_v20 = vpack.c.bf16 %v1788_v18, %v1787_v13  ;;  %v4964_v18 = vmov 0.0  }
 0x3cc   : > { %v1828_v21 = vpack.c.bf16 %v1786_v19, %v1785_v16  ;;  %v4149_v22 = vpop.f32.mrb[32].mxu0  ;;  %v4548_v16 = vld [vmem:[%s6285_s10 + $0x8] sm:$0xff]   ;;  %838 = vst [vmem:[#allocation2 + $0x10] sm:$0xff] %v4964_v18  ;;  %836 = vst [vmem:[#allocation2] sm:$0xff] %v4964_v18  ;;  %v868_v19 = vld [vmem:[%s5553_s17] sm:$0xff] }
 0x3cd   : > { %v1719_v23 = vadd.f32 %v4149_v22, %v5486_v29  ;;  %v1710_v24 = vpop.f32.mrb[33].mxu0  ;;  %837 = vst [vmem:[#allocation2 + $0x8] sm:$0xff] %v4964_v18  ;;  %839 = vst [vmem:[#allocation2 + $0x18] sm:$0xff] %v4964_v18  ;;  %v4550_v22 = vld [vmem:[%s6285_s10 + $0x18] sm:$0xff]  }
 0x3ce   : > { %1992 = vmatmul.mubr.bf16.gmra.mrb[60].mxu1 %v1825_v57  ;;  %v1711_v25 = vadd.f32 %v5486_v29, %v1710_v24  ;;  %v4150_v26 = vpop.f32.mrb[34].mxu0  ;;  %840 = vst [vmem:[#allocation2 + $0x20] sm:$0xff] %v4964_v18  ;;  %841 = vst [vmem:[#allocation2 + $0x28] sm:$0xff] %v4964_v18  ;;  %v871_v24 = vld [vmem:[%s5553_s17 + $0x18] sm:$0xff] }
 0x3cf   : > { %2001 = vmatprep.mubr.bf16.mxu1 %v4963_v28  ;;  %v1791_v27 = vmax.f32 %v1719_v23, 0.0  ;;  %v1722_v30 = vadd.f32 %v4150_v26, %v5486_v29  ;;  %v1713_v31 = vpop.f32.mrb[35].mxu0  ;;  %842 = vst [vmem:[#allocation2 + $0x30] sm:$0xff] %v4964_v18  ;;  %843 = vst [vmem:[#allocation2 + $0x38] sm:$0xff] %v4964_v18  ;;  %v4551_v23 = vld [vmem:[%s6285_s10 + $0x20] sm:$0xff]   ;;  %v4553_v26 = vld [vmem:[%s6285_s10 + $0x30] sm:$0xff]  }
 0x3d0   : > { %v1789_v9 = vmax.f32 %v1711_v25, 0.0  ;;  %v1714_v32 = vadd.f32 %v5486_v29, %v1713_v31  ;;  %844 = vst [vmem:[#allocation2 + $0x40] sm:$0xff] %v4964_v18  ;;  %845 = vst [vmem:[#allocation2 + $0x48] sm:$0xff] %v4964_v18  ;;  %v4552_v25 = vld [vmem:[%s6285_s10 + $0x28] sm:$0xff]   ;;  %v4554_v31 = vld [vmem:[%s6285_s10 + $0x38] sm:$0xff]  }
 0x3d1   : > { %v1792_v33 = vmax.f32 %v1722_v30, 0.0  ;;  %846 = vst [vmem:[#allocation2 + $0x50] sm:$0xff] %v4964_v18  ;;  %847 = vst [vmem:[#allocation2 + $0x58] sm:$0xff] %v4964_v18  ;;  %v873_v30 = vld [vmem:[%s5553_s17 + $0x28] sm:$0xff] }
 0x3d2   : > { %v1790_v35 = vmax.f32 %v1714_v32, 0.0  ;;  %848 = vst [vmem:[#allocation2 + $0x60] sm:$0xff] %v4964_v18  ;;  %849 = vst [vmem:[#allocation2 + $0x68] sm:$0xff] %v4964_v18  ;;  %v875_v32 = vld [vmem:[%s5553_s17 + $0x38] sm:$0xff] }
 0x3d3   : > { %v1831_v36 = vpack.c.bf16 %v1792_v33, %v1791_v27  ;;  %850 = vst [vmem:[#allocation2 + $0x70] sm:$0xff] %v4964_v18  ;;  %851 = vst [vmem:[#allocation2 + $0x78] sm:$0xff] %v4964_v18  ;;  %v872_v27 = vld [vmem:[%s5553_s17 + $0x20] sm:$0xff] }
 0x3d4   : > { %v1830_v38 = vpack.c.bf16 %v1790_v35, %v1789_v9  ;;  %v4153_v39 = vpop.f32.mrb[36].mxu0  ;;  %852 = vst [vmem:[#allocation2 + $0x80] sm:$0xff] %v4964_v18  ;;  %853 = vst [vmem:[#allocation2 + $0x88] sm:$0xff] %v4964_v18  ;;  %v874_v9 = vld [vmem:[%s5553_s17 + $0x30] sm:$0xff]  ;;  %v876_v33 = vld [vmem:[%s5553_s17 + $0x40] sm:$0xff] }
 0x3d5   : > { %v1735_v40 = vadd.f32 %v4153_v39, %v5486_v29  ;;  %v1726_v41 = vpop.f32.mrb[37].mxu0  ;;  %854 = vst [vmem:[#allocation2 + $0x90] sm:$0xff] %v4964_v18  ;;  %855 = vst [vmem:[#allocation2 + $0x98] sm:$0xff] %v4964_v18  ;;  %v877_v35 = vld [vmem:[%s5553_s17 + $0x48] sm:$0xff] }
 0x3d6   : > { %2002 = vmatmul.mubr.bf16.gmra.mrb[64].mxu1 %v1826_v5  ;;  %v1727_v42 = vadd.f32 %v5486_v29, %v1726_v41  ;;  %v4154_v43 = vpop.f32.mrb[38].mxu0  ;;  %856 = vst [vmem:[#allocation2 + $0xa0] sm:$0xff] %v4964_v18  ;;  %857 = vst [vmem:[#allocation2 + $0xa8] sm:$0xff] %v4964_v18  ;;  %v881_v39 = vld [vmem:[%s5553_s17 + $0x68] sm:$0xff]  ;;  %v883_v41 = vld [vmem:[%s5553_s17 + $0x78] sm:$0xff] }
 0x3d7   : > { %2011 = vmatprep.mubr.bf16.mxu1 %v4963_v28  ;;  %v1795_v44 = vmax.f32 %v1735_v40, 0.0  ;;  %v1738_v45 = vadd.f32 %v4154_v43, %v5486_v29  ;;  %v1729_v46 = vpop.f32.mrb[39].mxu0  ;;  %858 = vst [vmem:[#allocation2 + $0xb0] sm:$0xff] %v4964_v18  ;;  %859 = vst [vmem:[#allocation2 + $0xb8] sm:$0xff] %v4964_v18  ;;  %v882_v40 = vld [vmem:[%s5553_s17 + $0x70] sm:$0xff]  ;;  %v885_v43 = vld [vmem:[%s5553_s17 + $0x88] sm:$0xff] }
 0x3d8   : > { %v1793_v47 = vmax.f32 %v1727_v42, 0.0  ;;  %v1730_v48 = vadd.f32 %v5486_v29, %v1729_v46  ;;  %860 = vst [vmem:[#allocation2 + $0xc0] sm:$0xff] %v4964_v18  ;;  %861 = vst [vmem:[#allocation2 + $0xc8] sm:$0xff] %v4964_v18  ;;  %v884_v42 = vld [vmem:[%s5553_s17 + $0x80] sm:$0xff] }
 0x3d9   : > { %v1796_v49 = vmax.f32 %v1738_v45, 0.0  ;;  %862 = vst [vmem:[#allocation2 + $0xd0] sm:$0xff] %v4964_v18  ;;  %863 = vst [vmem:[#allocation2 + $0xd8] sm:$0xff] %v4964_v18  ;;  %v887_v45 = vld [vmem:[%s5553_s17 + $0x98] sm:$0xff]  ;;  %v888_v46 = vld [vmem:[%s5553_s17 + $0xa0] sm:$0xff] }
 0x3da   : > { %v1794_v50 = vmax.f32 %v1730_v48, 0.0  ;;  %864 = vst [vmem:[#allocation2 + $0xe0] sm:$0xff] %v4964_v18  ;;  %865 = vst [vmem:[#allocation2 + $0xe8] sm:$0xff] %v4964_v18  ;;  %v890_v48 = vld [vmem:[%s5553_s17 + $0xb0] sm:$0xff] }
 0x3db   : > { %v1833_v51 = vpack.c.bf16 %v1796_v49, %v1795_v44  ;;  %866 = vst [vmem:[#allocation2 + $0xf0] sm:$0xff] %v4964_v18  ;;  %867 = vst [vmem:[#allocation2 + $0xf8] sm:$0xff] %v4964_v18  ;;  %v886_v44 = vld [vmem:[%s5553_s17 + $0x90] sm:$0xff]  ;;  %v891_v49 = vld [vmem:[%s5553_s17 + $0xb8] sm:$0xff] }
 0x3dc   : > { %v1832_v52 = vpack.c.bf16 %v1794_v50, %v1793_v47  ;;  %v4157_v53 = vpop.f32.mrb[40].mxu0  ;;  %901 = vst.msk [vmem:[#allocation2] sm:$0xff] %vm900_vm0, %v868_v19  ;;  %904 = vst.msk [vmem:[#allocation2 + $0x18] sm:$0xff] %vm900_vm0, %v871_v24  ;;  %v889_v47 = vld [vmem:[%s5553_s17 + $0xa8] sm:$0xff]  ;;  %v892_v50 = vld [vmem:[%s5553_s17 + $0xc0] sm:$0xff] }
 0x3dd   : > { %v1751_v54 = vadd.f32 %v4157_v53, %v5486_v29  ;;  %v1742_v55 = vpop.f32.mrb[41].mxu0  ;;  %905 = vst.msk [vmem:[#allocation2 + $0x20] sm:$0xff] %vm900_vm0, %v872_v27  ;;  %906 = vst.msk [vmem:[#allocation2 + $0x28] sm:$0xff] %vm900_vm0, %v873_v30  ;;  %v894_v53 = vld [vmem:[%s5553_s17 + $0xd0] sm:$0xff] }
 0x3de   : > { %2012 = vmatmul.mubr.bf16.gmra.mrb[68].mxu1 %v1827_v4  ;;  %v1743_v56 = vadd.f32 %v5486_v29, %v1742_v55  ;;  %v4158_v57 = vpop.f32.mrb[42].mxu0  ;;  %907 = vst.msk [vmem:[#allocation2 + $0x30] sm:$0xff] %vm900_vm0, %v874_v9  ;;  %908 = vst.msk [vmem:[#allocation2 + $0x38] sm:$0xff] %vm900_vm0, %v875_v32 }
 0x3df   : > { %2021 = vmatprep.mubr.bf16.mxu1 %v4963_v28  ;;  %v1799_v6 = vmax.f32 %v1751_v54, 0.0  ;;  %v1754_v58 = vadd.f32 %v4158_v57, %v5486_v29  ;;  %v1745_v59 = vpop.f32.mrb[43].mxu0  ;;  %909 = vst.msk [vmem:[#allocation2 + $0x40] sm:$0xff] %vm900_vm0, %v876_v33  ;;  %910 = vst.msk [vmem:[#allocation2 + $0x48] sm:$0xff] %vm900_vm0, %v877_v35  ;;  %v895_v54 = vld [vmem:[%s5553_s17 + $0xd8] sm:$0xff] }
 0x3e0   : > { %v1797_v60 = vmax.f32 %v1743_v56, 0.0  ;;  %v1746_v61 = vadd.f32 %v5486_v29, %v1745_v59  ;;  %914 = vst.msk [vmem:[#allocation2 + $0x68] sm:$0xff] %vm900_vm0, %v881_v39  ;;  %915 = vst.msk [vmem:[#allocation2 + $0x70] sm:$0xff] %vm900_vm0, %v882_v40  ;;  %v1821_v57 = vld [vmem:[%s6284_s9] sm:$0x3]  ;;  %v897_v59 = vld [vmem:[%s5553_s17 + $0xe8] sm:$0xff] }
 0x3e1   : > { %v1800_v37 = vmax.f32 %v1754_v58, 0.0  ;;  %916 = vst.msk [vmem:[#allocation2 + $0x78] sm:$0xff] %vm900_vm0, %v883_v41  ;;  %917 = vst.msk [vmem:[#allocation2 + $0x80] sm:$0xff] %vm900_vm0, %v884_v42  ;;  %v896_v58 = vld [vmem:[%s5553_s17 + $0xe0] sm:$0xff] }
 0x3e2   : > { %v1798_v34 = vmax.f32 %v1746_v61, 0.0  ;;  %918 = vst.msk [vmem:[#allocation2 + $0x88] sm:$0xff] %vm900_vm0, %v885_v43  ;;  %919 = vst.msk [vmem:[#allocation2 + $0x90] sm:$0xff] %vm900_vm0, %v886_v44 }
 0x3e3   : > { %v5524_v62 = vpack.c.bf16 %v1800_v37, %v1799_v6  ;;  %920 = vst.msk [vmem:[#allocation2 + $0x98] sm:$0xff] %vm900_vm0, %v887_v45  ;;  %921 = vst.msk [vmem:[#allocation2 + $0xa0] sm:$0xff] %vm900_vm0, %v888_v46  ;;  %v933_v24 = vld [vmem:[#allocation2] sm:$0xff] }
 0x3e4   : > { %v5526_v63 = vpack.c.bf16 %v1798_v34, %v1797_v60  ;;  %v4161_v0 = vpop.f32.mrb[44].mxu0  ;;  %922 = vst.msk [vmem:[#allocation2 + $0xa8] sm:$0xff] %vm900_vm0, %v889_v47  ;;  %923 = vst.msk [vmem:[#allocation2 + $0xb0] sm:$0xff] %vm900_vm0, %v890_v48 }
 0x3e5   : > { %v1767_v1 = vadd.f32 %v4161_v0, %v5486_v29  ;;  %v1758_v2 = vpop.f32.mrb[45].mxu0  ;;  %924 = vst.msk [vmem:[#allocation2 + $0xb8] sm:$0xff] %vm900_vm0, %v891_v49  ;;  %925 = vst.msk [vmem:[#allocation2 + $0xc0] sm:$0xff] %vm900_vm0, %v892_v50 }
 0x3e6   : > { %2022 = vmatmul.mubr.bf16.gmra.mrb[72].mxu1 %v1828_v21  ;;  %v1759_v3 = vadd.f32 %v5486_v29, %v1758_v2  ;;  %v4162_v4 = vpop.f32.mrb[46].mxu0  ;;  %v869_v21 = vld [vmem:[%s5553_s17 + $0x8] sm:$0xff]  ;;  %927 = vst.msk [vmem:[#allocation2 + $0xd0] sm:$0xff] %vm900_vm0, %v894_v53  ;;  %928 = vst.msk [vmem:[#allocation2 + $0xd8] sm:$0xff] %vm900_vm0, %v895_v54 }
 0x3e7   : > { %2031 = vmatprep.mubr.bf16.mxu1 %v4963_v28  ;;  %v1803_v5 = vmax.f32 %v1767_v1, 0.0  ;;  %v1770_v7 = vadd.f32 %v4162_v4, %v5486_v29  ;;  %v1761_v8 = vpop.f32.mrb[47].mxu0  ;;  %902 = vst.msk [vmem:[#allocation2 + $0x8] sm:$0xff] %vm900_vm0, %v869_v21  ;;  %929 = vst.msk [vmem:[#allocation2 + $0xe0] sm:$0xff] %vm900_vm0, %v896_v58  ;;  %v898_v1 = vld [vmem:[%s5553_s17 + $0xf0] sm:$0xff] }
 0x3e8   : > { %v1801_v10 = vmax.f32 %v1759_v3, 0.0  ;;  %v1762_v11 = vadd.f32 %v5486_v29, %v1761_v8  ;;  %v4547_v29 = vld [vmem:[%s6285_s10] sm:$0xff]   ;;  %930 = vst.msk [vmem:[#allocation2 + $0xe8] sm:$0xff] %vm900_vm0, %v897_v59  ;;  %931 = vst.msk [vmem:[#allocation2 + $0xf0] sm:$0xff] %vm900_vm0, %v898_v1 }
 0x3e9   : > { %v1804_v12 = vmax.f32 %v1770_v7, 0.0  ;;  %4163 = vmatprep.subr.bf16.mxu0 %v4547_v29  ;;  %v899_v7 = vld [vmem:[%s5553_s17 + $0xf8] sm:$0xff] }
 0x3ea   : > { %v1802_v13 = vmax.f32 %v1762_v11, 0.0  ;;  %4164 = vmatpush3.bf16.msra.mxu0 %v4547_v29  ;;  %932 = vst.msk [vmem:[#allocation2 + $0xf8] sm:$0xff] %vm900_vm0, %v899_v7 }
 0x3eb   : > { %v5533_v14 = vpack.c.bf16 %v1804_v12, %v1803_v5  ;;  %4165 = vmatprep.subr.bf16.mxu0 %v4548_v16 }
 0x3ec   : > { %v5535_v15 = vpack.c.bf16 %v1802_v13, %v1801_v10 }
 0x3ee   : > { %2032 = vmatmul.mubr.bf16.gmra.mrb[76].mxu1 %v5507_v20  ;;  %4166 = vmatpush3.bf16.msra.mxu0 %v4548_v16  ;;  %v870_v20 = vld [vmem:[%s5553_s17 + $0x10] sm:$0xff]  ;;  %v934_v9 = vld [vmem:[#allocation2 + $0x8] sm:$0xff] }
 0x3ef   : > { %2041 = vmatprep.mubr.bf16.mxu1 %v4963_v28  ;;  %4167 = vmatprep.subr.bf16.mxu0 %v4549_v17  ;;  %903 = vst.msk [vmem:[#allocation2 + $0x10] sm:$0xff] %vm900_vm0, %v870_v20 }
 0x3f2   : > { %4168 = vmatpush3.bf16.msra.mxu0 %v4549_v17 }
 0x3f3   : > { %4169 = vmatprep.subr.bf16.mxu0 %v4550_v22 }
 0x3f6   : > { %2042 = vmatmul.mubr.bf16.gmra.mrb[80].mxu1 %v1830_v38  ;;  %4170 = vmatpush3.bf16.msra.mxu0 %v4550_v22  ;;  %v880_v38 = vld [vmem:[%s5553_s17 + $0x60] sm:$0xff]  ;;  %v935_v45 = vld [vmem:[#allocation2 + $0x10] sm:$0xff] }
 0x3f7   : > { %2051 = vmatprep.mubr.bf16.mxu1 %v4963_v28  ;;  %4171 = vmatprep.subr.bf16.mxu0 %v4551_v23  ;;  %913 = vst.msk [vmem:[#allocation2 + $0x60] sm:$0xff] %vm900_vm0, %v880_v38 }
 0x3fa   : > { %4172 = vmatpush3.bf16.msra.mxu0 %v4551_v23 }
 0x3fb   : > { %4173 = vmatprep.subr.bf16.mxu0 %v4552_v25 }
 0x3fe   : > { %2052 = vmatmul.mubr.bf16.gmra.mrb[84].mxu1 %v1831_v36  ;;  %4174 = vmatpush3.bf16.msra.mxu0 %v4552_v25  ;;  %v879_v36 = vld [vmem:[%s5553_s17 + $0x58] sm:$0xff] }
 0x3ff   : > { %2061 = vmatprep.mubr.bf16.mxu1 %v4963_v28  ;;  %4175 = vmatprep.subr.bf16.mxu0 %v4553_v26  ;;  %912 = vst.msk [vmem:[#allocation2 + $0x58] sm:$0xff] %vm900_vm0, %v879_v36 }
 0x402   : > { %4176 = vmatpush3.bf16.msra.mxu0 %v4553_v26 }
 0x403   : > { %4177 = vmatprep.subr.bf16.mxu0 %v4554_v31 }
 0x406   : > { %2062 = vmatmul.mubr.bf16.gmra.mrb[88].mxu1 %v1832_v52  ;;  %4178 = vmatpush3.bf16.msra.mxu0 %v4554_v31  ;;  %v1839_v52 = vlaneseq }
 0x407   : > { %2071 = vmatprep.mubr.bf16.mxu1 %v4963_v28 }
 0x408   : > { %v1840_v55 = vshrl.u32 %v1839_v52, 7  ;;  %v936_v52 = vld [vmem:[#allocation2 + $0x18] sm:$0xff] }
 0x40a   : > { %v1841_v56 = vsub.s32 0, %v1840_v55  ;;  %v1845_v6 = vsub.s32 1, %v1840_v55 }
 0x40c   : > { %v5642_v60 = vrot.slane %v1821_v57, %v1841_v56  ;;  %v5645_v61 = vrot.slane %v1821_v57, %v1845_v6 }
 0x40e   : > { %2072 = vmatmul.mubr.bf16.gmra.mrb[92].mxu1 %v1833_v51  ;;  %v893_v51 = vld [vmem:[%s5553_s17 + $0xc8] sm:$0xff] }
 0x40f   : > { %2081 = vmatprep.mubr.bf16.mxu1 %v4963_v28  ;;  %926 = vst.msk [vmem:[#allocation2 + $0xc8] sm:$0xff] %vm900_vm0, %v893_v51 }
 0x416   : > { %2082 = vmatmul.mubr.bf16.gmra.mrb[96].mxu1 %v5526_v63 }
 0x417   : > { %2091 = vmatprep.mubr.bf16.mxu1 %v4963_v28 }
 0x41e   : > { %2092 = vmatmul.mubr.bf16.gmra.mrb[100].mxu1 %v5524_v62 }
 0x41f   : > { %2101 = vmatprep.mubr.bf16.mxu1 %v4963_v28 }
 0x426   : > { %2102 = vmatmul.mubr.bf16.gmra.mrb[104].mxu1 %v5535_v15 }
 0x427   : > { %2111 = vmatprep.mubr.bf16.mxu1 %v4963_v28  ;;  %v878_v28 = vld [vmem:[%s5553_s17 + $0x50] sm:$0xff]  ;;  %s6364_s17 = sld [smem:[#allocation30_spill]] }
 0x428   : > { %911 = vst.msk [vmem:[#allocation2 + $0x50] sm:$0xff] %vm900_vm0, %v878_v28  ;;  %v5703_v28 = vld [vmem:[#allocation12] sm:$0xff]  }
 0x429   : > { %4211 = vmatprep.subr.bf16.mxu0 %v5703_v28 }
 0x42d   : > { %p6366_p11 = scmp.ne.s32.totalorder %s6364_s17, 0 }
 0x42e   : > { %2112 = vmatmul.mubr.bf16.gmra.mrb[108].mxu1 %v5533_v14 }
 0x489   : > { %v1963_v37 = vpop.f32.mrb[48].mxu1 }
 0x48a   : > { %v1964_v34 = vadd.f32 %v1963_v37, %v5642_v60  ;;  %v1965_v62 = vpop.f32.mrb[49].mxu1 }
 0x48b   : > { %v1966_v63 = vadd.f32 %v1965_v62, %v5645_v61  ;;  %v1967_v0 = vpop.f32.mrb[50].mxu1 }
 0x48c   : > { %3402 = vst.msk [vmem:[%s5651_s30] sm:$0xff] %vm900_vm0, %v1964_v34  ;;  %v1968_v2 = vadd.f32 %v1967_v0, %v5642_v60  ;;  %v1969_v3 = vpop.f32.mrb[51].mxu1 }
 0x48d   : > { %v2122_v4 = vmul.f32 0.5, %v1966_v63  ;;  %3434 = vst.msk [vmem:[%s5658_s18] sm:$0xff] %vm900_vm0, %v1966_v63  ;;  %v1970_v5 = vadd.f32 %v1969_v3, %v5645_v61  ;;  %v937_v3 = vld [vmem:[#allocation2 + $0x20] sm:$0xff] }
 0x48e   : > { %3403 = vst.msk [vmem:[%s5651_s30 + $0x8] sm:$0xff] %vm900_vm0, %v1968_v2 }
 0x48f   : > { %v2154_v8 = vmul.f32 1.442695, %v2122_v4  ;;  %v2123_v10 = vmul.f32 0.5, %v1970_v5  ;;  %3435 = vst.msk [vmem:[%s5658_s18 + $0x8] sm:$0xff] %vm900_vm0, %v1970_v5 }
 0x491   : > { %4579 = vpow2.f32 %v2154_v8  ;;  %v2156_v11 = vmul.f32 1.442695, %v2123_v10  ;;  %v1973_v12 = vpop.f32.mrb[52].mxu1  ;;  %v4556_v8 = vld [vmem:[#allocation12 + $0x8] sm:$0xff]  }
 0x492   : > { %v5676_v13 = vadd.f32 %v1973_v12, %v5642_v60  ;;  %v1975_v14 = vpop.f32.mrb[53].mxu1 }
 0x493   : > { %4581 = vpow2.f32 %v2156_v11  ;;  %v1976_v15 = vadd.f32 %v1975_v14, %v5645_v61  ;;  %v1977_v29 = vpop.f32.mrb[54].mxu1 }
 0x494   : > { %3404 = vst.msk [vmem:[%s5651_s30 + $0x10] sm:$0xff] %vm900_vm0, %v5676_v13  ;;  %v5683_v16 = vadd.f32 %v1977_v29, %v5642_v60  ;;  %v1979_v17 = vpop.f32.mrb[55].mxu1 }
 0x495   : > { %v2124_v18 = vmul.f32 0.5, %v1976_v15  ;;  %3436 = vst.msk [vmem:[%s5658_s18 + $0x10] sm:$0xff] %vm900_vm0, %v1976_v15  ;;  %v1980_v19 = vadd.f32 %v1979_v17, %v5645_v61 }
 0x496   : > { %3405 = vst.msk [vmem:[%s5651_s30 + $0x18] sm:$0xff] %vm900_vm0, %v5683_v16 }
 0x497   : > { %v2158_v20 = vmul.f32 1.442695, %v2124_v18  ;;  %v2125_v21 = vmul.f32 0.5, %v1980_v19  ;;  %3437 = vst.msk [vmem:[%s5658_s18 + $0x18] sm:$0xff] %vm900_vm0, %v1980_v19 }
 0x499   : > { %4583 = vpow2.f32 %v2158_v20  ;;  %v2160_v22 = vmul.f32 1.442695, %v2125_v21  ;;  %v1983_v23 = vpop.f32.mrb[56].mxu1  ;;  %v4557_v21 = vld [vmem:[#allocation12 + $0x10] sm:$0xff]  }
 0x49a   : > { %v5694_v25 = vadd.f32 %v1983_v23, %v5642_v60  ;;  %v1985_v26 = vpop.f32.mrb[57].mxu1 }
 0x49b   : > { %v4580_v27 = vpop.eup %4579  ;;  %4585 = vpow2.f32 %v2160_v22  ;;  %v1986_v30 = vadd.f32 %v1985_v26, %v5645_v61  ;;  %v1987_v31 = vpop.f32.mrb[58].mxu1 }
 0x49c   : > { %3406 = vst.msk [vmem:[%s5651_s30 + $0x20] sm:$0xff] %vm900_vm0, %v5694_v25  ;;  %v5701_v32 = vadd.f32 %v1987_v31, %v5642_v60  ;;  %v1989_v33 = vpop.f32.mrb[59].mxu1  ;;  %v2218_v35 = vmul.f32 %v4580_v27, %v933_v24 }
 0x49d   : > { %v4582_v36 = vpop.eup %4581  ;;  %v2126_v38 = vmul.f32 0.5, %v1986_v30  ;;  %3438 = vst.msk [vmem:[%s5658_s18 + $0x20] sm:$0xff] %vm900_vm0, %v1986_v30  ;;  %v1990_v39 = vadd.f32 %v1989_v33, %v5645_v61  ;;  %v939_v30 = vld [vmem:[#allocation2 + $0x30] sm:$0xff]  ;;  %v4558_v33 = vld [vmem:[#allocation12 + $0x18] sm:$0xff]  }
 0x49e   : > { %3407 = vst.msk [vmem:[%s5651_s30 + $0x28] sm:$0xff] %vm900_vm0, %v5701_v32  ;;  %v2219_v40 = vmul.f32 %v4582_v36, %v934_v9  ;;  %v2250_v41 = vadd.f32 %v2218_v35, %v1964_v34  ;;  %v940_v36 = vld [vmem:[#allocation2 + $0x38] sm:$0xff] }
 0x49f   : > { %v2162_v42 = vmul.f32 1.442695, %v2126_v38  ;;  %v2127_v43 = vmul.f32 0.5, %v1990_v39  ;;  %3439 = vst.msk [vmem:[%s5658_s18 + $0x28] sm:$0xff] %vm900_vm0, %v1990_v39 }
 0x4a0   : > { %v2251_v44 = vadd.f32 %v2219_v40, %v1968_v2  ;;  %3370 = vst.msk [vmem:[%s5712_s8] sm:$0xff] %vm900_vm0, %v2250_v41 }
 0x4a1   : > { %4587 = vpow2.f32 %v2162_v42  ;;  %v2164_v46 = vmul.f32 1.442695, %v2127_v43  ;;  %v1993_v47 = vpop.f32.mrb[60].mxu1 }
 0x4a2   : > { %v5723_v48 = vadd.f32 %v1993_v47, %v5642_v60  ;;  %v1995_v49 = vpop.f32.mrb[61].mxu1  ;;  %v2299_v50 = vpack.c.bf16 %v2251_v44, %v2250_v41  ;;  %3371 = vst.msk [vmem:[%s5712_s8 + $0x8] sm:$0xff] %vm900_vm0, %v2251_v44 }
 0x4a3   : > { %v4584_v51 = vpop.eup %4583  ;;  %4589 = vpow2.f32 %v2164_v46  ;;  %v1996_v53 = vadd.f32 %v1995_v49, %v5645_v61  ;;  %v1997_v54 = vpop.f32.mrb[62].mxu1  ;;  %v4559_v46 = vld [vmem:[#allocation12 + $0x20] sm:$0xff]  }
 0x4a4   : > { %v2220_v55 = vmul.f32 %v4584_v51, %v935_v45  ;;  %3408 = vst.msk [vmem:[%s5651_s30 + $0x30] sm:$0xff] %vm900_vm0, %v5723_v48  ;;  %v5732_v56 = vadd.f32 %v1997_v54, %v5642_v60  ;;  %v1999_v57 = vpop.f32.mrb[63].mxu1  ;;  %4179 = vmatprep.mubr.bf16.mxu0 %v2299_v50 }
 0x4a5   : > { %v4586_v6 = vpop.eup %4585  ;;  %v2128_v58 = vmul.f32 0.5, %v1996_v53  ;;  %3440 = vst.msk [vmem:[%s5658_s18 + $0x30] sm:$0xff] %vm900_vm0, %v1996_v53  ;;  %v2000_v59 = vadd.f32 %v1999_v57, %v5645_v61  ;;  %v941_v53 = vld [vmem:[#allocation2 + $0x40] sm:$0xff]  ;;  %v4560_v57 = vld [vmem:[#allocation12 + $0x28] sm:$0xff]  }
 0x4a6   : > { %v2221_v37 = vmul.f32 %v4586_v6, %v936_v52  ;;  %3409 = vst.msk [vmem:[%s5651_s30 + $0x38] sm:$0xff] %vm900_vm0, %v5732_v56  ;;  %v2252_v34 = vadd.f32 %v2220_v55, %v5676_v13  ;;  %v938_v13 = vld [vmem:[#allocation2 + $0x28] sm:$0xff] }
 0x4a7   : > { %v2166_v62 = vmul.f32 1.442695, %v2128_v58  ;;  %v2129_v63 = vmul.f32 0.5, %v2000_v59  ;;  %3441 = vst.msk [vmem:[%s5658_s18 + $0x38] sm:$0xff] %vm900_vm0, %v2000_v59  ;;  %v942_v59 = vld [vmem:[#allocation2 + $0x48] sm:$0xff] }
 0x4a8   : > { %v2253_v0 = vadd.f32 %v2221_v37, %v5683_v16  ;;  %3372 = vst.msk [vmem:[%s5712_s8 + $0x10] sm:$0xff] %vm900_vm0, %v2252_v34 }
 0x4a9   : > { %4591 = vpow2.f32 %v2166_v62  ;;  %v2168_v1 = vmul.f32 1.442695, %v2129_v63  ;;  %v2003_v2 = vpop.f32.mrb[64].mxu1 }
 0x4aa   : > { %v5747_v4 = vadd.f32 %v2003_v2, %v5642_v60  ;;  %v2005_v5 = vpop.f32.mrb[65].mxu1  ;;  %v2300_v7 = vpack.c.bf16 %v2253_v0, %v2252_v34  ;;  %3373 = vst.msk [vmem:[%s5712_s8 + $0x18] sm:$0xff] %vm900_vm0, %v2253_v0 }
 0x4ab   : > { %v4588_v10 = vpop.eup %4587  ;;  %4593 = vpow2.f32 %v2168_v1  ;;  %v2006_v11 = vadd.f32 %v2005_v5, %v5645_v61  ;;  %v2007_v12 = vpop.f32.mrb[66].mxu1 }
 0x4ac   : > { %3410 = vst.msk [vmem:[%s5651_s30 + $0x40] sm:$0xff] %vm900_vm0, %v5747_v4  ;;  %v5756_v14 = vadd.f32 %v2007_v12, %v5642_v60  ;;  %v2009_v15 = vpop.f32.mrb[67].mxu1  ;;  %4180 = vmatmul.mubr.bf16.vlgmr.msra.gmra.mrb[48].mxu0 %v2300_v7  ;;  %v2222_v29 = vmul.f32 %v4588_v10, %v937_v3  ;;  %v943_v12 = vld [vmem:[#allocation2 + $0x50] sm:$0xff] }
 0x4ad   : > { %v4590_v16 = vpop.eup %4589  ;;  %v2130_v17 = vmul.f32 0.5, %v2006_v11  ;;  %3442 = vst.msk [vmem:[%s5658_s18 + $0x40] sm:$0xff] %vm900_vm0, %v2006_v11  ;;  %v2010_v18 = vadd.f32 %v2009_v15, %v5645_v61  ;;  %4212 = vmatpush3.bf16.msra.mxu0 %v5703_v28 }
 0x4ae   : > { %3411 = vst.msk [vmem:[%s5651_s30 + $0x48] sm:$0xff] %vm900_vm0, %v5756_v14  ;;  %v2223_v19 = vmul.f32 %v4590_v16, %v938_v13  ;;  %v2254_v20 = vadd.f32 %v2222_v29, %v5694_v25  ;;  %4213 = vmatprep.subr.bf16.mxu0 %v4556_v8 }
 0x4af   : > { %v2170_v22 = vmul.f32 1.442695, %v2130_v17  ;;  %v2131_v23 = vmul.f32 0.5, %v2010_v18  ;;  %3443 = vst.msk [vmem:[%s5658_s18 + $0x48] sm:$0xff] %vm900_vm0, %v2010_v18  ;;  %v944_v17 = vld [vmem:[#allocation2 + $0x58] sm:$0xff] }
 0x4b0   : > { %v2255_v24 = vadd.f32 %v2223_v19, %v5701_v32  ;;  %3374 = vst.msk [vmem:[%s5712_s8 + $0x20] sm:$0xff] %vm900_vm0, %v2254_v20 }
 0x4b1   : > { %4595 = vpow2.f32 %v2170_v22  ;;  %v2172_v26 = vmul.f32 1.442695, %v2131_v23  ;;  %v2013_v27 = vpop.f32.mrb[68].mxu1  ;;  %4214 = vmatpush3.bf16.msra.mxu0 %v4556_v8 }
 0x4b2   : > { %v5772_v31 = vadd.f32 %v2013_v27, %v5642_v60  ;;  %v2015_v25 = vpop.f32.mrb[69].mxu1  ;;  %v2301_v9 = vpack.c.bf16 %v2255_v24, %v2254_v20  ;;  %3375 = vst.msk [vmem:[%s5712_s8 + $0x28] sm:$0xff] %vm900_vm0, %v2255_v24  ;;  %4215 = vmatprep.subr.bf16.mxu0 %v4557_v21 }
 0x4b3   : > { %v4592_v32 = vpop.eup %4591  ;;  %4597 = vpow2.f32 %v2172_v26  ;;  %v2016_v35 = vadd.f32 %v2015_v25, %v5645_v61  ;;  %v2017_v28 = vpop.f32.mrb[70].mxu1 }
 0x4b4   : > { %3412 = vst.msk [vmem:[%s5651_s30 + $0x50] sm:$0xff] %vm900_vm0, %v5772_v31  ;;  %v5781_v38 = vadd.f32 %v2017_v28, %v5642_v60  ;;  %v2019_v39 = vpop.f32.mrb[71].mxu1  ;;  %4183 = vmatprep.mubr.bf16.mxu0 %v2301_v9  ;;  %v2224_v40 = vmul.f32 %v4592_v32, %v939_v30  ;;  %v945_v32 = vld [vmem:[#allocation2 + $0x60] sm:$0xff] }
 0x4b5   : > { %v4594_v41 = vpop.eup %4593  ;;  %v2132_v42 = vmul.f32 0.5, %v2016_v35  ;;  %3444 = vst.msk [vmem:[%s5658_s18 + $0x50] sm:$0xff] %vm900_vm0, %v2016_v35  ;;  %v2020_v43 = vadd.f32 %v2019_v39, %v5645_v61  ;;  %4216 = vmatpush3.bf16.msra.mxu0 %v4557_v21 }
 0x4b6   : > { %3413 = vst.msk [vmem:[%s5651_s30 + $0x58] sm:$0xff] %vm900_vm0, %v5781_v38  ;;  %v2225_v44 = vmul.f32 %v4594_v41, %v940_v36  ;;  %v2256_v45 = vadd.f32 %v2224_v40, %v5723_v48  ;;  %4217 = vmatprep.subr.bf16.mxu0 %v4558_v33  ;;  %v946_v40 = vld [vmem:[#allocation2 + $0x68] sm:$0xff] }
 0x4b7   : > { %v2174_v47 = vmul.f32 1.442695, %v2132_v42  ;;  %v2133_v49 = vmul.f32 0.5, %v2020_v43  ;;  %3445 = vst.msk [vmem:[%s5658_s18 + $0x58] sm:$0xff] %vm900_vm0, %v2020_v43 }
 0x4b8   : > { %v2257_v50 = vadd.f32 %v2225_v44, %v5732_v56  ;;  %3376 = vst.msk [vmem:[%s5712_s8 + $0x30] sm:$0xff] %vm900_vm0, %v2256_v45 }
 0x4b9   : > { %4599 = vpow2.f32 %v2174_v47  ;;  %v2176_v51 = vmul.f32 1.442695, %v2133_v49  ;;  %v2023_v52 = vpop.f32.mrb[72].mxu1  ;;  %4218 = vmatpush3.bf16.msra.mxu0 %v4558_v33 }
 0x4ba   : > { %v5796_v54 = vadd.f32 %v2023_v52, %v5642_v60  ;;  %v2025_v48 = vpop.f32.mrb[73].mxu1  ;;  %v2302_v55 = vpack.c.bf16 %v2257_v50, %v2256_v45  ;;  %3377 = vst.msk [vmem:[%s5712_s8 + $0x38] sm:$0xff] %vm900_vm0, %v2257_v50  ;;  %4219 = vmatprep.subr.bf16.mxu0 %v4559_v46 }
 0x4bb   : > { %v4596_v56 = vpop.eup %4595  ;;  %4601 = vpow2.f32 %v2176_v51  ;;  %v2026_v6 = vadd.f32 %v2025_v48, %v5645_v61  ;;  %v2027_v58 = vpop.f32.mrb[74].mxu1 }
 0x4bc   : > { %3414 = vst.msk [vmem:[%s5651_s30 + $0x60] sm:$0xff] %vm900_vm0, %v5796_v54  ;;  %v5805_v37 = vadd.f32 %v2027_v58, %v5642_v60  ;;  %v2029_v34 = vpop.f32.mrb[75].mxu1  ;;  %4184 = vmatmul.mubr.bf16.gmra.mrb[52].mxu0 %v2302_v55  ;;  %v2226_v62 = vmul.f32 %v4596_v56, %v941_v53  ;;  %v947_v55 = vld [vmem:[#allocation2 + $0x70] sm:$0xff] }
 0x4bd   : > { %v4598_v63 = vpop.eup %4597  ;;  %v2134_v0 = vmul.f32 0.5, %v2026_v6  ;;  %3446 = vst.msk [vmem:[%s5658_s18 + $0x60] sm:$0xff] %vm900_vm0, %v2026_v6  ;;  %v2030_v1 = vadd.f32 %v2029_v34, %v5645_v61  ;;  %4220 = vmatpush3.bf16.msra.mxu0 %v4559_v46 }
 0x4be   : > { %3415 = vst.msk [vmem:[%s5651_s30 + $0x68] sm:$0xff] %vm900_vm0, %v5805_v37  ;;  %v2227_v2 = vmul.f32 %v4598_v63, %v942_v59  ;;  %v2258_v3 = vadd.f32 %v2226_v62, %v5747_v4  ;;  %4221 = vmatprep.subr.bf16.mxu0 %v4560_v57 }
 0x4bf   : > { %v2178_v5 = vmul.f32 1.442695, %v2134_v0  ;;  %v2135_v7 = vmul.f32 0.5, %v2030_v1  ;;  %3447 = vst.msk [vmem:[%s5658_s18 + $0x68] sm:$0xff] %vm900_vm0, %v2030_v1 }
 0x4c0   : > { %v2259_v8 = vadd.f32 %v2227_v2, %v5756_v14  ;;  %3378 = vst.msk [vmem:[%s5712_s8 + $0x40] sm:$0xff] %vm900_vm0, %v2258_v3 }
 0x4c1   : > { %4603 = vpow2.f32 %v2178_v5  ;;  %v2180_v10 = vmul.f32 1.442695, %v2135_v7  ;;  %v2033_v11 = vpop.f32.mrb[76].mxu1  ;;  %4222 = vmatpush3.bf16.msra.mxu0 %v4560_v57 }
 0x4c2   : > { %v5820_v13 = vadd.f32 %v2033_v11, %v5642_v60  ;;  %v2035_v4 = vpop.f32.mrb[77].mxu1  ;;  %v2303_v15 = vpack.c.bf16 %v2259_v8, %v2258_v3  ;;  %3379 = vst.msk [vmem:[%s5712_s8 + $0x48] sm:$0xff] %vm900_vm0, %v2259_v8 }
 0x4c3   : > { %v4600_v29 = vpop.eup %4599  ;;  %4605 = vpow2.f32 %v2180_v10  ;;  %v2036_v14 = vadd.f32 %v2035_v4, %v5645_v61  ;;  %v2037_v16 = vpop.f32.mrb[78].mxu1  ;;  %v949_v4 = vld [vmem:[#allocation2 + $0x80] sm:$0xff] }
 0x4c4   : > { %3416 = vst.msk [vmem:[%s5651_s30 + $0x70] sm:$0xff] %vm900_vm0, %v5820_v13  ;;  %v5829_v18 = vadd.f32 %v2037_v16, %v5642_v60  ;;  %v2039_v19 = vpop.f32.mrb[79].mxu1  ;;  %4187 = vmatprep.mubr.bf16.mxu0 %v2303_v15  ;;  %v2228_v20 = vmul.f32 %v4600_v29, %v943_v12 }
 0x4c5   : > { %v4602_v21 = vpop.eup %4601  ;;  %v2136_v22 = vmul.f32 0.5, %v2036_v14  ;;  %3448 = vst.msk [vmem:[%s5658_s18 + $0x70] sm:$0xff] %vm900_vm0, %v2036_v14  ;;  %v2040_v23 = vadd.f32 %v2039_v19, %v5645_v61 }
 0x4c6   : > { %3417 = vst.msk [vmem:[%s5651_s30 + $0x78] sm:$0xff] %vm900_vm0, %v5829_v18  ;;  %v2229_v24 = vmul.f32 %v4602_v21, %v944_v17  ;;  %v2260_v26 = vadd.f32 %v2228_v20, %v5772_v31 }
 0x4c7   : > { %v2182_v27 = vmul.f32 1.442695, %v2136_v22  ;;  %v2137_v30 = vmul.f32 0.5, %v2040_v23  ;;  %3449 = vst.msk [vmem:[%s5658_s18 + $0x78] sm:$0xff] %vm900_vm0, %v2040_v23 }
 0x4c8   : > { %v2261_v25 = vadd.f32 %v2229_v24, %v5781_v38  ;;  %3380 = vst.msk [vmem:[%s5712_s8 + $0x50] sm:$0xff] %vm900_vm0, %v2260_v26 }
 0x4c9   : > { %4607 = vpow2.f32 %v2182_v27  ;;  %v2184_v9 = vmul.f32 1.442695, %v2137_v30  ;;  %v2043_v33 = vpop.f32.mrb[80].mxu1 }
 0x4ca   : > { %v5844_v35 = vadd.f32 %v2043_v33, %v5642_v60  ;;  %v2045_v28 = vpop.f32.mrb[81].mxu1  ;;  %v2304_v36 = vpack.c.bf16 %v2261_v25, %v2260_v26  ;;  %3381 = vst.msk [vmem:[%s5712_s8 + $0x58] sm:$0xff] %vm900_vm0, %v2261_v25 }
 0x4cb   : > { %v4604_v31 = vpop.eup %4603  ;;  %4609 = vpow2.f32 %v2184_v9  ;;  %v2046_v39 = vadd.f32 %v2045_v28, %v5645_v61  ;;  %v2047_v38 = vpop.f32.mrb[82].mxu1  ;;  %v951_v28 = vld [vmem:[#allocation2 + $0x90] sm:$0xff] }
 0x4cc   : > { %3418 = vst.msk [vmem:[%s5651_s30 + $0x80] sm:$0xff] %vm900_vm0, %v5844_v35  ;;  %v5853_v41 = vadd.f32 %v2047_v38, %v5642_v60  ;;  %v2049_v42 = vpop.f32.mrb[83].mxu1  ;;  %4188 = vmatmul.mubr.bf16.gmra.mrb[56].mxu0 %v2304_v36  ;;  %v2230_v43 = vmul.f32 %v4604_v31, %v945_v32 }
 0x4cd   : > { %v4606_v44 = vpop.eup %4605  ;;  %v2138_v45 = vmul.f32 0.5, %v2046_v39  ;;  %3450 = vst.msk [vmem:[%s5658_s18 + $0x80] sm:$0xff] %vm900_vm0, %v2046_v39  ;;  %v2050_v46 = vadd.f32 %v2049_v42, %v5645_v61 }
 0x4ce   : > { %3419 = vst.msk [vmem:[%s5651_s30 + $0x88] sm:$0xff] %vm900_vm0, %v5853_v41  ;;  %v2231_v47 = vmul.f32 %v4606_v44, %v946_v40  ;;  %v2262_v49 = vadd.f32 %v2230_v43, %v5796_v54 }
 0x4cf   : > { %v2186_v50 = vmul.f32 1.442695, %v2138_v45  ;;  %v2139_v51 = vmul.f32 0.5, %v2050_v46  ;;  %3451 = vst.msk [vmem:[%s5658_s18 + $0x88] sm:$0xff] %vm900_vm0, %v2050_v46 }
 0x4d0   : > { %v2263_v52 = vadd.f32 %v2231_v47, %v5805_v37  ;;  %3382 = vst.msk [vmem:[%s5712_s8 + $0x60] sm:$0xff] %vm900_vm0, %v2262_v49  ;;  %v948_v37 = vld [vmem:[#allocation2 + $0x78] sm:$0xff] }
 0x4d1   : > { %4611 = vpow2.f32 %v2186_v50  ;;  %v2188_v53 = vmul.f32 1.442695, %v2139_v51  ;;  %v2053_v48 = vpop.f32.mrb[84].mxu1 }
 0x4d2   : > { %v5868_v57 = vadd.f32 %v2053_v48, %v5642_v60  ;;  %v2055_v56 = vpop.f32.mrb[85].mxu1  ;;  %v2305_v6 = vpack.c.bf16 %v2263_v52, %v2262_v49  ;;  %3383 = vst.msk [vmem:[%s5712_s8 + $0x68] sm:$0xff] %vm900_vm0, %v2263_v52 }
 0x4d3   : > { %v4608_v54 = vpop.eup %4607  ;;  %4613 = vpow2.f32 %v2188_v53  ;;  %v2056_v58 = vadd.f32 %v2055_v56, %v5645_v61  ;;  %v2057_v59 = vpop.f32.mrb[86].mxu1  ;;  %v953_v56 = vld [vmem:[#allocation2 + $0xa0] sm:$0xff] }
 0x4d4   : > { %3420 = vst.msk [vmem:[%s5651_s30 + $0x90] sm:$0xff] %vm900_vm0, %v5868_v57  ;;  %v5877_v34 = vadd.f32 %v2057_v59, %v5642_v60  ;;  %v2059_v62 = vpop.f32.mrb[87].mxu1  ;;  %4191 = vmatprep.mubr.bf16.mxu0 %v2305_v6  ;;  %v2232_v63 = vmul.f32 %v4608_v54, %v947_v55 }
 0x4d5   : > { %v4610_v0 = vpop.eup %4609  ;;  %v2140_v1 = vmul.f32 0.5, %v2056_v58  ;;  %3452 = vst.msk [vmem:[%s5658_s18 + $0x90] sm:$0xff] %vm900_vm0, %v2056_v58  ;;  %v2060_v2 = vadd.f32 %v2059_v62, %v5645_v61 }
 0x4d6   : > { %3421 = vst.msk [vmem:[%s5651_s30 + $0x98] sm:$0xff] %vm900_vm0, %v5877_v34  ;;  %v2233_v3 = vmul.f32 %v4610_v0, %v948_v37  ;;  %v2264_v5 = vadd.f32 %v2232_v63, %v5820_v13 }
 0x4d7   : > { %v2190_v7 = vmul.f32 1.442695, %v2140_v1  ;;  %v2141_v8 = vmul.f32 0.5, %v2060_v2  ;;  %3453 = vst.msk [vmem:[%s5658_s18 + $0x98] sm:$0xff] %vm900_vm0, %v2060_v2 }
 0x4d8   : > { %v2265_v10 = vadd.f32 %v2233_v3, %v5829_v18  ;;  %3384 = vst.msk [vmem:[%s5712_s8 + $0x70] sm:$0xff] %vm900_vm0, %v2264_v5  ;;  %v950_v18 = vld [vmem:[#allocation2 + $0x88] sm:$0xff] }
 0x4d9   : > { %4615 = vpow2.f32 %v2190_v7  ;;  %v2192_v11 = vmul.f32 1.442695, %v2141_v8  ;;  %v2063_v12 = vpop.f32.mrb[88].mxu1 }
 0x4da   : > { %v5892_v15 = vadd.f32 %v2063_v12, %v5642_v60  ;;  %v2065_v29 = vpop.f32.mrb[89].mxu1  ;;  %v2306_v14 = vpack.c.bf16 %v2265_v10, %v2264_v5  ;;  %3385 = vst.msk [vmem:[%s5712_s8 + $0x78] sm:$0xff] %vm900_vm0, %v2265_v10 }
 0x4db   : > { %v4612_v13 = vpop.eup %4611  ;;  %4617 = vpow2.f32 %v2192_v11  ;;  %v2066_v16 = vadd.f32 %v2065_v29, %v5645_v61  ;;  %v2067_v17 = vpop.f32.mrb[90].mxu1  ;;  %v955_v29 = vld [vmem:[#allocation2 + $0xb0] sm:$0xff] }
 0x4dc   : > { %3422 = vst.msk [vmem:[%s5651_s30 + $0xa0] sm:$0xff] %vm900_vm0, %v5892_v15  ;;  %v5901_v19 = vadd.f32 %v2067_v17, %v5642_v60  ;;  %v2069_v20 = vpop.f32.mrb[91].mxu1  ;;  %4192 = vmatmul.mubr.bf16.gmra.mrb[60].mxu0 %v2306_v14  ;;  %v2234_v21 = vmul.f32 %v4612_v13, %v949_v4 }
 0x4dd   : > { %v4614_v22 = vpop.eup %4613  ;;  %v2142_v23 = vmul.f32 0.5, %v2066_v16  ;;  %3454 = vst.msk [vmem:[%s5658_s18 + $0xa0] sm:$0xff] %vm900_vm0, %v2066_v16  ;;  %v2070_v24 = vadd.f32 %v2069_v20, %v5645_v61 }
 0x4de   : > { %3423 = vst.msk [vmem:[%s5651_s30 + $0xa8] sm:$0xff] %vm900_vm0, %v5901_v19  ;;  %v2235_v26 = vmul.f32 %v4614_v22, %v950_v18  ;;  %v2266_v27 = vadd.f32 %v2234_v21, %v5844_v35 }
 0x4df   : > { %v2194_v30 = vmul.f32 1.442695, %v2142_v23  ;;  %v2143_v25 = vmul.f32 0.5, %v2070_v24  ;;  %3455 = vst.msk [vmem:[%s5658_s18 + $0xa8] sm:$0xff] %vm900_vm0, %v2070_v24 }
 0x4e0   : > { %v2267_v9 = vadd.f32 %v2235_v26, %v5853_v41  ;;  %3386 = vst.msk [vmem:[%s5712_s8 + $0x80] sm:$0xff] %vm900_vm0, %v2266_v27  ;;  %v952_v41 = vld [vmem:[#allocation2 + $0x98] sm:$0xff] }
 0x4e1   : > { %4619 = vpow2.f32 %v2194_v30  ;;  %v2196_v33 = vmul.f32 1.442695, %v2143_v25  ;;  %v2073_v32 = vpop.f32.mrb[92].mxu1 }
 0x4e2   : > { %v5916_v36 = vadd.f32 %v2073_v32, %v5642_v60  ;;  %v2075_v31 = vpop.f32.mrb[93].mxu1  ;;  %v2307_v39 = vpack.c.bf16 %v2267_v9, %v2266_v27  ;;  %3387 = vst.msk [vmem:[%s5712_s8 + $0x88] sm:$0xff] %vm900_vm0, %v2267_v9 }
 0x4e3   : > { %v4616_v35 = vpop.eup %4615  ;;  %4621 = vpow2.f32 %v2196_v33  ;;  %v2076_v38 = vadd.f32 %v2075_v31, %v5645_v61  ;;  %v2077_v40 = vpop.f32.mrb[94].mxu1  ;;  %v957_v31 = vld [vmem:[#allocation2 + $0xc0] sm:$0xff] }
 0x4e4   : > { %3424 = vst.msk [vmem:[%s5651_s30 + $0xb0] sm:$0xff] %vm900_vm0, %v5916_v36  ;;  %v5925_v42 = vadd.f32 %v2077_v40, %v5642_v60  ;;  %v2079_v43 = vpop.f32.mrb[95].mxu1  ;;  %4195 = vmatprep.mubr.bf16.mxu0 %v2307_v39  ;;  %v2236_v44 = vmul.f32 %v4616_v35, %v951_v28 }
 0x4e5   : > { %v4618_v45 = vpop.eup %4617  ;;  %v2144_v46 = vmul.f32 0.5, %v2076_v38  ;;  %3456 = vst.msk [vmem:[%s5658_s18 + $0xb0] sm:$0xff] %vm900_vm0, %v2076_v38  ;;  %v2080_v47 = vadd.f32 %v2079_v43, %v5645_v61 }
 0x4e6   : > { %3425 = vst.msk [vmem:[%s5651_s30 + $0xb8] sm:$0xff] %vm900_vm0, %v5925_v42  ;;  %v2237_v49 = vmul.f32 %v4618_v45, %v952_v41  ;;  %v2268_v50 = vadd.f32 %v2236_v44, %v5868_v57 }
 0x4e7   : > { %v2198_v51 = vmul.f32 1.442695, %v2144_v46  ;;  %v2145_v52 = vmul.f32 0.5, %v2080_v47  ;;  %3457 = vst.msk [vmem:[%s5658_s18 + $0xb8] sm:$0xff] %vm900_vm0, %v2080_v47 }
 0x4e8   : > { %v2269_v53 = vadd.f32 %v2237_v49, %v5877_v34  ;;  %3388 = vst.msk [vmem:[%s5712_s8 + $0x90] sm:$0xff] %vm900_vm0, %v2268_v50  ;;  %v954_v34 = vld [vmem:[#allocation2 + $0xa8] sm:$0xff] }
 0x4e9   : > { %4623 = vpow2.f32 %v2198_v51  ;;  %v2200_v48 = vmul.f32 1.442695, %v2145_v52  ;;  %v2083_v55 = vpop.f32.mrb[96].mxu1 }
 0x4ea   : > { %v5940_v6 = vadd.f32 %v2083_v55, %v5642_v60  ;;  %v2085_v54 = vpop.f32.mrb[97].mxu1  ;;  %v2308_v58 = vpack.c.bf16 %v2269_v53, %v2268_v50  ;;  %3389 = vst.msk [vmem:[%s5712_s8 + $0x98] sm:$0xff] %vm900_vm0, %v2269_v53  ;;  %v4561_v55 = vld [vmem:[#allocation12 + $0x30] sm:$0xff]  }
 0x4eb   : > { %v4620_v57 = vpop.eup %4619  ;;  %4625 = vpow2.f32 %v2200_v48  ;;  %v2086_v59 = vadd.f32 %v2085_v54, %v5645_v61  ;;  %v2087_v37 = vpop.f32.mrb[98].mxu1  ;;  %4223 = vmatprep.subr.bf16.mxu0 %v4561_v55 }
 0x4ec   : > { %3426 = vst.msk [vmem:[%s5651_s30 + $0xc0] sm:$0xff] %vm900_vm0, %v5940_v6  ;;  %v5949_v62 = vadd.f32 %v2087_v37, %v5642_v60  ;;  %v2089_v63 = vpop.f32.mrb[99].mxu1  ;;  %4196 = vmatmul.mubr.bf16.gmra.mrb[64].mxu0 %v2308_v58  ;;  %v2238_v0 = vmul.f32 %v4620_v57, %v953_v56  ;;  %v959_v58 = vld [vmem:[#allocation2 + $0xd0] sm:$0xff] }
 0x4ed   : > { %v4622_v1 = vpop.eup %4621  ;;  %v2146_v2 = vmul.f32 0.5, %v2086_v59  ;;  %3458 = vst.msk [vmem:[%s5658_s18 + $0xc0] sm:$0xff] %vm900_vm0, %v2086_v59  ;;  %v2090_v3 = vadd.f32 %v2089_v63, %v5645_v61  ;;  %v960_v63 = vld [vmem:[#allocation2 + $0xd8] sm:$0xff]  ;;  %4224 = vmatpush3.bf16.msra.mxu0 %v4561_v55 }
 0x4ee   : > { %3427 = vst.msk [vmem:[%s5651_s30 + $0xc8] sm:$0xff] %vm900_vm0, %v5949_v62  ;;  %v2239_v5 = vmul.f32 %v4622_v1, %v954_v34  ;;  %v2270_v7 = vadd.f32 %v2238_v0, %v5892_v15 }
 0x4ef   : > { %v2202_v8 = vmul.f32 1.442695, %v2146_v2  ;;  %v2147_v10 = vmul.f32 0.5, %v2090_v3  ;;  %3459 = vst.msk [vmem:[%s5658_s18 + $0xc8] sm:$0xff] %vm900_vm0, %v2090_v3  ;;  %v4562_v3 = vld [vmem:[#allocation12 + $0x38] sm:$0xff]  }
 0x4f0   : > { %v2271_v11 = vadd.f32 %v2239_v5, %v5901_v19  ;;  %3390 = vst.msk [vmem:[%s5712_s8 + $0xa0] sm:$0xff] %vm900_vm0, %v2270_v7  ;;  %v956_v19 = vld [vmem:[#allocation2 + $0xb8] sm:$0xff]  ;;  %4225 = vmatprep.subr.bf16.mxu0 %v4562_v3 }
 0x4f1   : > { %4627 = vpow2.f32 %v2202_v8  ;;  %v2204_v12 = vmul.f32 1.442695, %v2147_v10  ;;  %v2093_v4 = vpop.f32.mrb[100].mxu1  ;;  %4226 = vmatpush3.bf16.msra.mxu0 %v4562_v3 }
 0x4f2   : > { %v5964_v14 = vadd.f32 %v2093_v4, %v5642_v60  ;;  %v2095_v13 = vpop.f32.mrb[101].mxu1  ;;  %v2309_v16 = vpack.c.bf16 %v2271_v11, %v2270_v7  ;;  %3391 = vst.msk [vmem:[%s5712_s8 + $0xa8] sm:$0xff] %vm900_vm0, %v2271_v11 }
 0x4f3   : > { %v4624_v15 = vpop.eup %4623  ;;  %4629 = vpow2.f32 %v2204_v12  ;;  %v2096_v17 = vadd.f32 %v2095_v13, %v5645_v61  ;;  %v2097_v18 = vpop.f32.mrb[102].mxu1 }
 0x4f4   : > { %3428 = vst.msk [vmem:[%s5651_s30 + $0xd0] sm:$0xff] %vm900_vm0, %v5964_v14  ;;  %v5973_v20 = vadd.f32 %v2097_v18, %v5642_v60  ;;  %v2099_v21 = vpop.f32.mrb[103].mxu1  ;;  %4199 = vmatprep.mubr.bf16.mxu0 %v2309_v16  ;;  %v2240_v22 = vmul.f32 %v4624_v15, %v955_v29 }
 0x4f5   : > { %v4626_v23 = vpop.eup %4625  ;;  %v2148_v24 = vmul.f32 0.5, %v2096_v17  ;;  %3460 = vst.msk [vmem:[%s5658_s18 + $0xd0] sm:$0xff] %vm900_vm0, %v2096_v17  ;;  %v2100_v26 = vadd.f32 %v2099_v21, %v5645_v61  ;;  %v963_v21 = vld [vmem:[#allocation2 + $0xf0] sm:$0xff] }
 0x4f6   : > { %3429 = vst.msk [vmem:[%s5651_s30 + $0xd8] sm:$0xff] %vm900_vm0, %v5973_v20  ;;  %v2241_v27 = vmul.f32 %v4626_v23, %v956_v19  ;;  %v2272_v30 = vadd.f32 %v2240_v22, %v5916_v36 }
 0x4f7   : > { %v2206_v25 = vmul.f32 1.442695, %v2148_v24  ;;  %v2149_v9 = vmul.f32 0.5, %v2100_v26  ;;  %3461 = vst.msk [vmem:[%s5658_s18 + $0xd8] sm:$0xff] %vm900_vm0, %v2100_v26  ;;  %v964_v24 = vld [vmem:[#allocation2 + $0xf8] sm:$0xff] }
 0x4f8   : > { %v2273_v33 = vadd.f32 %v2241_v27, %v5925_v42  ;;  %3392 = vst.msk [vmem:[%s5712_s8 + $0xb0] sm:$0xff] %vm900_vm0, %v2272_v30  ;;  %v958_v42 = vld [vmem:[#allocation2 + $0xc8] sm:$0xff] }
 0x4f9   : > { %4631 = vpow2.f32 %v2206_v25  ;;  %v2208_v32 = vmul.f32 1.442695, %v2149_v9  ;;  %v2103_v28 = vpop.f32.mrb[104].mxu1 }
 0x4fa   : > { %v5988_v39 = vadd.f32 %v2103_v28, %v5642_v60  ;;  %v2105_v35 = vpop.f32.mrb[105].mxu1  ;;  %v2310_v38 = vpack.c.bf16 %v2273_v33, %v2272_v30  ;;  %3393 = vst.msk [vmem:[%s5712_s8 + $0xb8] sm:$0xff] %vm900_vm0, %v2273_v33  ;;  %v4564_v28 = vld [vmem:[#allocation14 + $0x8] sm:$0xff]  }
 0x4fb   : > { %v4628_v36 = vpop.eup %4627  ;;  %4633 = vpow2.f32 %v2208_v32  ;;  %v2106_v40 = vadd.f32 %v2105_v35, %v5645_v61  ;;  %v2107_v41 = vpop.f32.mrb[106].mxu1  ;;  %v4563_v32 = vld [vmem:[#allocation14] sm:$0xff]  }
 0x4fc   : > { %3430 = vst.msk [vmem:[%s5651_s30 + $0xe0] sm:$0xff] %vm900_vm0, %v5988_v39  ;;  %v5997_v43 = vadd.f32 %v2107_v41, %v5642_v60  ;;  %v2109_v44 = vpop.f32.mrb[107].mxu1  ;;  %4200 = vmatmul.mubr.bf16.gmra.mrb[68].mxu0 %v2310_v38  ;;  %v2242_v45 = vmul.f32 %v4628_v36, %v957_v31  ;;  %4259 = vmatprep.subr.bf16.mxu1 %v4563_v32  ;;  %v6041_v31 = vld [vmem:[#allocation11] ss:$0 sm:$0xff] }
 0x4fd   : > { %v4630_v46 = vpop.eup %4629  ;;  %v2150_v47 = vmul.f32 0.5, %v2106_v40  ;;  %3462 = vst.msk [vmem:[%s5658_s18 + $0xe0] sm:$0xff] %vm900_vm0, %v2106_v40  ;;  %v2110_v49 = vadd.f32 %v2109_v44, %v5645_v61  ;;  %4260 = vmatpush3.bf16.msra.mxu1 %v4563_v32  ;;  %v4566_v44 = vld [vmem:[#allocation14 + $0x18] sm:$0xff]  }
 0x4fe   : > { %3431 = vst.msk [vmem:[%s5651_s30 + $0xe8] sm:$0xff] %vm900_vm0, %v5997_v43  ;;  %v2243_v50 = vmul.f32 %v4630_v46, %v958_v42  ;;  %v2274_v51 = vadd.f32 %v2242_v45, %v5940_v6  ;;  %4261 = vmatprep.subr.bf16.mxu1 %v4564_v28 }
 0x4ff   : > { %v2210_v52 = vmul.f32 1.442695, %v2150_v47  ;;  %v2151_v53 = vmul.f32 0.5, %v2110_v49  ;;  %3463 = vst.msk [vmem:[%s5658_s18 + $0xe8] sm:$0xff] %vm900_vm0, %v2110_v49 }
 0x500   : > { %v2275_v48 = vadd.f32 %v2243_v50, %v5949_v62  ;;  %3394 = vst.msk [vmem:[%s5712_s8 + $0xc0] sm:$0xff] %vm900_vm0, %v2274_v51 }
 0x501   : > { %4635 = vpow2.f32 %v2210_v52  ;;  %v2212_v56 = vmul.f32 1.442695, %v2151_v53  ;;  %v2113_v54 = vpop.f32.mrb[108].mxu1  ;;  %4262 = vmatpush3.bf16.msra.mxu1 %v4564_v28  ;;  %v4567_v52 = vld [vmem:[#allocation14 + $0x20] sm:$0xff]  }
 0x502   : > { %v2114_v57 = vadd.f32 %v2113_v54, %v5642_v60  ;;  %v2115_v59 = vpop.f32.mrb[109].mxu1  ;;  %v2311_v37 = vpack.c.bf16 %v2275_v48, %v2274_v51  ;;  %3395 = vst.msk [vmem:[%s5712_s8 + $0xc8] sm:$0xff] %vm900_vm0, %v2275_v48  ;;  %v4568_v48 = vld [vmem:[#allocation14 + $0x28] sm:$0xff]  }
 0x503   : > { %v4632_v6 = vpop.eup %4631  ;;  %4637 = vpow2.f32 %v2212_v56  ;;  %v2116_v34 = vadd.f32 %v2115_v59, %v5645_v61  ;;  %v2117_v62 = vpop.f32.mrb[110].mxu1 }
 0x504   : > { %3432 = vst.msk [vmem:[%s5651_s30 + $0xf0] sm:$0xff] %vm900_vm0, %v2114_v57  ;;  %v2118_v0 = vadd.f32 %v2117_v62, %v5642_v60  ;;  %v2119_v1 = vpop.f32.mrb[111].mxu1  ;;  %4203 = vmatprep.mubr.bf16.mxu0 %v2311_v37  ;;  %v2244_v2 = vmul.f32 %v4632_v6, %v959_v58 }
 0x505   : > { %v4634_v5 = vpop.eup %4633  ;;  %v2152_v7 = vmul.f32 0.5, %v2116_v34  ;;  %3464 = vst.msk [vmem:[%s5658_s18 + $0xf0] sm:$0xff] %vm900_vm0, %v2116_v34  ;;  %v2120_v8 = vadd.f32 %v2119_v1, %v5645_v61  ;;  %v961_v61 = vld [vmem:[#allocation2 + $0xe0] sm:$0xff] }
 0x506   : > { %3433 = vst.msk [vmem:[%s5651_s30 + $0xf8] sm:$0xff] %vm900_vm0, %v2118_v0  ;;  %v2245_v10 = vmul.f32 %v4634_v5, %v960_v63  ;;  %v2276_v11 = vadd.f32 %v2244_v2, %v5964_v14  ;;  %v962_v14 = vld [vmem:[#allocation2 + $0xe8] sm:$0xff]  ;;  %s6363_s30 = sld [smem:[#allocation40_spill]] }
 0x507   : > { %v2214_v12 = vmul.f32 1.442695, %v2152_v7  ;;  %v2153_v60 = vmul.f32 0.5, %v2120_v8  ;;  %3465 = vst.msk [vmem:[%s5658_s18 + $0xf8] sm:$0xff] %vm900_vm0, %v2120_v8  ;;  %s3495_s18 = sshll.u32 %s6159_s15, 4  ;;  %s6226_s18 = int_to_ptr.vmem [resolvable:$true] %s3495_s18 }
 0x508   : > { %v2277_v4 = vadd.f32 %v2245_v10, %v5973_v20  ;;  %3396 = vst.msk [vmem:[%s5712_s8 + $0xd0] sm:$0xff] %vm900_vm0, %v2276_v11  ;;  %s4867_s25 = scalar_lea.vmem %s6226_s18, 4096 }
 0x509   : > { %4639 = vpow2.f32 %v2214_v12  ;;  %v2216_v29 = vmul.f32 1.442695, %v2153_v60  ;;  %p4868_p8 = scmp.ne.s32.totalorder %s6226_s18, %s4867_s25 }
 0x50a   : > { %v2312_v13 = vpack.c.bf16 %v2277_v4, %v2276_v11  ;;  %3397 = vst.msk [vmem:[%s5712_s8 + $0xd8] sm:$0xff] %vm900_vm0, %v2277_v4 }
 0x50b   : > { %v4636_v16 = vpop.eup %4635  ;;  %4641 = vpow2.f32 %v2216_v29  ;;  %p4869_p5 = pnand %p4868_p8, %p6366_p11 }
 0x50c   : > { %4204 = vmatmul.mubr.bf16.gmra.mrb[72].mxu0 %v2312_v13  ;;  %v2246_v15 = vmul.f32 %v4636_v16, %v961_v61 }
 0x50d   : > { %v4638_v17 = vpop.eup %4637  ;;  %p4870_p0 = pneg %p4869_p5 }
 0x50e   : > { %v2247_v18 = vmul.f32 %v4638_v17, %v962_v14  ;;  %v2278_v19 = vadd.f32 %v2246_v15, %v5988_v39  ;;  %v4565_v39 = vld [vmem:[#allocation14 + $0x10] sm:$0xff]  }
 0x50f   : > { %4263 = vmatprep.subr.bf16.mxu1 %v4565_v39 }
 0x510   : > { %v2279_v20 = vadd.f32 %v2247_v18, %v5997_v43  ;;  %3398 = vst.msk [vmem:[%s5712_s8 + $0xe0] sm:$0xff] %vm900_vm0, %v2278_v19  ;;  %4264 = vmatpush3.bf16.msra.mxu1 %v4565_v39 }
 0x511   : > { %4265 = vmatprep.subr.bf16.mxu1 %v4566_v44 }
 0x512   : > { %v2313_v22 = vpack.c.bf16 %v2279_v20, %v2278_v19  ;;  %3399 = vst.msk [vmem:[%s5712_s8 + $0xe8] sm:$0xff] %vm900_vm0, %v2279_v20 }
 0x513   : > { %v4640_v23 = vpop.eup %4639 }
 0x514   : > { %4207 = vmatprep.mubr.bf16.mxu0 %v2313_v22  ;;  %v2248_v26 = vmul.f32 %v4640_v23, %v963_v21  ;;  %4266 = vmatpush3.bf16.msra.mxu1 %v4566_v44 }
 0x515   : > { %v4642_v27 = vpop.eup %4641  ;;  %4267 = vmatprep.subr.bf16.mxu1 %v4567_v52 }
 0x516   : > { %v2249_v30 = vmul.f32 %v4642_v27, %v964_v24  ;;  %v2280_v25 = vadd.f32 %v2248_v26, %v2114_v57 }
 0x518   : > { %v2281_v9 = vadd.f32 %v2249_v30, %v2118_v0  ;;  %3400 = vst.msk [vmem:[%s5712_s8 + $0xf0] sm:$0xff] %vm900_vm0, %v2280_v25  ;;  %4268 = vmatpush3.bf16.msra.mxu1 %v4567_v52 }
 0x519   : > { %4269 = vmatprep.subr.bf16.mxu1 %v4568_v48 }
 0x51a   : > { %v2314_v33 = vpack.c.bf16 %v2281_v9, %v2280_v25  ;;  %3401 = vst.msk [vmem:[%s5712_s8 + $0xf8] sm:$0xff] %vm900_vm0, %v2281_v9 }
 0x51c   : > { %4208 = vmatmul.mubr.bf16.gmra.mrb[76].mxu0 %v2314_v33  ;;  %4270 = vmatpush3.bf16.msra.mxu1 %v4568_v48 }
 0x57f   : > { %v4181_v35 = vpop.f32.mrb[48].mxu0 }
 0x580   : > { %v2412_v38 = vadd.f32 %v4181_v35, %v6041_v31  ;;  %v2403_v36 = vpop.f32.mrb[49].mxu0 }
 0x581   : > { %v2404_v40 = vadd.f32 %v6041_v31, %v2403_v36  ;;  %v4182_v41 = vpop.f32.mrb[50].mxu0 }
 0x582   : > { %v2415_v42 = vadd.f32 %v4182_v41, %v6041_v31  ;;  %v2406_v43 = vpop.f32.mrb[51].mxu0  ;;  %v2532_v46 = vmax.f32 %v2412_v38, 0.0 }
 0x583   : > { %v2407_v45 = vadd.f32 %v6041_v31, %v2406_v43  ;;  %v2530_v49 = vmax.f32 %v2404_v40, 0.0 }
 0x584   : > { %v2533_v47 = vmax.f32 %v2415_v42, 0.0 }
 0x585   : > { %v2531_v50 = vmax.f32 %v2407_v45, 0.0 }
 0x586   : > { %v2580_v51 = vpack.c.bf16 %v2533_v47, %v2532_v46 }
 0x587   : > { %v2579_v53 = vpack.c.bf16 %v2531_v50, %v2530_v49 }
 0x589   : > { %4227 = vmatprep.mubr.bf16.mxu0 %v2579_v53 }
 0x58a   : > { %4228 = vmatmul.mubr.bf16.vlgmr.msra.gmra.mrb[80].mxu0 %v2580_v51 }
 0x58f   : > { %v4185_v55 = vpop.f32.mrb[52].mxu0 }
 0x590   : > { %v2428_v56 = vadd.f32 %v4185_v55, %v6041_v31  ;;  %v2419_v54 = vpop.f32.mrb[53].mxu0 }
 0x591   : > { %v2420_v58 = vadd.f32 %v6041_v31, %v2419_v54  ;;  %v4186_v57 = vpop.f32.mrb[54].mxu0 }
 0x592   : > { %v2431_v59 = vadd.f32 %v4186_v57, %v6041_v31  ;;  %v2422_v37 = vpop.f32.mrb[55].mxu0  ;;  %v2536_v34 = vmax.f32 %v2428_v56, 0.0 }
 0x593   : > { %v2423_v6 = vadd.f32 %v6041_v31, %v2422_v37  ;;  %v2534_v63 = vmax.f32 %v2420_v58, 0.0 }
 0x594   : > { %v2537_v62 = vmax.f32 %v2431_v59, 0.0 }
 0x595   : > { %v2535_v0 = vmax.f32 %v2423_v6, 0.0  ;;  %v4569_v6 = vld [vmem:[#allocation14 + $0x30] sm:$0xff]  }
 0x596   : > { %v2582_v1 = vpack.c.bf16 %v2537_v62, %v2536_v34  ;;  %4271 = vmatprep.subr.bf16.mxu1 %v4569_v6 }
 0x597   : > { %v2581_v2 = vpack.c.bf16 %v2535_v0, %v2534_v63  ;;  %4272 = vmatpush3.bf16.msra.mxu1 %v4569_v6  ;;  %v4570_v0 = vld [vmem:[#allocation14 + $0x38] sm:$0xff]  }
 0x598   : > { %4273 = vmatprep.subr.bf16.mxu1 %v4570_v0 }
 0x599   : > { %4231 = vmatprep.mubr.bf16.mxu0 %v2581_v2 }
 0x59a   : > { %4232 = vmatmul.mubr.bf16.gmra.mrb[84].mxu0 %v2582_v1 }
 0x59b   : > { %4274 = vmatpush3.bf16.msra.mxu1 %v4570_v0 }
 0x59f   : > { %v4189_v3 = vpop.f32.mrb[56].mxu0 }
 0x5a0   : > { %v2444_v5 = vadd.f32 %v4189_v3, %v6041_v31  ;;  %v2435_v7 = vpop.f32.mrb[57].mxu0 }
 0x5a1   : > { %v2436_v8 = vadd.f32 %v6041_v31, %v2435_v7  ;;  %v4190_v10 = vpop.f32.mrb[58].mxu0 }
 0x5a2   : > { %v2447_v11 = vadd.f32 %v4190_v10, %v6041_v31  ;;  %v2438_v12 = vpop.f32.mrb[59].mxu0  ;;  %v2540_v4 = vmax.f32 %v2444_v5, 0.0 }
 0x5a3   : > { %v2439_v60 = vadd.f32 %v6041_v31, %v2438_v12  ;;  %v2538_v61 = vmax.f32 %v2436_v8, 0.0 }
 0x5a4   : > { %v2541_v29 = vmax.f32 %v2447_v11, 0.0 }
 0x5a5   : > { %v2539_v13 = vmax.f32 %v2439_v60, 0.0 }
 0x5a6   : > { %v2584_v16 = vpack.c.bf16 %v2541_v29, %v2540_v4 }
 0x5a7   : > { %v2583_v14 = vpack.c.bf16 %v2539_v13, %v2538_v61 }
 0x5a9   : > { %4235 = vmatprep.mubr.bf16.mxu0 %v2583_v14 }
 0x5aa   : > { %4236 = vmatmul.mubr.bf16.gmra.mrb[88].mxu0 %v2584_v16 }
 0x5af   : > { %v4193_v15 = vpop.f32.mrb[60].mxu0 }
 0x5b0   : > { %v2460_v17 = vadd.f32 %v4193_v15, %v6041_v31  ;;  %v2451_v18 = vpop.f32.mrb[61].mxu0 }
 0x5b1   : > { %v2452_v19 = vadd.f32 %v6041_v31, %v2451_v18  ;;  %v4194_v20 = vpop.f32.mrb[62].mxu0 }
 0x5b2   : > { %v2463_v21 = vadd.f32 %v4194_v20, %v6041_v31  ;;  %v2454_v22 = vpop.f32.mrb[63].mxu0  ;;  %v2544_v24 = vmax.f32 %v2460_v17, 0.0 }
 0x5b3   : > { %v2455_v23 = vadd.f32 %v6041_v31, %v2454_v22  ;;  %v2542_v27 = vmax.f32 %v2452_v19, 0.0 }
 0x5b4   : > { %v2545_v26 = vmax.f32 %v2463_v21, 0.0 }
 0x5b5   : > { %v2543_v30 = vmax.f32 %v2455_v23, 0.0 }
 0x5b6   : > { %v2586_v25 = vpack.c.bf16 %v2545_v26, %v2544_v24  ;;  %v4571_v26 = vld [vmem:[#allocation15] sm:$0xff]  }
 0x5b7   : > { %v2585_v9 = vpack.c.bf16 %v2543_v30, %v2542_v27  ;;  %v4572_v27 = vld [vmem:[#allocation15 + $0x8] sm:$0xff]   ;;  %4307 = vmatprep.subr.bf16.mxu0 %v4571_v26  ;;  %v4573_v30 = vld [vmem:[#allocation15 + $0x10] sm:$0xff]  }
 0x5b8   : > { %4308 = vmatpush3.bf16.msra.mxu0 %v4571_v26 }
 0x5b9   : > { %4239 = vmatprep.mubr.bf16.mxu0 %v2585_v9  ;;  %4309 = vmatprep.subr.bf16.mxu0 %v4572_v27  ;;  %v6078_v9 = vld [vmem:[%s6288_s13] ss:$0 sm:$0xff] }
 0x5ba   : > { %4240 = vmatmul.mubr.bf16.gmra.mrb[92].mxu0 %v2586_v25 }
 0x5bc   : > { %4310 = vmatpush3.bf16.msra.mxu0 %v4572_v27 }
 0x5bd   : > { %4311 = vmatprep.subr.bf16.mxu0 %v4573_v30 }
 0x5bf   : > { %v4197_v33 = vpop.f32.mrb[64].mxu0 }
 0x5c0   : > { %v2476_v32 = vadd.f32 %v4197_v33, %v6041_v31  ;;  %v2467_v28 = vpop.f32.mrb[65].mxu0  ;;  %v4574_v33 = vld [vmem:[#allocation15 + $0x18] sm:$0xff]   ;;  %4312 = vmatpush3.bf16.msra.mxu0 %v4573_v30 }
 0x5c1   : > { %v2468_v39 = vadd.f32 %v6041_v31, %v2467_v28  ;;  %v4198_v35 = vpop.f32.mrb[66].mxu0  ;;  %4313 = vmatprep.subr.bf16.mxu0 %v4574_v33 }
 0x5c2   : > { %v2479_v38 = vadd.f32 %v4198_v35, %v6041_v31  ;;  %v2470_v36 = vpop.f32.mrb[67].mxu0  ;;  %v2548_v41 = vmax.f32 %v2476_v32, 0.0 }
 0x5c3   : > { %v2471_v40 = vadd.f32 %v6041_v31, %v2470_v36  ;;  %v2546_v43 = vmax.f32 %v2468_v39, 0.0 }
 0x5c4   : > { %v2549_v42 = vmax.f32 %v2479_v38, 0.0  ;;  %4314 = vmatpush3.bf16.msra.mxu0 %v4574_v33 }
 0x5c5   : > { %v2547_v44 = vmax.f32 %v2471_v40, 0.0 }
 0x5c6   : > { %v2588_v45 = vpack.c.bf16 %v2549_v42, %v2548_v41  ;;  %v4575_v41 = vld [vmem:[#allocation15 + $0x20] sm:$0xff]  }
 0x5c7   : > { %v2587_v46 = vpack.c.bf16 %v2547_v44, %v2546_v43  ;;  %4315 = vmatprep.subr.bf16.mxu0 %v4575_v41  ;;  %v4576_v43 = vld [vmem:[#allocation15 + $0x28] sm:$0xff]  }
 0x5c8   : > { %4316 = vmatpush3.bf16.msra.mxu0 %v4575_v41 }
 0x5c9   : > { %4243 = vmatprep.mubr.bf16.mxu0 %v2587_v46  ;;  %4317 = vmatprep.subr.bf16.mxu0 %v4576_v43 }
 0x5ca   : > { %4244 = vmatmul.mubr.bf16.gmra.mrb[96].mxu0 %v2588_v45 }
 0x5cc   : > { %4318 = vmatpush3.bf16.msra.mxu0 %v4576_v43 }
 0x5cf   : > { %v4201_v47 = vpop.f32.mrb[68].mxu0 }
 0x5d0   : > { %v2492_v49 = vadd.f32 %v4201_v47, %v6041_v31  ;;  %v2483_v50 = vpop.f32.mrb[69].mxu0 }
 0x5d1   : > { %v2484_v51 = vadd.f32 %v6041_v31, %v2483_v50  ;;  %v4202_v52 = vpop.f32.mrb[70].mxu0 }
 0x5d2   : > { %v2495_v53 = vadd.f32 %v4202_v52, %v6041_v31  ;;  %v2486_v48 = vpop.f32.mrb[71].mxu0  ;;  %v2552_v56 = vmax.f32 %v2492_v49, 0.0 }
 0x5d3   : > { %v2487_v55 = vadd.f32 %v6041_v31, %v2486_v48  ;;  %v2550_v58 = vmax.f32 %v2484_v51, 0.0 }
 0x5d4   : > { %v2553_v54 = vmax.f32 %v2495_v53, 0.0 }
 0x5d5   : > { %v2551_v57 = vmax.f32 %v2487_v55, 0.0 }
 0x5d6   : > { %v2590_v59 = vpack.c.bf16 %v2553_v54, %v2552_v56 }
 0x5d7   : > { %v2589_v37 = vpack.c.bf16 %v2551_v57, %v2550_v58 }
 0x5d9   : > { %4247 = vmatprep.mubr.bf16.mxu0 %v2589_v37 }
 0x5da   : > { %4248 = vmatmul.mubr.bf16.gmra.mrb[100].mxu0 %v2590_v59 }
 0x5df   : > { %v4205_v34 = vpop.f32.mrb[72].mxu0 }
 0x5e0   : > { %v2508_v62 = vadd.f32 %v4205_v34, %v6041_v31  ;;  %v2499_v63 = vpop.f32.mrb[73].mxu0 }
 0x5e1   : > { %v2500_v1 = vadd.f32 %v6041_v31, %v2499_v63  ;;  %v4206_v2 = vpop.f32.mrb[74].mxu0 }
 0x5e2   : > { %v2511_v3 = vadd.f32 %v4206_v2, %v6041_v31  ;;  %v2502_v5 = vpop.f32.mrb[75].mxu0  ;;  %v2556_v8 = vmax.f32 %v2508_v62, 0.0 }
 0x5e3   : > { %v2503_v7 = vadd.f32 %v6041_v31, %v2502_v5  ;;  %v2554_v11 = vmax.f32 %v2500_v1, 0.0 }
 0x5e4   : > { %v2557_v10 = vmax.f32 %v2511_v3, 0.0 }
 0x5e5   : > { %v2555_v12 = vmax.f32 %v2503_v7, 0.0 }
 0x5e6   : > { %v2592_v60 = vpack.c.bf16 %v2557_v10, %v2556_v8 }
 0x5e7   : > { %v2591_v4 = vpack.c.bf16 %v2555_v12, %v2554_v11 }
 0x5e9   : > { %4251 = vmatprep.mubr.bf16.mxu0 %v2591_v4 }
 0x5ea   : > { %4252 = vmatmul.mubr.bf16.gmra.mrb[104].mxu0 %v2592_v60 }
 0x5ef   : > { %v4209_v29 = vpop.f32.mrb[76].mxu0 }
 0x5f0   : > { %v2524_v61 = vadd.f32 %v4209_v29, %v6041_v31  ;;  %v2515_v13 = vpop.f32.mrb[77].mxu0 }
 0x5f1   : > { %v2516_v16 = vadd.f32 %v6041_v31, %v2515_v13  ;;  %v4210_v14 = vpop.f32.mrb[78].mxu0 }
 0x5f2   : > { %v2527_v15 = vadd.f32 %v4210_v14, %v6041_v31  ;;  %v2518_v17 = vpop.f32.mrb[79].mxu0  ;;  %v2560_v19 = vmax.f32 %v2524_v61, 0.0 }
 0x5f3   : > { %v2519_v18 = vadd.f32 %v6041_v31, %v2518_v17  ;;  %v2558_v21 = vmax.f32 %v2516_v16, 0.0 }
 0x5f4   : > { %v2561_v20 = vmax.f32 %v2527_v15, 0.0 }
 0x5f5   : > { %v2559_v22 = vmax.f32 %v2519_v18, 0.0 }
 0x5f6   : > { %v2594_v23 = vpack.c.bf16 %v2561_v20, %v2560_v19 }
 0x5f7   : > { %v2593_v24 = vpack.c.bf16 %v2559_v22, %v2558_v21 }
 0x5f9   : > { %4255 = vmatprep.mubr.bf16.mxu0 %v2593_v24 }
 0x5fa   : > { %4256 = vmatmul.mubr.bf16.gmra.mrb[108].mxu0 %v2594_v23 }
 0x65d   : > { %v4229_v25 = vpop.f32.mrb[80].mxu0 }
 0x65e   : > { %v2683_v31 = vpop.f32.mrb[81].mxu0  ;;  %v2692_v28 = vadd.f32 %v4229_v25, %v6078_v9  ;;  %v4577_v25 = vld [vmem:[#allocation15 + $0x30] sm:$0xff]  }
 0x65f   : > { %v4230_v32 = vpop.f32.mrb[82].mxu0  ;;  %v2684_v38 = vadd.f32 %v6078_v9, %v2683_v31  ;;  %4319 = vmatprep.subr.bf16.mxu0 %v4577_v25 }
 0x660   : > { %v2695_v39 = vadd.f32 %v4230_v32, %v6078_v9  ;;  %v2686_v35 = vpop.f32.mrb[83].mxu0  ;;  %4320 = vmatpush3.bf16.msra.mxu0 %v4577_v25  ;;  %v4578_v32 = vld [vmem:[#allocation15 + $0x38] sm:$0xff]  }
 0x661   : > { %v2687_v36 = vadd.f32 %v6078_v9, %v2686_v35  ;;  %4321 = vmatprep.subr.bf16.mxu0 %v4578_v32 }
 0x662   : > { %v2828_v40 = vpack.c.bf16 %v2695_v39, %v2692_v28 }
 0x663   : > { %v2827_v42 = vpack.c.bf16 %v2687_v36, %v2684_v38 }
 0x664   : > { %4322 = vmatpush3.bf16.msra.mxu0 %v4578_v32 }
 0x665   : > { %4275 = vmatprep.mubr.bf16.mxu1 %v2827_v42 }
 0x666   : > { %4276 = vmatmul.mubr.bf16.vlgmr.msra.gmra.mrb[112].mxu1 %v2828_v40 }
 0x66d   : > { %v4233_v44 = vpop.f32.mrb[84].mxu0 }
 0x66e   : > { %v2699_v45 = vpop.f32.mrb[85].mxu0  ;;  %v2708_v47 = vadd.f32 %v4233_v44, %v6078_v9 }
 0x66f   : > { %v4234_v46 = vpop.f32.mrb[86].mxu0  ;;  %v2700_v51 = vadd.f32 %v6078_v9, %v2699_v45 }
 0x670   : > { %v2711_v49 = vadd.f32 %v4234_v46, %v6078_v9  ;;  %v2702_v50 = vpop.f32.mrb[87].mxu0 }
 0x671   : > { %v2703_v52 = vadd.f32 %v6078_v9, %v2702_v50 }
 0x672   : > { %v2830_v53 = vpack.c.bf16 %v2711_v49, %v2708_v47 }
 0x673   : > { %v2829_v48 = vpack.c.bf16 %v2703_v52, %v2700_v51 }
 0x675   : > { %4279 = vmatprep.mubr.bf16.mxu1 %v2829_v48  ;;  %v6115_v48 = vld [vmem:[%s6361_s26] ss:$0 sm:$0xff]  ;;  %s4871_s26 = sshll.u32 %s4965_s5, 4  ;;  %s4872_s26 = int_to_ptr.vmem [resolvable:$false] %s4871_s26 }
 0x676   : > { %4280 = vmatmul.mubr.bf16.gmra.mrb[116].mxu1 %v2830_v53  ;;  %s4873_s29 = scalar_lea.vmem %s4872_s26, 8192  ;;  %p4874_p6 = scmp.lt.s32.totalorder %s6226_s18, %s4872_s26 }
 0x677   : > { %p4875_p9 = scmp.lt.s32.totalorder %s4873_s29, %s4867_s25 }
 0x679   : > { %p4876_p10 = por %p4875_p9, %p4874_p6 }
 0x67b   : > { %p4877_p13 = pnand %p4876_p10, %p4870_p0 }
 0x67d   : > { %v4237_v55 = vpop.f32.mrb[88].mxu0 }
 0x67e   : > { %v2715_v56 = vpop.f32.mrb[89].mxu0  ;;  %v2724_v58 = vadd.f32 %v4237_v55, %v6078_v9 }
 0x67f   : > { %v4238_v54 = vpop.f32.mrb[90].mxu0  ;;  %v2716_v37 = vadd.f32 %v6078_v9, %v2715_v56 }
 0x680   : > { %v2727_v57 = vadd.f32 %v4238_v54, %v6078_v9  ;;  %v2718_v59 = vpop.f32.mrb[91].mxu0 }
 0x681   : > { %v2719_v6 = vadd.f32 %v6078_v9, %v2718_v59 }
 0x682   : > { %v2832_v34 = vpack.c.bf16 %v2727_v57, %v2724_v58 }
 0x683   : > { %v2831_v62 = vpack.c.bf16 %v2719_v6, %v2716_v37 }
 0x685   : > { %4283 = vmatprep.mubr.bf16.mxu1 %v2831_v62 }
 0x686   : > { %4284 = vmatmul.mubr.bf16.gmra.mrb[120].mxu1 %v2832_v34 }
 0x68d   : > { %v4241_v63 = vpop.f32.mrb[92].mxu0 }
 0x68e   : > { %v2731_v0 = vpop.f32.mrb[93].mxu0  ;;  %v2740_v2 = vadd.f32 %v4241_v63, %v6078_v9 }
 0x68f   : > { %v4242_v1 = vpop.f32.mrb[94].mxu0  ;;  %v2732_v7 = vadd.f32 %v6078_v9, %v2731_v0 }
 0x690   : > { %v2743_v3 = vadd.f32 %v4242_v1, %v6078_v9  ;;  %v2734_v5 = vpop.f32.mrb[95].mxu0 }
 0x691   : > { %v2735_v8 = vadd.f32 %v6078_v9, %v2734_v5 }
 0x692   : > { %v2834_v10 = vpack.c.bf16 %v2743_v3, %v2740_v2 }
 0x693   : > { %v2833_v11 = vpack.c.bf16 %v2735_v8, %v2732_v7 }
 0x695   : > { %4287 = vmatprep.mubr.bf16.mxu1 %v2833_v11 }
 0x696   : > { %4288 = vmatmul.mubr.bf16.gmra.mrb[124].mxu1 %v2834_v10 }
 0x69d   : > { %v4245_v12 = vpop.f32.mrb[96].mxu0 }
 0x69e   : > { %v2747_v60 = vpop.f32.mrb[97].mxu0  ;;  %v2756_v29 = vadd.f32 %v4245_v12, %v6078_v9 }
 0x69f   : > { %v4246_v4 = vpop.f32.mrb[98].mxu0  ;;  %v2748_v16 = vadd.f32 %v6078_v9, %v2747_v60 }
 0x6a0   : > { %v2759_v61 = vadd.f32 %v4246_v4, %v6078_v9  ;;  %v2750_v13 = vpop.f32.mrb[99].mxu0 }
 0x6a1   : > { %v2751_v14 = vadd.f32 %v6078_v9, %v2750_v13 }
 0x6a2   : > { %v2836_v15 = vpack.c.bf16 %v2759_v61, %v2756_v29 }
 0x6a3   : > { %v2835_v17 = vpack.c.bf16 %v2751_v14, %v2748_v16 }
 0x6a5   : > { %4291 = vmatprep.mubr.bf16.mxu1 %v2835_v17 }
 0x6a6   : > { %4292 = vmatmul.mubr.bf16.gmra.mrb[128].mxu1 %v2836_v15 }
 0x6ad   : > { %v4249_v18 = vpop.f32.mrb[100].mxu0 }
 0x6ae   : > { %v2763_v19 = vpop.f32.mrb[101].mxu0  ;;  %v2772_v21 = vadd.f32 %v4249_v18, %v6078_v9 }
 0x6af   : > { %v4250_v20 = vpop.f32.mrb[102].mxu0  ;;  %v2764_v24 = vadd.f32 %v6078_v9, %v2763_v19 }
 0x6b0   : > { %v2775_v22 = vadd.f32 %v4250_v20, %v6078_v9  ;;  %v2766_v23 = vpop.f32.mrb[103].mxu0 }
 0x6b1   : > { %v2767_v26 = vadd.f32 %v6078_v9, %v2766_v23 }
 0x6b2   : > { %v2838_v27 = vpack.c.bf16 %v2775_v22, %v2772_v21 }
 0x6b3   : > { %v2837_v30 = vpack.c.bf16 %v2767_v26, %v2764_v24 }
 0x6b5   : > { %4295 = vmatprep.mubr.bf16.mxu1 %v2837_v30 }
 0x6b6   : > { %4296 = vmatmul.mubr.bf16.gmra.mrb[132].mxu1 %v2838_v27 }
 0x6bd   : > { %v4253_v31 = vpop.f32.mrb[104].mxu0 }
 0x6be   : > { %v2779_v33 = vpop.f32.mrb[105].mxu0  ;;  %v2788_v39 = vadd.f32 %v4253_v31, %v6078_v9 }
 0x6bf   : > { %v4254_v28 = vpop.f32.mrb[106].mxu0  ;;  %v2780_v36 = vadd.f32 %v6078_v9, %v2779_v33 }
 0x6c0   : > { %v2791_v35 = vadd.f32 %v4254_v28, %v6078_v9  ;;  %v2782_v38 = vpop.f32.mrb[107].mxu0 }
 0x6c1   : > { %v2783_v40 = vadd.f32 %v6078_v9, %v2782_v38 }
 0x6c2   : > { %v2840_v41 = vpack.c.bf16 %v2791_v35, %v2788_v39 }
 0x6c3   : > { %v2839_v42 = vpack.c.bf16 %v2783_v40, %v2780_v36 }
 0x6c5   : > { %4299 = vmatprep.mubr.bf16.mxu1 %v2839_v42 }
 0x6c6   : > { %4300 = vmatmul.mubr.bf16.gmra.mrb[136].mxu1 %v2840_v41 }
 0x6cd   : > { %v4257_v43 = vpop.f32.mrb[108].mxu0 }
 0x6ce   : > { %v2795_v44 = vpop.f32.mrb[109].mxu0  ;;  %v2804_v46 = vadd.f32 %v4257_v43, %v6078_v9 }
 0x6cf   : > { %v4258_v45 = vpop.f32.mrb[110].mxu0  ;;  %v2796_v50 = vadd.f32 %v6078_v9, %v2795_v44 }
 0x6d0   : > { %v2807_v47 = vadd.f32 %v4258_v45, %v6078_v9  ;;  %v2798_v49 = vpop.f32.mrb[111].mxu0 }
 0x6d1   : > { %v2799_v51 = vadd.f32 %v6078_v9, %v2798_v49 }
 0x6d2   : > { %v2842_v52 = vpack.c.bf16 %v2807_v47, %v2804_v46 }
 0x6d3   : > { %v2841_v53 = vpack.c.bf16 %v2799_v51, %v2796_v50 }
 0x6d5   : > { %4303 = vmatprep.mubr.bf16.mxu1 %v2841_v53 }
 0x6d6   : > { %4304 = vmatmul.mubr.bf16.gmra.mrb[140].mxu1 %v2842_v52 }
 0x739   : > { %v4277_v55 = vpop.f32.mrb[112].mxu1 }
 0x73a   : > { %v2940_v56 = vadd.f32 %v4277_v55, %v6115_v48  ;;  %v2931_v54 = vpop.f32.mrb[113].mxu1 }
 0x73b   : > { %v2932_v58 = vadd.f32 %v6115_v48, %v2931_v54  ;;  %v4278_v57 = vpop.f32.mrb[114].mxu1 }
 0x73c   : > { %v2943_v59 = vadd.f32 %v4278_v57, %v6115_v48  ;;  %v2934_v37 = vpop.f32.mrb[115].mxu1  ;;  %v3060_v6 = vmax.f32 %v2940_v56, 0.0 }
 0x73d   : > { %v2935_v9 = vadd.f32 %v6115_v48, %v2934_v37  ;;  %v3058_v62 = vmax.f32 %v2932_v58, 0.0 }
 0x73e   : > { %v3061_v34 = vmax.f32 %v2943_v59, 0.0 }
 0x73f   : > { %v3059_v63 = vmax.f32 %v2935_v9, 0.0 }
 0x740   : > { %v3108_v0 = vpack.c.bf16 %v3061_v34, %v3060_v6 }
 0x741   : > { %v3107_v1 = vpack.c.bf16 %v3059_v63, %v3058_v62 }
 0x743   : > { %4323 = vmatprep.mubr.bf16.mxu0 %v3107_v1 }
 0x744   : > { %4324 = vmatmul.mubr.bf16.vlgmr.msra.gmra.mrb[112].mxu0 %v3108_v0 }
 0x749   : > { %v4281_v2 = vpop.f32.mrb[116].mxu1 }
 0x74a   : > { %v2956_v3 = vadd.f32 %v4281_v2, %v6115_v48  ;;  %v2947_v5 = vpop.f32.mrb[117].mxu1 }
 0x74b   : > { %v2948_v7 = vadd.f32 %v6115_v48, %v2947_v5  ;;  %v4282_v8 = vpop.f32.mrb[118].mxu1 }
 0x74c   : > { %v2959_v10 = vadd.f32 %v4282_v8, %v6115_v48  ;;  %v2950_v11 = vpop.f32.mrb[119].mxu1  ;;  %v3064_v60 = vmax.f32 %v2956_v3, 0.0 }
 0x74d   : > { %v2951_v12 = vadd.f32 %v6115_v48, %v2950_v11  ;;  %v3062_v29 = vmax.f32 %v2948_v7, 0.0 }
 0x74e   : > { %v3065_v4 = vmax.f32 %v2959_v10, 0.0 }
 0x74f   : > { %v3063_v61 = vmax.f32 %v2951_v12, 0.0 }
 0x750   : > { %v3110_v13 = vpack.c.bf16 %v3065_v4, %v3064_v60 }
 0x751   : > { %v3109_v16 = vpack.c.bf16 %v3063_v61, %v3062_v29 }
 0x753   : > { %4327 = vmatprep.mubr.bf16.mxu0 %v3109_v16 }
 0x754   : > { %4328 = vmatmul.mubr.bf16.gmra.mrb[116].mxu0 %v3110_v13 }
 0x759   : > { %v4285_v14 = vpop.f32.mrb[120].mxu1 }
 0x75a   : > { %v2972_v15 = vadd.f32 %v4285_v14, %v6115_v48  ;;  %v2963_v17 = vpop.f32.mrb[121].mxu1 }
 0x75b   : > { %v2964_v18 = vadd.f32 %v6115_v48, %v2963_v17  ;;  %v4286_v19 = vpop.f32.mrb[122].mxu1 }
 0x75c   : > { %v2975_v20 = vadd.f32 %v4286_v19, %v6115_v48  ;;  %v2966_v21 = vpop.f32.mrb[123].mxu1  ;;  %v3068_v23 = vmax.f32 %v2972_v15, 0.0 }
 0x75d   : > { %v2967_v22 = vadd.f32 %v6115_v48, %v2966_v21  ;;  %v3066_v26 = vmax.f32 %v2964_v18, 0.0 }
 0x75e   : > { %v3069_v24 = vmax.f32 %v2975_v20, 0.0 }
 0x75f   : > { %v3067_v27 = vmax.f32 %v2967_v22, 0.0 }
 0x760   : > { %v3112_v30 = vpack.c.bf16 %v3069_v24, %v3068_v23 }
 0x761   : > { %v3111_v25 = vpack.c.bf16 %v3067_v27, %v3066_v26 }
 0x763   : > { %4331 = vmatprep.mubr.bf16.mxu0 %v3111_v25 }
 0x764   : > { %4332 = vmatmul.mubr.bf16.gmra.mrb[120].mxu0 %v3112_v30 }
 0x769   : > { %v4289_v31 = vpop.f32.mrb[124].mxu1 }
 0x76a   : > { %v2988_v33 = vadd.f32 %v4289_v31, %v6115_v48  ;;  %v2979_v32 = vpop.f32.mrb[125].mxu1 }
 0x76b   : > { %v2980_v28 = vadd.f32 %v6115_v48, %v2979_v32  ;;  %v4290_v39 = vpop.f32.mrb[126].mxu1 }
 0x76c   : > { %v2991_v35 = vadd.f32 %v4290_v39, %v6115_v48  ;;  %v2982_v38 = vpop.f32.mrb[127].mxu1  ;;  %v3072_v40 = vmax.f32 %v2988_v33, 0.0 }
 0x76d   : > { %v2983_v36 = vadd.f32 %v6115_v48, %v2982_v38  ;;  %v3070_v42 = vmax.f32 %v2980_v28, 0.0 }
 0x76e   : > { %v3073_v41 = vmax.f32 %v2991_v35, 0.0 }
 0x76f   : > { %v3071_v43 = vmax.f32 %v2983_v36, 0.0  ;;  %v6155_v36 = vld [vmem:[%s6363_s30] ss:$0 sm:$0xff] }
 0x770   : > { %v3114_v44 = vpack.c.bf16 %v3073_v41, %v3072_v40 }
 0x771   : > { %v3113_v45 = vpack.c.bf16 %v3071_v43, %v3070_v42 }
 0x773   : > { %4335 = vmatprep.mubr.bf16.mxu0 %v3113_v45 }
 0x774   : > { %4336 = vmatmul.mubr.bf16.gmra.mrb[124].mxu0 %v3114_v44 }
 0x779   : > { %v4293_v46 = vpop.f32.mrb[128].mxu1 }
 0x77a   : > { %v3004_v47 = vadd.f32 %v4293_v46, %v6115_v48  ;;  %v2995_v49 = vpop.f32.mrb[129].mxu1 }
 0x77b   : > { %v2996_v50 = vadd.f32 %v6115_v48, %v2995_v49  ;;  %v4294_v51 = vpop.f32.mrb[130].mxu1 }
 0x77c   : > { %v3007_v52 = vadd.f32 %v4294_v51, %v6115_v48  ;;  %v2998_v53 = vpop.f32.mrb[131].mxu1  ;;  %v3076_v56 = vmax.f32 %v3004_v47, 0.0 }
 0x77d   : > { %v2999_v55 = vadd.f32 %v6115_v48, %v2998_v53  ;;  %v3074_v58 = vmax.f32 %v2996_v50, 0.0 }
 0x77e   : > { %v3077_v54 = vmax.f32 %v3007_v52, 0.0 }
 0x77f   : > { %v3075_v57 = vmax.f32 %v2999_v55, 0.0 }
 0x780   : > { %v3116_v59 = vpack.c.bf16 %v3077_v54, %v3076_v56 }
 0x781   : > { %v3115_v37 = vpack.c.bf16 %v3075_v57, %v3074_v58 }
 0x783   : > { %4339 = vmatprep.mubr.bf16.mxu0 %v3115_v37 }
 0x784   : > { %4340 = vmatmul.mubr.bf16.gmra.mrb[128].mxu0 %v3116_v59 }
 0x789   : > { %v4297_v9 = vpop.f32.mrb[132].mxu1 }
 0x78a   : > { %v3020_v6 = vadd.f32 %v4297_v9, %v6115_v48  ;;  %v3011_v34 = vpop.f32.mrb[133].mxu1 }
 0x78b   : > { %v3012_v62 = vadd.f32 %v6115_v48, %v3011_v34  ;;  %v4298_v63 = vpop.f32.mrb[134].mxu1 }
 0x78c   : > { %v3023_v0 = vadd.f32 %v4298_v63, %v6115_v48  ;;  %v3014_v1 = vpop.f32.mrb[135].mxu1  ;;  %v3080_v3 = vmax.f32 %v3020_v6, 0.0 }
 0x78d   : > { %v3015_v2 = vadd.f32 %v6115_v48, %v3014_v1  ;;  %v3078_v7 = vmax.f32 %v3012_v62, 0.0 }
 0x78e   : > { %v3081_v5 = vmax.f32 %v3023_v0, 0.0 }
 0x78f   : > { %v3079_v8 = vmax.f32 %v3015_v2, 0.0 }
 0x790   : > { %v3118_v10 = vpack.c.bf16 %v3081_v5, %v3080_v3 }
 0x791   : > { %v3117_v11 = vpack.c.bf16 %v3079_v8, %v3078_v7 }
 0x793   : > { %4343 = vmatprep.mubr.bf16.mxu0 %v3117_v11 }
 0x794   : > { %4344 = vmatmul.mubr.bf16.gmra.mrb[132].mxu0 %v3118_v10 }
 0x799   : > { %v4301_v12 = vpop.f32.mrb[136].mxu1 }
 0x79a   : > { %v3036_v60 = vadd.f32 %v4301_v12, %v6115_v48  ;;  %v3027_v4 = vpop.f32.mrb[137].mxu1 }
 0x79b   : > { %v3028_v29 = vadd.f32 %v6115_v48, %v3027_v4  ;;  %v4302_v61 = vpop.f32.mrb[138].mxu1 }
 0x79c   : > { %v3039_v13 = vadd.f32 %v4302_v61, %v6115_v48  ;;  %v3030_v16 = vpop.f32.mrb[139].mxu1  ;;  %v3084_v15 = vmax.f32 %v3036_v60, 0.0 }
 0x79d   : > { %v3031_v14 = vadd.f32 %v6115_v48, %v3030_v16  ;;  %v3082_v18 = vmax.f32 %v3028_v29, 0.0 }
 0x79e   : > { %v3085_v17 = vmax.f32 %v3039_v13, 0.0 }
 0x79f   : > { %v3083_v19 = vmax.f32 %v3031_v14, 0.0 }
 0x7a0   : > { %v3120_v20 = vpack.c.bf16 %v3085_v17, %v3084_v15 }
 0x7a1   : > { %v3119_v21 = vpack.c.bf16 %v3083_v19, %v3082_v18 }
 0x7a3   : > { %4347 = vmatprep.mubr.bf16.mxu0 %v3119_v21 }
 0x7a4   : > { %4348 = vmatmul.mubr.bf16.gmra.mrb[136].mxu0 %v3120_v20 }
 0x7a9   : > { %v4305_v22 = vpop.f32.mrb[140].mxu1 }
 0x7aa   : > { %v3052_v23 = vadd.f32 %v4305_v22, %v6115_v48  ;;  %v3043_v24 = vpop.f32.mrb[141].mxu1 }
 0x7ab   : > { %v3044_v26 = vadd.f32 %v6115_v48, %v3043_v24  ;;  %v4306_v27 = vpop.f32.mrb[142].mxu1 }
 0x7ac   : > { %v3055_v30 = vadd.f32 %v4306_v27, %v6115_v48  ;;  %v3046_v25 = vpop.f32.mrb[143].mxu1  ;;  %v3088_v33 = vmax.f32 %v3052_v23, 0.0 }
 0x7ad   : > { %v3047_v31 = vadd.f32 %v6115_v48, %v3046_v25  ;;  %v3086_v28 = vmax.f32 %v3044_v26, 0.0 }
 0x7ae   : > { %v3089_v32 = vmax.f32 %v3055_v30, 0.0 }
 0x7af   : > { %v3087_v39 = vmax.f32 %v3047_v31, 0.0 }
 0x7b0   : > { %v3122_v35 = vpack.c.bf16 %v3089_v32, %v3088_v33 }
 0x7b1   : > { %v3121_v38 = vpack.c.bf16 %v3087_v39, %v3086_v28 }
 0x7b3   : > { %4351 = vmatprep.mubr.bf16.mxu0 %v3121_v38 }
 0x7b4   : > { %4352 = vmatmul.mubr.bf16.gmra.mrb[140].mxu0 %v3122_v35 }
 0x817   : > { %v4325_v40 = vpop.f32.mrb[112].mxu0 }
 0x818   : > { %v3220_v41 = vadd.f32 %v4325_v40, %v6155_v36  ;;  %v3211_v48 = vpop.f32.mrb[113].mxu0 }
 0x819   : > { %v3212_v42 = vadd.f32 %v6155_v36, %v3211_v48  ;;  %v4326_v43 = vpop.f32.mrb[114].mxu0 }
 0x81a   : > { %3340 = vst [vmem:[%s6159_s15 + $0x10] sm:$0xff] %v3220_v41  ;;  %v3223_v44 = vadd.f32 %v4326_v43, %v6155_v36  ;;  %v3214_v45 = vpop.f32.mrb[115].mxu0 }
 0x81b   : > { %3338 = vst [vmem:[%s6159_s15] sm:$0xff] %v3212_v42  ;;  %v3215_v46 = vadd.f32 %v6155_v36, %v3214_v45 }
 0x81c   : > { %3341 = vst [vmem:[%s6159_s15 + $0x18] sm:$0xff] %v3223_v44 }
 0x81d   : > { %3339 = vst [vmem:[%s6159_s15 + $0x8] sm:$0xff] %v3215_v46 }
 0x827   : > { %v4329_v47 = vpop.f32.mrb[116].mxu0 }
 0x828   : > { %v3236_v49 = vadd.f32 %v4329_v47, %v6155_v36  ;;  %v3227_v50 = vpop.f32.mrb[117].mxu0 }
 0x829   : > { %v3228_v51 = vadd.f32 %v6155_v36, %v3227_v50  ;;  %v4330_v52 = vpop.f32.mrb[118].mxu0 }
 0x82a   : > { %3344 = vst [vmem:[%s6159_s15 + $0x30] sm:$0xff] %v3236_v49  ;;  %v3239_v53 = vadd.f32 %v4330_v52, %v6155_v36  ;;  %v3230_v55 = vpop.f32.mrb[119].mxu0 }
 0x82b   : > { %3342 = vst [vmem:[%s6159_s15 + $0x20] sm:$0xff] %v3228_v51  ;;  %v3231_v56 = vadd.f32 %v6155_v36, %v3230_v55 }
 0x82c   : > { %3345 = vst [vmem:[%s6159_s15 + $0x38] sm:$0xff] %v3239_v53 }
 0x82d   : > { %3343 = vst [vmem:[%s6159_s15 + $0x28] sm:$0xff] %v3231_v56 }
 0x837   : > { %v4333_v54 = vpop.f32.mrb[120].mxu0 }
 0x838   : > { %v3252_v58 = vadd.f32 %v4333_v54, %v6155_v36  ;;  %v3243_v57 = vpop.f32.mrb[121].mxu0 }
 0x839   : > { %v3244_v59 = vadd.f32 %v6155_v36, %v3243_v57  ;;  %v4334_v37 = vpop.f32.mrb[122].mxu0 }
 0x83a   : > { %3348 = vst [vmem:[%s6159_s15 + $0x50] sm:$0xff] %v3252_v58  ;;  %v3255_v9 = vadd.f32 %v4334_v37, %v6155_v36  ;;  %v3246_v6 = vpop.f32.mrb[123].mxu0 }
 0x83b   : > { %3346 = vst [vmem:[%s6159_s15 + $0x40] sm:$0xff] %v3244_v59  ;;  %v3247_v34 = vadd.f32 %v6155_v36, %v3246_v6 }
 0x83c   : > { %3349 = vst [vmem:[%s6159_s15 + $0x58] sm:$0xff] %v3255_v9 }
 0x83d   : > { %3347 = vst [vmem:[%s6159_s15 + $0x48] sm:$0xff] %v3247_v34 }
 0x847   : > { %v4337_v62 = vpop.f32.mrb[124].mxu0 }
 0x848   : > { %v3268_v63 = vadd.f32 %v4337_v62, %v6155_v36  ;;  %v3259_v0 = vpop.f32.mrb[125].mxu0 }
 0x849   : > { %v3260_v1 = vadd.f32 %v6155_v36, %v3259_v0  ;;  %v4338_v2 = vpop.f32.mrb[126].mxu0 }
 0x84a   : > { %3352 = vst [vmem:[%s6159_s15 + $0x70] sm:$0xff] %v3268_v63  ;;  %v3271_v3 = vadd.f32 %v4338_v2, %v6155_v36  ;;  %v3262_v5 = vpop.f32.mrb[127].mxu0 }
 0x84b   : > { %3350 = vst [vmem:[%s6159_s15 + $0x60] sm:$0xff] %v3260_v1  ;;  %v3263_v7 = vadd.f32 %v6155_v36, %v3262_v5 }
 0x84c   : > { %3353 = vst [vmem:[%s6159_s15 + $0x78] sm:$0xff] %v3271_v3 }
 0x84d   : > { %3351 = vst [vmem:[%s6159_s15 + $0x68] sm:$0xff] %v3263_v7 }
 0x857   : > { %v4341_v8 = vpop.f32.mrb[128].mxu0 }
 0x858   : > { %v3284_v10 = vadd.f32 %v4341_v8, %v6155_v36  ;;  %v3275_v11 = vpop.f32.mrb[129].mxu0 }
 0x859   : > { %v3276_v12 = vadd.f32 %v6155_v36, %v3275_v11  ;;  %v4342_v60 = vpop.f32.mrb[130].mxu0 }
 0x85a   : > { %3356 = vst [vmem:[%s6159_s15 + $0x90] sm:$0xff] %v3284_v10  ;;  %v3287_v4 = vadd.f32 %v4342_v60, %v6155_v36  ;;  %v3278_v29 = vpop.f32.mrb[131].mxu0 }
 0x85b   : > { %3354 = vst [vmem:[%s6159_s15 + $0x80] sm:$0xff] %v3276_v12  ;;  %v3279_v61 = vadd.f32 %v6155_v36, %v3278_v29 }
 0x85c   : > { %3357 = vst [vmem:[%s6159_s15 + $0x98] sm:$0xff] %v3287_v4 }
 0x85d   : > { %3355 = vst [vmem:[%s6159_s15 + $0x88] sm:$0xff] %v3279_v61 }
 0x867   : > { %v4345_v13 = vpop.f32.mrb[132].mxu0 }
 0x868   : > { %v3300_v16 = vadd.f32 %v4345_v13, %v6155_v36  ;;  %v3291_v14 = vpop.f32.mrb[133].mxu0 }
 0x869   : > { %v3292_v15 = vadd.f32 %v6155_v36, %v3291_v14  ;;  %v4346_v17 = vpop.f32.mrb[134].mxu0 }
 0x86a   : > { %3360 = vst [vmem:[%s6159_s15 + $0xb0] sm:$0xff] %v3300_v16  ;;  %v3303_v18 = vadd.f32 %v4346_v17, %v6155_v36  ;;  %v3294_v19 = vpop.f32.mrb[135].mxu0 }
 0x86b   : > { %3358 = vst [vmem:[%s6159_s15 + $0xa0] sm:$0xff] %v3292_v15  ;;  %v3295_v20 = vadd.f32 %v6155_v36, %v3294_v19 }
 0x86c   : > { %3361 = vst [vmem:[%s6159_s15 + $0xb8] sm:$0xff] %v3303_v18 }
 0x86d   : > { %3359 = vst [vmem:[%s6159_s15 + $0xa8] sm:$0xff] %v3295_v20 }
 0x877   : > { %v4349_v21 = vpop.f32.mrb[136].mxu0 }
 0x878   : > { %v3316_v22 = vadd.f32 %v4349_v21, %v6155_v36  ;;  %v3307_v23 = vpop.f32.mrb[137].mxu0 }
 0x879   : > { %v3308_v24 = vadd.f32 %v6155_v36, %v3307_v23  ;;  %v4350_v26 = vpop.f32.mrb[138].mxu0 }
 0x87a   : > { %3364 = vst [vmem:[%s6159_s15 + $0xd0] sm:$0xff] %v3316_v22  ;;  %v3319_v27 = vadd.f32 %v4350_v26, %v6155_v36  ;;  %v3310_v30 = vpop.f32.mrb[139].mxu0 }
 0x87b   : > { %3362 = vst [vmem:[%s6159_s15 + $0xc0] sm:$0xff] %v3308_v24  ;;  %v3311_v25 = vadd.f32 %v6155_v36, %v3310_v30 }
 0x87c   : > { %3365 = vst [vmem:[%s6159_s15 + $0xd8] sm:$0xff] %v3319_v27 }
 0x87d   : > { %3363 = vst [vmem:[%s6159_s15 + $0xc8] sm:$0xff] %v3311_v25 }
 0x887   : > { %v4353_v31 = vpop.f32.mrb[140].mxu0 }
 0x888   : > { %v3332_v33 = vadd.f32 %v4353_v31, %v6155_v36  ;;  %v3323_v32 = vpop.f32.mrb[141].mxu0 }
 0x889   : > { %v3324_v28 = vadd.f32 %v6155_v36, %v3323_v32  ;;  %v4354_v39 = vpop.f32.mrb[142].mxu0 }
 0x88a   : > { %3368 = vst [vmem:[%s6159_s15 + $0xf0] sm:$0xff] %v3332_v33  ;;  %v3335_v35 = vadd.f32 %v4354_v39, %v6155_v36  ;;  %v3326_v38 = vpop.f32.mrb[143].mxu0 }
 0x88b   : > { %3366 = vst [vmem:[%s6159_s15 + $0xe0] sm:$0xff] %v3324_v28  ;;  %v3327_v40 = vadd.f32 %v6155_v36, %v3326_v38 }
 0x88c   : > { %3369 = vst [vmem:[%s6159_s15 + $0xf8] sm:$0xff] %v3335_v35 }
 0x88d   : > { %3367 = vst [vmem:[%s6159_s15 + $0xe8] sm:$0xff] %v3327_v40 }
 0x88e   : > { %4880 = shalt.err (!%p4877_p13)
}
 0x88f   : > { %s4881_s23 = scalar_lea.hbm %s6224_s24, 4096  ;;  %s4885_s4 = scalar_lea.hbm %s6365_s28, 8192 }
 0x890   : > { %p4882_p12 = scmp.ne.s32.totalorder %s6224_s24, %s4881_s23  ;;  %p4886_p3 = scmp.lt.u32.totalorder %s6224_s24, %s6365_s28 }
 0x891   : > { %p4887_p4 = scmp.lt.u32.totalorder %s4885_s4, %s4881_s23  ;;  %p4889_p8 = scmp.lt.u32.totalorder %s4881_s23, %s6224_s24 }
 0x892   : > { %p4883_p1 = pnand %p4882_p12, %p6366_p11 }
 0x893   : > { %p4888_p7 = por %p4887_p4, %p4886_p3 }
 0x894   : > { %p4884_p2 = pneg %p4883_p1 }
 0x895   : > { %p4890_p5 = por %p4889_p8, %p4888_p7 }
 0x897   : > { %p4891_p0 = pnand %p4890_p5, %p4884_p2 }
 0x899   : > { %4894 = shalt.err (!%p4891_p0)
}
 0x89a   : > { %s4966_s0 = smov 128   ;;  %s4967_s2 = smov 8  }
 0x89b   : > { %4403 = dma.vmem_to_hbm [thread:$0]  (%p6366_p11), %s6226_s18, 4096, %s6224_s24, %s6234_s3, %s4966_s0, %s4966_s0, %s4967_s2  }
 0x89c PF: > { %s6367_s8 = sld [smem:[#allocation27_spill]]  ;;  %s6368_s25 = sld [smem:[#allocation24_spill]] }
 0x89d   : > { %s6369_s5 = sld [smem:[#allocation31_spill]] }
 0x8a2   : > { %p4450_p6 = scmp.ge.s32.totalorder %s6367_s8, 2  ;;  %s3522_s26 = sand.u32 1, %s6368_s25  }
 0x8a3   : > { %p6370_p9 = scmp.ne.s32.totalorder %s6369_s5, 0  ;;  %s3523_s29 = scalar_lea.sflag [#allocation5], %s3522_s26 }
 0x8a5   : > { %p4431_p10 = pnand %p4450_p6, %p6370_p9 }
 0x8a7   : > { %4932 = dma.done.wait (!%p4431_p10), %s3523_s29, 4096  }
 0x8a8   : > { %4934 = vsyncadd (!%p4431_p10), %s3523_s29, 4294963200  ;;  %s6371_s27 = sld [smem:[#allocation28_spill]]  ;;  %s6372_s2 = sld [smem:[#allocation25_spill]] }
 0x8a9   : > { %s6373_s25 = sld [smem:[#allocation26_spill]]  ;;  %s6374_s26 = sld [smem:[#allocation29_spill]] }
 0x8ae   : > { %p37_p13 = scmp.ge.s32.totalorder %s6371_s27, 4  }
 0x8b0   :  { %39 = sbr.rel (!%p37_p13) target bundleno = 19 (0x13), region = 199 }
 0x8b7   :  { %3552 = vsyncpa [#allocation4], 1 }
 0x8b8   :  { %3554 = vsyncpa [#allocation4 + $0x1], 1 }
 0x8b9   :  { %3555 = vsyncpa [#allocation7], 1 }
 0x8ba   :  { %3556 = vsyncpa [#allocation10], 1 }
 0x8bb   :  { %3557 = vsyncpa [#allocation13], 1 }
 0x8bc   :  { %3558 = vsyncpa [#allocation16], 1 }
 0x8bd   :  { %3559 = vsyncpa [#allocation5], 1 }
 0x8be   :  { %3561 = vsyncpa [#allocation5 + $0x1], 1 }

</bundles_post_ra>
